<compile_context>
chip_gen: v5e
topology: v5e:2x2
jax: 0.10.0
libtpu: 0.0.40
codegen_flags: <defaults>
</compile_context>

<pallas_src>
import jax
import jax.numpy as jnp
from jax.experimental import pallas as pl
from jax.experimental.pallas import tpu as pltpu

LRELU_SLOPE = 0.01
IN_EPS = 1e-5
# MXU operand dtype (accumulation is always f32). bf16 is native on v6e/v7x and
# halves operand bytes; set to jnp.float32 for bit-closer parity with PyTorch.
MXU_DTYPE = jnp.bfloat16
ENC_STRIDES = (1, 2, 2)


# ----------------------------------------------------------------------------
# Generic fused conv kernel (one grid step == one batch image):
#   acc = sum_src sum_tap  W[src,tap] @ X_src[:, off_tap : off_tap + Lo]
#   y   = [LeakyReLU]( [ +residual after ] InstanceNorm(acc + bias) )
# All slabs are 2-D: channels on sublanes, flattened spatial on lanes.
# ----------------------------------------------------------------------------
def _make_fused_conv_kernel(*, n_src, taps, cout, lo, has_bias, do_norm,
                            has_mask, act_slope, has_res, final_slope, eps,
                            inv_count):
    def kernel(*refs):
        i = 0
        x_refs = refs[i:i + n_src]; i += n_src
        w_refs = refs[i:i + n_src]; i += n_src
        bias_ref = gamma_ref = beta_ref = mask_ref = res_ref = None
        if has_bias:
            bias_ref = refs[i]; i += 1
        if do_norm:
            gamma_ref = refs[i]; beta_ref = refs[i + 1]; i += 2
        if has_mask:
            mask_ref = refs[i]; i += 1
        if has_res:
            res_ref = refs[i]; i += 1
        o_ref = refs[i]

        # --- tap-accumulated MXU matmuls (bf16 operands, f32 accumulation) ---
        acc = None
        for s in range(n_src):
            x_full = x_refs[s][...].astype(MXU_DTYPE)        # (Cin_s, Lin)
            w_full = w_refs[s][...].astype(MXU_DTYPE)        # (T*Cout, Cin_s)
            for t, off in enumerate(taps):
                w_t = w_full[t * cout:(t + 1) * cout, :]     # (Cout, Cin_s)
                x_t = x_full[:, off:off + lo]                # (Cin_s, Lo)
                part = jnp.dot(w_t, x_t, preferred_element_type=jnp.float32)
                acc = part if acc is None else acc + part

        if has_bias:
            acc = acc + bias_ref[...]                        # (Cout,1) bcast

        # --- fused InstanceNorm (mask hides the garbage ring columns) -------
        if do_norm:
            mask = mask_ref[...] if has_mask else None       # (1, Lo) 0/1
            masked = acc if mask is None else acc * mask
            mean = jnp.sum(masked, axis=-1, keepdims=True) * inv_count
            diff = acc - mean
            dm = diff if mask is None else diff * mask
            var = jnp.sum(dm * dm, axis=-1, keepdims=True) * inv_count
            y = diff * jax.lax.rsqrt(var + eps)
            y = y * gamma_ref[...] + beta_ref[...]
        else:
            y = acc

        if act_slope is not None:                            # conv nonlin
            y = jnp.where(y >= 0, y, y * act_slope)
        if has_res:                                          # residual add
            y = y + res_ref[...]
        if final_slope is not None:                          # block nonlin2
            y = jnp.where(y >= 0, y, y * final_slope)

        o_ref[...] = y

    return kernel


def fused_conv(sources, weights, *, kh, kw, hin, pitch, bias=None, gamma=None,
               beta=None, act_slope=None, residual=None, final_act_slope=None,
               eps=IN_EPS):
    """Fused conv (+bias / InstanceNorm / LeakyReLU / residual).

    sources : list of (N, Cin_s, Lin) flattened zero-padded slabs (same
              geometry), Lin = (hin+1)*pitch (one extra zero row appended).
    weights : list of (kh*kw*Cout, Cin_s) tap-major weight matrices.
    residual: optional (N, Cout, hout*pitch) slab in the output layout.
    Returns (N, Cout, hout, wout) float32.
    """
    n_src = len(sources)
    N = sources[0].shape[0]
    T = kh * kw
    cout = weights[0].shape[0] // T
    hout = hin - kh + 1
    wout = pitch - kw + 1
    lo = hout * pitch
    taps = tuple(dh * pitch + dw for dh in range(kh) for dw in range(kw))
    do_norm = gamma is not None
    need_mask = do_norm and (wout != pitch)

    kernel = _make_fused_conv_kernel(
        n_src=n_src, taps=taps, cout=cout, lo=lo,
        has_bias=bias is not None, do_norm=do_norm, has_mask=need_mask,
        act_slope=act_slope, has_res=residual is not None,
        final_slope=final_act_slope, eps=eps,
        inv_count=1.0 / float(hout * wout))

    in_specs, operands = [], []
    for src in sources:
        _, c_s, l_s = src.shape
        in_specs.append(pl.BlockSpec((None, c_s, l_s), lambda n: (n, 0, 0)))
        operands.append(src)
    for w in weights:
        in_specs.append(pl.BlockSpec(w.shape, lambda n: (0, 0)))
        operands.append(w.astype(jnp.float32))
    if bias is not None:
        in_specs.append(pl.BlockSpec((cout, 1), lambda n: (0, 0)))
        operands.append(bias.reshape(cout, 1).astype(jnp.float32))
    if do_norm:
        in_specs.append(pl.BlockSpec((cout, 1), lambda n: (0, 0)))
        operands.append(gamma.reshape(cout, 1).astype(jnp.float32))
        in_specs.append(pl.BlockSpec((cout, 1), lambda n: (0, 0)))
        operands.append(beta.reshape(cout, 1).astype(jnp.float32))
    if need_mask:
        row_mask = (jnp.arange(pitch) < wout).astype(jnp.float32)
        mask = jnp.tile(row_mask, hout).reshape(1, lo)
        in_specs.append(pl.BlockSpec((1, lo), lambda n: (0, 0)))
        operands.append(mask)
    if residual is not None:
        in_specs.append(pl.BlockSpec((None, cout, lo), lambda n: (n, 0, 0)))
        operands.append(residual)

    out = pl.pallas_call(
        kernel,
        out_shape=jax.ShapeDtypeStruct((N, cout, lo), jnp.float32),
        grid=(N,),
        in_specs=in_specs,
        out_specs=pl.BlockSpec((None, cout, lo), lambda n: (n, 0, 0)),
        compiler_params=pltpu.CompilerParams(
            # one image per grid step, independent -> megacore-parallel
            dimension_semantics=("parallel",),
            # explicit scoped-VMEM budget (fits v7x's 64 MiB physical VMEM)
            vmem_limit_bytes=64 * 1024 * 1024),
    )(*operands)

    out = out.reshape(N, cout, hout, pitch)
    if wout != pitch:
        out = out[:, :, :, :wout]           # drop the garbage ring columns
    return out


# ----------------------------------------------------------------------------
# JAX-side layout glue (cheap pads / reshapes only - no im2col, no concat)
# ----------------------------------------------------------------------------
def _pad_flat(x, ph, pw):
    """(N,C,H,W) -> (N,C,(H+2ph+1)*(W+2pw)) zero-padded, row-flattened slab.
    One extra zero row is appended so shifted tap reads stay in bounds."""
    N, C, H, W = x.shape
    hin, pitch = H + 2 * ph, W + 2 * pw
    xp = jnp.pad(x, ((0, 0), (0, 0), (ph, ph + 1), (pw, pw)))
    return xp.reshape(N, C, (hin + 1) * pitch), hin, pitch


def _space_to_depth2(x):
    """(N,C,H,W) (even H,W) -> (N,4C,H//2,W//2); phase order (a*2+b) outer."""
    return jnp.concatenate(
        [x[:, :, 0::2, 0::2], x[:, :, 0::2, 1::2],
         x[:, :, 1::2, 0::2], x[:, :, 1::2, 1::2]], axis=1)


def _res_layout(r, pitch):
    """Residual (N,C,h,w) -> (N,C,h*pitch) matching the conv output slab."""
    N, C, h, w = r.shape
    if pitch != w:
        r = jnp.pad(r, ((0, 0), (0, 0), (0, 0), (0, pitch - w)))
    return r.reshape(N, C, h * pitch)


def _w_taps(w):
    """(Cout,Cin,kh,kw) -> (kh*kw*Cout, Cin), tap-major rows."""
    cout, cin, kh, kw = w.shape
    return w.transpose(2, 3, 0, 1).reshape(kh * kw * cout, cin)


def _w_stride2(w):
    """Stride-2 3x3 conv rewritten as a 2x2-tap stride-1 conv over the 4-phase
    (space-to-depth) input: (Cout,Cin,3,3) -> (4*Cout, 4*Cin)."""
    cout, cin = w.shape[:2]
    wq = jnp.zeros((2, 2, cout, 2, 2, cin), w.dtype)      # [qh,qw,co,a,b,ci]
    for qh in range(2):
        for qw in range(2):
            for a in range(2):
                for b in range(2):
                    dh, dw = 2 * qh + a, 2 * qw + b
                    if dh < 3 and dw < 3:
                        wq = wq.at[qh, qw, :, a, b, :].set(w[:, :, dh, dw])
    return wq.reshape(4 * cout, 4 * cin)


def _w_pool_1x1(w):
    """AvgPool2x2(s2) + Conv1x1 fused into one 4-phase 1x1 conv:
    (Cout,Cin,1,1) -> (Cout, 4*Cin)."""
    cout, cin = w.shape[:2]
    w2 = w.reshape(cout, cin)
    return 0.25 * jnp.concatenate([w2, w2, w2, w2], axis=1)


def _w_transp(wt):
    """ConvTranspose2d(k=2,s=2) weight (Cin,Cout,2,2) -> (4*Cout, Cin);
    output channel order co*4 + a*2 + b (a,b = output sub-pixel phase)."""
    cin, cout = wt.shape[:2]
    return wt.transpose(1, 2, 3, 0).reshape(4 * cout, cin)


# ----------------------------------------------------------------------------
# Network layers (each convolution is exactly one fused pallas_call)
# ----------------------------------------------------------------------------
def conv3x3_s1(srcs_ws, gamma, beta, *, act, residual=None, final_act=False):
    """3x3 stride-1 'same' conv over (possibly several, concat-equivalent)
    sources + IN (+LeakyReLU) (+fused residual add -> LeakyReLU)."""
    flats, hin, pitch = [], None, None
    for x, _ in srcs_ws:
        f, hin, pitch = _pad_flat(x, 1, 1)
        flats.append(f)
    weights = [_w_taps(w) for _, w in srcs_ws]
    res = None if residual is None else _res_layout(residual, pitch)
    return fused_conv(flats, weights, kh=3, kw=3, hin=hin, pitch=pitch,
                      gamma=gamma, beta=beta,
                      act_slope=LRELU_SLOPE if act else None,
                      residual=res,
                      final_act_slope=LRELU_SLOPE if final_act else None)


def conv3x3_s2(x, w, gamma, beta):
    """3x3 stride-2 conv + IN + LeakyReLU via space-to-depth (no im2col)."""
    xp = jnp.pad(x, ((0, 0), (0, 0), (1, 1), (1, 1)))
    flat, hin, pitch = _pad_flat(_space_to_depth2(xp), 0, 0)
    return fused_conv([flat], [_w_stride2(w)], kh=2, kw=2, hin=hin, pitch=pitch,
                      gamma=gamma, beta=beta, act_slope=LRELU_SLOPE)


def skip_pool_conv1x1(x, w, gamma, beta):
    """BasicBlockD downsample skip: AvgPool2x2(s2) + 1x1 conv + IN, one call."""
    flat, hin, pitch = _pad_flat(_space_to_depth2(x), 0, 0)
    return fused_conv([flat], [_w_pool_1x1(w)], kh=1, kw=1, hin=hin, pitch=pitch,
                      gamma=gamma, beta=beta)


def conv1x1(srcs_ws, *, gamma=None, beta=None, bias=None):
    """1x1 conv over (possibly several) sources, optional IN / bias."""
    flats, hin, pitch = [], None, None
    for x, _ in srcs_ws:
        f, hin, pitch = _pad_flat(x, 0, 0)
        flats.append(f)
    weights = [w.reshape(w.shape[0], w.shape[1]) for _, w in srcs_ws]
    return fused_conv(flats, weights, kh=1, kw=1, hin=hin, pitch=pitch,
                      gamma=gamma, beta=beta, bias=bias)


def transp_conv2x2(x, wt):
    """ConvTranspose2d(k=2, s=2, bias=False): one fused matmul produces the 4
    sub-pixel phases; they are interleaved to (2H, 2W) in JAX."""
    N, C, H, W = x.shape
    cout = wt.shape[1]
    flat, hin, pitch = _pad_flat(x, 0, 0)
    y = fused_conv([flat], [_w_transp(wt)], kh=1, kw=1, hin=hin, pitch=pitch)
    # TODO(synk): this x2 interleave is still a JAX-side relayout; it could be
    # folded into the consumer conv via the same phase decomposition.
    y = y.reshape(N, cout, 2, 2, H, W).transpose(0, 1, 4, 2, 5, 3)
    return y.reshape(N, cout, 2 * H, 2 * W)


# ----------------------------------------------------------------------------
# BasicBlockD and full ResidualUNet forward
# ----------------------------------------------------------------------------
def basic_block_d(sources, p, stride):
    """BasicBlockD. `sources` are channel-concat-equivalent inputs (the concat
    itself is never materialized; weights are split along Cin instead)."""
    cins = [s.shape[1] for s in sources]

    def split_cin(w):
        outs, off = [], 0
        for c in cins:
            outs.append(w[:, off:off + c])
            off += c
        return outs

    # main path: conv1 -> IN -> LeakyReLU
    if stride == 1:
        y = conv3x3_s1(list(zip(sources, split_cin(p["conv1"]["w"]))),
                       p["conv1"]["gamma"], p["conv1"]["beta"], act=True)
    else:
        y = conv3x3_s2(sources[0], p["conv1"]["w"],
                       p["conv1"]["gamma"], p["conv1"]["beta"])

    # skip path
    if "skip" in p:
        if stride != 1:
            skip = skip_pool_conv1x1(sources[0], p["skip"]["w"],
                                     p["skip"]["gamma"], p["skip"]["beta"])
        else:
            skip = conv1x1(list(zip(sources, split_cin(p["skip"]["w"]))),
                           gamma=p["skip"]["gamma"], beta=p["skip"]["beta"])
    else:
        skip = sources[0]

    # conv2 -> IN, fused (residual add -> LeakyReLU)
    return conv3x3_s1([(y, p["conv2"]["w"])],
                      p["conv2"]["gamma"], p["conv2"]["beta"],
                      act=False, residual=skip, final_act=True)


def residual_unet_forward(x, params):
    # --- encoder ---
    x = conv3x3_s1([(x, params["stem"]["w"])],
                   params["stem"]["gamma"], params["stem"]["beta"], act=True)
    skips = []
    for stride, p in zip(ENC_STRIDES, params["enc"]):
        x = basic_block_d([x], p, stride)
        skips.append(x)
    # --- decoder (concat replaced by two-source weight-split convs) ---
    lres = skips[-1]
    for i, dp in enumerate(params["dec"]):
        up = transp_conv2x2(lres, dp["transp_w"])
        lres = basic_block_d([up, skips[-(i + 2)]], dp["block"], 1)
    # --- seg head: 1x1 conv, bias=True, deep_supervision=False ---
    return conv1x1([(lres, params["seg_w"])], bias=params["seg_b"])


# ----------------------------------------------------------------------------
# Deterministic parameter init (He-style normal convs, IN affine ~ (1, 0))
# ----------------------------------------------------------------------------
def _conv_init(key, cout, cin, k):
    fan_in = cin * k * k
    return jax.random.normal(key, (cout, cin, k, k), jnp.float32) * jnp.sqrt(2.0 / fan_in)


def _norm_init(key, c):
    k1, k2 = jax.random.split(key)
    return {"gamma": 1.0 + 0.1 * jax.random.normal(k1, (c,), jnp.float32),
            "beta": 0.1 * jax.random.normal(k2, (c,), jnp.float32)}


def _init_conv_norm(key, cin, cout, k):
    k1, k2 = jax.random.split(key)
    return {"w": _conv_init(k1, cout, cin, k), **_norm_init(k2, cout)}


def _init_block(key, cin, cout, k, stride):
    k1, k2, k3 = jax.random.split(key, 3)
    p = {"conv1": _init_conv_norm(k1, cin, cout, k),
         "conv2": _init_conv_norm(k2, cout, cout, k)}
    if stride != 1 or cin != cout:
        p["skip"] = _init_conv_norm(k3, cin, cout, 1)
    return p


def _init_transp(key, cin, cout):
    return jax.random.normal(key, (cin, cout, 2, 2), jnp.float32) * jnp.sqrt(2.0 / (cin * 4))


def init_params(key, input_channels=4, features=(8, 16, 32), num_classes=2, k=3):
    keys = jax.random.split(key, 16)
    params = {"stem": _init_conv_norm(keys[0], input_channels, features[0], k)}
    enc = []
    cin = features[0]
    for i, (cout, stride) in enumerate(zip(features, ENC_STRIDES)):
        enc.append(_init_block(keys[1 + i], cin, cout, k, stride))
        cin = cout
    params["enc"] = enc
    params["dec"] = [
        {"transp_w": _init_transp(keys[5], features[2], features[1]),
         "block": _init_block(keys[6], 2 * features[1], features[1], k, 1)},
        {"transp_w": _init_transp(keys[7], features[1], features[0]),
         "block": _init_block(keys[8], 2 * features[0], features[0], k, 1)},
    ]
    params["seg_w"] = _conv_init(keys[9], num_classes, features[0], 1)
    params["seg_b"] = 0.01 * jax.random.normal(keys[10], (num_classes,), jnp.float32)
    return params


# ----------------------------------------------------------------------------
if __name__ == "__main__":
    key = jax.random.PRNGKey(0)
    kx, kp = jax.random.split(key)
    x = jax.random.normal(kx, (2, 4, 16, 16), jnp.float32)   # NCHW, like PyTorch
    params = init_params(kp)

    fwd = jax.jit(residual_unet_forward)
    out = jax.block_until_ready(fwd(x, params))

    assert out.shape == (2, 2, 16, 16), out.shape
    assert out.dtype == jnp.float32
    assert bool(jnp.all(jnp.isfinite(out)))
    print("KERNEL_OK")
</pallas_src>

<mosaic_0001>
module attributes {stable_mosaic.version = 11 : i64} {
  func.func @kernel(%arg0: i32, %arg1: memref<1x4x342xf32, #tpu.memory_space<vmem>>, %arg2: memref<72x4xf32, #tpu.memory_space<vmem>>, %arg3: memref<8x1xf32, #tpu.memory_space<vmem>>, %arg4: memref<8x1xf32, #tpu.memory_space<vmem>>, %arg5: memref<1x288xf32, #tpu.memory_space<vmem>>, %arg6: memref<1x8x288xf32, #tpu.memory_space<vmem>>) attributes {dimension_semantics = [#tpu.dimension_semantics<parallel>], iteration_bounds = array<i64: 2>, scalar_prefetch = 0 : i64, scratch_operands = 0 : i64, tpu.core_type = #tpu.core_type<tc>, window_params = [{transform_indices = @transform_0, window_bounds = array<i64: 1, 4, 342>}, {pipeline_mode = #tpu.pipeline_mode<synchronous>, transform_indices = @transform_1, window_bounds = array<i64: 72, 4>}, {pipeline_mode = #tpu.pipeline_mode<synchronous>, transform_indices = @transform_2, window_bounds = array<i64: 8, 1>}, {pipeline_mode = #tpu.pipeline_mode<synchronous>, transform_indices = @transform_3, window_bounds = array<i64: 8, 1>}, {pipeline_mode = #tpu.pipeline_mode<synchronous>, transform_indices = @transform_4, window_bounds = array<i64: 1, 288>}, {transform_indices = @transform_5, window_bounds = array<i64: 1, 8, 288>}]} {
    %c0 = arith.constant 0 : index
    %c0_0 = arith.constant 0 : index
    %c0_1 = arith.constant 0 : index
    %0 = vector.load %arg1[%c0, %c0_0, %c0_1] : memref<1x4x342xf32, #tpu.memory_space<vmem>>, vector<1x4x342xf32>
    %1 = vector.shape_cast %0 : vector<1x4x342xf32> to vector<4x342xf32>
    %2 = arith.truncf %1 : vector<4x342xf32> to vector<4x342xbf16>
    %c0_2 = arith.constant 0 : index
    %c0_3 = arith.constant 0 : index
    %3 = vector.load %arg2[%c0_2, %c0_3] : memref<72x4xf32, #tpu.memory_space<vmem>>, vector<72x4xf32>
    %4 = arith.truncf %3 : vector<72x4xf32> to vector<72x4xbf16>
    %5 = vector.extract_strided_slice %4 {offsets = [0, 0], sizes = [8, 4], strides = [1, 1]} : vector<72x4xbf16> to vector<8x4xbf16>
    %6 = vector.extract_strided_slice %2 {offsets = [0, 0], sizes = [4, 288], strides = [1, 1]} : vector<4x342xbf16> to vector<4x288xbf16>
    %cst = arith.constant dense<0.000000e+00> : vector<8x288xf32>
    %7 = tpu.matmul %5, %6, %cst {dimension_numbers = #tpu.dot_dimension_numbers<[1], [0], [0], [1], [0, 0, 1, 1], [], []>} : vector<8x4xbf16>, vector<4x288xbf16>, vector<8x288xf32> -> vector<8x288xf32>
    %8 = vector.extract_strided_slice %4 {offsets = [8, 0], sizes = [8, 4], strides = [1, 1]} : vector<72x4xbf16> to vector<8x4xbf16>
    %9 = vector.extract_strided_slice %2 {offsets = [0, 1], sizes = [4, 288], strides = [1, 1]} : vector<4x342xbf16> to vector<4x288xbf16>
    %cst_4 = arith.constant dense<0.000000e+00> : vector<8x288xf32>
    %10 = tpu.matmul %8, %9, %cst_4 {dimension_numbers = #tpu.dot_dimension_numbers<[1], [0], [0], [1], [0, 0, 1, 1], [], []>} : vector<8x4xbf16>, vector<4x288xbf16>, vector<8x288xf32> -> vector<8x288xf32>
    %11 = arith.addf %7, %10 : vector<8x288xf32>
    %12 = vector.extract_strided_slice %4 {offsets = [16, 0], sizes = [8, 4], strides = [1, 1]} : vector<72x4xbf16> to vector<8x4xbf16>
    %13 = vector.extract_strided_slice %2 {offsets = [0, 2], sizes = [4, 288], strides = [1, 1]} : vector<4x342xbf16> to vector<4x288xbf16>
    %cst_5 = arith.constant dense<0.000000e+00> : vector<8x288xf32>
    %14 = tpu.matmul %12, %13, %cst_5 {dimension_numbers = #tpu.dot_dimension_numbers<[1], [0], [0], [1], [0, 0, 1, 1], [], []>} : vector<8x4xbf16>, vector<4x288xbf16>, vector<8x288xf32> -> vector<8x288xf32>
    %15 = arith.addf %11, %14 : vector<8x288xf32>
    %16 = vector.extract_strided_slice %4 {offsets = [24, 0], sizes = [8, 4], strides = [1, 1]} : vector<72x4xbf16> to vector<8x4xbf16>
    %17 = vector.extract_strided_slice %2 {offsets = [0, 18], sizes = [4, 288], strides = [1, 1]} : vector<4x342xbf16> to vector<4x288xbf16>
    %cst_6 = arith.constant dense<0.000000e+00> : vector<8x288xf32>
    %18 = tpu.matmul %16, %17, %cst_6 {dimension_numbers = #tpu.dot_dimension_numbers<[1], [0], [0], [1], [0, 0, 1, 1], [], []>} : vector<8x4xbf16>, vector<4x288xbf16>, vector<8x288xf32> -> vector<8x288xf32>
    %19 = arith.addf %15, %18 : vector<8x288xf32>
    %20 = vector.extract_strided_slice %4 {offsets = [32, 0], sizes = [8, 4], strides = [1, 1]} : vector<72x4xbf16> to vector<8x4xbf16>
    %21 = vector.extract_strided_slice %2 {offsets = [0, 19], sizes = [4, 288], strides = [1, 1]} : vector<4x342xbf16> to vector<4x288xbf16>
    %cst_7 = arith.constant dense<0.000000e+00> : vector<8x288xf32>
    %22 = tpu.matmul %20, %21, %cst_7 {dimension_numbers = #tpu.dot_dimension_numbers<[1], [0], [0], [1], [0, 0, 1, 1], [], []>} : vector<8x4xbf16>, vector<4x288xbf16>, vector<8x288xf32> -> vector<8x288xf32>
    %23 = arith.addf %19, %22 : vector<8x288xf32>
    %24 = vector.extract_strided_slice %4 {offsets = [40, 0], sizes = [8, 4], strides = [1, 1]} : vector<72x4xbf16> to vector<8x4xbf16>
    %25 = vector.extract_strided_slice %2 {offsets = [0, 20], sizes = [4, 288], strides = [1, 1]} : vector<4x342xbf16> to vector<4x288xbf16>
    %cst_8 = arith.constant dense<0.000000e+00> : vector<8x288xf32>
    %26 = tpu.matmul %24, %25, %cst_8 {dimension_numbers = #tpu.dot_dimension_numbers<[1], [0], [0], [1], [0, 0, 1, 1], [], []>} : vector<8x4xbf16>, vector<4x288xbf16>, vector<8x288xf32> -> vector<8x288xf32>
    %27 = arith.addf %23, %26 : vector<8x288xf32>
    %28 = vector.extract_strided_slice %4 {offsets = [48, 0], sizes = [8, 4], strides = [1, 1]} : vector<72x4xbf16> to vector<8x4xbf16>
    %29 = vector.extract_strided_slice %2 {offsets = [0, 36], sizes = [4, 288], strides = [1, 1]} : vector<4x342xbf16> to vector<4x288xbf16>
    %cst_9 = arith.constant dense<0.000000e+00> : vector<8x288xf32>
    %30 = tpu.matmul %28, %29, %cst_9 {dimension_numbers = #tpu.dot_dimension_numbers<[1], [0], [0], [1], [0, 0, 1, 1], [], []>} : vector<8x4xbf16>, vector<4x288xbf16>, vector<8x288xf32> -> vector<8x288xf32>
    %31 = arith.addf %27, %30 : vector<8x288xf32>
    %32 = vector.extract_strided_slice %4 {offsets = [56, 0], sizes = [8, 4], strides = [1, 1]} : vector<72x4xbf16> to vector<8x4xbf16>
    %33 = vector.extract_strided_slice %2 {offsets = [0, 37], sizes = [4, 288], strides = [1, 1]} : vector<4x342xbf16> to vector<4x288xbf16>
    %cst_10 = arith.constant dense<0.000000e+00> : vector<8x288xf32>
    %34 = tpu.matmul %32, %33, %cst_10 {dimension_numbers = #tpu.dot_dimension_numbers<[1], [0], [0], [1], [0, 0, 1, 1], [], []>} : vector<8x4xbf16>, vector<4x288xbf16>, vector<8x288xf32> -> vector<8x288xf32>
    %35 = arith.addf %31, %34 : vector<8x288xf32>
    %36 = vector.extract_strided_slice %4 {offsets = [64, 0], sizes = [8, 4], strides = [1, 1]} : vector<72x4xbf16> to vector<8x4xbf16>
    %37 = vector.extract_strided_slice %2 {offsets = [0, 38], sizes = [4, 288], strides = [1, 1]} : vector<4x342xbf16> to vector<4x288xbf16>
    %cst_11 = arith.constant dense<0.000000e+00> : vector<8x288xf32>
    %38 = tpu.matmul %36, %37, %cst_11 {dimension_numbers = #tpu.dot_dimension_numbers<[1], [0], [0], [1], [0, 0, 1, 1], [], []>} : vector<8x4xbf16>, vector<4x288xbf16>, vector<8x288xf32> -> vector<8x288xf32>
    %39 = arith.addf %35, %38 : vector<8x288xf32>
    %c0_12 = arith.constant 0 : index
    %c0_13 = arith.constant 0 : index
    %40 = vector.load %arg5[%c0_12, %c0_13] : memref<1x288xf32, #tpu.memory_space<vmem>>, vector<1x288xf32>
    %41 = vector.broadcast %40 : vector<1x288xf32> to vector<8x288xf32>
    %42 = arith.mulf %39, %41 : vector<8x288xf32>
    %cst_14 = arith.constant dense<0.000000e+00> : vector<8xf32>
    %43 = vector.multi_reduction <add>, %42, %cst_14 [1] : vector<8x288xf32> to vector<8xf32>
    %44 = vector.shape_cast %43 : vector<8xf32> to vector<8x1xf32>
    %cst_15 = arith.constant 3.906250e-03 : f32
    %45 = vector.broadcast %cst_15 : f32 to vector<8x1xf32>
    %46 = arith.mulf %44, %45 : vector<8x1xf32>
    %47 = vector.broadcast %46 : vector<8x1xf32> to vector<8x288xf32>
    %48 = arith.subf %39, %47 : vector<8x288xf32>
    %49 = vector.broadcast %40 : vector<1x288xf32> to vector<8x288xf32>
    %50 = arith.mulf %48, %49 : vector<8x288xf32>
    %51 = arith.mulf %50, %50 : vector<8x288xf32>
    %cst_16 = arith.constant dense<0.000000e+00> : vector<8xf32>
    %52 = vector.multi_reduction <add>, %51, %cst_16 [1] : vector<8x288xf32> to vector<8xf32>
    %53 = vector.shape_cast %52 : vector<8xf32> to vector<8x1xf32>
    %cst_17 = arith.constant 3.906250e-03 : f32
    %54 = vector.broadcast %cst_17 : f32 to vector<8x1xf32>
    %55 = arith.mulf %53, %54 : vector<8x1xf32>
    %cst_18 = arith.constant 9.99999974E-6 : f32
    %56 = vector.broadcast %cst_18 : f32 to vector<8x1xf32>
    %57 = arith.addf %55, %56 : vector<8x1xf32>
    %58 = math.rsqrt %57 : vector<8x1xf32>
    %59 = vector.broadcast %58 : vector<8x1xf32> to vector<8x288xf32>
    %60 = arith.mulf %48, %59 : vector<8x288xf32>
    %c0_19 = arith.constant 0 : index
    %c0_20 = arith.constant 0 : index
    %61 = vector.load %arg3[%c0_19, %c0_20] : memref<8x1xf32, #tpu.memory_space<vmem>>, vector<8x1xf32>
    %62 = vector.broadcast %61 : vector<8x1xf32> to vector<8x288xf32>
    %63 = arith.mulf %60, %62 : vector<8x288xf32>
    %c0_21 = arith.constant 0 : index
    %c0_22 = arith.constant 0 : index
    %64 = vector.load %arg4[%c0_21, %c0_22] : memref<8x1xf32, #tpu.memory_space<vmem>>, vector<8x1xf32>
    %65 = vector.broadcast %64 : vector<8x1xf32> to vector<8x288xf32>
    %66 = arith.addf %63, %65 : vector<8x288xf32>
    %cst_23 = arith.constant 0.000000e+00 : f32
    %67 = vector.broadcast %cst_23 : f32 to vector<8x288xf32>
    %68 = arith.cmpf oge, %66, %67 : vector<8x288xf32>
    %cst_24 = arith.constant 0.00999999977 : f32
    %69 = vector.broadcast %cst_24 : f32 to vector<8x288xf32>
    %70 = arith.mulf %66, %69 : vector<8x288xf32>
    %71 = arith.select %68, %66, %70 : vector<8x288xi1>, vector<8x288xf32>
    %c0_25 = arith.constant 0 : index
    %c0_26 = arith.constant 0 : index
    %c0_27 = arith.constant 0 : index
    %72 = vector.load %arg6[%c0_25, %c0_26, %c0_27] : memref<1x8x288xf32, #tpu.memory_space<vmem>>, vector<1x8x288xf32>
    %73 = vector.shape_cast %72 : vector<1x8x288xf32> to vector<8x288xf32>
    %74 = vector.shape_cast %71 : vector<8x288xf32> to vector<1x8x288xf32>
    tpu.vector_store %arg6[%c0_25, %c0_26, %c0_27], %74 {strides = array<i32>} : memref<1x8x288xf32, #tpu.memory_space<vmem>>, vector<1x8x288xf32>,
    return
  }
  func.func @transform_0(%arg0: i32) -> (i32, i32, i32) {
    %c0_i32 = arith.constant 0 : i32
    %c0_i32_0 = arith.constant 0 : i32
    %c0_i32_1 = arith.constant 0 : i32
    return %arg0, %c0_i32, %c0_i32_0 : i32, i32, i32
  }
  func.func @transform_1(%arg0: i32) -> (i32, i32) {
    %c0_i32 = arith.constant 0 : i32
    %c0_i32_0 = arith.constant 0 : i32
    %c0_i32_1 = arith.constant 0 : i32
    return %c0_i32, %c0_i32_0 : i32, i32
  }
  func.func @transform_2(%arg0: i32) -> (i32, i32) {
    %c0_i32 = arith.constant 0 : i32
    %c0_i32_0 = arith.constant 0 : i32
    %c0_i32_1 = arith.constant 0 : i32
    return %c0_i32, %c0_i32_0 : i32, i32
  }
  func.func @transform_3(%arg0: i32) -> (i32, i32) {
    %c0_i32 = arith.constant 0 : i32
    %c0_i32_0 = arith.constant 0 : i32
    %c0_i32_1 = arith.constant 0 : i32
    return %c0_i32, %c0_i32_0 : i32, i32
  }
  func.func @transform_4(%arg0: i32) -> (i32, i32) {
    %c0_i32 = arith.constant 0 : i32
    %c0_i32_0 = arith.constant 0 : i32
    %c0_i32_1 = arith.constant 0 : i32
    return %c0_i32, %c0_i32_0 : i32, i32
  }
  func.func @transform_5(%arg0: i32) -> (i32, i32, i32) {
    %c0_i32 = arith.constant 0 : i32
    %c0_i32_0 = arith.constant 0 : i32
    %c0_i32_1 = arith.constant 0 : i32
    return %arg0, %c0_i32, %c0_i32_0 : i32, i32, i32
  }
}

module attributes {stable_mosaic.version = 11 : i64} {
  func.func @kernel(%arg0: i32, %arg1: memref<1x8x342xf32, #tpu.memory_space<vmem>>, %arg2: memref<72x8xf32, #tpu.memory_space<vmem>>, %arg3: memref<8x1xf32, #tpu.memory_space<vmem>>, %arg4: memref<8x1xf32, #tpu.memory_space<vmem>>, %arg5: memref<1x288xf32, #tpu.memory_space<vmem>>, %arg6: memref<1x8x288xf32, #tpu.memory_space<vmem>>) attributes {dimension_semantics = [#tpu.dimension_semantics<parallel>], iteration_bounds = array<i64: 2>, scalar_prefetch = 0 : i64, scratch_operands = 0 : i64, tpu.core_type = #tpu.core_type<tc>, window_params = [{transform_indices = @transform_0, window_bounds = array<i64: 1, 8, 342>}, {pipeline_mode = #tpu.pipeline_mode<synchronous>, transform_indices = @transform_1, window_bounds = array<i64: 72, 8>}, {pipeline_mode = #tpu.pipeline_mode<synchronous>, transform_indices = @transform_2, window_bounds = array<i64: 8, 1>}, {pipeline_mode = #tpu.pipeline_mode<synchronous>, transform_indices = @transform_3, window_bounds = array<i64: 8, 1>}, {pipeline_mode = #tpu.pipeline_mode<synchronous>, transform_indices = @transform_4, window_bounds = array<i64: 1, 288>}, {transform_indices = @transform_5, window_bounds = array<i64: 1, 8, 288>}]} {
    %c0 = arith.constant 0 : index
    %c0_0 = arith.constant 0 : index
    %c0_1 = arith.constant 0 : index
    %0 = vector.load %arg1[%c0, %c0_0, %c0_1] : memref<1x8x342xf32, #tpu.memory_space<vmem>>, vector<1x8x342xf32>
    %1 = vector.shape_cast %0 : vector<1x8x342xf32> to vector<8x342xf32>
    %2 = arith.truncf %1 : vector<8x342xf32> to vector<8x342xbf16>
    %c0_2 = arith.constant 0 : index
    %c0_3 = arith.constant 0 : index
    %3 = vector.load %arg2[%c0_2, %c0_3] : memref<72x8xf32, #tpu.memory_space<vmem>>, vector<72x8xf32>
    %4 = arith.truncf %3 : vector<72x8xf32> to vector<72x8xbf16>
    %5 = vector.extract_strided_slice %4 {offsets = [0, 0], sizes = [8, 8], strides = [1, 1]} : vector<72x8xbf16> to vector<8x8xbf16>
    %6 = vector.extract_strided_slice %2 {offsets = [0, 0], sizes = [8, 288], strides = [1, 1]} : vector<8x342xbf16> to vector<8x288xbf16>
    %cst = arith.constant dense<0.000000e+00> : vector<8x288xf32>
    %7 = tpu.matmul %5, %6, %cst {dimension_numbers = #tpu.dot_dimension_numbers<[1], [0], [0], [1], [0, 0, 1, 1], [], []>} : vector<8x8xbf16>, vector<8x288xbf16>, vector<8x288xf32> -> vector<8x288xf32>
    %8 = vector.extract_strided_slice %4 {offsets = [8, 0], sizes = [8, 8], strides = [1, 1]} : vector<72x8xbf16> to vector<8x8xbf16>
    %9 = vector.extract_strided_slice %2 {offsets = [0, 1], sizes = [8, 288], strides = [1, 1]} : vector<8x342xbf16> to vector<8x288xbf16>
    %cst_4 = arith.constant dense<0.000000e+00> : vector<8x288xf32>
    %10 = tpu.matmul %8, %9, %cst_4 {dimension_numbers = #tpu.dot_dimension_numbers<[1], [0], [0], [1], [0, 0, 1, 1], [], []>} : vector<8x8xbf16>, vector<8x288xbf16>, vector<8x288xf32> -> vector<8x288xf32>
    %11 = arith.addf %7, %10 : vector<8x288xf32>
    %12 = vector.extract_strided_slice %4 {offsets = [16, 0], sizes = [8, 8], strides = [1, 1]} : vector<72x8xbf16> to vector<8x8xbf16>
    %13 = vector.extract_strided_slice %2 {offsets = [0, 2], sizes = [8, 288], strides = [1, 1]} : vector<8x342xbf16> to vector<8x288xbf16>
    %cst_5 = arith.constant dense<0.000000e+00> : vector<8x288xf32>
    %14 = tpu.matmul %12, %13, %cst_5 {dimension_numbers = #tpu.dot_dimension_numbers<[1], [0], [0], [1], [0, 0, 1, 1], [], []>} : vector<8x8xbf16>, vector<8x288xbf16>, vector<8x288xf32> -> vector<8x288xf32>
    %15 = arith.addf %11, %14 : vector<8x288xf32>
    %16 = vector.extract_strided_slice %4 {offsets = [24, 0], sizes = [8, 8], strides = [1, 1]} : vector<72x8xbf16> to vector<8x8xbf16>
    %17 = vector.extract_strided_slice %2 {offsets = [0, 18], sizes = [8, 288], strides = [1, 1]} : vector<8x342xbf16> to vector<8x288xbf16>
    %cst_6 = arith.constant dense<0.000000e+00> : vector<8x288xf32>
    %18 = tpu.matmul %16, %17, %cst_6 {dimension_numbers = #tpu.dot_dimension_numbers<[1], [0], [0], [1], [0, 0, 1, 1], [], []>} : vector<8x8xbf16>, vector<8x288xbf16>, vector<8x288xf32> -> vector<8x288xf32>
    %19 = arith.addf %15, %18 : vector<8x288xf32>
    %20 = vector.extract_strided_slice %4 {offsets = [32, 0], sizes = [8, 8], strides = [1, 1]} : vector<72x8xbf16> to vector<8x8xbf16>
    %21 = vector.extract_strided_slice %2 {offsets = [0, 19], sizes = [8, 288], strides = [1, 1]} : vector<8x342xbf16> to vector<8x288xbf16>
    %cst_7 = arith.constant dense<0.000000e+00> : vector<8x288xf32>
    %22 = tpu.matmul %20, %21, %cst_7 {dimension_numbers = #tpu.dot_dimension_numbers<[1], [0], [0], [1], [0, 0, 1, 1], [], []>} : vector<8x8xbf16>, vector<8x288xbf16>, vector<8x288xf32> -> vector<8x288xf32>
    %23 = arith.addf %19, %22 : vector<8x288xf32>
    %24 = vector.extract_strided_slice %4 {offsets = [40, 0], sizes = [8, 8], strides = [1, 1]} : vector<72x8xbf16> to vector<8x8xbf16>
    %25 = vector.extract_strided_slice %2 {offsets = [0, 20], sizes = [8, 288], strides = [1, 1]} : vector<8x342xbf16> to vector<8x288xbf16>
    %cst_8 = arith.constant dense<0.000000e+00> : vector<8x288xf32>
    %26 = tpu.matmul %24, %25, %cst_8 {dimension_numbers = #tpu.dot_dimension_numbers<[1], [0], [0], [1], [0, 0, 1, 1], [], []>} : vector<8x8xbf16>, vector<8x288xbf16>, vector<8x288xf32> -> vector<8x288xf32>
    %27 = arith.addf %23, %26 : vector<8x288xf32>
    %28 = vector.extract_strided_slice %4 {offsets = [48, 0], sizes = [8, 8], strides = [1, 1]} : vector<72x8xbf16> to vector<8x8xbf16>
    %29 = vector.extract_strided_slice %2 {offsets = [0, 36], sizes = [8, 288], strides = [1, 1]} : vector<8x342xbf16> to vector<8x288xbf16>
    %cst_9 = arith.constant dense<0.000000e+00> : vector<8x288xf32>
    %30 = tpu.matmul %28, %29, %cst_9 {dimension_numbers = #tpu.dot_dimension_numbers<[1], [0], [0], [1], [0, 0, 1, 1], [], []>} : vector<8x8xbf16>, vector<8x288xbf16>, vector<8x288xf32> -> vector<8x288xf32>
    %31 = arith.addf %27, %30 : vector<8x288xf32>
    %32 = vector.extract_strided_slice %4 {offsets = [56, 0], sizes = [8, 8], strides = [1, 1]} : vector<72x8xbf16> to vector<8x8xbf16>
    %33 = vector.extract_strided_slice %2 {offsets = [0, 37], sizes = [8, 288], strides = [1, 1]} : vector<8x342xbf16> to vector<8x288xbf16>
    %cst_10 = arith.constant dense<0.000000e+00> : vector<8x288xf32>
    %34 = tpu.matmul %32, %33, %cst_10 {dimension_numbers = #tpu.dot_dimension_numbers<[1], [0], [0], [1], [0, 0, 1, 1], [], []>} : vector<8x8xbf16>, vector<8x288xbf16>, vector<8x288xf32> -> vector<8x288xf32>
    %35 = arith.addf %31, %34 : vector<8x288xf32>
    %36 = vector.extract_strided_slice %4 {offsets = [64, 0], sizes = [8, 8], strides = [1, 1]} : vector<72x8xbf16> to vector<8x8xbf16>
    %37 = vector.extract_strided_slice %2 {offsets = [0, 38], sizes = [8, 288], strides = [1, 1]} : vector<8x342xbf16> to vector<8x288xbf16>
    %cst_11 = arith.constant dense<0.000000e+00> : vector<8x288xf32>
    %38 = tpu.matmul %36, %37, %cst_11 {dimension_numbers = #tpu.dot_dimension_numbers<[1], [0], [0], [1], [0, 0, 1, 1], [], []>} : vector<8x8xbf16>, vector<8x288xbf16>, vector<8x288xf32> -> vector<8x288xf32>
    %39 = arith.addf %35, %38 : vector<8x288xf32>
    %c0_12 = arith.constant 0 : index
    %c0_13 = arith.constant 0 : index
    %40 = vector.load %arg5[%c0_12, %c0_13] : memref<1x288xf32, #tpu.memory_space<vmem>>, vector<1x288xf32>
    %41 = vector.broadcast %40 : vector<1x288xf32> to vector<8x288xf32>
    %42 = arith.mulf %39, %41 : vector<8x288xf32>
    %cst_14 = arith.constant dense<0.000000e+00> : vector<8xf32>
    %43 = vector.multi_reduction <add>, %42, %cst_14 [1] : vector<8x288xf32> to vector<8xf32>
    %44 = vector.shape_cast %43 : vector<8xf32> to vector<8x1xf32>
    %cst_15 = arith.constant 3.906250e-03 : f32
    %45 = vector.broadcast %cst_15 : f32 to vector<8x1xf32>
    %46 = arith.mulf %44, %45 : vector<8x1xf32>
    %47 = vector.broadcast %46 : vector<8x1xf32> to vector<8x288xf32>
    %48 = arith.subf %39, %47 : vector<8x288xf32>
    %49 = vector.broadcast %40 : vector<1x288xf32> to vector<8x288xf32>
    %50 = arith.mulf %48, %49 : vector<8x288xf32>
    %51 = arith.mulf %50, %50 : vector<8x288xf32>
    %cst_16 = arith.constant dense<0.000000e+00> : vector<8xf32>
    %52 = vector.multi_reduction <add>, %51, %cst_16 [1] : vector<8x288xf32> to vector<8xf32>
    %53 = vector.shape_cast %52 : vector<8xf32> to vector<8x1xf32>
    %cst_17 = arith.constant 3.906250e-03 : f32
    %54 = vector.broadcast %cst_17 : f32 to vector<8x1xf32>
    %55 = arith.mulf %53, %54 : vector<8x1xf32>
    %cst_18 = arith.constant 9.99999974E-6 : f32
    %56 = vector.broadcast %cst_18 : f32 to vector<8x1xf32>
    %57 = arith.addf %55, %56 : vector<8x1xf32>
    %58 = math.rsqrt %57 : vector<8x1xf32>
    %59 = vector.broadcast %58 : vector<8x1xf32> to vector<8x288xf32>
    %60 = arith.mulf %48, %59 : vector<8x288xf32>
    %c0_19 = arith.constant 0 : index
    %c0_20 = arith.constant 0 : index
    %61 = vector.load %arg3[%c0_19, %c0_20] : memref<8x1xf32, #tpu.memory_space<vmem>>, vector<8x1xf32>
    %62 = vector.broadcast %61 : vector<8x1xf32> to vector<8x288xf32>
    %63 = arith.mulf %60, %62 : vector<8x288xf32>
    %c0_21 = arith.constant 0 : index
    %c0_22 = arith.constant 0 : index
    %64 = vector.load %arg4[%c0_21, %c0_22] : memref<8x1xf32, #tpu.memory_space<vmem>>, vector<8x1xf32>
    %65 = vector.broadcast %64 : vector<8x1xf32> to vector<8x288xf32>
    %66 = arith.addf %63, %65 : vector<8x288xf32>
    %cst_23 = arith.constant 0.000000e+00 : f32
    %67 = vector.broadcast %cst_23 : f32 to vector<8x288xf32>
    %68 = arith.cmpf oge, %66, %67 : vector<8x288xf32>
    %cst_24 = arith.constant 0.00999999977 : f32
    %69 = vector.broadcast %cst_24 : f32 to vector<8x288xf32>
    %70 = arith.mulf %66, %69 : vector<8x288xf32>
    %71 = arith.select %68, %66, %70 : vector<8x288xi1>, vector<8x288xf32>
    %c0_25 = arith.constant 0 : index
    %c0_26 = arith.constant 0 : index
    %c0_27 = arith.constant 0 : index
    %72 = vector.load %arg6[%c0_25, %c0_26, %c0_27] : memref<1x8x288xf32, #tpu.memory_space<vmem>>, vector<1x8x288xf32>
    %73 = vector.shape_cast %72 : vector<1x8x288xf32> to vector<8x288xf32>
    %74 = vector.shape_cast %71 : vector<8x288xf32> to vector<1x8x288xf32>
    tpu.vector_store %arg6[%c0_25, %c0_26, %c0_27], %74 {strides = array<i32>} : memref<1x8x288xf32, #tpu.memory_space<vmem>>, vector<1x8x288xf32>,
    return
  }
  func.func @transform_0(%arg0: i32) -> (i32, i32, i32) {
    %c0_i32 = arith.constant 0 : i32
    %c0_i32_0 = arith.constant 0 : i32
    %c0_i32_1 = arith.constant 0 : i32
    return %arg0, %c0_i32, %c0_i32_0 : i32, i32, i32
  }
  func.func @transform_1(%arg0: i32) -> (i32, i32) {
    %c0_i32 = arith.constant 0 : i32
    %c0_i32_0 = arith.constant 0 : i32
    %c0_i32_1 = arith.constant 0 : i32
    return %c0_i32, %c0_i32_0 : i32, i32
  }
  func.func @transform_2(%arg0: i32) -> (i32, i32) {
    %c0_i32 = arith.constant 0 : i32
    %c0_i32_0 = arith.constant 0 : i32
    %c0_i32_1 = arith.constant 0 : i32
    return %c0_i32, %c0_i32_0 : i32, i32
  }
  func.func @transform_3(%arg0: i32) -> (i32, i32) {
    %c0_i32 = arith.constant 0 : i32
    %c0_i32_0 = arith.constant 0 : i32
    %c0_i32_1 = arith.constant 0 : i32
    return %c0_i32, %c0_i32_0 : i32, i32
  }
  func.func @transform_4(%arg0: i32) -> (i32, i32) {
    %c0_i32 = arith.constant 0 : i32
    %c0_i32_0 = arith.constant 0 : i32
    %c0_i32_1 = arith.constant 0 : i32
    return %c0_i32, %c0_i32_0 : i32, i32
  }
  func.func @transform_5(%arg0: i32) -> (i32, i32, i32) {
    %c0_i32 = arith.constant 0 : i32
    %c0_i32_0 = arith.constant 0 : i32
    %c0_i32_1 = arith.constant 0 : i32
    return %arg0, %c0_i32, %c0_i32_0 : i32, i32, i32
  }
}

module attributes {stable_mosaic.version = 11 : i64} {
  func.func @kernel(%arg0: i32, %arg1: memref<1x8x342xf32, #tpu.memory_space<vmem>>, %arg2: memref<72x8xf32, #tpu.memory_space<vmem>>, %arg3: memref<8x1xf32, #tpu.memory_space<vmem>>, %arg4: memref<8x1xf32, #tpu.memory_space<vmem>>, %arg5: memref<1x288xf32, #tpu.memory_space<vmem>>, %arg6: memref<1x8x288xf32, #tpu.memory_space<vmem>>, %arg7: memref<1x8x288xf32, #tpu.memory_space<vmem>>) attributes {dimension_semantics = [#tpu.dimension_semantics<parallel>], iteration_bounds = array<i64: 2>, scalar_prefetch = 0 : i64, scratch_operands = 0 : i64, tpu.core_type = #tpu.core_type<tc>, window_params = [{transform_indices = @transform_0, window_bounds = array<i64: 1, 8, 342>}, {pipeline_mode = #tpu.pipeline_mode<synchronous>, transform_indices = @transform_1, window_bounds = array<i64: 72, 8>}, {pipeline_mode = #tpu.pipeline_mode<synchronous>, transform_indices = @transform_2, window_bounds = array<i64: 8, 1>}, {pipeline_mode = #tpu.pipeline_mode<synchronous>, transform_indices = @transform_3, window_bounds = array<i64: 8, 1>}, {pipeline_mode = #tpu.pipeline_mode<synchronous>, transform_indices = @transform_4, window_bounds = array<i64: 1, 288>}, {transform_indices = @transform_5, window_bounds = array<i64: 1, 8, 288>}, {transform_indices = @transform_6, window_bounds = array<i64: 1, 8, 288>}]} {
    %c0 = arith.constant 0 : index
    %c0_0 = arith.constant 0 : index
    %c0_1 = arith.constant 0 : index
    %0 = vector.load %arg1[%c0, %c0_0, %c0_1] : memref<1x8x342xf32, #tpu.memory_space<vmem>>, vector<1x8x342xf32>
    %1 = vector.shape_cast %0 : vector<1x8x342xf32> to vector<8x342xf32>
    %2 = arith.truncf %1 : vector<8x342xf32> to vector<8x342xbf16>
    %c0_2 = arith.constant 0 : index
    %c0_3 = arith.constant 0 : index
    %3 = vector.load %arg2[%c0_2, %c0_3] : memref<72x8xf32, #tpu.memory_space<vmem>>, vector<72x8xf32>
    %4 = arith.truncf %3 : vector<72x8xf32> to vector<72x8xbf16>
    %5 = vector.extract_strided_slice %4 {offsets = [0, 0], sizes = [8, 8], strides = [1, 1]} : vector<72x8xbf16> to vector<8x8xbf16>
    %6 = vector.extract_strided_slice %2 {offsets = [0, 0], sizes = [8, 288], strides = [1, 1]} : vector<8x342xbf16> to vector<8x288xbf16>
    %cst = arith.constant dense<0.000000e+00> : vector<8x288xf32>
    %7 = tpu.matmul %5, %6, %cst {dimension_numbers = #tpu.dot_dimension_numbers<[1], [0], [0], [1], [0, 0, 1, 1], [], []>} : vector<8x8xbf16>, vector<8x288xbf16>, vector<8x288xf32> -> vector<8x288xf32>
    %8 = vector.extract_strided_slice %4 {offsets = [8, 0], sizes = [8, 8], strides = [1, 1]} : vector<72x8xbf16> to vector<8x8xbf16>
    %9 = vector.extract_strided_slice %2 {offsets = [0, 1], sizes = [8, 288], strides = [1, 1]} : vector<8x342xbf16> to vector<8x288xbf16>
    %cst_4 = arith.constant dense<0.000000e+00> : vector<8x288xf32>
    %10 = tpu.matmul %8, %9, %cst_4 {dimension_numbers = #tpu.dot_dimension_numbers<[1], [0], [0], [1], [0, 0, 1, 1], [], []>} : vector<8x8xbf16>, vector<8x288xbf16>, vector<8x288xf32> -> vector<8x288xf32>
    %11 = arith.addf %7, %10 : vector<8x288xf32>
    %12 = vector.extract_strided_slice %4 {offsets = [16, 0], sizes = [8, 8], strides = [1, 1]} : vector<72x8xbf16> to vector<8x8xbf16>
    %13 = vector.extract_strided_slice %2 {offsets = [0, 2], sizes = [8, 288], strides = [1, 1]} : vector<8x342xbf16> to vector<8x288xbf16>
    %cst_5 = arith.constant dense<0.000000e+00> : vector<8x288xf32>
    %14 = tpu.matmul %12, %13, %cst_5 {dimension_numbers = #tpu.dot_dimension_numbers<[1], [0], [0], [1], [0, 0, 1, 1], [], []>} : vector<8x8xbf16>, vector<8x288xbf16>, vector<8x288xf32> -> vector<8x288xf32>
    %15 = arith.addf %11, %14 : vector<8x288xf32>
    %16 = vector.extract_strided_slice %4 {offsets = [24, 0], sizes = [8, 8], strides = [1, 1]} : vector<72x8xbf16> to vector<8x8xbf16>
    %17 = vector.extract_strided_slice %2 {offsets = [0, 18], sizes = [8, 288], strides = [1, 1]} : vector<8x342xbf16> to vector<8x288xbf16>
    %cst_6 = arith.constant dense<0.000000e+00> : vector<8x288xf32>
    %18 = tpu.matmul %16, %17, %cst_6 {dimension_numbers = #tpu.dot_dimension_numbers<[1], [0], [0], [1], [0, 0, 1, 1], [], []>} : vector<8x8xbf16>, vector<8x288xbf16>, vector<8x288xf32> -> vector<8x288xf32>
    %19 = arith.addf %15, %18 : vector<8x288xf32>
    %20 = vector.extract_strided_slice %4 {offsets = [32, 0], sizes = [8, 8], strides = [1, 1]} : vector<72x8xbf16> to vector<8x8xbf16>
    %21 = vector.extract_strided_slice %2 {offsets = [0, 19], sizes = [8, 288], strides = [1, 1]} : vector<8x342xbf16> to vector<8x288xbf16>
    %cst_7 = arith.constant dense<0.000000e+00> : vector<8x288xf32>
    %22 = tpu.matmul %20, %21, %cst_7 {dimension_numbers = #tpu.dot_dimension_numbers<[1], [0], [0], [1], [0, 0, 1, 1], [], []>} : vector<8x8xbf16>, vector<8x288xbf16>, vector<8x288xf32> -> vector<8x288xf32>
    %23 = arith.addf %19, %22 : vector<8x288xf32>
    %24 = vector.extract_strided_slice %4 {offsets = [40, 0], sizes = [8, 8], strides = [1, 1]} : vector<72x8xbf16> to vector<8x8xbf16>
    %25 = vector.extract_strided_slice %2 {offsets = [0, 20], sizes = [8, 288], strides = [1, 1]} : vector<8x342xbf16> to vector<8x288xbf16>
    %cst_8 = arith.constant dense<0.000000e+00> : vector<8x288xf32>
    %26 = tpu.matmul %24, %25, %cst_8 {dimension_numbers = #tpu.dot_dimension_numbers<[1], [0], [0], [1], [0, 0, 1, 1], [], []>} : vector<8x8xbf16>, vector<8x288xbf16>, vector<8x288xf32> -> vector<8x288xf32>
    %27 = arith.addf %23, %26 : vector<8x288xf32>
    %28 = vector.extract_strided_slice %4 {offsets = [48, 0], sizes = [8, 8], strides = [1, 1]} : vector<72x8xbf16> to vector<8x8xbf16>
    %29 = vector.extract_strided_slice %2 {offsets = [0, 36], sizes = [8, 288], strides = [1, 1]} : vector<8x342xbf16> to vector<8x288xbf16>
    %cst_9 = arith.constant dense<0.000000e+00> : vector<8x288xf32>
    %30 = tpu.matmul %28, %29, %cst_9 {dimension_numbers = #tpu.dot_dimension_numbers<[1], [0], [0], [1], [0, 0, 1, 1], [], []>} : vector<8x8xbf16>, vector<8x288xbf16>, vector<8x288xf32> -> vector<8x288xf32>
    %31 = arith.addf %27, %30 : vector<8x288xf32>
    %32 = vector.extract_strided_slice %4 {offsets = [56, 0], sizes = [8, 8], strides = [1, 1]} : vector<72x8xbf16> to vector<8x8xbf16>
    %33 = vector.extract_strided_slice %2 {offsets = [0, 37], sizes = [8, 288], strides = [1, 1]} : vector<8x342xbf16> to vector<8x288xbf16>
    %cst_10 = arith.constant dense<0.000000e+00> : vector<8x288xf32>
    %34 = tpu.matmul %32, %33, %cst_10 {dimension_numbers = #tpu.dot_dimension_numbers<[1], [0], [0], [1], [0, 0, 1, 1], [], []>} : vector<8x8xbf16>, vector<8x288xbf16>, vector<8x288xf32> -> vector<8x288xf32>
    %35 = arith.addf %31, %34 : vector<8x288xf32>
    %36 = vector.extract_strided_slice %4 {offsets = [64, 0], sizes = [8, 8], strides = [1, 1]} : vector<72x8xbf16> to vector<8x8xbf16>
    %37 = vector.extract_strided_slice %2 {offsets = [0, 38], sizes = [8, 288], strides = [1, 1]} : vector<8x342xbf16> to vector<8x288xbf16>
    %cst_11 = arith.constant dense<0.000000e+00> : vector<8x288xf32>
    %38 = tpu.matmul %36, %37, %cst_11 {dimension_numbers = #tpu.dot_dimension_numbers<[1], [0], [0], [1], [0, 0, 1, 1], [], []>} : vector<8x8xbf16>, vector<8x288xbf16>, vector<8x288xf32> -> vector<8x288xf32>
    %39 = arith.addf %35, %38 : vector<8x288xf32>
    %c0_12 = arith.constant 0 : index
    %c0_13 = arith.constant 0 : index
    %40 = vector.load %arg5[%c0_12, %c0_13] : memref<1x288xf32, #tpu.memory_space<vmem>>, vector<1x288xf32>
    %41 = vector.broadcast %40 : vector<1x288xf32> to vector<8x288xf32>
    %42 = arith.mulf %39, %41 : vector<8x288xf32>
    %cst_14 = arith.constant dense<0.000000e+00> : vector<8xf32>
    %43 = vector.multi_reduction <add>, %42, %cst_14 [1] : vector<8x288xf32> to vector<8xf32>
    %44 = vector.shape_cast %43 : vector<8xf32> to vector<8x1xf32>
    %cst_15 = arith.constant 3.906250e-03 : f32
    %45 = vector.broadcast %cst_15 : f32 to vector<8x1xf32>
    %46 = arith.mulf %44, %45 : vector<8x1xf32>
    %47 = vector.broadcast %46 : vector<8x1xf32> to vector<8x288xf32>
    %48 = arith.subf %39, %47 : vector<8x288xf32>
    %49 = vector.broadcast %40 : vector<1x288xf32> to vector<8x288xf32>
    %50 = arith.mulf %48, %49 : vector<8x288xf32>
    %51 = arith.mulf %50, %50 : vector<8x288xf32>
    %cst_16 = arith.constant dense<0.000000e+00> : vector<8xf32>
    %52 = vector.multi_reduction <add>, %51, %cst_16 [1] : vector<8x288xf32> to vector<8xf32>
    %53 = vector.shape_cast %52 : vector<8xf32> to vector<8x1xf32>
    %cst_17 = arith.constant 3.906250e-03 : f32
    %54 = vector.broadcast %cst_17 : f32 to vector<8x1xf32>
    %55 = arith.mulf %53, %54 : vector<8x1xf32>
    %cst_18 = arith.constant 9.99999974E-6 : f32
    %56 = vector.broadcast %cst_18 : f32 to vector<8x1xf32>
    %57 = arith.addf %55, %56 : vector<8x1xf32>
    %58 = math.rsqrt %57 : vector<8x1xf32>
    %59 = vector.broadcast %58 : vector<8x1xf32> to vector<8x288xf32>
    %60 = arith.mulf %48, %59 : vector<8x288xf32>
    %c0_19 = arith.constant 0 : index
    %c0_20 = arith.constant 0 : index
    %61 = vector.load %arg3[%c0_19, %c0_20] : memref<8x1xf32, #tpu.memory_space<vmem>>, vector<8x1xf32>
    %62 = vector.broadcast %61 : vector<8x1xf32> to vector<8x288xf32>
    %63 = arith.mulf %60, %62 : vector<8x288xf32>
    %c0_21 = arith.constant 0 : index
    %c0_22 = arith.constant 0 : index
    %64 = vector.load %arg4[%c0_21, %c0_22] : memref<8x1xf32, #tpu.memory_space<vmem>>, vector<8x1xf32>
    %65 = vector.broadcast %64 : vector<8x1xf32> to vector<8x288xf32>
    %66 = arith.addf %63, %65 : vector<8x288xf32>
    %c0_23 = arith.constant 0 : index
    %c0_24 = arith.constant 0 : index
    %c0_25 = arith.constant 0 : index
    %67 = vector.load %arg6[%c0_23, %c0_24, %c0_25] : memref<1x8x288xf32, #tpu.memory_space<vmem>>, vector<1x8x288xf32>
    %68 = vector.shape_cast %67 : vector<1x8x288xf32> to vector<8x288xf32>
    %69 = arith.addf %66, %68 : vector<8x288xf32>
    %cst_26 = arith.constant 0.000000e+00 : f32
    %70 = vector.broadcast %cst_26 : f32 to vector<8x288xf32>
    %71 = arith.cmpf oge, %69, %70 : vector<8x288xf32>
    %cst_27 = arith.constant 0.00999999977 : f32
    %72 = vector.broadcast %cst_27 : f32 to vector<8x288xf32>
    %73 = arith.mulf %69, %72 : vector<8x288xf32>
    %74 = arith.select %71, %69, %73 : vector<8x288xi1>, vector<8x288xf32>
    %c0_28 = arith.constant 0 : index
    %c0_29 = arith.constant 0 : index
    %c0_30 = arith.constant 0 : index
    %75 = vector.load %arg7[%c0_28, %c0_29, %c0_30] : memref<1x8x288xf32, #tpu.memory_space<vmem>>, vector<1x8x288xf32>
    %76 = vector.shape_cast %75 : vector<1x8x288xf32> to vector<8x288xf32>
    %77 = vector.shape_cast %74 : vector<8x288xf32> to vector<1x8x288xf32>
    tpu.vector_store %arg7[%c0_28, %c0_29, %c0_30], %77 {strides = array<i32>} : memref<1x8x288xf32, #tpu.memory_space<vmem>>, vector<1x8x288xf32>,
    return
  }
  func.func @transform_0(%arg0: i32) -> (i32, i32, i32) {
    %c0_i32 = arith.constant 0 : i32
    %c0_i32_0 = arith.constant 0 : i32
    %c0_i32_1 = arith.constant 0 : i32
    return %arg0, %c0_i32, %c0_i32_0 : i32, i32, i32
  }
  func.func @transform_1(%arg0: i32) -> (i32, i32) {
    %c0_i32 = arith.constant 0 : i32
    %c0_i32_0 = arith.constant 0 : i32
    %c0_i32_1 = arith.constant 0 : i32
    return %c0_i32, %c0_i32_0 : i32, i32
  }
  func.func @transform_2(%arg0: i32) -> (i32, i32) {
    %c0_i32 = arith.constant 0 : i32
    %c0_i32_0 = arith.constant 0 : i32
    %c0_i32_1 = arith.constant 0 : i32
    return %c0_i32, %c0_i32_0 : i32, i32
  }
  func.func @transform_3(%arg0: i32) -> (i32, i32) {
    %c0_i32 = arith.constant 0 : i32
    %c0_i32_0 = arith.constant 0 : i32
    %c0_i32_1 = arith.constant 0 : i32
    return %c0_i32, %c0_i32_0 : i32, i32
  }
  func.func @transform_4(%arg0: i32) -> (i32, i32) {
    %c0_i32 = arith.constant 0 : i32
    %c0_i32_0 = arith.constant 0 : i32
    %c0_i32_1 = arith.constant 0 : i32
    return %c0_i32, %c0_i32_0 : i32, i32
  }
  func.func @transform_5(%arg0: i32) -> (i32, i32, i32) {
    %c0_i32 = arith.constant 0 : i32
    %c0_i32_0 = arith.constant 0 : i32
    %c0_i32_1 = arith.constant 0 : i32
    return %arg0, %c0_i32, %c0_i32_0 : i32, i32, i32
  }
  func.func @transform_6(%arg0: i32) -> (i32, i32, i32) {
    %c0_i32 = arith.constant 0 : i32
    %c0_i32_0 = arith.constant 0 : i32
    %c0_i32_1 = arith.constant 0 : i32
    return %arg0, %c0_i32, %c0_i32_0 : i32, i32, i32
  }
}

module attributes {stable_mosaic.version = 11 : i64} {
  func.func @kernel(%arg0: i32, %arg1: memref<1x32x72xf32, #tpu.memory_space<vmem>>, %arg2: memref<16x32xf32, #tpu.memory_space<vmem>>, %arg3: memref<16x1xf32, #tpu.memory_space<vmem>>, %arg4: memref<16x1xf32, #tpu.memory_space<vmem>>, %arg5: memref<1x16x64xf32, #tpu.memory_space<vmem>>) attributes {dimension_semantics = [#tpu.dimension_semantics<parallel>], iteration_bounds = array<i64: 2>, scalar_prefetch = 0 : i64, scratch_operands = 0 : i64, tpu.core_type = #tpu.core_type<tc>, window_params = [{transform_indices = @transform_0, window_bounds = array<i64: 1, 32, 72>}, {pipeline_mode = #tpu.pipeline_mode<synchronous>, transform_indices = @transform_1, window_bounds = array<i64: 16, 32>}, {pipeline_mode = #tpu.pipeline_mode<synchronous>, transform_indices = @transform_2, window_bounds = array<i64: 16, 1>}, {pipeline_mode = #tpu.pipeline_mode<synchronous>, transform_indices = @transform_3, window_bounds = array<i64: 16, 1>}, {transform_indices = @transform_4, window_bounds = array<i64: 1, 16, 64>}]} {
    %c0 = arith.constant 0 : index
    %c0_0 = arith.constant 0 : index
    %c0_1 = arith.constant 0 : index
    %0 = vector.load %arg1[%c0, %c0_0, %c0_1] : memref<1x32x72xf32, #tpu.memory_space<vmem>>, vector<1x32x72xf32>
    %1 = vector.shape_cast %0 : vector<1x32x72xf32> to vector<32x72xf32>
    %2 = arith.truncf %1 : vector<32x72xf32> to vector<32x72xbf16>
    %c0_2 = arith.constant 0 : index
    %c0_3 = arith.constant 0 : index
    %3 = vector.load %arg2[%c0_2, %c0_3] : memref<16x32xf32, #tpu.memory_space<vmem>>, vector<16x32xf32>
    %4 = arith.truncf %3 : vector<16x32xf32> to vector<16x32xbf16>
    %5 = vector.extract_strided_slice %2 {offsets = [0, 0], sizes = [32, 64], strides = [1, 1]} : vector<32x72xbf16> to vector<32x64xbf16>
    %cst = arith.constant dense<0.000000e+00> : vector<16x64xf32>
    %6 = tpu.matmul %4, %5, %cst {dimension_numbers = #tpu.dot_dimension_numbers<[1], [0], [0], [1], [0, 0, 1, 1], [], []>} : vector<16x32xbf16>, vector<32x64xbf16>, vector<16x64xf32> -> vector<16x64xf32>
    %cst_4 = arith.constant dense<0.000000e+00> : vector<16xf32>
    %7 = vector.multi_reduction <add>, %6, %cst_4 [1] : vector<16x64xf32> to vector<16xf32>
    %8 = vector.shape_cast %7 : vector<16xf32> to vector<16x1xf32>
    %cst_5 = arith.constant 1.562500e-02 : f32
    %9 = vector.broadcast %cst_5 : f32 to vector<16x1xf32>
    %10 = arith.mulf %8, %9 : vector<16x1xf32>
    %11 = vector.broadcast %10 : vector<16x1xf32> to vector<16x64xf32>
    %12 = arith.subf %6, %11 : vector<16x64xf32>
    %13 = arith.mulf %12, %12 : vector<16x64xf32>
    %cst_6 = arith.constant dense<0.000000e+00> : vector<16xf32>
    %14 = vector.multi_reduction <add>, %13, %cst_6 [1] : vector<16x64xf32> to vector<16xf32>
    %15 = vector.shape_cast %14 : vector<16xf32> to vector<16x1xf32>
    %cst_7 = arith.constant 1.562500e-02 : f32
    %16 = vector.broadcast %cst_7 : f32 to vector<16x1xf32>
    %17 = arith.mulf %15, %16 : vector<16x1xf32>
    %cst_8 = arith.constant 9.99999974E-6 : f32
    %18 = vector.broadcast %cst_8 : f32 to vector<16x1xf32>
    %19 = arith.addf %17, %18 : vector<16x1xf32>
    %20 = math.rsqrt %19 : vector<16x1xf32>
    %21 = vector.broadcast %20 : vector<16x1xf32> to vector<16x64xf32>
    %22 = arith.mulf %12, %21 : vector<16x64xf32>
    %c0_9 = arith.constant 0 : index
    %c0_10 = arith.constant 0 : index
    %23 = vector.load %arg3[%c0_9, %c0_10] : memref<16x1xf32, #tpu.memory_space<vmem>>, vector<16x1xf32>
    %24 = vector.broadcast %23 : vector<16x1xf32> to vector<16x64xf32>
    %25 = arith.mulf %22, %24 : vector<16x64xf32>
    %c0_11 = arith.constant 0 : index
    %c0_12 = arith.constant 0 : index
    %26 = vector.load %arg4[%c0_11, %c0_12] : memref<16x1xf32, #tpu.memory_space<vmem>>, vector<16x1xf32>
    %27 = vector.broadcast %26 : vector<16x1xf32> to vector<16x64xf32>
    %28 = arith.addf %25, %27 : vector<16x64xf32>
    %c0_13 = arith.constant 0 : index
    %c0_14 = arith.constant 0 : index
    %c0_15 = arith.constant 0 : index
    %29 = vector.load %arg5[%c0_13, %c0_14, %c0_15] : memref<1x16x64xf32, #tpu.memory_space<vmem>>, vector<1x16x64xf32>
    %30 = vector.shape_cast %29 : vector<1x16x64xf32> to vector<16x64xf32>
    %31 = vector.shape_cast %28 : vector<16x64xf32> to vector<1x16x64xf32>
    tpu.vector_store %arg5[%c0_13, %c0_14, %c0_15], %31 {strides = array<i32>} : memref<1x16x64xf32, #tpu.memory_space<vmem>>, vector<1x16x64xf32>,
    return
  }
  func.func @transform_0(%arg0: i32) -> (i32, i32, i32) {
    %c0_i32 = arith.constant 0 : i32
    %c0_i32_0 = arith.constant 0 : i32
    %c0_i32_1 = arith.constant 0 : i32
    return %arg0, %c0_i32, %c0_i32_0 : i32, i32, i32
  }
  func.func @transform_1(%arg0: i32) -> (i32, i32) {
    %c0_i32 = arith.constant 0 : i32
    %c0_i32_0 = arith.constant 0 : i32
    %c0_i32_1 = arith.constant 0 : i32
    return %c0_i32, %c0_i32_0 : i32, i32
  }
  func.func @transform_2(%arg0: i32) -> (i32, i32) {
    %c0_i32 = arith.constant 0 : i32
    %c0_i32_0 = arith.constant 0 : i32
    %c0_i32_1 = arith.constant 0 : i32
    return %c0_i32, %c0_i32_0 : i32, i32
  }
  func.func @transform_3(%arg0: i32) -> (i32, i32) {
    %c0_i32 = arith.constant 0 : i32
    %c0_i32_0 = arith.constant 0 : i32
    %c0_i32_1 = arith.constant 0 : i32
    return %c0_i32, %c0_i32_0 : i32, i32
  }
  func.func @transform_4(%arg0: i32) -> (i32, i32, i32) {
    %c0_i32 = arith.constant 0 : i32
    %c0_i32_0 = arith.constant 0 : i32
    %c0_i32_1 = arith.constant 0 : i32
    return %arg0, %c0_i32, %c0_i32_0 : i32, i32, i32
  }
}

module attributes {stable_mosaic.version = 11 : i64} {
  func.func @kernel(%arg0: i32, %arg1: memref<1x32x90xf32, #tpu.memory_space<vmem>>, %arg2: memref<64x32xf32, #tpu.memory_space<vmem>>, %arg3: memref<16x1xf32, #tpu.memory_space<vmem>>, %arg4: memref<16x1xf32, #tpu.memory_space<vmem>>, %arg5: memref<1x72xf32, #tpu.memory_space<vmem>>, %arg6: memref<1x16x72xf32, #tpu.memory_space<vmem>>) attributes {dimension_semantics = [#tpu.dimension_semantics<parallel>], iteration_bounds = array<i64: 2>, scalar_prefetch = 0 : i64, scratch_operands = 0 : i64, tpu.core_type = #tpu.core_type<tc>, window_params = [{transform_indices = @transform_0, window_bounds = array<i64: 1, 32, 90>}, {pipeline_mode = #tpu.pipeline_mode<synchronous>, transform_indices = @transform_1, window_bounds = array<i64: 64, 32>}, {pipeline_mode = #tpu.pipeline_mode<synchronous>, transform_indices = @transform_2, window_bounds = array<i64: 16, 1>}, {pipeline_mode = #tpu.pipeline_mode<synchronous>, transform_indices = @transform_3, window_bounds = array<i64: 16, 1>}, {pipeline_mode = #tpu.pipeline_mode<synchronous>, transform_indices = @transform_4, window_bounds = array<i64: 1, 72>}, {transform_indices = @transform_5, window_bounds = array<i64: 1, 16, 72>}]} {
    %c0 = arith.constant 0 : index
    %c0_0 = arith.constant 0 : index
    %c0_1 = arith.constant 0 : index
    %0 = vector.load %arg1[%c0, %c0_0, %c0_1] : memref<1x32x90xf32, #tpu.memory_space<vmem>>, vector<1x32x90xf32>
    %1 = vector.shape_cast %0 : vector<1x32x90xf32> to vector<32x90xf32>
    %2 = arith.truncf %1 : vector<32x90xf32> to vector<32x90xbf16>
    %c0_2 = arith.constant 0 : index
    %c0_3 = arith.constant 0 : index
    %3 = vector.load %arg2[%c0_2, %c0_3] : memref<64x32xf32, #tpu.memory_space<vmem>>, vector<64x32xf32>
    %4 = arith.truncf %3 : vector<64x32xf32> to vector<64x32xbf16>
    %5 = vector.extract_strided_slice %4 {offsets = [0, 0], sizes = [16, 32], strides = [1, 1]} : vector<64x32xbf16> to vector<16x32xbf16>
    %6 = vector.extract_strided_slice %2 {offsets = [0, 0], sizes = [32, 72], strides = [1, 1]} : vector<32x90xbf16> to vector<32x72xbf16>
    %cst = arith.constant dense<0.000000e+00> : vector<16x72xf32>
    %7 = tpu.matmul %5, %6, %cst {dimension_numbers = #tpu.dot_dimension_numbers<[1], [0], [0], [1], [0, 0, 1, 1], [], []>} : vector<16x32xbf16>, vector<32x72xbf16>, vector<16x72xf32> -> vector<16x72xf32>
    %8 = vector.extract_strided_slice %4 {offsets = [16, 0], sizes = [16, 32], strides = [1, 1]} : vector<64x32xbf16> to vector<16x32xbf16>
    %9 = vector.extract_strided_slice %2 {offsets = [0, 1], sizes = [32, 72], strides = [1, 1]} : vector<32x90xbf16> to vector<32x72xbf16>
    %cst_4 = arith.constant dense<0.000000e+00> : vector<16x72xf32>
    %10 = tpu.matmul %8, %9, %cst_4 {dimension_numbers = #tpu.dot_dimension_numbers<[1], [0], [0], [1], [0, 0, 1, 1], [], []>} : vector<16x32xbf16>, vector<32x72xbf16>, vector<16x72xf32> -> vector<16x72xf32>
    %11 = arith.addf %7, %10 : vector<16x72xf32>
    %12 = vector.extract_strided_slice %4 {offsets = [32, 0], sizes = [16, 32], strides = [1, 1]} : vector<64x32xbf16> to vector<16x32xbf16>
    %13 = vector.extract_strided_slice %2 {offsets = [0, 9], sizes = [32, 72], strides = [1, 1]} : vector<32x90xbf16> to vector<32x72xbf16>
    %cst_5 = arith.constant dense<0.000000e+00> : vector<16x72xf32>
    %14 = tpu.matmul %12, %13, %cst_5 {dimension_numbers = #tpu.dot_dimension_numbers<[1], [0], [0], [1], [0, 0, 1, 1], [], []>} : vector<16x32xbf16>, vector<32x72xbf16>, vector<16x72xf32> -> vector<16x72xf32>
    %15 = arith.addf %11, %14 : vector<16x72xf32>
    %16 = vector.extract_strided_slice %4 {offsets = [48, 0], sizes = [16, 32], strides = [1, 1]} : vector<64x32xbf16> to vector<16x32xbf16>
    %17 = vector.extract_strided_slice %2 {offsets = [0, 10], sizes = [32, 72], strides = [1, 1]} : vector<32x90xbf16> to vector<32x72xbf16>
    %cst_6 = arith.constant dense<0.000000e+00> : vector<16x72xf32>
    %18 = tpu.matmul %16, %17, %cst_6 {dimension_numbers = #tpu.dot_dimension_numbers<[1], [0], [0], [1], [0, 0, 1, 1], [], []>} : vector<16x32xbf16>, vector<32x72xbf16>, vector<16x72xf32> -> vector<16x72xf32>
    %19 = arith.addf %15, %18 : vector<16x72xf32>
    %c0_7 = arith.constant 0 : index
    %c0_8 = arith.constant 0 : index
    %20 = vector.load %arg5[%c0_7, %c0_8] : memref<1x72xf32, #tpu.memory_space<vmem>>, vector<1x72xf32>
    %21 = vector.broadcast %20 : vector<1x72xf32> to vector<16x72xf32>
    %22 = arith.mulf %19, %21 : vector<16x72xf32>
    %cst_9 = arith.constant dense<0.000000e+00> : vector<16xf32>
    %23 = vector.multi_reduction <add>, %22, %cst_9 [1] : vector<16x72xf32> to vector<16xf32>
    %24 = vector.shape_cast %23 : vector<16xf32> to vector<16x1xf32>
    %cst_10 = arith.constant 1.562500e-02 : f32
    %25 = vector.broadcast %cst_10 : f32 to vector<16x1xf32>
    %26 = arith.mulf %24, %25 : vector<16x1xf32>
    %27 = vector.broadcast %26 : vector<16x1xf32> to vector<16x72xf32>
    %28 = arith.subf %19, %27 : vector<16x72xf32>
    %29 = vector.broadcast %20 : vector<1x72xf32> to vector<16x72xf32>
    %30 = arith.mulf %28, %29 : vector<16x72xf32>
    %31 = arith.mulf %30, %30 : vector<16x72xf32>
    %cst_11 = arith.constant dense<0.000000e+00> : vector<16xf32>
    %32 = vector.multi_reduction <add>, %31, %cst_11 [1] : vector<16x72xf32> to vector<16xf32>
    %33 = vector.shape_cast %32 : vector<16xf32> to vector<16x1xf32>
    %cst_12 = arith.constant 1.562500e-02 : f32
    %34 = vector.broadcast %cst_12 : f32 to vector<16x1xf32>
    %35 = arith.mulf %33, %34 : vector<16x1xf32>
    %cst_13 = arith.constant 9.99999974E-6 : f32
    %36 = vector.broadcast %cst_13 : f32 to vector<16x1xf32>
    %37 = arith.addf %35, %36 : vector<16x1xf32>
    %38 = math.rsqrt %37 : vector<16x1xf32>
    %39 = vector.broadcast %38 : vector<16x1xf32> to vector<16x72xf32>
    %40 = arith.mulf %28, %39 : vector<16x72xf32>
    %c0_14 = arith.constant 0 : index
    %c0_15 = arith.constant 0 : index
    %41 = vector.load %arg3[%c0_14, %c0_15] : memref<16x1xf32, #tpu.memory_space<vmem>>, vector<16x1xf32>
    %42 = vector.broadcast %41 : vector<16x1xf32> to vector<16x72xf32>
    %43 = arith.mulf %40, %42 : vector<16x72xf32>
    %c0_16 = arith.constant 0 : index
    %c0_17 = arith.constant 0 : index
    %44 = vector.load %arg4[%c0_16, %c0_17] : memref<16x1xf32, #tpu.memory_space<vmem>>, vector<16x1xf32>
    %45 = vector.broadcast %44 : vector<16x1xf32> to vector<16x72xf32>
    %46 = arith.addf %43, %45 : vector<16x72xf32>
    %cst_18 = arith.constant 0.000000e+00 : f32
    %47 = vector.broadcast %cst_18 : f32 to vector<16x72xf32>
    %48 = arith.cmpf oge, %46, %47 : vector<16x72xf32>
    %cst_19 = arith.constant 0.00999999977 : f32
    %49 = vector.broadcast %cst_19 : f32 to vector<16x72xf32>
    %50 = arith.mulf %46, %49 : vector<16x72xf32>
    %51 = arith.select %48, %46, %50 : vector<16x72xi1>, vector<16x72xf32>
    %c0_20 = arith.constant 0 : index
    %c0_21 = arith.constant 0 : index
    %c0_22 = arith.constant 0 : index
    %52 = vector.load %arg6[%c0_20, %c0_21, %c0_22] : memref<1x16x72xf32, #tpu.memory_space<vmem>>, vector<1x16x72xf32>
    %53 = vector.shape_cast %52 : vector<1x16x72xf32> to vector<16x72xf32>
    %54 = vector.shape_cast %51 : vector<16x72xf32> to vector<1x16x72xf32>
    tpu.vector_store %arg6[%c0_20, %c0_21, %c0_22], %54 {strides = array<i32>} : memref<1x16x72xf32, #tpu.memory_space<vmem>>, vector<1x16x72xf32>,
    return
  }
  func.func @transform_0(%arg0: i32) -> (i32, i32, i32) {
    %c0_i32 = arith.constant 0 : i32
    %c0_i32_0 = arith.constant 0 : i32
    %c0_i32_1 = arith.constant 0 : i32
    return %arg0, %c0_i32, %c0_i32_0 : i32, i32, i32
  }
  func.func @transform_1(%arg0: i32) -> (i32, i32) {
    %c0_i32 = arith.constant 0 : i32
    %c0_i32_0 = arith.constant 0 : i32
    %c0_i32_1 = arith.constant 0 : i32
    return %c0_i32, %c0_i32_0 : i32, i32
  }
  func.func @transform_2(%arg0: i32) -> (i32, i32) {
    %c0_i32 = arith.constant 0 : i32
    %c0_i32_0 = arith.constant 0 : i32
    %c0_i32_1 = arith.constant 0 : i32
    return %c0_i32, %c0_i32_0 : i32, i32
  }
  func.func @transform_3(%arg0: i32) -> (i32, i32) {
    %c0_i32 = arith.constant 0 : i32
    %c0_i32_0 = arith.constant 0 : i32
    %c0_i32_1 = arith.constant 0 : i32
    return %c0_i32, %c0_i32_0 : i32, i32
  }
  func.func @transform_4(%arg0: i32) -> (i32, i32) {
    %c0_i32 = arith.constant 0 : i32
    %c0_i32_0 = arith.constant 0 : i32
    %c0_i32_1 = arith.constant 0 : i32
    return %c0_i32, %c0_i32_0 : i32, i32
  }
  func.func @transform_5(%arg0: i32) -> (i32, i32, i32) {
    %c0_i32 = arith.constant 0 : i32
    %c0_i32_0 = arith.constant 0 : i32
    %c0_i32_1 = arith.constant 0 : i32
    return %arg0, %c0_i32, %c0_i32_0 : i32, i32, i32
  }
}

module attributes {stable_mosaic.version = 11 : i64} {
  func.func @kernel(%arg0: i32, %arg1: memref<1x16x110xf32, #tpu.memory_space<vmem>>, %arg2: memref<144x16xf32, #tpu.memory_space<vmem>>, %arg3: memref<16x1xf32, #tpu.memory_space<vmem>>, %arg4: memref<16x1xf32, #tpu.memory_space<vmem>>, %arg5: memref<1x80xf32, #tpu.memory_space<vmem>>, %arg6: memref<1x16x80xf32, #tpu.memory_space<vmem>>, %arg7: memref<1x16x80xf32, #tpu.memory_space<vmem>>) attributes {dimension_semantics = [#tpu.dimension_semantics<parallel>], iteration_bounds = array<i64: 2>, scalar_prefetch = 0 : i64, scratch_operands = 0 : i64, tpu.core_type = #tpu.core_type<tc>, window_params = [{transform_indices = @transform_0, window_bounds = array<i64: 1, 16, 110>}, {pipeline_mode = #tpu.pipeline_mode<synchronous>, transform_indices = @transform_1, window_bounds = array<i64: 144, 16>}, {pipeline_mode = #tpu.pipeline_mode<synchronous>, transform_indices = @transform_2, window_bounds = array<i64: 16, 1>}, {pipeline_mode = #tpu.pipeline_mode<synchronous>, transform_indices = @transform_3, window_bounds = array<i64: 16, 1>}, {pipeline_mode = #tpu.pipeline_mode<synchronous>, transform_indices = @transform_4, window_bounds = array<i64: 1, 80>}, {transform_indices = @transform_5, window_bounds = array<i64: 1, 16, 80>}, {transform_indices = @transform_6, window_bounds = array<i64: 1, 16, 80>}]} {
    %c0 = arith.constant 0 : index
    %c0_0 = arith.constant 0 : index
    %c0_1 = arith.constant 0 : index
    %0 = vector.load %arg1[%c0, %c0_0, %c0_1] : memref<1x16x110xf32, #tpu.memory_space<vmem>>, vector<1x16x110xf32>
    %1 = vector.shape_cast %0 : vector<1x16x110xf32> to vector<16x110xf32>
    %2 = arith.truncf %1 : vector<16x110xf32> to vector<16x110xbf16>
    %c0_2 = arith.constant 0 : index
    %c0_3 = arith.constant 0 : index
    %3 = vector.load %arg2[%c0_2, %c0_3] : memref<144x16xf32, #tpu.memory_space<vmem>>, vector<144x16xf32>
    %4 = arith.truncf %3 : vector<144x16xf32> to vector<144x16xbf16>
    %5 = vector.extract_strided_slice %4 {offsets = [0, 0], sizes = [16, 16], strides = [1, 1]} : vector<144x16xbf16> to vector<16x16xbf16>
    %6 = vector.extract_strided_slice %2 {offsets = [0, 0], sizes = [16, 80], strides = [1, 1]} : vector<16x110xbf16> to vector<16x80xbf16>
    %cst = arith.constant dense<0.000000e+00> : vector<16x80xf32>
    %7 = tpu.matmul %5, %6, %cst {dimension_numbers = #tpu.dot_dimension_numbers<[1], [0], [0], [1], [0, 0, 1, 1], [], []>} : vector<16x16xbf16>, vector<16x80xbf16>, vector<16x80xf32> -> vector<16x80xf32>
    %8 = vector.extract_strided_slice %4 {offsets = [16, 0], sizes = [16, 16], strides = [1, 1]} : vector<144x16xbf16> to vector<16x16xbf16>
    %9 = vector.extract_strided_slice %2 {offsets = [0, 1], sizes = [16, 80], strides = [1, 1]} : vector<16x110xbf16> to vector<16x80xbf16>
    %cst_4 = arith.constant dense<0.000000e+00> : vector<16x80xf32>
    %10 = tpu.matmul %8, %9, %cst_4 {dimension_numbers = #tpu.dot_dimension_numbers<[1], [0], [0], [1], [0, 0, 1, 1], [], []>} : vector<16x16xbf16>, vector<16x80xbf16>, vector<16x80xf32> -> vector<16x80xf32>
    %11 = arith.addf %7, %10 : vector<16x80xf32>
    %12 = vector.extract_strided_slice %4 {offsets = [32, 0], sizes = [16, 16], strides = [1, 1]} : vector<144x16xbf16> to vector<16x16xbf16>
    %13 = vector.extract_strided_slice %2 {offsets = [0, 2], sizes = [16, 80], strides = [1, 1]} : vector<16x110xbf16> to vector<16x80xbf16>
    %cst_5 = arith.constant dense<0.000000e+00> : vector<16x80xf32>
    %14 = tpu.matmul %12, %13, %cst_5 {dimension_numbers = #tpu.dot_dimension_numbers<[1], [0], [0], [1], [0, 0, 1, 1], [], []>} : vector<16x16xbf16>, vector<16x80xbf16>, vector<16x80xf32> -> vector<16x80xf32>
    %15 = arith.addf %11, %14 : vector<16x80xf32>
    %16 = vector.extract_strided_slice %4 {offsets = [48, 0], sizes = [16, 16], strides = [1, 1]} : vector<144x16xbf16> to vector<16x16xbf16>
    %17 = vector.extract_strided_slice %2 {offsets = [0, 10], sizes = [16, 80], strides = [1, 1]} : vector<16x110xbf16> to vector<16x80xbf16>
    %cst_6 = arith.constant dense<0.000000e+00> : vector<16x80xf32>
    %18 = tpu.matmul %16, %17, %cst_6 {dimension_numbers = #tpu.dot_dimension_numbers<[1], [0], [0], [1], [0, 0, 1, 1], [], []>} : vector<16x16xbf16>, vector<16x80xbf16>, vector<16x80xf32> -> vector<16x80xf32>
    %19 = arith.addf %15, %18 : vector<16x80xf32>
    %20 = vector.extract_strided_slice %4 {offsets = [64, 0], sizes = [16, 16], strides = [1, 1]} : vector<144x16xbf16> to vector<16x16xbf16>
    %21 = vector.extract_strided_slice %2 {offsets = [0, 11], sizes = [16, 80], strides = [1, 1]} : vector<16x110xbf16> to vector<16x80xbf16>
    %cst_7 = arith.constant dense<0.000000e+00> : vector<16x80xf32>
    %22 = tpu.matmul %20, %21, %cst_7 {dimension_numbers = #tpu.dot_dimension_numbers<[1], [0], [0], [1], [0, 0, 1, 1], [], []>} : vector<16x16xbf16>, vector<16x80xbf16>, vector<16x80xf32> -> vector<16x80xf32>
    %23 = arith.addf %19, %22 : vector<16x80xf32>
    %24 = vector.extract_strided_slice %4 {offsets = [80, 0], sizes = [16, 16], strides = [1, 1]} : vector<144x16xbf16> to vector<16x16xbf16>
    %25 = vector.extract_strided_slice %2 {offsets = [0, 12], sizes = [16, 80], strides = [1, 1]} : vector<16x110xbf16> to vector<16x80xbf16>
    %cst_8 = arith.constant dense<0.000000e+00> : vector<16x80xf32>
    %26 = tpu.matmul %24, %25, %cst_8 {dimension_numbers = #tpu.dot_dimension_numbers<[1], [0], [0], [1], [0, 0, 1, 1], [], []>} : vector<16x16xbf16>, vector<16x80xbf16>, vector<16x80xf32> -> vector<16x80xf32>
    %27 = arith.addf %23, %26 : vector<16x80xf32>
    %28 = vector.extract_strided_slice %4 {offsets = [96, 0], sizes = [16, 16], strides = [1, 1]} : vector<144x16xbf16> to vector<16x16xbf16>
    %29 = vector.extract_strided_slice %2 {offsets = [0, 20], sizes = [16, 80], strides = [1, 1]} : vector<16x110xbf16> to vector<16x80xbf16>
    %cst_9 = arith.constant dense<0.000000e+00> : vector<16x80xf32>
    %30 = tpu.matmul %28, %29, %cst_9 {dimension_numbers = #tpu.dot_dimension_numbers<[1], [0], [0], [1], [0, 0, 1, 1], [], []>} : vector<16x16xbf16>, vector<16x80xbf16>, vector<16x80xf32> -> vector<16x80xf32>
    %31 = arith.addf %27, %30 : vector<16x80xf32>
    %32 = vector.extract_strided_slice %4 {offsets = [112, 0], sizes = [16, 16], strides = [1, 1]} : vector<144x16xbf16> to vector<16x16xbf16>
    %33 = vector.extract_strided_slice %2 {offsets = [0, 21], sizes = [16, 80], strides = [1, 1]} : vector<16x110xbf16> to vector<16x80xbf16>
    %cst_10 = arith.constant dense<0.000000e+00> : vector<16x80xf32>
    %34 = tpu.matmul %32, %33, %cst_10 {dimension_numbers = #tpu.dot_dimension_numbers<[1], [0], [0], [1], [0, 0, 1, 1], [], []>} : vector<16x16xbf16>, vector<16x80xbf16>, vector<16x80xf32> -> vector<16x80xf32>
    %35 = arith.addf %31, %34 : vector<16x80xf32>
    %36 = vector.extract_strided_slice %4 {offsets = [128, 0], sizes = [16, 16], strides = [1, 1]} : vector<144x16xbf16> to vector<16x16xbf16>
    %37 = vector.extract_strided_slice %2 {offsets = [0, 22], sizes = [16, 80], strides = [1, 1]} : vector<16x110xbf16> to vector<16x80xbf16>
    %cst_11 = arith.constant dense<0.000000e+00> : vector<16x80xf32>
    %38 = tpu.matmul %36, %37, %cst_11 {dimension_numbers = #tpu.dot_dimension_numbers<[1], [0], [0], [1], [0, 0, 1, 1], [], []>} : vector<16x16xbf16>, vector<16x80xbf16>, vector<16x80xf32> -> vector<16x80xf32>
    %39 = arith.addf %35, %38 : vector<16x80xf32>
    %c0_12 = arith.constant 0 : index
    %c0_13 = arith.constant 0 : index
    %40 = vector.load %arg5[%c0_12, %c0_13] : memref<1x80xf32, #tpu.memory_space<vmem>>, vector<1x80xf32>
    %41 = vector.broadcast %40 : vector<1x80xf32> to vector<16x80xf32>
    %42 = arith.mulf %39, %41 : vector<16x80xf32>
    %cst_14 = arith.constant dense<0.000000e+00> : vector<16xf32>
    %43 = vector.multi_reduction <add>, %42, %cst_14 [1] : vector<16x80xf32> to vector<16xf32>
    %44 = vector.shape_cast %43 : vector<16xf32> to vector<16x1xf32>
    %cst_15 = arith.constant 1.562500e-02 : f32
    %45 = vector.broadcast %cst_15 : f32 to vector<16x1xf32>
    %46 = arith.mulf %44, %45 : vector<16x1xf32>
    %47 = vector.broadcast %46 : vector<16x1xf32> to vector<16x80xf32>
    %48 = arith.subf %39, %47 : vector<16x80xf32>
    %49 = vector.broadcast %40 : vector<1x80xf32> to vector<16x80xf32>
    %50 = arith.mulf %48, %49 : vector<16x80xf32>
    %51 = arith.mulf %50, %50 : vector<16x80xf32>
    %cst_16 = arith.constant dense<0.000000e+00> : vector<16xf32>
    %52 = vector.multi_reduction <add>, %51, %cst_16 [1] : vector<16x80xf32> to vector<16xf32>
    %53 = vector.shape_cast %52 : vector<16xf32> to vector<16x1xf32>
    %cst_17 = arith.constant 1.562500e-02 : f32
    %54 = vector.broadcast %cst_17 : f32 to vector<16x1xf32>
    %55 = arith.mulf %53, %54 : vector<16x1xf32>
    %cst_18 = arith.constant 9.99999974E-6 : f32
    %56 = vector.broadcast %cst_18 : f32 to vector<16x1xf32>
    %57 = arith.addf %55, %56 : vector<16x1xf32>
    %58 = math.rsqrt %57 : vector<16x1xf32>
    %59 = vector.broadcast %58 : vector<16x1xf32> to vector<16x80xf32>
    %60 = arith.mulf %48, %59 : vector<16x80xf32>
    %c0_19 = arith.constant 0 : index
    %c0_20 = arith.constant 0 : index
    %61 = vector.load %arg3[%c0_19, %c0_20] : memref<16x1xf32, #tpu.memory_space<vmem>>, vector<16x1xf32>
    %62 = vector.broadcast %61 : vector<16x1xf32> to vector<16x80xf32>
    %63 = arith.mulf %60, %62 : vector<16x80xf32>
    %c0_21 = arith.constant 0 : index
    %c0_22 = arith.constant 0 : index
    %64 = vector.load %arg4[%c0_21, %c0_22] : memref<16x1xf32, #tpu.memory_space<vmem>>, vector<16x1xf32>
    %65 = vector.broadcast %64 : vector<16x1xf32> to vector<16x80xf32>
    %66 = arith.addf %63, %65 : vector<16x80xf32>
    %c0_23 = arith.constant 0 : index
    %c0_24 = arith.constant 0 : index
    %c0_25 = arith.constant 0 : index
    %67 = vector.load %arg6[%c0_23, %c0_24, %c0_25] : memref<1x16x80xf32, #tpu.memory_space<vmem>>, vector<1x16x80xf32>
    %68 = vector.shape_cast %67 : vector<1x16x80xf32> to vector<16x80xf32>
    %69 = arith.addf %66, %68 : vector<16x80xf32>
    %cst_26 = arith.constant 0.000000e+00 : f32
    %70 = vector.broadcast %cst_26 : f32 to vector<16x80xf32>
    %71 = arith.cmpf oge, %69, %70 : vector<16x80xf32>
    %cst_27 = arith.constant 0.00999999977 : f32
    %72 = vector.broadcast %cst_27 : f32 to vector<16x80xf32>
    %73 = arith.mulf %69, %72 : vector<16x80xf32>
    %74 = arith.select %71, %69, %73 : vector<16x80xi1>, vector<16x80xf32>
    %c0_28 = arith.constant 0 : index
    %c0_29 = arith.constant 0 : index
    %c0_30 = arith.constant 0 : index
    %75 = vector.load %arg7[%c0_28, %c0_29, %c0_30] : memref<1x16x80xf32, #tpu.memory_space<vmem>>, vector<1x16x80xf32>
    %76 = vector.shape_cast %75 : vector<1x16x80xf32> to vector<16x80xf32>
    %77 = vector.shape_cast %74 : vector<16x80xf32> to vector<1x16x80xf32>
    tpu.vector_store %arg7[%c0_28, %c0_29, %c0_30], %77 {strides = array<i32>} : memref<1x16x80xf32, #tpu.memory_space<vmem>>, vector<1x16x80xf32>,
    return
  }
  func.func @transform_0(%arg0: i32) -> (i32, i32, i32) {
    %c0_i32 = arith.constant 0 : i32
    %c0_i32_0 = arith.constant 0 : i32
    %c0_i32_1 = arith.constant 0 : i32
    return %arg0, %c0_i32, %c0_i32_0 : i32, i32, i32
  }
  func.func @transform_1(%arg0: i32) -> (i32, i32) {
    %c0_i32 = arith.constant 0 : i32
    %c0_i32_0 = arith.constant 0 : i32
    %c0_i32_1 = arith.constant 0 : i32
    return %c0_i32, %c0_i32_0 : i32, i32
  }
  func.func @transform_2(%arg0: i32) -> (i32, i32) {
    %c0_i32 = arith.constant 0 : i32
    %c0_i32_0 = arith.constant 0 : i32
    %c0_i32_1 = arith.constant 0 : i32
    return %c0_i32, %c0_i32_0 : i32, i32
  }
  func.func @transform_3(%arg0: i32) -> (i32, i32) {
    %c0_i32 = arith.constant 0 : i32
    %c0_i32_0 = arith.constant 0 : i32
    %c0_i32_1 = arith.constant 0 : i32
    return %c0_i32, %c0_i32_0 : i32, i32
  }
  func.func @transform_4(%arg0: i32) -> (i32, i32) {
    %c0_i32 = arith.constant 0 : i32
    %c0_i32_0 = arith.constant 0 : i32
    %c0_i32_1 = arith.constant 0 : i32
    return %c0_i32, %c0_i32_0 : i32, i32
  }
  func.func @transform_5(%arg0: i32) -> (i32, i32, i32) {
    %c0_i32 = arith.constant 0 : i32
    %c0_i32_0 = arith.constant 0 : i32
    %c0_i32_1 = arith.constant 0 : i32
    return %arg0, %c0_i32, %c0_i32_0 : i32, i32, i32
  }
  func.func @transform_6(%arg0: i32) -> (i32, i32, i32) {
    %c0_i32 = arith.constant 0 : i32
    %c0_i32_0 = arith.constant 0 : i32
    %c0_i32_1 = arith.constant 0 : i32
    return %arg0, %c0_i32, %c0_i32_0 : i32, i32, i32
  }
}

module attributes {stable_mosaic.version = 11 : i64} {
  func.func @kernel(%arg0: i32, %arg1: memref<1x64x20xf32, #tpu.memory_space<vmem>>, %arg2: memref<32x64xf32, #tpu.memory_space<vmem>>, %arg3: memref<32x1xf32, #tpu.memory_space<vmem>>, %arg4: memref<32x1xf32, #tpu.memory_space<vmem>>, %arg5: memref<1x32x16xf32, #tpu.memory_space<vmem>>) attributes {dimension_semantics = [#tpu.dimension_semantics<parallel>], iteration_bounds = array<i64: 2>, scalar_prefetch = 0 : i64, scratch_operands = 0 : i64, tpu.core_type = #tpu.core_type<tc>, window_params = [{transform_indices = @transform_0, window_bounds = array<i64: 1, 64, 20>}, {pipeline_mode = #tpu.pipeline_mode<synchronous>, transform_indices = @transform_1, window_bounds = array<i64: 32, 64>}, {pipeline_mode = #tpu.pipeline_mode<synchronous>, transform_indices = @transform_2, window_bounds = array<i64: 32, 1>}, {pipeline_mode = #tpu.pipeline_mode<synchronous>, transform_indices = @transform_3, window_bounds = array<i64: 32, 1>}, {transform_indices = @transform_4, window_bounds = array<i64: 1, 32, 16>}]} {
    %c0 = arith.constant 0 : index
    %c0_0 = arith.constant 0 : index
    %c0_1 = arith.constant 0 : index
    %0 = vector.load %arg1[%c0, %c0_0, %c0_1] : memref<1x64x20xf32, #tpu.memory_space<vmem>>, vector<1x64x20xf32>
    %1 = vector.shape_cast %0 : vector<1x64x20xf32> to vector<64x20xf32>
    %2 = arith.truncf %1 : vector<64x20xf32> to vector<64x20xbf16>
    %c0_2 = arith.constant 0 : index
    %c0_3 = arith.constant 0 : index
    %3 = vector.load %arg2[%c0_2, %c0_3] : memref<32x64xf32, #tpu.memory_space<vmem>>, vector<32x64xf32>
    %4 = arith.truncf %3 : vector<32x64xf32> to vector<32x64xbf16>
    %5 = vector.extract_strided_slice %2 {offsets = [0, 0], sizes = [64, 16], strides = [1, 1]} : vector<64x20xbf16> to vector<64x16xbf16>
    %cst = arith.constant dense<0.000000e+00> : vector<32x16xf32>
    %6 = tpu.matmul %4, %5, %cst {dimension_numbers = #tpu.dot_dimension_numbers<[1], [0], [0], [1], [0, 0, 1, 1], [], []>} : vector<32x64xbf16>, vector<64x16xbf16>, vector<32x16xf32> -> vector<32x16xf32>
    %cst_4 = arith.constant dense<0.000000e+00> : vector<32xf32>
    %7 = vector.multi_reduction <add>, %6, %cst_4 [1] : vector<32x16xf32> to vector<32xf32>
    %8 = vector.shape_cast %7 : vector<32xf32> to vector<32x1xf32>
    %cst_5 = arith.constant 6.250000e-02 : f32
    %9 = vector.broadcast %cst_5 : f32 to vector<32x1xf32>
    %10 = arith.mulf %8, %9 : vector<32x1xf32>
    %11 = vector.broadcast %10 : vector<32x1xf32> to vector<32x16xf32>
    %12 = arith.subf %6, %11 : vector<32x16xf32>
    %13 = arith.mulf %12, %12 : vector<32x16xf32>
    %cst_6 = arith.constant dense<0.000000e+00> : vector<32xf32>
    %14 = vector.multi_reduction <add>, %13, %cst_6 [1] : vector<32x16xf32> to vector<32xf32>
    %15 = vector.shape_cast %14 : vector<32xf32> to vector<32x1xf32>
    %cst_7 = arith.constant 6.250000e-02 : f32
    %16 = vector.broadcast %cst_7 : f32 to vector<32x1xf32>
    %17 = arith.mulf %15, %16 : vector<32x1xf32>
    %cst_8 = arith.constant 9.99999974E-6 : f32
    %18 = vector.broadcast %cst_8 : f32 to vector<32x1xf32>
    %19 = arith.addf %17, %18 : vector<32x1xf32>
    %20 = math.rsqrt %19 : vector<32x1xf32>
    %21 = vector.broadcast %20 : vector<32x1xf32> to vector<32x16xf32>
    %22 = arith.mulf %12, %21 : vector<32x16xf32>
    %c0_9 = arith.constant 0 : index
    %c0_10 = arith.constant 0 : index
    %23 = vector.load %arg3[%c0_9, %c0_10] : memref<32x1xf32, #tpu.memory_space<vmem>>, vector<32x1xf32>
    %24 = vector.broadcast %23 : vector<32x1xf32> to vector<32x16xf32>
    %25 = arith.mulf %22, %24 : vector<32x16xf32>
    %c0_11 = arith.constant 0 : index
    %c0_12 = arith.constant 0 : index
    %26 = vector.load %arg4[%c0_11, %c0_12] : memref<32x1xf32, #tpu.memory_space<vmem>>, vector<32x1xf32>
    %27 = vector.broadcast %26 : vector<32x1xf32> to vector<32x16xf32>
    %28 = arith.addf %25, %27 : vector<32x16xf32>
    %c0_13 = arith.constant 0 : index
    %c0_14 = arith.constant 0 : index
    %c0_15 = arith.constant 0 : index
    %29 = vector.load %arg5[%c0_13, %c0_14, %c0_15] : memref<1x32x16xf32, #tpu.memory_space<vmem>>, vector<1x32x16xf32>
    %30 = vector.shape_cast %29 : vector<1x32x16xf32> to vector<32x16xf32>
    %31 = vector.shape_cast %28 : vector<32x16xf32> to vector<1x32x16xf32>
    tpu.vector_store %arg5[%c0_13, %c0_14, %c0_15], %31 {strides = array<i32>} : memref<1x32x16xf32, #tpu.memory_space<vmem>>, vector<1x32x16xf32>,
    return
  }
  func.func @transform_0(%arg0: i32) -> (i32, i32, i32) {
    %c0_i32 = arith.constant 0 : i32
    %c0_i32_0 = arith.constant 0 : i32
    %c0_i32_1 = arith.constant 0 : i32
    return %arg0, %c0_i32, %c0_i32_0 : i32, i32, i32
  }
  func.func @transform_1(%arg0: i32) -> (i32, i32) {
    %c0_i32 = arith.constant 0 : i32
    %c0_i32_0 = arith.constant 0 : i32
    %c0_i32_1 = arith.constant 0 : i32
    return %c0_i32, %c0_i32_0 : i32, i32
  }
  func.func @transform_2(%arg0: i32) -> (i32, i32) {
    %c0_i32 = arith.constant 0 : i32
    %c0_i32_0 = arith.constant 0 : i32
    %c0_i32_1 = arith.constant 0 : i32
    return %c0_i32, %c0_i32_0 : i32, i32
  }
  func.func @transform_3(%arg0: i32) -> (i32, i32) {
    %c0_i32 = arith.constant 0 : i32
    %c0_i32_0 = arith.constant 0 : i32
    %c0_i32_1 = arith.constant 0 : i32
    return %c0_i32, %c0_i32_0 : i32, i32
  }
  func.func @transform_4(%arg0: i32) -> (i32, i32, i32) {
    %c0_i32 = arith.constant 0 : i32
    %c0_i32_0 = arith.constant 0 : i32
    %c0_i32_1 = arith.constant 0 : i32
    return %arg0, %c0_i32, %c0_i32_0 : i32, i32, i32
  }
}

module attributes {stable_mosaic.version = 11 : i64} {
  func.func @kernel(%arg0: i32, %arg1: memref<1x64x30xf32, #tpu.memory_space<vmem>>, %arg2: memref<128x64xf32, #tpu.memory_space<vmem>>, %arg3: memref<32x1xf32, #tpu.memory_space<vmem>>, %arg4: memref<32x1xf32, #tpu.memory_space<vmem>>, %arg5: memref<1x20xf32, #tpu.memory_space<vmem>>, %arg6: memref<1x32x20xf32, #tpu.memory_space<vmem>>) attributes {dimension_semantics = [#tpu.dimension_semantics<parallel>], iteration_bounds = array<i64: 2>, scalar_prefetch = 0 : i64, scratch_operands = 0 : i64, tpu.core_type = #tpu.core_type<tc>, window_params = [{transform_indices = @transform_0, window_bounds = array<i64: 1, 64, 30>}, {pipeline_mode = #tpu.pipeline_mode<synchronous>, transform_indices = @transform_1, window_bounds = array<i64: 128, 64>}, {pipeline_mode = #tpu.pipeline_mode<synchronous>, transform_indices = @transform_2, window_bounds = array<i64: 32, 1>}, {pipeline_mode = #tpu.pipeline_mode<synchronous>, transform_indices = @transform_3, window_bounds = array<i64: 32, 1>}, {pipeline_mode = #tpu.pipeline_mode<synchronous>, transform_indices = @transform_4, window_bounds = array<i64: 1, 20>}, {transform_indices = @transform_5, window_bounds = array<i64: 1, 32, 20>}]} {
    %c0 = arith.constant 0 : index
    %c0_0 = arith.constant 0 : index
    %c0_1 = arith.constant 0 : index
    %0 = vector.load %arg1[%c0, %c0_0, %c0_1] : memref<1x64x30xf32, #tpu.memory_space<vmem>>, vector<1x64x30xf32>
    %1 = vector.shape_cast %0 : vector<1x64x30xf32> to vector<64x30xf32>
    %2 = arith.truncf %1 : vector<64x30xf32> to vector<64x30xbf16>
    %c0_2 = arith.constant 0 : index
    %c0_3 = arith.constant 0 : index
    %3 = vector.load %arg2[%c0_2, %c0_3] : memref<128x64xf32, #tpu.memory_space<vmem>>, vector<128x64xf32>
    %4 = arith.truncf %3 : vector<128x64xf32> to vector<128x64xbf16>
    %5 = vector.extract_strided_slice %4 {offsets = [0, 0], sizes = [32, 64], strides = [1, 1]} : vector<128x64xbf16> to vector<32x64xbf16>
    %6 = vector.extract_strided_slice %2 {offsets = [0, 0], sizes = [64, 20], strides = [1, 1]} : vector<64x30xbf16> to vector<64x20xbf16>
    %cst = arith.constant dense<0.000000e+00> : vector<32x20xf32>
    %7 = tpu.matmul %5, %6, %cst {dimension_numbers = #tpu.dot_dimension_numbers<[1], [0], [0], [1], [0, 0, 1, 1], [], []>} : vector<32x64xbf16>, vector<64x20xbf16>, vector<32x20xf32> -> vector<32x20xf32>
    %8 = vector.extract_strided_slice %4 {offsets = [32, 0], sizes = [32, 64], strides = [1, 1]} : vector<128x64xbf16> to vector<32x64xbf16>
    %9 = vector.extract_strided_slice %2 {offsets = [0, 1], sizes = [64, 20], strides = [1, 1]} : vector<64x30xbf16> to vector<64x20xbf16>
    %cst_4 = arith.constant dense<0.000000e+00> : vector<32x20xf32>
    %10 = tpu.matmul %8, %9, %cst_4 {dimension_numbers = #tpu.dot_dimension_numbers<[1], [0], [0], [1], [0, 0, 1, 1], [], []>} : vector<32x64xbf16>, vector<64x20xbf16>, vector<32x20xf32> -> vector<32x20xf32>
    %11 = arith.addf %7, %10 : vector<32x20xf32>
    %12 = vector.extract_strided_slice %4 {offsets = [64, 0], sizes = [32, 64], strides = [1, 1]} : vector<128x64xbf16> to vector<32x64xbf16>
    %13 = vector.extract_strided_slice %2 {offsets = [0, 5], sizes = [64, 20], strides = [1, 1]} : vector<64x30xbf16> to vector<64x20xbf16>
    %cst_5 = arith.constant dense<0.000000e+00> : vector<32x20xf32>
    %14 = tpu.matmul %12, %13, %cst_5 {dimension_numbers = #tpu.dot_dimension_numbers<[1], [0], [0], [1], [0, 0, 1, 1], [], []>} : vector<32x64xbf16>, vector<64x20xbf16>, vector<32x20xf32> -> vector<32x20xf32>
    %15 = arith.addf %11, %14 : vector<32x20xf32>
    %16 = vector.extract_strided_slice %4 {offsets = [96, 0], sizes = [32, 64], strides = [1, 1]} : vector<128x64xbf16> to vector<32x64xbf16>
    %17 = vector.extract_strided_slice %2 {offsets = [0, 6], sizes = [64, 20], strides = [1, 1]} : vector<64x30xbf16> to vector<64x20xbf16>
    %cst_6 = arith.constant dense<0.000000e+00> : vector<32x20xf32>
    %18 = tpu.matmul %16, %17, %cst_6 {dimension_numbers = #tpu.dot_dimension_numbers<[1], [0], [0], [1], [0, 0, 1, 1], [], []>} : vector<32x64xbf16>, vector<64x20xbf16>, vector<32x20xf32> -> vector<32x20xf32>
    %19 = arith.addf %15, %18 : vector<32x20xf32>
    %c0_7 = arith.constant 0 : index
    %c0_8 = arith.constant 0 : index
    %20 = vector.load %arg5[%c0_7, %c0_8] : memref<1x20xf32, #tpu.memory_space<vmem>>, vector<1x20xf32>
    %21 = vector.broadcast %20 : vector<1x20xf32> to vector<32x20xf32>
    %22 = arith.mulf %19, %21 : vector<32x20xf32>
    %cst_9 = arith.constant dense<0.000000e+00> : vector<32xf32>
    %23 = vector.multi_reduction <add>, %22, %cst_9 [1] : vector<32x20xf32> to vector<32xf32>
    %24 = vector.shape_cast %23 : vector<32xf32> to vector<32x1xf32>
    %cst_10 = arith.constant 6.250000e-02 : f32
    %25 = vector.broadcast %cst_10 : f32 to vector<32x1xf32>
    %26 = arith.mulf %24, %25 : vector<32x1xf32>
    %27 = vector.broadcast %26 : vector<32x1xf32> to vector<32x20xf32>
    %28 = arith.subf %19, %27 : vector<32x20xf32>
    %29 = vector.broadcast %20 : vector<1x20xf32> to vector<32x20xf32>
    %30 = arith.mulf %28, %29 : vector<32x20xf32>
    %31 = arith.mulf %30, %30 : vector<32x20xf32>
    %cst_11 = arith.constant dense<0.000000e+00> : vector<32xf32>
    %32 = vector.multi_reduction <add>, %31, %cst_11 [1] : vector<32x20xf32> to vector<32xf32>
    %33 = vector.shape_cast %32 : vector<32xf32> to vector<32x1xf32>
    %cst_12 = arith.constant 6.250000e-02 : f32
    %34 = vector.broadcast %cst_12 : f32 to vector<32x1xf32>
    %35 = arith.mulf %33, %34 : vector<32x1xf32>
    %cst_13 = arith.constant 9.99999974E-6 : f32
    %36 = vector.broadcast %cst_13 : f32 to vector<32x1xf32>
    %37 = arith.addf %35, %36 : vector<32x1xf32>
    %38 = math.rsqrt %37 : vector<32x1xf32>
    %39 = vector.broadcast %38 : vector<32x1xf32> to vector<32x20xf32>
    %40 = arith.mulf %28, %39 : vector<32x20xf32>
    %c0_14 = arith.constant 0 : index
    %c0_15 = arith.constant 0 : index
    %41 = vector.load %arg3[%c0_14, %c0_15] : memref<32x1xf32, #tpu.memory_space<vmem>>, vector<32x1xf32>
    %42 = vector.broadcast %41 : vector<32x1xf32> to vector<32x20xf32>
    %43 = arith.mulf %40, %42 : vector<32x20xf32>
    %c0_16 = arith.constant 0 : index
    %c0_17 = arith.constant 0 : index
    %44 = vector.load %arg4[%c0_16, %c0_17] : memref<32x1xf32, #tpu.memory_space<vmem>>, vector<32x1xf32>
    %45 = vector.broadcast %44 : vector<32x1xf32> to vector<32x20xf32>
    %46 = arith.addf %43, %45 : vector<32x20xf32>
    %cst_18 = arith.constant 0.000000e+00 : f32
    %47 = vector.broadcast %cst_18 : f32 to vector<32x20xf32>
    %48 = arith.cmpf oge, %46, %47 : vector<32x20xf32>
    %cst_19 = arith.constant 0.00999999977 : f32
    %49 = vector.broadcast %cst_19 : f32 to vector<32x20xf32>
    %50 = arith.mulf %46, %49 : vector<32x20xf32>
    %51 = arith.select %48, %46, %50 : vector<32x20xi1>, vector<32x20xf32>
    %c0_20 = arith.constant 0 : index
    %c0_21 = arith.constant 0 : index
    %c0_22 = arith.constant 0 : index
    %52 = vector.load %arg6[%c0_20, %c0_21, %c0_22] : memref<1x32x20xf32, #tpu.memory_space<vmem>>, vector<1x32x20xf32>
    %53 = vector.shape_cast %52 : vector<1x32x20xf32> to vector<32x20xf32>
    %54 = vector.shape_cast %51 : vector<32x20xf32> to vector<1x32x20xf32>
    tpu.vector_store %arg6[%c0_20, %c0_21, %c0_22], %54 {strides = array<i32>} : memref<1x32x20xf32, #tpu.memory_space<vmem>>, vector<1x32x20xf32>,
    return
  }
  func.func @transform_0(%arg0: i32) -> (i32, i32, i32) {
    %c0_i32 = arith.constant 0 : i32
    %c0_i32_0 = arith.constant 0 : i32
    %c0_i32_1 = arith.constant 0 : i32
    return %arg0, %c0_i32, %c0_i32_0 : i32, i32, i32
  }
  func.func @transform_1(%arg0: i32) -> (i32, i32) {
    %c0_i32 = arith.constant 0 : i32
    %c0_i32_0 = arith.constant 0 : i32
    %c0_i32_1 = arith.constant 0 : i32
    return %c0_i32, %c0_i32_0 : i32, i32
  }
  func.func @transform_2(%arg0: i32) -> (i32, i32) {
    %c0_i32 = arith.constant 0 : i32
    %c0_i32_0 = arith.constant 0 : i32
    %c0_i32_1 = arith.constant 0 : i32
    return %c0_i32, %c0_i32_0 : i32, i32
  }
  func.func @transform_3(%arg0: i32) -> (i32, i32) {
    %c0_i32 = arith.constant 0 : i32
    %c0_i32_0 = arith.constant 0 : i32
    %c0_i32_1 = arith.constant 0 : i32
    return %c0_i32, %c0_i32_0 : i32, i32
  }
  func.func @transform_4(%arg0: i32) -> (i32, i32) {
    %c0_i32 = arith.constant 0 : i32
    %c0_i32_0 = arith.constant 0 : i32
    %c0_i32_1 = arith.constant 0 : i32
    return %c0_i32, %c0_i32_0 : i32, i32
  }
  func.func @transform_5(%arg0: i32) -> (i32, i32, i32) {
    %c0_i32 = arith.constant 0 : i32
    %c0_i32_0 = arith.constant 0 : i32
    %c0_i32_1 = arith.constant 0 : i32
    return %arg0, %c0_i32, %c0_i32_0 : i32, i32, i32
  }
}

module attributes {stable_mosaic.version = 11 : i64} {
  func.func @kernel(%arg0: i32, %arg1: memref<1x32x42xf32, #tpu.memory_space<vmem>>, %arg2: memref<288x32xf32, #tpu.memory_space<vmem>>, %arg3: memref<32x1xf32, #tpu.memory_space<vmem>>, %arg4: memref<32x1xf32, #tpu.memory_space<vmem>>, %arg5: memref<1x24xf32, #tpu.memory_space<vmem>>, %arg6: memref<1x32x24xf32, #tpu.memory_space<vmem>>, %arg7: memref<1x32x24xf32, #tpu.memory_space<vmem>>) attributes {dimension_semantics = [#tpu.dimension_semantics<parallel>], iteration_bounds = array<i64: 2>, scalar_prefetch = 0 : i64, scratch_operands = 0 : i64, tpu.core_type = #tpu.core_type<tc>, window_params = [{transform_indices = @transform_0, window_bounds = array<i64: 1, 32, 42>}, {pipeline_mode = #tpu.pipeline_mode<synchronous>, transform_indices = @transform_1, window_bounds = array<i64: 288, 32>}, {pipeline_mode = #tpu.pipeline_mode<synchronous>, transform_indices = @transform_2, window_bounds = array<i64: 32, 1>}, {pipeline_mode = #tpu.pipeline_mode<synchronous>, transform_indices = @transform_3, window_bounds = array<i64: 32, 1>}, {pipeline_mode = #tpu.pipeline_mode<synchronous>, transform_indices = @transform_4, window_bounds = array<i64: 1, 24>}, {transform_indices = @transform_5, window_bounds = array<i64: 1, 32, 24>}, {transform_indices = @transform_6, window_bounds = array<i64: 1, 32, 24>}]} {
    %c0 = arith.constant 0 : index
    %c0_0 = arith.constant 0 : index
    %c0_1 = arith.constant 0 : index
    %0 = vector.load %arg1[%c0, %c0_0, %c0_1] : memref<1x32x42xf32, #tpu.memory_space<vmem>>, vector<1x32x42xf32>
    %1 = vector.shape_cast %0 : vector<1x32x42xf32> to vector<32x42xf32>
    %2 = arith.truncf %1 : vector<32x42xf32> to vector<32x42xbf16>
    %c0_2 = arith.constant 0 : index
    %c0_3 = arith.constant 0 : index
    %3 = vector.load %arg2[%c0_2, %c0_3] : memref<288x32xf32, #tpu.memory_space<vmem>>, vector<288x32xf32>
    %4 = arith.truncf %3 : vector<288x32xf32> to vector<288x32xbf16>
    %5 = vector.extract_strided_slice %4 {offsets = [0, 0], sizes = [32, 32], strides = [1, 1]} : vector<288x32xbf16> to vector<32x32xbf16>
    %6 = vector.extract_strided_slice %2 {offsets = [0, 0], sizes = [32, 24], strides = [1, 1]} : vector<32x42xbf16> to vector<32x24xbf16>
    %cst = arith.constant dense<0.000000e+00> : vector<32x24xf32>
    %7 = tpu.matmul %5, %6, %cst {dimension_numbers = #tpu.dot_dimension_numbers<[1], [0], [0], [1], [0, 0, 1, 1], [], []>} : vector<32x32xbf16>, vector<32x24xbf16>, vector<32x24xf32> -> vector<32x24xf32>
    %8 = vector.extract_strided_slice %4 {offsets = [32, 0], sizes = [32, 32], strides = [1, 1]} : vector<288x32xbf16> to vector<32x32xbf16>
    %9 = vector.extract_strided_slice %2 {offsets = [0, 1], sizes = [32, 24], strides = [1, 1]} : vector<32x42xbf16> to vector<32x24xbf16>
    %cst_4 = arith.constant dense<0.000000e+00> : vector<32x24xf32>
    %10 = tpu.matmul %8, %9, %cst_4 {dimension_numbers = #tpu.dot_dimension_numbers<[1], [0], [0], [1], [0, 0, 1, 1], [], []>} : vector<32x32xbf16>, vector<32x24xbf16>, vector<32x24xf32> -> vector<32x24xf32>
    %11 = arith.addf %7, %10 : vector<32x24xf32>
    %12 = vector.extract_strided_slice %4 {offsets = [64, 0], sizes = [32, 32], strides = [1, 1]} : vector<288x32xbf16> to vector<32x32xbf16>
    %13 = vector.extract_strided_slice %2 {offsets = [0, 2], sizes = [32, 24], strides = [1, 1]} : vector<32x42xbf16> to vector<32x24xbf16>
    %cst_5 = arith.constant dense<0.000000e+00> : vector<32x24xf32>
    %14 = tpu.matmul %12, %13, %cst_5 {dimension_numbers = #tpu.dot_dimension_numbers<[1], [0], [0], [1], [0, 0, 1, 1], [], []>} : vector<32x32xbf16>, vector<32x24xbf16>, vector<32x24xf32> -> vector<32x24xf32>
    %15 = arith.addf %11, %14 : vector<32x24xf32>
    %16 = vector.extract_strided_slice %4 {offsets = [96, 0], sizes = [32, 32], strides = [1, 1]} : vector<288x32xbf16> to vector<32x32xbf16>
    %17 = vector.extract_strided_slice %2 {offsets = [0, 6], sizes = [32, 24], strides = [1, 1]} : vector<32x42xbf16> to vector<32x24xbf16>
    %cst_6 = arith.constant dense<0.000000e+00> : vector<32x24xf32>
    %18 = tpu.matmul %16, %17, %cst_6 {dimension_numbers = #tpu.dot_dimension_numbers<[1], [0], [0], [1], [0, 0, 1, 1], [], []>} : vector<32x32xbf16>, vector<32x24xbf16>, vector<32x24xf32> -> vector<32x24xf32>
    %19 = arith.addf %15, %18 : vector<32x24xf32>
    %20 = vector.extract_strided_slice %4 {offsets = [128, 0], sizes = [32, 32], strides = [1, 1]} : vector<288x32xbf16> to vector<32x32xbf16>
    %21 = vector.extract_strided_slice %2 {offsets = [0, 7], sizes = [32, 24], strides = [1, 1]} : vector<32x42xbf16> to vector<32x24xbf16>
    %cst_7 = arith.constant dense<0.000000e+00> : vector<32x24xf32>
    %22 = tpu.matmul %20, %21, %cst_7 {dimension_numbers = #tpu.dot_dimension_numbers<[1], [0], [0], [1], [0, 0, 1, 1], [], []>} : vector<32x32xbf16>, vector<32x24xbf16>, vector<32x24xf32> -> vector<32x24xf32>
    %23 = arith.addf %19, %22 : vector<32x24xf32>
    %24 = vector.extract_strided_slice %4 {offsets = [160, 0], sizes = [32, 32], strides = [1, 1]} : vector<288x32xbf16> to vector<32x32xbf16>
    %25 = vector.extract_strided_slice %2 {offsets = [0, 8], sizes = [32, 24], strides = [1, 1]} : vector<32x42xbf16> to vector<32x24xbf16>
    %cst_8 = arith.constant dense<0.000000e+00> : vector<32x24xf32>
    %26 = tpu.matmul %24, %25, %cst_8 {dimension_numbers = #tpu.dot_dimension_numbers<[1], [0], [0], [1], [0, 0, 1, 1], [], []>} : vector<32x32xbf16>, vector<32x24xbf16>, vector<32x24xf32> -> vector<32x24xf32>
    %27 = arith.addf %23, %26 : vector<32x24xf32>
    %28 = vector.extract_strided_slice %4 {offsets = [192, 0], sizes = [32, 32], strides = [1, 1]} : vector<288x32xbf16> to vector<32x32xbf16>
    %29 = vector.extract_strided_slice %2 {offsets = [0, 12], sizes = [32, 24], strides = [1, 1]} : vector<32x42xbf16> to vector<32x24xbf16>
    %cst_9 = arith.constant dense<0.000000e+00> : vector<32x24xf32>
    %30 = tpu.matmul %28, %29, %cst_9 {dimension_numbers = #tpu.dot_dimension_numbers<[1], [0], [0], [1], [0, 0, 1, 1], [], []>} : vector<32x32xbf16>, vector<32x24xbf16>, vector<32x24xf32> -> vector<32x24xf32>
    %31 = arith.addf %27, %30 : vector<32x24xf32>
    %32 = vector.extract_strided_slice %4 {offsets = [224, 0], sizes = [32, 32], strides = [1, 1]} : vector<288x32xbf16> to vector<32x32xbf16>
    %33 = vector.extract_strided_slice %2 {offsets = [0, 13], sizes = [32, 24], strides = [1, 1]} : vector<32x42xbf16> to vector<32x24xbf16>
    %cst_10 = arith.constant dense<0.000000e+00> : vector<32x24xf32>
    %34 = tpu.matmul %32, %33, %cst_10 {dimension_numbers = #tpu.dot_dimension_numbers<[1], [0], [0], [1], [0, 0, 1, 1], [], []>} : vector<32x32xbf16>, vector<32x24xbf16>, vector<32x24xf32> -> vector<32x24xf32>
    %35 = arith.addf %31, %34 : vector<32x24xf32>
    %36 = vector.extract_strided_slice %4 {offsets = [256, 0], sizes = [32, 32], strides = [1, 1]} : vector<288x32xbf16> to vector<32x32xbf16>
    %37 = vector.extract_strided_slice %2 {offsets = [0, 14], sizes = [32, 24], strides = [1, 1]} : vector<32x42xbf16> to vector<32x24xbf16>
    %cst_11 = arith.constant dense<0.000000e+00> : vector<32x24xf32>
    %38 = tpu.matmul %36, %37, %cst_11 {dimension_numbers = #tpu.dot_dimension_numbers<[1], [0], [0], [1], [0, 0, 1, 1], [], []>} : vector<32x32xbf16>, vector<32x24xbf16>, vector<32x24xf32> -> vector<32x24xf32>
    %39 = arith.addf %35, %38 : vector<32x24xf32>
    %c0_12 = arith.constant 0 : index
    %c0_13 = arith.constant 0 : index
    %40 = vector.load %arg5[%c0_12, %c0_13] : memref<1x24xf32, #tpu.memory_space<vmem>>, vector<1x24xf32>
    %41 = vector.broadcast %40 : vector<1x24xf32> to vector<32x24xf32>
    %42 = arith.mulf %39, %41 : vector<32x24xf32>
    %cst_14 = arith.constant dense<0.000000e+00> : vector<32xf32>
    %43 = vector.multi_reduction <add>, %42, %cst_14 [1] : vector<32x24xf32> to vector<32xf32>
    %44 = vector.shape_cast %43 : vector<32xf32> to vector<32x1xf32>
    %cst_15 = arith.constant 6.250000e-02 : f32
    %45 = vector.broadcast %cst_15 : f32 to vector<32x1xf32>
    %46 = arith.mulf %44, %45 : vector<32x1xf32>
    %47 = vector.broadcast %46 : vector<32x1xf32> to vector<32x24xf32>
    %48 = arith.subf %39, %47 : vector<32x24xf32>
    %49 = vector.broadcast %40 : vector<1x24xf32> to vector<32x24xf32>
    %50 = arith.mulf %48, %49 : vector<32x24xf32>
    %51 = arith.mulf %50, %50 : vector<32x24xf32>
    %cst_16 = arith.constant dense<0.000000e+00> : vector<32xf32>
    %52 = vector.multi_reduction <add>, %51, %cst_16 [1] : vector<32x24xf32> to vector<32xf32>
    %53 = vector.shape_cast %52 : vector<32xf32> to vector<32x1xf32>
    %cst_17 = arith.constant 6.250000e-02 : f32
    %54 = vector.broadcast %cst_17 : f32 to vector<32x1xf32>
    %55 = arith.mulf %53, %54 : vector<32x1xf32>
    %cst_18 = arith.constant 9.99999974E-6 : f32
    %56 = vector.broadcast %cst_18 : f32 to vector<32x1xf32>
    %57 = arith.addf %55, %56 : vector<32x1xf32>
    %58 = math.rsqrt %57 : vector<32x1xf32>
    %59 = vector.broadcast %58 : vector<32x1xf32> to vector<32x24xf32>
    %60 = arith.mulf %48, %59 : vector<32x24xf32>
    %c0_19 = arith.constant 0 : index
    %c0_20 = arith.constant 0 : index
    %61 = vector.load %arg3[%c0_19, %c0_20] : memref<32x1xf32, #tpu.memory_space<vmem>>, vector<32x1xf32>
    %62 = vector.broadcast %61 : vector<32x1xf32> to vector<32x24xf32>
    %63 = arith.mulf %60, %62 : vector<32x24xf32>
    %c0_21 = arith.constant 0 : index
    %c0_22 = arith.constant 0 : index
    %64 = vector.load %arg4[%c0_21, %c0_22] : memref<32x1xf32, #tpu.memory_space<vmem>>, vector<32x1xf32>
    %65 = vector.broadcast %64 : vector<32x1xf32> to vector<32x24xf32>
    %66 = arith.addf %63, %65 : vector<32x24xf32>
    %c0_23 = arith.constant 0 : index
    %c0_24 = arith.constant 0 : index
    %c0_25 = arith.constant 0 : index
    %67 = vector.load %arg6[%c0_23, %c0_24, %c0_25] : memref<1x32x24xf32, #tpu.memory_space<vmem>>, vector<1x32x24xf32>
    %68 = vector.shape_cast %67 : vector<1x32x24xf32> to vector<32x24xf32>
    %69 = arith.addf %66, %68 : vector<32x24xf32>
    %cst_26 = arith.constant 0.000000e+00 : f32
    %70 = vector.broadcast %cst_26 : f32 to vector<32x24xf32>
    %71 = arith.cmpf oge, %69, %70 : vector<32x24xf32>
    %cst_27 = arith.constant 0.00999999977 : f32
    %72 = vector.broadcast %cst_27 : f32 to vector<32x24xf32>
    %73 = arith.mulf %69, %72 : vector<32x24xf32>
    %74 = arith.select %71, %69, %73 : vector<32x24xi1>, vector<32x24xf32>
    %c0_28 = arith.constant 0 : index
    %c0_29 = arith.constant 0 : index
    %c0_30 = arith.constant 0 : index
    %75 = vector.load %arg7[%c0_28, %c0_29, %c0_30] : memref<1x32x24xf32, #tpu.memory_space<vmem>>, vector<1x32x24xf32>
    %76 = vector.shape_cast %75 : vector<1x32x24xf32> to vector<32x24xf32>
    %77 = vector.shape_cast %74 : vector<32x24xf32> to vector<1x32x24xf32>
    tpu.vector_store %arg7[%c0_28, %c0_29, %c0_30], %77 {strides = array<i32>} : memref<1x32x24xf32, #tpu.memory_space<vmem>>, vector<1x32x24xf32>,
    return
  }
  func.func @transform_0(%arg0: i32) -> (i32, i32, i32) {
    %c0_i32 = arith.constant 0 : i32
    %c0_i32_0 = arith.constant 0 : i32
    %c0_i32_1 = arith.constant 0 : i32
    return %arg0, %c0_i32, %c0_i32_0 : i32, i32, i32
  }
  func.func @transform_1(%arg0: i32) -> (i32, i32) {
    %c0_i32 = arith.constant 0 : i32
    %c0_i32_0 = arith.constant 0 : i32
    %c0_i32_1 = arith.constant 0 : i32
    return %c0_i32, %c0_i32_0 : i32, i32
  }
  func.func @transform_2(%arg0: i32) -> (i32, i32) {
    %c0_i32 = arith.constant 0 : i32
    %c0_i32_0 = arith.constant 0 : i32
    %c0_i32_1 = arith.constant 0 : i32
    return %c0_i32, %c0_i32_0 : i32, i32
  }
  func.func @transform_3(%arg0: i32) -> (i32, i32) {
    %c0_i32 = arith.constant 0 : i32
    %c0_i32_0 = arith.constant 0 : i32
    %c0_i32_1 = arith.constant 0 : i32
    return %c0_i32, %c0_i32_0 : i32, i32
  }
  func.func @transform_4(%arg0: i32) -> (i32, i32) {
    %c0_i32 = arith.constant 0 : i32
    %c0_i32_0 = arith.constant 0 : i32
    %c0_i32_1 = arith.constant 0 : i32
    return %c0_i32, %c0_i32_0 : i32, i32
  }
  func.func @transform_5(%arg0: i32) -> (i32, i32, i32) {
    %c0_i32 = arith.constant 0 : i32
    %c0_i32_0 = arith.constant 0 : i32
    %c0_i32_1 = arith.constant 0 : i32
    return %arg0, %c0_i32, %c0_i32_0 : i32, i32, i32
  }
  func.func @transform_6(%arg0: i32) -> (i32, i32, i32) {
    %c0_i32 = arith.constant 0 : i32
    %c0_i32_0 = arith.constant 0 : i32
    %c0_i32_1 = arith.constant 0 : i32
    return %arg0, %c0_i32, %c0_i32_0 : i32, i32, i32
  }
}

module attributes {stable_mosaic.version = 11 : i64} {
  func.func @kernel(%arg0: i32, %arg1: memref<1x32x20xf32, #tpu.memory_space<vmem>>, %arg2: memref<64x32xf32, #tpu.memory_space<vmem>>, %arg3: memref<1x64x16xf32, #tpu.memory_space<vmem>>) attributes {dimension_semantics = [#tpu.dimension_semantics<parallel>], iteration_bounds = array<i64: 2>, scalar_prefetch = 0 : i64, scratch_operands = 0 : i64, tpu.core_type = #tpu.core_type<tc>, window_params = [{transform_indices = @transform_0, window_bounds = array<i64: 1, 32, 20>}, {pipeline_mode = #tpu.pipeline_mode<synchronous>, transform_indices = @transform_1, window_bounds = array<i64: 64, 32>}, {transform_indices = @transform_2, window_bounds = array<i64: 1, 64, 16>}]} {
    %c0 = arith.constant 0 : index
    %c0_0 = arith.constant 0 : index
    %c0_1 = arith.constant 0 : index
    %0 = vector.load %arg1[%c0, %c0_0, %c0_1] : memref<1x32x20xf32, #tpu.memory_space<vmem>>, vector<1x32x20xf32>
    %1 = vector.shape_cast %0 : vector<1x32x20xf32> to vector<32x20xf32>
    %2 = arith.truncf %1 : vector<32x20xf32> to vector<32x20xbf16>
    %c0_2 = arith.constant 0 : index
    %c0_3 = arith.constant 0 : index
    %3 = vector.load %arg2[%c0_2, %c0_3] : memref<64x32xf32, #tpu.memory_space<vmem>>, vector<64x32xf32>
    %4 = arith.truncf %3 : vector<64x32xf32> to vector<64x32xbf16>
    %5 = vector.extract_strided_slice %2 {offsets = [0, 0], sizes = [32, 16], strides = [1, 1]} : vector<32x20xbf16> to vector<32x16xbf16>
    %cst = arith.constant dense<0.000000e+00> : vector<64x16xf32>
    %6 = tpu.matmul %4, %5, %cst {dimension_numbers = #tpu.dot_dimension_numbers<[1], [0], [0], [1], [0, 0, 1, 1], [], []>} : vector<64x32xbf16>, vector<32x16xbf16>, vector<64x16xf32> -> vector<64x16xf32>
    %c0_4 = arith.constant 0 : index
    %c0_5 = arith.constant 0 : index
    %c0_6 = arith.constant 0 : index
    %7 = vector.load %arg3[%c0_4, %c0_5, %c0_6] : memref<1x64x16xf32, #tpu.memory_space<vmem>>, vector<1x64x16xf32>
    %8 = vector.shape_cast %7 : vector<1x64x16xf32> to vector<64x16xf32>
    %9 = vector.shape_cast %6 : vector<64x16xf32> to vector<1x64x16xf32>
    tpu.vector_store %arg3[%c0_4, %c0_5, %c0_6], %9 {strides = array<i32>} : memref<1x64x16xf32, #tpu.memory_space<vmem>>, vector<1x64x16xf32>,
    return
  }
  func.func @transform_0(%arg0: i32) -> (i32, i32, i32) {
    %c0_i32 = arith.constant 0 : i32
    %c0_i32_0 = arith.constant 0 : i32
    %c0_i32_1 = arith.constant 0 : i32
    return %arg0, %c0_i32, %c0_i32_0 : i32, i32, i32
  }
  func.func @transform_1(%arg0: i32) -> (i32, i32) {
    %c0_i32 = arith.constant 0 : i32
    %c0_i32_0 = arith.constant 0 : i32
    %c0_i32_1 = arith.constant 0 : i32
    return %c0_i32, %c0_i32_0 : i32, i32
  }
  func.func @transform_2(%arg0: i32) -> (i32, i32, i32) {
    %c0_i32 = arith.constant 0 : i32
    %c0_i32_0 = arith.constant 0 : i32
    %c0_i32_1 = arith.constant 0 : i32
    return %arg0, %c0_i32, %c0_i32_0 : i32, i32, i32
  }
}

module attributes {stable_mosaic.version = 11 : i64} {
  func.func @kernel(%arg0: i32, %arg1: memref<1x16x72xf32, #tpu.memory_space<vmem>>, %arg2: memref<1x16x72xf32, #tpu.memory_space<vmem>>, %arg3: memref<16x16xf32, #tpu.memory_space<vmem>>, %arg4: memref<16x16xf32, #tpu.memory_space<vmem>>, %arg5: memref<16x1xf32, #tpu.memory_space<vmem>>, %arg6: memref<16x1xf32, #tpu.memory_space<vmem>>, %arg7: memref<1x16x64xf32, #tpu.memory_space<vmem>>) attributes {dimension_semantics = [#tpu.dimension_semantics<parallel>], iteration_bounds = array<i64: 2>, scalar_prefetch = 0 : i64, scratch_operands = 0 : i64, tpu.core_type = #tpu.core_type<tc>, window_params = [{transform_indices = @transform_0, window_bounds = array<i64: 1, 16, 72>}, {transform_indices = @transform_1, window_bounds = array<i64: 1, 16, 72>}, {pipeline_mode = #tpu.pipeline_mode<synchronous>, transform_indices = @transform_2, window_bounds = array<i64: 16, 16>}, {pipeline_mode = #tpu.pipeline_mode<synchronous>, transform_indices = @transform_3, window_bounds = array<i64: 16, 16>}, {pipeline_mode = #tpu.pipeline_mode<synchronous>, transform_indices = @transform_4, window_bounds = array<i64: 16, 1>}, {pipeline_mode = #tpu.pipeline_mode<synchronous>, transform_indices = @transform_5, window_bounds = array<i64: 16, 1>}, {transform_indices = @transform_6, window_bounds = array<i64: 1, 16, 64>}]} {
    %c0 = arith.constant 0 : index
    %c0_0 = arith.constant 0 : index
    %c0_1 = arith.constant 0 : index
    %0 = vector.load %arg1[%c0, %c0_0, %c0_1] : memref<1x16x72xf32, #tpu.memory_space<vmem>>, vector<1x16x72xf32>
    %1 = vector.shape_cast %0 : vector<1x16x72xf32> to vector<16x72xf32>
    %2 = arith.truncf %1 : vector<16x72xf32> to vector<16x72xbf16>
    %c0_2 = arith.constant 0 : index
    %c0_3 = arith.constant 0 : index
    %3 = vector.load %arg3[%c0_2, %c0_3] : memref<16x16xf32, #tpu.memory_space<vmem>>, vector<16x16xf32>
    %4 = arith.truncf %3 : vector<16x16xf32> to vector<16x16xbf16>
    %5 = vector.extract_strided_slice %2 {offsets = [0, 0], sizes = [16, 64], strides = [1, 1]} : vector<16x72xbf16> to vector<16x64xbf16>
    %cst = arith.constant dense<0.000000e+00> : vector<16x64xf32>
    %6 = tpu.matmul %4, %5, %cst {dimension_numbers = #tpu.dot_dimension_numbers<[1], [0], [0], [1], [0, 0, 1, 1], [], []>} : vector<16x16xbf16>, vector<16x64xbf16>, vector<16x64xf32> -> vector<16x64xf32>
    %c0_4 = arith.constant 0 : index
    %c0_5 = arith.constant 0 : index
    %c0_6 = arith.constant 0 : index
    %7 = vector.load %arg2[%c0_4, %c0_5, %c0_6] : memref<1x16x72xf32, #tpu.memory_space<vmem>>, vector<1x16x72xf32>
    %8 = vector.shape_cast %7 : vector<1x16x72xf32> to vector<16x72xf32>
    %9 = arith.truncf %8 : vector<16x72xf32> to vector<16x72xbf16>
    %c0_7 = arith.constant 0 : index
    %c0_8 = arith.constant 0 : index
    %10 = vector.load %arg4[%c0_7, %c0_8] : memref<16x16xf32, #tpu.memory_space<vmem>>, vector<16x16xf32>
    %11 = arith.truncf %10 : vector<16x16xf32> to vector<16x16xbf16>
    %12 = vector.extract_strided_slice %9 {offsets = [0, 0], sizes = [16, 64], strides = [1, 1]} : vector<16x72xbf16> to vector<16x64xbf16>
    %cst_9 = arith.constant dense<0.000000e+00> : vector<16x64xf32>
    %13 = tpu.matmul %11, %12, %cst_9 {dimension_numbers = #tpu.dot_dimension_numbers<[1], [0], [0], [1], [0, 0, 1, 1], [], []>} : vector<16x16xbf16>, vector<16x64xbf16>, vector<16x64xf32> -> vector<16x64xf32>
    %14 = arith.addf %6, %13 : vector<16x64xf32>
    %cst_10 = arith.constant dense<0.000000e+00> : vector<16xf32>
    %15 = vector.multi_reduction <add>, %14, %cst_10 [1] : vector<16x64xf32> to vector<16xf32>
    %16 = vector.shape_cast %15 : vector<16xf32> to vector<16x1xf32>
    %cst_11 = arith.constant 1.562500e-02 : f32
    %17 = vector.broadcast %cst_11 : f32 to vector<16x1xf32>
    %18 = arith.mulf %16, %17 : vector<16x1xf32>
    %19 = vector.broadcast %18 : vector<16x1xf32> to vector<16x64xf32>
    %20 = arith.subf %14, %19 : vector<16x64xf32>
    %21 = arith.mulf %20, %20 : vector<16x64xf32>
    %cst_12 = arith.constant dense<0.000000e+00> : vector<16xf32>
    %22 = vector.multi_reduction <add>, %21, %cst_12 [1] : vector<16x64xf32> to vector<16xf32>
    %23 = vector.shape_cast %22 : vector<16xf32> to vector<16x1xf32>
    %cst_13 = arith.constant 1.562500e-02 : f32
    %24 = vector.broadcast %cst_13 : f32 to vector<16x1xf32>
    %25 = arith.mulf %23, %24 : vector<16x1xf32>
    %cst_14 = arith.constant 9.99999974E-6 : f32
    %26 = vector.broadcast %cst_14 : f32 to vector<16x1xf32>
    %27 = arith.addf %25, %26 : vector<16x1xf32>
    %28 = math.rsqrt %27 : vector<16x1xf32>
    %29 = vector.broadcast %28 : vector<16x1xf32> to vector<16x64xf32>
    %30 = arith.mulf %20, %29 : vector<16x64xf32>
    %c0_15 = arith.constant 0 : index
    %c0_16 = arith.constant 0 : index
    %31 = vector.load %arg5[%c0_15, %c0_16] : memref<16x1xf32, #tpu.memory_space<vmem>>, vector<16x1xf32>
    %32 = vector.broadcast %31 : vector<16x1xf32> to vector<16x64xf32>
    %33 = arith.mulf %30, %32 : vector<16x64xf32>
    %c0_17 = arith.constant 0 : index
    %c0_18 = arith.constant 0 : index
    %34 = vector.load %arg6[%c0_17, %c0_18] : memref<16x1xf32, #tpu.memory_space<vmem>>, vector<16x1xf32>
    %35 = vector.broadcast %34 : vector<16x1xf32> to vector<16x64xf32>
    %36 = arith.addf %33, %35 : vector<16x64xf32>
    %c0_19 = arith.constant 0 : index
    %c0_20 = arith.constant 0 : index
    %c0_21 = arith.constant 0 : index
    %37 = vector.load %arg7[%c0_19, %c0_20, %c0_21] : memref<1x16x64xf32, #tpu.memory_space<vmem>>, vector<1x16x64xf32>
    %38 = vector.shape_cast %37 : vector<1x16x64xf32> to vector<16x64xf32>
    %39 = vector.shape_cast %36 : vector<16x64xf32> to vector<1x16x64xf32>
    tpu.vector_store %arg7[%c0_19, %c0_20, %c0_21], %39 {strides = array<i32>} : memref<1x16x64xf32, #tpu.memory_space<vmem>>, vector<1x16x64xf32>,
    return
  }
  func.func @transform_0(%arg0: i32) -> (i32, i32, i32) {
    %c0_i32 = arith.constant 0 : i32
    %c0_i32_0 = arith.constant 0 : i32
    %c0_i32_1 = arith.constant 0 : i32
    return %arg0, %c0_i32, %c0_i32_0 : i32, i32, i32
  }
  func.func @transform_1(%arg0: i32) -> (i32, i32, i32) {
    %c0_i32 = arith.constant 0 : i32
    %c0_i32_0 = arith.constant 0 : i32
    %c0_i32_1 = arith.constant 0 : i32
    return %arg0, %c0_i32, %c0_i32_0 : i32, i32, i32
  }
  func.func @transform_2(%arg0: i32) -> (i32, i32) {
    %c0_i32 = arith.constant 0 : i32
    %c0_i32_0 = arith.constant 0 : i32
    %c0_i32_1 = arith.constant 0 : i32
    return %c0_i32, %c0_i32_0 : i32, i32
  }
  func.func @transform_3(%arg0: i32) -> (i32, i32) {
    %c0_i32 = arith.constant 0 : i32
    %c0_i32_0 = arith.constant 0 : i32
    %c0_i32_1 = arith.constant 0 : i32
    return %c0_i32, %c0_i32_0 : i32, i32
  }
  func.func @transform_4(%arg0: i32) -> (i32, i32) {
    %c0_i32 = arith.constant 0 : i32
    %c0_i32_0 = arith.constant 0 : i32
    %c0_i32_1 = arith.constant 0 : i32
    return %c0_i32, %c0_i32_0 : i32, i32
  }
  func.func @transform_5(%arg0: i32) -> (i32, i32) {
    %c0_i32 = arith.constant 0 : i32
    %c0_i32_0 = arith.constant 0 : i32
    %c0_i32_1 = arith.constant 0 : i32
    return %c0_i32, %c0_i32_0 : i32, i32
  }
  func.func @transform_6(%arg0: i32) -> (i32, i32, i32) {
    %c0_i32 = arith.constant 0 : i32
    %c0_i32_0 = arith.constant 0 : i32
    %c0_i32_1 = arith.constant 0 : i32
    return %arg0, %c0_i32, %c0_i32_0 : i32, i32, i32
  }
}

module attributes {stable_mosaic.version = 11 : i64} {
  func.func @kernel(%arg0: i32, %arg1: memref<1x16x72xf32, #tpu.memory_space<vmem>>, %arg2: memref<32x16xf32, #tpu.memory_space<vmem>>, %arg3: memref<1x32x64xf32, #tpu.memory_space<vmem>>) attributes {dimension_semantics = [#tpu.dimension_semantics<parallel>], iteration_bounds = array<i64: 2>, scalar_prefetch = 0 : i64, scratch_operands = 0 : i64, tpu.core_type = #tpu.core_type<tc>, window_params = [{transform_indices = @transform_0, window_bounds = array<i64: 1, 16, 72>}, {pipeline_mode = #tpu.pipeline_mode<synchronous>, transform_indices = @transform_1, window_bounds = array<i64: 32, 16>}, {transform_indices = @transform_2, window_bounds = array<i64: 1, 32, 64>}]} {
    %c0 = arith.constant 0 : index
    %c0_0 = arith.constant 0 : index
    %c0_1 = arith.constant 0 : index
    %0 = vector.load %arg1[%c0, %c0_0, %c0_1] : memref<1x16x72xf32, #tpu.memory_space<vmem>>, vector<1x16x72xf32>
    %1 = vector.shape_cast %0 : vector<1x16x72xf32> to vector<16x72xf32>
    %2 = arith.truncf %1 : vector<16x72xf32> to vector<16x72xbf16>
    %c0_2 = arith.constant 0 : index
    %c0_3 = arith.constant 0 : index
    %3 = vector.load %arg2[%c0_2, %c0_3] : memref<32x16xf32, #tpu.memory_space<vmem>>, vector<32x16xf32>
    %4 = arith.truncf %3 : vector<32x16xf32> to vector<32x16xbf16>
    %5 = vector.extract_strided_slice %2 {offsets = [0, 0], sizes = [16, 64], strides = [1, 1]} : vector<16x72xbf16> to vector<16x64xbf16>
    %cst = arith.constant dense<0.000000e+00> : vector<32x64xf32>
    %6 = tpu.matmul %4, %5, %cst {dimension_numbers = #tpu.dot_dimension_numbers<[1], [0], [0], [1], [0, 0, 1, 1], [], []>} : vector<32x16xbf16>, vector<16x64xbf16>, vector<32x64xf32> -> vector<32x64xf32>
    %c0_4 = arith.constant 0 : index
    %c0_5 = arith.constant 0 : index
    %c0_6 = arith.constant 0 : index
    %7 = vector.load %arg3[%c0_4, %c0_5, %c0_6] : memref<1x32x64xf32, #tpu.memory_space<vmem>>, vector<1x32x64xf32>
    %8 = vector.shape_cast %7 : vector<1x32x64xf32> to vector<32x64xf32>
    %9 = vector.shape_cast %6 : vector<32x64xf32> to vector<1x32x64xf32>
    tpu.vector_store %arg3[%c0_4, %c0_5, %c0_6], %9 {strides = array<i32>} : memref<1x32x64xf32, #tpu.memory_space<vmem>>, vector<1x32x64xf32>,
    return
  }
  func.func @transform_0(%arg0: i32) -> (i32, i32, i32) {
    %c0_i32 = arith.constant 0 : i32
    %c0_i32_0 = arith.constant 0 : i32
    %c0_i32_1 = arith.constant 0 : i32
    return %arg0, %c0_i32, %c0_i32_0 : i32, i32, i32
  }
  func.func @transform_1(%arg0: i32) -> (i32, i32) {
    %c0_i32 = arith.constant 0 : i32
    %c0_i32_0 = arith.constant 0 : i32
    %c0_i32_1 = arith.constant 0 : i32
    return %c0_i32, %c0_i32_0 : i32, i32
  }
  func.func @transform_2(%arg0: i32) -> (i32, i32, i32) {
    %c0_i32 = arith.constant 0 : i32
    %c0_i32_0 = arith.constant 0 : i32
    %c0_i32_1 = arith.constant 0 : i32
    return %arg0, %c0_i32, %c0_i32_0 : i32, i32, i32
  }
}

module attributes {stable_mosaic.version = 11 : i64} {
  func.func @kernel(%arg0: i32, %arg1: memref<1x16x110xf32, #tpu.memory_space<vmem>>, %arg2: memref<1x16x110xf32, #tpu.memory_space<vmem>>, %arg3: memref<144x16xf32, #tpu.memory_space<vmem>>, %arg4: memref<144x16xf32, #tpu.memory_space<vmem>>, %arg5: memref<16x1xf32, #tpu.memory_space<vmem>>, %arg6: memref<16x1xf32, #tpu.memory_space<vmem>>, %arg7: memref<1x80xf32, #tpu.memory_space<vmem>>, %arg8: memref<1x16x80xf32, #tpu.memory_space<vmem>>) attributes {dimension_semantics = [#tpu.dimension_semantics<parallel>], iteration_bounds = array<i64: 2>, scalar_prefetch = 0 : i64, scratch_operands = 0 : i64, tpu.core_type = #tpu.core_type<tc>, window_params = [{transform_indices = @transform_0, window_bounds = array<i64: 1, 16, 110>}, {transform_indices = @transform_1, window_bounds = array<i64: 1, 16, 110>}, {pipeline_mode = #tpu.pipeline_mode<synchronous>, transform_indices = @transform_2, window_bounds = array<i64: 144, 16>}, {pipeline_mode = #tpu.pipeline_mode<synchronous>, transform_indices = @transform_3, window_bounds = array<i64: 144, 16>}, {pipeline_mode = #tpu.pipeline_mode<synchronous>, transform_indices = @transform_4, window_bounds = array<i64: 16, 1>}, {pipeline_mode = #tpu.pipeline_mode<synchronous>, transform_indices = @transform_5, window_bounds = array<i64: 16, 1>}, {pipeline_mode = #tpu.pipeline_mode<synchronous>, transform_indices = @transform_6, window_bounds = array<i64: 1, 80>}, {transform_indices = @transform_7, window_bounds = array<i64: 1, 16, 80>}]} {
    %c0 = arith.constant 0 : index
    %c0_0 = arith.constant 0 : index
    %c0_1 = arith.constant 0 : index
    %0 = vector.load %arg1[%c0, %c0_0, %c0_1] : memref<1x16x110xf32, #tpu.memory_space<vmem>>, vector<1x16x110xf32>
    %1 = vector.shape_cast %0 : vector<1x16x110xf32> to vector<16x110xf32>
    %2 = arith.truncf %1 : vector<16x110xf32> to vector<16x110xbf16>
    %c0_2 = arith.constant 0 : index
    %c0_3 = arith.constant 0 : index
    %3 = vector.load %arg3[%c0_2, %c0_3] : memref<144x16xf32, #tpu.memory_space<vmem>>, vector<144x16xf32>
    %4 = arith.truncf %3 : vector<144x16xf32> to vector<144x16xbf16>
    %5 = vector.extract_strided_slice %4 {offsets = [0, 0], sizes = [16, 16], strides = [1, 1]} : vector<144x16xbf16> to vector<16x16xbf16>
    %6 = vector.extract_strided_slice %2 {offsets = [0, 0], sizes = [16, 80], strides = [1, 1]} : vector<16x110xbf16> to vector<16x80xbf16>
    %cst = arith.constant dense<0.000000e+00> : vector<16x80xf32>
    %7 = tpu.matmul %5, %6, %cst {dimension_numbers = #tpu.dot_dimension_numbers<[1], [0], [0], [1], [0, 0, 1, 1], [], []>} : vector<16x16xbf16>, vector<16x80xbf16>, vector<16x80xf32> -> vector<16x80xf32>
    %8 = vector.extract_strided_slice %4 {offsets = [16, 0], sizes = [16, 16], strides = [1, 1]} : vector<144x16xbf16> to vector<16x16xbf16>
    %9 = vector.extract_strided_slice %2 {offsets = [0, 1], sizes = [16, 80], strides = [1, 1]} : vector<16x110xbf16> to vector<16x80xbf16>
    %cst_4 = arith.constant dense<0.000000e+00> : vector<16x80xf32>
    %10 = tpu.matmul %8, %9, %cst_4 {dimension_numbers = #tpu.dot_dimension_numbers<[1], [0], [0], [1], [0, 0, 1, 1], [], []>} : vector<16x16xbf16>, vector<16x80xbf16>, vector<16x80xf32> -> vector<16x80xf32>
    %11 = arith.addf %7, %10 : vector<16x80xf32>
    %12 = vector.extract_strided_slice %4 {offsets = [32, 0], sizes = [16, 16], strides = [1, 1]} : vector<144x16xbf16> to vector<16x16xbf16>
    %13 = vector.extract_strided_slice %2 {offsets = [0, 2], sizes = [16, 80], strides = [1, 1]} : vector<16x110xbf16> to vector<16x80xbf16>
    %cst_5 = arith.constant dense<0.000000e+00> : vector<16x80xf32>
    %14 = tpu.matmul %12, %13, %cst_5 {dimension_numbers = #tpu.dot_dimension_numbers<[1], [0], [0], [1], [0, 0, 1, 1], [], []>} : vector<16x16xbf16>, vector<16x80xbf16>, vector<16x80xf32> -> vector<16x80xf32>
    %15 = arith.addf %11, %14 : vector<16x80xf32>
    %16 = vector.extract_strided_slice %4 {offsets = [48, 0], sizes = [16, 16], strides = [1, 1]} : vector<144x16xbf16> to vector<16x16xbf16>
    %17 = vector.extract_strided_slice %2 {offsets = [0, 10], sizes = [16, 80], strides = [1, 1]} : vector<16x110xbf16> to vector<16x80xbf16>
    %cst_6 = arith.constant dense<0.000000e+00> : vector<16x80xf32>
    %18 = tpu.matmul %16, %17, %cst_6 {dimension_numbers = #tpu.dot_dimension_numbers<[1], [0], [0], [1], [0, 0, 1, 1], [], []>} : vector<16x16xbf16>, vector<16x80xbf16>, vector<16x80xf32> -> vector<16x80xf32>
    %19 = arith.addf %15, %18 : vector<16x80xf32>
    %20 = vector.extract_strided_slice %4 {offsets = [64, 0], sizes = [16, 16], strides = [1, 1]} : vector<144x16xbf16> to vector<16x16xbf16>
    %21 = vector.extract_strided_slice %2 {offsets = [0, 11], sizes = [16, 80], strides = [1, 1]} : vector<16x110xbf16> to vector<16x80xbf16>
    %cst_7 = arith.constant dense<0.000000e+00> : vector<16x80xf32>
    %22 = tpu.matmul %20, %21, %cst_7 {dimension_numbers = #tpu.dot_dimension_numbers<[1], [0], [0], [1], [0, 0, 1, 1], [], []>} : vector<16x16xbf16>, vector<16x80xbf16>, vector<16x80xf32> -> vector<16x80xf32>
    %23 = arith.addf %19, %22 : vector<16x80xf32>
    %24 = vector.extract_strided_slice %4 {offsets = [80, 0], sizes = [16, 16], strides = [1, 1]} : vector<144x16xbf16> to vector<16x16xbf16>
    %25 = vector.extract_strided_slice %2 {offsets = [0, 12], sizes = [16, 80], strides = [1, 1]} : vector<16x110xbf16> to vector<16x80xbf16>
    %cst_8 = arith.constant dense<0.000000e+00> : vector<16x80xf32>
    %26 = tpu.matmul %24, %25, %cst_8 {dimension_numbers = #tpu.dot_dimension_numbers<[1], [0], [0], [1], [0, 0, 1, 1], [], []>} : vector<16x16xbf16>, vector<16x80xbf16>, vector<16x80xf32> -> vector<16x80xf32>
    %27 = arith.addf %23, %26 : vector<16x80xf32>
    %28 = vector.extract_strided_slice %4 {offsets = [96, 0], sizes = [16, 16], strides = [1, 1]} : vector<144x16xbf16> to vector<16x16xbf16>
    %29 = vector.extract_strided_slice %2 {offsets = [0, 20], sizes = [16, 80], strides = [1, 1]} : vector<16x110xbf16> to vector<16x80xbf16>
    %cst_9 = arith.constant dense<0.000000e+00> : vector<16x80xf32>
    %30 = tpu.matmul %28, %29, %cst_9 {dimension_numbers = #tpu.dot_dimension_numbers<[1], [0], [0], [1], [0, 0, 1, 1], [], []>} : vector<16x16xbf16>, vector<16x80xbf16>, vector<16x80xf32> -> vector<16x80xf32>
    %31 = arith.addf %27, %30 : vector<16x80xf32>
    %32 = vector.extract_strided_slice %4 {offsets = [112, 0], sizes = [16, 16], strides = [1, 1]} : vector<144x16xbf16> to vector<16x16xbf16>
    %33 = vector.extract_strided_slice %2 {offsets = [0, 21], sizes = [16, 80], strides = [1, 1]} : vector<16x110xbf16> to vector<16x80xbf16>
    %cst_10 = arith.constant dense<0.000000e+00> : vector<16x80xf32>
    %34 = tpu.matmul %32, %33, %cst_10 {dimension_numbers = #tpu.dot_dimension_numbers<[1], [0], [0], [1], [0, 0, 1, 1], [], []>} : vector<16x16xbf16>, vector<16x80xbf16>, vector<16x80xf32> -> vector<16x80xf32>
    %35 = arith.addf %31, %34 : vector<16x80xf32>
    %36 = vector.extract_strided_slice %4 {offsets = [128, 0], sizes = [16, 16], strides = [1, 1]} : vector<144x16xbf16> to vector<16x16xbf16>
    %37 = vector.extract_strided_slice %2 {offsets = [0, 22], sizes = [16, 80], strides = [1, 1]} : vector<16x110xbf16> to vector<16x80xbf16>
    %cst_11 = arith.constant dense<0.000000e+00> : vector<16x80xf32>
    %38 = tpu.matmul %36, %37, %cst_11 {dimension_numbers = #tpu.dot_dimension_numbers<[1], [0], [0], [1], [0, 0, 1, 1], [], []>} : vector<16x16xbf16>, vector<16x80xbf16>, vector<16x80xf32> -> vector<16x80xf32>
    %39 = arith.addf %35, %38 : vector<16x80xf32>
    %c0_12 = arith.constant 0 : index
    %c0_13 = arith.constant 0 : index
    %c0_14 = arith.constant 0 : index
    %40 = vector.load %arg2[%c0_12, %c0_13, %c0_14] : memref<1x16x110xf32, #tpu.memory_space<vmem>>, vector<1x16x110xf32>
    %41 = vector.shape_cast %40 : vector<1x16x110xf32> to vector<16x110xf32>
    %42 = arith.truncf %41 : vector<16x110xf32> to vector<16x110xbf16>
    %c0_15 = arith.constant 0 : index
    %c0_16 = arith.constant 0 : index
    %43 = vector.load %arg4[%c0_15, %c0_16] : memref<144x16xf32, #tpu.memory_space<vmem>>, vector<144x16xf32>
    %44 = arith.truncf %43 : vector<144x16xf32> to vector<144x16xbf16>
    %45 = vector.extract_strided_slice %44 {offsets = [0, 0], sizes = [16, 16], strides = [1, 1]} : vector<144x16xbf16> to vector<16x16xbf16>
    %46 = vector.extract_strided_slice %42 {offsets = [0, 0], sizes = [16, 80], strides = [1, 1]} : vector<16x110xbf16> to vector<16x80xbf16>
    %cst_17 = arith.constant dense<0.000000e+00> : vector<16x80xf32>
    %47 = tpu.matmul %45, %46, %cst_17 {dimension_numbers = #tpu.dot_dimension_numbers<[1], [0], [0], [1], [0, 0, 1, 1], [], []>} : vector<16x16xbf16>, vector<16x80xbf16>, vector<16x80xf32> -> vector<16x80xf32>
    %48 = arith.addf %39, %47 : vector<16x80xf32>
    %49 = vector.extract_strided_slice %44 {offsets = [16, 0], sizes = [16, 16], strides = [1, 1]} : vector<144x16xbf16> to vector<16x16xbf16>
    %50 = vector.extract_strided_slice %42 {offsets = [0, 1], sizes = [16, 80], strides = [1, 1]} : vector<16x110xbf16> to vector<16x80xbf16>
    %cst_18 = arith.constant dense<0.000000e+00> : vector<16x80xf32>
    %51 = tpu.matmul %49, %50, %cst_18 {dimension_numbers = #tpu.dot_dimension_numbers<[1], [0], [0], [1], [0, 0, 1, 1], [], []>} : vector<16x16xbf16>, vector<16x80xbf16>, vector<16x80xf32> -> vector<16x80xf32>
    %52 = arith.addf %48, %51 : vector<16x80xf32>
    %53 = vector.extract_strided_slice %44 {offsets = [32, 0], sizes = [16, 16], strides = [1, 1]} : vector<144x16xbf16> to vector<16x16xbf16>
    %54 = vector.extract_strided_slice %42 {offsets = [0, 2], sizes = [16, 80], strides = [1, 1]} : vector<16x110xbf16> to vector<16x80xbf16>
    %cst_19 = arith.constant dense<0.000000e+00> : vector<16x80xf32>
    %55 = tpu.matmul %53, %54, %cst_19 {dimension_numbers = #tpu.dot_dimension_numbers<[1], [0], [0], [1], [0, 0, 1, 1], [], []>} : vector<16x16xbf16>, vector<16x80xbf16>, vector<16x80xf32> -> vector<16x80xf32>
    %56 = arith.addf %52, %55 : vector<16x80xf32>
    %57 = vector.extract_strided_slice %44 {offsets = [48, 0], sizes = [16, 16], strides = [1, 1]} : vector<144x16xbf16> to vector<16x16xbf16>
    %58 = vector.extract_strided_slice %42 {offsets = [0, 10], sizes = [16, 80], strides = [1, 1]} : vector<16x110xbf16> to vector<16x80xbf16>
    %cst_20 = arith.constant dense<0.000000e+00> : vector<16x80xf32>
    %59 = tpu.matmul %57, %58, %cst_20 {dimension_numbers = #tpu.dot_dimension_numbers<[1], [0], [0], [1], [0, 0, 1, 1], [], []>} : vector<16x16xbf16>, vector<16x80xbf16>, vector<16x80xf32> -> vector<16x80xf32>
    %60 = arith.addf %56, %59 : vector<16x80xf32>
    %61 = vector.extract_strided_slice %44 {offsets = [64, 0], sizes = [16, 16], strides = [1, 1]} : vector<144x16xbf16> to vector<16x16xbf16>
    %62 = vector.extract_strided_slice %42 {offsets = [0, 11], sizes = [16, 80], strides = [1, 1]} : vector<16x110xbf16> to vector<16x80xbf16>
    %cst_21 = arith.constant dense<0.000000e+00> : vector<16x80xf32>
    %63 = tpu.matmul %61, %62, %cst_21 {dimension_numbers = #tpu.dot_dimension_numbers<[1], [0], [0], [1], [0, 0, 1, 1], [], []>} : vector<16x16xbf16>, vector<16x80xbf16>, vector<16x80xf32> -> vector<16x80xf32>
    %64 = arith.addf %60, %63 : vector<16x80xf32>
    %65 = vector.extract_strided_slice %44 {offsets = [80, 0], sizes = [16, 16], strides = [1, 1]} : vector<144x16xbf16> to vector<16x16xbf16>
    %66 = vector.extract_strided_slice %42 {offsets = [0, 12], sizes = [16, 80], strides = [1, 1]} : vector<16x110xbf16> to vector<16x80xbf16>
    %cst_22 = arith.constant dense<0.000000e+00> : vector<16x80xf32>
    %67 = tpu.matmul %65, %66, %cst_22 {dimension_numbers = #tpu.dot_dimension_numbers<[1], [0], [0], [1], [0, 0, 1, 1], [], []>} : vector<16x16xbf16>, vector<16x80xbf16>, vector<16x80xf32> -> vector<16x80xf32>
    %68 = arith.addf %64, %67 : vector<16x80xf32>
    %69 = vector.extract_strided_slice %44 {offsets = [96, 0], sizes = [16, 16], strides = [1, 1]} : vector<144x16xbf16> to vector<16x16xbf16>
    %70 = vector.extract_strided_slice %42 {offsets = [0, 20], sizes = [16, 80], strides = [1, 1]} : vector<16x110xbf16> to vector<16x80xbf16>
    %cst_23 = arith.constant dense<0.000000e+00> : vector<16x80xf32>
    %71 = tpu.matmul %69, %70, %cst_23 {dimension_numbers = #tpu.dot_dimension_numbers<[1], [0], [0], [1], [0, 0, 1, 1], [], []>} : vector<16x16xbf16>, vector<16x80xbf16>, vector<16x80xf32> -> vector<16x80xf32>
    %72 = arith.addf %68, %71 : vector<16x80xf32>
    %73 = vector.extract_strided_slice %44 {offsets = [112, 0], sizes = [16, 16], strides = [1, 1]} : vector<144x16xbf16> to vector<16x16xbf16>
    %74 = vector.extract_strided_slice %42 {offsets = [0, 21], sizes = [16, 80], strides = [1, 1]} : vector<16x110xbf16> to vector<16x80xbf16>
    %cst_24 = arith.constant dense<0.000000e+00> : vector<16x80xf32>
    %75 = tpu.matmul %73, %74, %cst_24 {dimension_numbers = #tpu.dot_dimension_numbers<[1], [0], [0], [1], [0, 0, 1, 1], [], []>} : vector<16x16xbf16>, vector<16x80xbf16>, vector<16x80xf32> -> vector<16x80xf32>
    %76 = arith.addf %72, %75 : vector<16x80xf32>
    %77 = vector.extract_strided_slice %44 {offsets = [128, 0], sizes = [16, 16], strides = [1, 1]} : vector<144x16xbf16> to vector<16x16xbf16>
    %78 = vector.extract_strided_slice %42 {offsets = [0, 22], sizes = [16, 80], strides = [1, 1]} : vector<16x110xbf16> to vector<16x80xbf16>
    %cst_25 = arith.constant dense<0.000000e+00> : vector<16x80xf32>
    %79 = tpu.matmul %77, %78, %cst_25 {dimension_numbers = #tpu.dot_dimension_numbers<[1], [0], [0], [1], [0, 0, 1, 1], [], []>} : vector<16x16xbf16>, vector<16x80xbf16>, vector<16x80xf32> -> vector<16x80xf32>
    %80 = arith.addf %76, %79 : vector<16x80xf32>
    %c0_26 = arith.constant 0 : index
    %c0_27 = arith.constant 0 : index
    %81 = vector.load %arg7[%c0_26, %c0_27] : memref<1x80xf32, #tpu.memory_space<vmem>>, vector<1x80xf32>
    %82 = vector.broadcast %81 : vector<1x80xf32> to vector<16x80xf32>
    %83 = arith.mulf %80, %82 : vector<16x80xf32>
    %cst_28 = arith.constant dense<0.000000e+00> : vector<16xf32>
    %84 = vector.multi_reduction <add>, %83, %cst_28 [1] : vector<16x80xf32> to vector<16xf32>
    %85 = vector.shape_cast %84 : vector<16xf32> to vector<16x1xf32>
    %cst_29 = arith.constant 1.562500e-02 : f32
    %86 = vector.broadcast %cst_29 : f32 to vector<16x1xf32>
    %87 = arith.mulf %85, %86 : vector<16x1xf32>
    %88 = vector.broadcast %87 : vector<16x1xf32> to vector<16x80xf32>
    %89 = arith.subf %80, %88 : vector<16x80xf32>
    %90 = vector.broadcast %81 : vector<1x80xf32> to vector<16x80xf32>
    %91 = arith.mulf %89, %90 : vector<16x80xf32>
    %92 = arith.mulf %91, %91 : vector<16x80xf32>
    %cst_30 = arith.constant dense<0.000000e+00> : vector<16xf32>
    %93 = vector.multi_reduction <add>, %92, %cst_30 [1] : vector<16x80xf32> to vector<16xf32>
    %94 = vector.shape_cast %93 : vector<16xf32> to vector<16x1xf32>
    %cst_31 = arith.constant 1.562500e-02 : f32
    %95 = vector.broadcast %cst_31 : f32 to vector<16x1xf32>
    %96 = arith.mulf %94, %95 : vector<16x1xf32>
    %cst_32 = arith.constant 9.99999974E-6 : f32
    %97 = vector.broadcast %cst_32 : f32 to vector<16x1xf32>
    %98 = arith.addf %96, %97 : vector<16x1xf32>
    %99 = math.rsqrt %98 : vector<16x1xf32>
    %100 = vector.broadcast %99 : vector<16x1xf32> to vector<16x80xf32>
    %101 = arith.mulf %89, %100 : vector<16x80xf32>
    %c0_33 = arith.constant 0 : index
    %c0_34 = arith.constant 0 : index
    %102 = vector.load %arg5[%c0_33, %c0_34] : memref<16x1xf32, #tpu.memory_space<vmem>>, vector<16x1xf32>
    %103 = vector.broadcast %102 : vector<16x1xf32> to vector<16x80xf32>
    %104 = arith.mulf %101, %103 : vector<16x80xf32>
    %c0_35 = arith.constant 0 : index
    %c0_36 = arith.constant 0 : index
    %105 = vector.load %arg6[%c0_35, %c0_36] : memref<16x1xf32, #tpu.memory_space<vmem>>, vector<16x1xf32>
    %106 = vector.broadcast %105 : vector<16x1xf32> to vector<16x80xf32>
    %107 = arith.addf %104, %106 : vector<16x80xf32>
    %cst_37 = arith.constant 0.000000e+00 : f32
    %108 = vector.broadcast %cst_37 : f32 to vector<16x80xf32>
    %109 = arith.cmpf oge, %107, %108 : vector<16x80xf32>
    %cst_38 = arith.constant 0.00999999977 : f32
    %110 = vector.broadcast %cst_38 : f32 to vector<16x80xf32>
    %111 = arith.mulf %107, %110 : vector<16x80xf32>
    %112 = arith.select %109, %107, %111 : vector<16x80xi1>, vector<16x80xf32>
    %c0_39 = arith.constant 0 : index
    %c0_40 = arith.constant 0 : index
    %c0_41 = arith.constant 0 : index
    %113 = vector.load %arg8[%c0_39, %c0_40, %c0_41] : memref<1x16x80xf32, #tpu.memory_space<vmem>>, vector<1x16x80xf32>
    %114 = vector.shape_cast %113 : vector<1x16x80xf32> to vector<16x80xf32>
    %115 = vector.shape_cast %112 : vector<16x80xf32> to vector<1x16x80xf32>
    tpu.vector_store %arg8[%c0_39, %c0_40, %c0_41], %115 {strides = array<i32>} : memref<1x16x80xf32, #tpu.memory_space<vmem>>, vector<1x16x80xf32>,
    return
  }
  func.func @transform_0(%arg0: i32) -> (i32, i32, i32) {
    %c0_i32 = arith.constant 0 : i32
    %c0_i32_0 = arith.constant 0 : i32
    %c0_i32_1 = arith.constant 0 : i32
    return %arg0, %c0_i32, %c0_i32_0 : i32, i32, i32
  }
  func.func @transform_1(%arg0: i32) -> (i32, i32, i32) {
    %c0_i32 = arith.constant 0 : i32
    %c0_i32_0 = arith.constant 0 : i32
    %c0_i32_1 = arith.constant 0 : i32
    return %arg0, %c0_i32, %c0_i32_0 : i32, i32, i32
  }
  func.func @transform_2(%arg0: i32) -> (i32, i32) {
    %c0_i32 = arith.constant 0 : i32
    %c0_i32_0 = arith.constant 0 : i32
    %c0_i32_1 = arith.constant 0 : i32
    return %c0_i32, %c0_i32_0 : i32, i32
  }
  func.func @transform_3(%arg0: i32) -> (i32, i32) {
    %c0_i32 = arith.constant 0 : i32
    %c0_i32_0 = arith.constant 0 : i32
    %c0_i32_1 = arith.constant 0 : i32
    return %c0_i32, %c0_i32_0 : i32, i32
  }
  func.func @transform_4(%arg0: i32) -> (i32, i32) {
    %c0_i32 = arith.constant 0 : i32
    %c0_i32_0 = arith.constant 0 : i32
    %c0_i32_1 = arith.constant 0 : i32
    return %c0_i32, %c0_i32_0 : i32, i32
  }
  func.func @transform_5(%arg0: i32) -> (i32, i32) {
    %c0_i32 = arith.constant 0 : i32
    %c0_i32_0 = arith.constant 0 : i32
    %c0_i32_1 = arith.constant 0 : i32
    return %c0_i32, %c0_i32_0 : i32, i32
  }
  func.func @transform_6(%arg0: i32) -> (i32, i32) {
    %c0_i32 = arith.constant 0 : i32
    %c0_i32_0 = arith.constant 0 : i32
    %c0_i32_1 = arith.constant 0 : i32
    return %c0_i32, %c0_i32_0 : i32, i32
  }
  func.func @transform_7(%arg0: i32) -> (i32, i32, i32) {
    %c0_i32 = arith.constant 0 : i32
    %c0_i32_0 = arith.constant 0 : i32
    %c0_i32_1 = arith.constant 0 : i32
    return %arg0, %c0_i32, %c0_i32_0 : i32, i32, i32
  }
}

module attributes {stable_mosaic.version = 11 : i64} {
  func.func @kernel(%arg0: i32, %arg1: memref<1x8x272xf32, #tpu.memory_space<vmem>>, %arg2: memref<1x8x272xf32, #tpu.memory_space<vmem>>, %arg3: memref<8x8xf32, #tpu.memory_space<vmem>>, %arg4: memref<8x8xf32, #tpu.memory_space<vmem>>, %arg5: memref<8x1xf32, #tpu.memory_space<vmem>>, %arg6: memref<8x1xf32, #tpu.memory_space<vmem>>, %arg7: memref<1x8x256xf32, #tpu.memory_space<vmem>>) attributes {dimension_semantics = [#tpu.dimension_semantics<parallel>], iteration_bounds = array<i64: 2>, scalar_prefetch = 0 : i64, scratch_operands = 0 : i64, tpu.core_type = #tpu.core_type<tc>, window_params = [{transform_indices = @transform_0, window_bounds = array<i64: 1, 8, 272>}, {transform_indices = @transform_1, window_bounds = array<i64: 1, 8, 272>}, {pipeline_mode = #tpu.pipeline_mode<synchronous>, transform_indices = @transform_2, window_bounds = array<i64: 8, 8>}, {pipeline_mode = #tpu.pipeline_mode<synchronous>, transform_indices = @transform_3, window_bounds = array<i64: 8, 8>}, {pipeline_mode = #tpu.pipeline_mode<synchronous>, transform_indices = @transform_4, window_bounds = array<i64: 8, 1>}, {pipeline_mode = #tpu.pipeline_mode<synchronous>, transform_indices = @transform_5, window_bounds = array<i64: 8, 1>}, {transform_indices = @transform_6, window_bounds = array<i64: 1, 8, 256>}]} {
    %c0 = arith.constant 0 : index
    %c0_0 = arith.constant 0 : index
    %c0_1 = arith.constant 0 : index
    %0 = vector.load %arg1[%c0, %c0_0, %c0_1] : memref<1x8x272xf32, #tpu.memory_space<vmem>>, vector<1x8x272xf32>
    %1 = vector.shape_cast %0 : vector<1x8x272xf32> to vector<8x272xf32>
    %2 = arith.truncf %1 : vector<8x272xf32> to vector<8x272xbf16>
    %c0_2 = arith.constant 0 : index
    %c0_3 = arith.constant 0 : index
    %3 = vector.load %arg3[%c0_2, %c0_3] : memref<8x8xf32, #tpu.memory_space<vmem>>, vector<8x8xf32>
    %4 = arith.truncf %3 : vector<8x8xf32> to vector<8x8xbf16>
    %5 = vector.extract_strided_slice %2 {offsets = [0, 0], sizes = [8, 256], strides = [1, 1]} : vector<8x272xbf16> to vector<8x256xbf16>
    %cst = arith.constant dense<0.000000e+00> : vector<8x256xf32>
    %6 = tpu.matmul %4, %5, %cst {dimension_numbers = #tpu.dot_dimension_numbers<[1], [0], [0], [1], [0, 0, 1, 1], [], []>} : vector<8x8xbf16>, vector<8x256xbf16>, vector<8x256xf32> -> vector<8x256xf32>
    %c0_4 = arith.constant 0 : index
    %c0_5 = arith.constant 0 : index
    %c0_6 = arith.constant 0 : index
    %7 = vector.load %arg2[%c0_4, %c0_5, %c0_6] : memref<1x8x272xf32, #tpu.memory_space<vmem>>, vector<1x8x272xf32>
    %8 = vector.shape_cast %7 : vector<1x8x272xf32> to vector<8x272xf32>
    %9 = arith.truncf %8 : vector<8x272xf32> to vector<8x272xbf16>
    %c0_7 = arith.constant 0 : index
    %c0_8 = arith.constant 0 : index
    %10 = vector.load %arg4[%c0_7, %c0_8] : memref<8x8xf32, #tpu.memory_space<vmem>>, vector<8x8xf32>
    %11 = arith.truncf %10 : vector<8x8xf32> to vector<8x8xbf16>
    %12 = vector.extract_strided_slice %9 {offsets = [0, 0], sizes = [8, 256], strides = [1, 1]} : vector<8x272xbf16> to vector<8x256xbf16>
    %cst_9 = arith.constant dense<0.000000e+00> : vector<8x256xf32>
    %13 = tpu.matmul %11, %12, %cst_9 {dimension_numbers = #tpu.dot_dimension_numbers<[1], [0], [0], [1], [0, 0, 1, 1], [], []>} : vector<8x8xbf16>, vector<8x256xbf16>, vector<8x256xf32> -> vector<8x256xf32>
    %14 = arith.addf %6, %13 : vector<8x256xf32>
    %cst_10 = arith.constant dense<0.000000e+00> : vector<8xf32>
    %15 = vector.multi_reduction <add>, %14, %cst_10 [1] : vector<8x256xf32> to vector<8xf32>
    %16 = vector.shape_cast %15 : vector<8xf32> to vector<8x1xf32>
    %cst_11 = arith.constant 3.906250e-03 : f32
    %17 = vector.broadcast %cst_11 : f32 to vector<8x1xf32>
    %18 = arith.mulf %16, %17 : vector<8x1xf32>
    %19 = vector.broadcast %18 : vector<8x1xf32> to vector<8x256xf32>
    %20 = arith.subf %14, %19 : vector<8x256xf32>
    %21 = arith.mulf %20, %20 : vector<8x256xf32>
    %cst_12 = arith.constant dense<0.000000e+00> : vector<8xf32>
    %22 = vector.multi_reduction <add>, %21, %cst_12 [1] : vector<8x256xf32> to vector<8xf32>
    %23 = vector.shape_cast %22 : vector<8xf32> to vector<8x1xf32>
    %cst_13 = arith.constant 3.906250e-03 : f32
    %24 = vector.broadcast %cst_13 : f32 to vector<8x1xf32>
    %25 = arith.mulf %23, %24 : vector<8x1xf32>
    %cst_14 = arith.constant 9.99999974E-6 : f32
    %26 = vector.broadcast %cst_14 : f32 to vector<8x1xf32>
    %27 = arith.addf %25, %26 : vector<8x1xf32>
    %28 = math.rsqrt %27 : vector<8x1xf32>
    %29 = vector.broadcast %28 : vector<8x1xf32> to vector<8x256xf32>
    %30 = arith.mulf %20, %29 : vector<8x256xf32>
    %c0_15 = arith.constant 0 : index
    %c0_16 = arith.constant 0 : index
    %31 = vector.load %arg5[%c0_15, %c0_16] : memref<8x1xf32, #tpu.memory_space<vmem>>, vector<8x1xf32>
    %32 = vector.broadcast %31 : vector<8x1xf32> to vector<8x256xf32>
    %33 = arith.mulf %30, %32 : vector<8x256xf32>
    %c0_17 = arith.constant 0 : index
    %c0_18 = arith.constant 0 : index
    %34 = vector.load %arg6[%c0_17, %c0_18] : memref<8x1xf32, #tpu.memory_space<vmem>>, vector<8x1xf32>
    %35 = vector.broadcast %34 : vector<8x1xf32> to vector<8x256xf32>
    %36 = arith.addf %33, %35 : vector<8x256xf32>
    %c0_19 = arith.constant 0 : index
    %c0_20 = arith.constant 0 : index
    %c0_21 = arith.constant 0 : index
    %37 = vector.load %arg7[%c0_19, %c0_20, %c0_21] : memref<1x8x256xf32, #tpu.memory_space<vmem>>, vector<1x8x256xf32>
    %38 = vector.shape_cast %37 : vector<1x8x256xf32> to vector<8x256xf32>
    %39 = vector.shape_cast %36 : vector<8x256xf32> to vector<1x8x256xf32>
    tpu.vector_store %arg7[%c0_19, %c0_20, %c0_21], %39 {strides = array<i32>} : memref<1x8x256xf32, #tpu.memory_space<vmem>>, vector<1x8x256xf32>,
    return
  }
  func.func @transform_0(%arg0: i32) -> (i32, i32, i32) {
    %c0_i32 = arith.constant 0 : i32
    %c0_i32_0 = arith.constant 0 : i32
    %c0_i32_1 = arith.constant 0 : i32
    return %arg0, %c0_i32, %c0_i32_0 : i32, i32, i32
  }
  func.func @transform_1(%arg0: i32) -> (i32, i32, i32) {
    %c0_i32 = arith.constant 0 : i32
    %c0_i32_0 = arith.constant 0 : i32
    %c0_i32_1 = arith.constant 0 : i32
    return %arg0, %c0_i32, %c0_i32_0 : i32, i32, i32
  }
  func.func @transform_2(%arg0: i32) -> (i32, i32) {
    %c0_i32 = arith.constant 0 : i32
    %c0_i32_0 = arith.constant 0 : i32
    %c0_i32_1 = arith.constant 0 : i32
    return %c0_i32, %c0_i32_0 : i32, i32
  }
  func.func @transform_3(%arg0: i32) -> (i32, i32) {
    %c0_i32 = arith.constant 0 : i32
    %c0_i32_0 = arith.constant 0 : i32
    %c0_i32_1 = arith.constant 0 : i32
    return %c0_i32, %c0_i32_0 : i32, i32
  }
  func.func @transform_4(%arg0: i32) -> (i32, i32) {
    %c0_i32 = arith.constant 0 : i32
    %c0_i32_0 = arith.constant 0 : i32
    %c0_i32_1 = arith.constant 0 : i32
    return %c0_i32, %c0_i32_0 : i32, i32
  }
  func.func @transform_5(%arg0: i32) -> (i32, i32) {
    %c0_i32 = arith.constant 0 : i32
    %c0_i32_0 = arith.constant 0 : i32
    %c0_i32_1 = arith.constant 0 : i32
    return %c0_i32, %c0_i32_0 : i32, i32
  }
  func.func @transform_6(%arg0: i32) -> (i32, i32, i32) {
    %c0_i32 = arith.constant 0 : i32
    %c0_i32_0 = arith.constant 0 : i32
    %c0_i32_1 = arith.constant 0 : i32
    return %arg0, %c0_i32, %c0_i32_0 : i32, i32, i32
  }
}

module attributes {stable_mosaic.version = 11 : i64} {
  func.func @kernel(%arg0: i32, %arg1: memref<1x8x342xf32, #tpu.memory_space<vmem>>, %arg2: memref<1x8x342xf32, #tpu.memory_space<vmem>>, %arg3: memref<72x8xf32, #tpu.memory_space<vmem>>, %arg4: memref<72x8xf32, #tpu.memory_space<vmem>>, %arg5: memref<8x1xf32, #tpu.memory_space<vmem>>, %arg6: memref<8x1xf32, #tpu.memory_space<vmem>>, %arg7: memref<1x288xf32, #tpu.memory_space<vmem>>, %arg8: memref<1x8x288xf32, #tpu.memory_space<vmem>>) attributes {dimension_semantics = [#tpu.dimension_semantics<parallel>], iteration_bounds = array<i64: 2>, scalar_prefetch = 0 : i64, scratch_operands = 0 : i64, tpu.core_type = #tpu.core_type<tc>, window_params = [{transform_indices = @transform_0, window_bounds = array<i64: 1, 8, 342>}, {transform_indices = @transform_1, window_bounds = array<i64: 1, 8, 342>}, {pipeline_mode = #tpu.pipeline_mode<synchronous>, transform_indices = @transform_2, window_bounds = array<i64: 72, 8>}, {pipeline_mode = #tpu.pipeline_mode<synchronous>, transform_indices = @transform_3, window_bounds = array<i64: 72, 8>}, {pipeline_mode = #tpu.pipeline_mode<synchronous>, transform_indices = @transform_4, window_bounds = array<i64: 8, 1>}, {pipeline_mode = #tpu.pipeline_mode<synchronous>, transform_indices = @transform_5, window_bounds = array<i64: 8, 1>}, {pipeline_mode = #tpu.pipeline_mode<synchronous>, transform_indices = @transform_6, window_bounds = array<i64: 1, 288>}, {transform_indices = @transform_7, window_bounds = array<i64: 1, 8, 288>}]} {
    %c0 = arith.constant 0 : index
    %c0_0 = arith.constant 0 : index
    %c0_1 = arith.constant 0 : index
    %0 = vector.load %arg1[%c0, %c0_0, %c0_1] : memref<1x8x342xf32, #tpu.memory_space<vmem>>, vector<1x8x342xf32>
    %1 = vector.shape_cast %0 : vector<1x8x342xf32> to vector<8x342xf32>
    %2 = arith.truncf %1 : vector<8x342xf32> to vector<8x342xbf16>
    %c0_2 = arith.constant 0 : index
    %c0_3 = arith.constant 0 : index
    %3 = vector.load %arg3[%c0_2, %c0_3] : memref<72x8xf32, #tpu.memory_space<vmem>>, vector<72x8xf32>
    %4 = arith.truncf %3 : vector<72x8xf32> to vector<72x8xbf16>
    %5 = vector.extract_strided_slice %4 {offsets = [0, 0], sizes = [8, 8], strides = [1, 1]} : vector<72x8xbf16> to vector<8x8xbf16>
    %6 = vector.extract_strided_slice %2 {offsets = [0, 0], sizes = [8, 288], strides = [1, 1]} : vector<8x342xbf16> to vector<8x288xbf16>
    %cst = arith.constant dense<0.000000e+00> : vector<8x288xf32>
    %7 = tpu.matmul %5, %6, %cst {dimension_numbers = #tpu.dot_dimension_numbers<[1], [0], [0], [1], [0, 0, 1, 1], [], []>} : vector<8x8xbf16>, vector<8x288xbf16>, vector<8x288xf32> -> vector<8x288xf32>
    %8 = vector.extract_strided_slice %4 {offsets = [8, 0], sizes = [8, 8], strides = [1, 1]} : vector<72x8xbf16> to vector<8x8xbf16>
    %9 = vector.extract_strided_slice %2 {offsets = [0, 1], sizes = [8, 288], strides = [1, 1]} : vector<8x342xbf16> to vector<8x288xbf16>
    %cst_4 = arith.constant dense<0.000000e+00> : vector<8x288xf32>
    %10 = tpu.matmul %8, %9, %cst_4 {dimension_numbers = #tpu.dot_dimension_numbers<[1], [0], [0], [1], [0, 0, 1, 1], [], []>} : vector<8x8xbf16>, vector<8x288xbf16>, vector<8x288xf32> -> vector<8x288xf32>
    %11 = arith.addf %7, %10 : vector<8x288xf32>
    %12 = vector.extract_strided_slice %4 {offsets = [16, 0], sizes = [8, 8], strides = [1, 1]} : vector<72x8xbf16> to vector<8x8xbf16>
    %13 = vector.extract_strided_slice %2 {offsets = [0, 2], sizes = [8, 288], strides = [1, 1]} : vector<8x342xbf16> to vector<8x288xbf16>
    %cst_5 = arith.constant dense<0.000000e+00> : vector<8x288xf32>
    %14 = tpu.matmul %12, %13, %cst_5 {dimension_numbers = #tpu.dot_dimension_numbers<[1], [0], [0], [1], [0, 0, 1, 1], [], []>} : vector<8x8xbf16>, vector<8x288xbf16>, vector<8x288xf32> -> vector<8x288xf32>
    %15 = arith.addf %11, %14 : vector<8x288xf32>
    %16 = vector.extract_strided_slice %4 {offsets = [24, 0], sizes = [8, 8], strides = [1, 1]} : vector<72x8xbf16> to vector<8x8xbf16>
    %17 = vector.extract_strided_slice %2 {offsets = [0, 18], sizes = [8, 288], strides = [1, 1]} : vector<8x342xbf16> to vector<8x288xbf16>
    %cst_6 = arith.constant dense<0.000000e+00> : vector<8x288xf32>
    %18 = tpu.matmul %16, %17, %cst_6 {dimension_numbers = #tpu.dot_dimension_numbers<[1], [0], [0], [1], [0, 0, 1, 1], [], []>} : vector<8x8xbf16>, vector<8x288xbf16>, vector<8x288xf32> -> vector<8x288xf32>
    %19 = arith.addf %15, %18 : vector<8x288xf32>
    %20 = vector.extract_strided_slice %4 {offsets = [32, 0], sizes = [8, 8], strides = [1, 1]} : vector<72x8xbf16> to vector<8x8xbf16>
    %21 = vector.extract_strided_slice %2 {offsets = [0, 19], sizes = [8, 288], strides = [1, 1]} : vector<8x342xbf16> to vector<8x288xbf16>
    %cst_7 = arith.constant dense<0.000000e+00> : vector<8x288xf32>
    %22 = tpu.matmul %20, %21, %cst_7 {dimension_numbers = #tpu.dot_dimension_numbers<[1], [0], [0], [1], [0, 0, 1, 1], [], []>} : vector<8x8xbf16>, vector<8x288xbf16>, vector<8x288xf32> -> vector<8x288xf32>
    %23 = arith.addf %19, %22 : vector<8x288xf32>
    %24 = vector.extract_strided_slice %4 {offsets = [40, 0], sizes = [8, 8], strides = [1, 1]} : vector<72x8xbf16> to vector<8x8xbf16>
    %25 = vector.extract_strided_slice %2 {offsets = [0, 20], sizes = [8, 288], strides = [1, 1]} : vector<8x342xbf16> to vector<8x288xbf16>
    %cst_8 = arith.constant dense<0.000000e+00> : vector<8x288xf32>
    %26 = tpu.matmul %24, %25, %cst_8 {dimension_numbers = #tpu.dot_dimension_numbers<[1], [0], [0], [1], [0, 0, 1, 1], [], []>} : vector<8x8xbf16>, vector<8x288xbf16>, vector<8x288xf32> -> vector<8x288xf32>
    %27 = arith.addf %23, %26 : vector<8x288xf32>
    %28 = vector.extract_strided_slice %4 {offsets = [48, 0], sizes = [8, 8], strides = [1, 1]} : vector<72x8xbf16> to vector<8x8xbf16>
    %29 = vector.extract_strided_slice %2 {offsets = [0, 36], sizes = [8, 288], strides = [1, 1]} : vector<8x342xbf16> to vector<8x288xbf16>
    %cst_9 = arith.constant dense<0.000000e+00> : vector<8x288xf32>
    %30 = tpu.matmul %28, %29, %cst_9 {dimension_numbers = #tpu.dot_dimension_numbers<[1], [0], [0], [1], [0, 0, 1, 1], [], []>} : vector<8x8xbf16>, vector<8x288xbf16>, vector<8x288xf32> -> vector<8x288xf32>
    %31 = arith.addf %27, %30 : vector<8x288xf32>
    %32 = vector.extract_strided_slice %4 {offsets = [56, 0], sizes = [8, 8], strides = [1, 1]} : vector<72x8xbf16> to vector<8x8xbf16>
    %33 = vector.extract_strided_slice %2 {offsets = [0, 37], sizes = [8, 288], strides = [1, 1]} : vector<8x342xbf16> to vector<8x288xbf16>
    %cst_10 = arith.constant dense<0.000000e+00> : vector<8x288xf32>
    %34 = tpu.matmul %32, %33, %cst_10 {dimension_numbers = #tpu.dot_dimension_numbers<[1], [0], [0], [1], [0, 0, 1, 1], [], []>} : vector<8x8xbf16>, vector<8x288xbf16>, vector<8x288xf32> -> vector<8x288xf32>
    %35 = arith.addf %31, %34 : vector<8x288xf32>
    %36 = vector.extract_strided_slice %4 {offsets = [64, 0], sizes = [8, 8], strides = [1, 1]} : vector<72x8xbf16> to vector<8x8xbf16>
    %37 = vector.extract_strided_slice %2 {offsets = [0, 38], sizes = [8, 288], strides = [1, 1]} : vector<8x342xbf16> to vector<8x288xbf16>
    %cst_11 = arith.constant dense<0.000000e+00> : vector<8x288xf32>
    %38 = tpu.matmul %36, %37, %cst_11 {dimension_numbers = #tpu.dot_dimension_numbers<[1], [0], [0], [1], [0, 0, 1, 1], [], []>} : vector<8x8xbf16>, vector<8x288xbf16>, vector<8x288xf32> -> vector<8x288xf32>
    %39 = arith.addf %35, %38 : vector<8x288xf32>
    %c0_12 = arith.constant 0 : index
    %c0_13 = arith.constant 0 : index
    %c0_14 = arith.constant 0 : index
    %40 = vector.load %arg2[%c0_12, %c0_13, %c0_14] : memref<1x8x342xf32, #tpu.memory_space<vmem>>, vector<1x8x342xf32>
    %41 = vector.shape_cast %40 : vector<1x8x342xf32> to vector<8x342xf32>
    %42 = arith.truncf %41 : vector<8x342xf32> to vector<8x342xbf16>
    %c0_15 = arith.constant 0 : index
    %c0_16 = arith.constant 0 : index
    %43 = vector.load %arg4[%c0_15, %c0_16] : memref<72x8xf32, #tpu.memory_space<vmem>>, vector<72x8xf32>
    %44 = arith.truncf %43 : vector<72x8xf32> to vector<72x8xbf16>
    %45 = vector.extract_strided_slice %44 {offsets = [0, 0], sizes = [8, 8], strides = [1, 1]} : vector<72x8xbf16> to vector<8x8xbf16>
    %46 = vector.extract_strided_slice %42 {offsets = [0, 0], sizes = [8, 288], strides = [1, 1]} : vector<8x342xbf16> to vector<8x288xbf16>
    %cst_17 = arith.constant dense<0.000000e+00> : vector<8x288xf32>
    %47 = tpu.matmul %45, %46, %cst_17 {dimension_numbers = #tpu.dot_dimension_numbers<[1], [0], [0], [1], [0, 0, 1, 1], [], []>} : vector<8x8xbf16>, vector<8x288xbf16>, vector<8x288xf32> -> vector<8x288xf32>
    %48 = arith.addf %39, %47 : vector<8x288xf32>
    %49 = vector.extract_strided_slice %44 {offsets = [8, 0], sizes = [8, 8], strides = [1, 1]} : vector<72x8xbf16> to vector<8x8xbf16>
    %50 = vector.extract_strided_slice %42 {offsets = [0, 1], sizes = [8, 288], strides = [1, 1]} : vector<8x342xbf16> to vector<8x288xbf16>
    %cst_18 = arith.constant dense<0.000000e+00> : vector<8x288xf32>
    %51 = tpu.matmul %49, %50, %cst_18 {dimension_numbers = #tpu.dot_dimension_numbers<[1], [0], [0], [1], [0, 0, 1, 1], [], []>} : vector<8x8xbf16>, vector<8x288xbf16>, vector<8x288xf32> -> vector<8x288xf32>
    %52 = arith.addf %48, %51 : vector<8x288xf32>
    %53 = vector.extract_strided_slice %44 {offsets = [16, 0], sizes = [8, 8], strides = [1, 1]} : vector<72x8xbf16> to vector<8x8xbf16>
    %54 = vector.extract_strided_slice %42 {offsets = [0, 2], sizes = [8, 288], strides = [1, 1]} : vector<8x342xbf16> to vector<8x288xbf16>
    %cst_19 = arith.constant dense<0.000000e+00> : vector<8x288xf32>
    %55 = tpu.matmul %53, %54, %cst_19 {dimension_numbers = #tpu.dot_dimension_numbers<[1], [0], [0], [1], [0, 0, 1, 1], [], []>} : vector<8x8xbf16>, vector<8x288xbf16>, vector<8x288xf32> -> vector<8x288xf32>
    %56 = arith.addf %52, %55 : vector<8x288xf32>
    %57 = vector.extract_strided_slice %44 {offsets = [24, 0], sizes = [8, 8], strides = [1, 1]} : vector<72x8xbf16> to vector<8x8xbf16>
    %58 = vector.extract_strided_slice %42 {offsets = [0, 18], sizes = [8, 288], strides = [1, 1]} : vector<8x342xbf16> to vector<8x288xbf16>
    %cst_20 = arith.constant dense<0.000000e+00> : vector<8x288xf32>
    %59 = tpu.matmul %57, %58, %cst_20 {dimension_numbers = #tpu.dot_dimension_numbers<[1], [0], [0], [1], [0, 0, 1, 1], [], []>} : vector<8x8xbf16>, vector<8x288xbf16>, vector<8x288xf32> -> vector<8x288xf32>
    %60 = arith.addf %56, %59 : vector<8x288xf32>
    %61 = vector.extract_strided_slice %44 {offsets = [32, 0], sizes = [8, 8], strides = [1, 1]} : vector<72x8xbf16> to vector<8x8xbf16>
    %62 = vector.extract_strided_slice %42 {offsets = [0, 19], sizes = [8, 288], strides = [1, 1]} : vector<8x342xbf16> to vector<8x288xbf16>
    %cst_21 = arith.constant dense<0.000000e+00> : vector<8x288xf32>
    %63 = tpu.matmul %61, %62, %cst_21 {dimension_numbers = #tpu.dot_dimension_numbers<[1], [0], [0], [1], [0, 0, 1, 1], [], []>} : vector<8x8xbf16>, vector<8x288xbf16>, vector<8x288xf32> -> vector<8x288xf32>
    %64 = arith.addf %60, %63 : vector<8x288xf32>
    %65 = vector.extract_strided_slice %44 {offsets = [40, 0], sizes = [8, 8], strides = [1, 1]} : vector<72x8xbf16> to vector<8x8xbf16>
    %66 = vector.extract_strided_slice %42 {offsets = [0, 20], sizes = [8, 288], strides = [1, 1]} : vector<8x342xbf16> to vector<8x288xbf16>
    %cst_22 = arith.constant dense<0.000000e+00> : vector<8x288xf32>
    %67 = tpu.matmul %65, %66, %cst_22 {dimension_numbers = #tpu.dot_dimension_numbers<[1], [0], [0], [1], [0, 0, 1, 1], [], []>} : vector<8x8xbf16>, vector<8x288xbf16>, vector<8x288xf32> -> vector<8x288xf32>
    %68 = arith.addf %64, %67 : vector<8x288xf32>
    %69 = vector.extract_strided_slice %44 {offsets = [48, 0], sizes = [8, 8], strides = [1, 1]} : vector<72x8xbf16> to vector<8x8xbf16>
    %70 = vector.extract_strided_slice %42 {offsets = [0, 36], sizes = [8, 288], strides = [1, 1]} : vector<8x342xbf16> to vector<8x288xbf16>
    %cst_23 = arith.constant dense<0.000000e+00> : vector<8x288xf32>
    %71 = tpu.matmul %69, %70, %cst_23 {dimension_numbers = #tpu.dot_dimension_numbers<[1], [0], [0], [1], [0, 0, 1, 1], [], []>} : vector<8x8xbf16>, vector<8x288xbf16>, vector<8x288xf32> -> vector<8x288xf32>
    %72 = arith.addf %68, %71 : vector<8x288xf32>
    %73 = vector.extract_strided_slice %44 {offsets = [56, 0], sizes = [8, 8], strides = [1, 1]} : vector<72x8xbf16> to vector<8x8xbf16>
    %74 = vector.extract_strided_slice %42 {offsets = [0, 37], sizes = [8, 288], strides = [1, 1]} : vector<8x342xbf16> to vector<8x288xbf16>
    %cst_24 = arith.constant dense<0.000000e+00> : vector<8x288xf32>
    %75 = tpu.matmul %73, %74, %cst_24 {dimension_numbers = #tpu.dot_dimension_numbers<[1], [0], [0], [1], [0, 0, 1, 1], [], []>} : vector<8x8xbf16>, vector<8x288xbf16>, vector<8x288xf32> -> vector<8x288xf32>
    %76 = arith.addf %72, %75 : vector<8x288xf32>
    %77 = vector.extract_strided_slice %44 {offsets = [64, 0], sizes = [8, 8], strides = [1, 1]} : vector<72x8xbf16> to vector<8x8xbf16>
    %78 = vector.extract_strided_slice %42 {offsets = [0, 38], sizes = [8, 288], strides = [1, 1]} : vector<8x342xbf16> to vector<8x288xbf16>
    %cst_25 = arith.constant dense<0.000000e+00> : vector<8x288xf32>
    %79 = tpu.matmul %77, %78, %cst_25 {dimension_numbers = #tpu.dot_dimension_numbers<[1], [0], [0], [1], [0, 0, 1, 1], [], []>} : vector<8x8xbf16>, vector<8x288xbf16>, vector<8x288xf32> -> vector<8x288xf32>
    %80 = arith.addf %76, %79 : vector<8x288xf32>
    %c0_26 = arith.constant 0 : index
    %c0_27 = arith.constant 0 : index
    %81 = vector.load %arg7[%c0_26, %c0_27] : memref<1x288xf32, #tpu.memory_space<vmem>>, vector<1x288xf32>
    %82 = vector.broadcast %81 : vector<1x288xf32> to vector<8x288xf32>
    %83 = arith.mulf %80, %82 : vector<8x288xf32>
    %cst_28 = arith.constant dense<0.000000e+00> : vector<8xf32>
    %84 = vector.multi_reduction <add>, %83, %cst_28 [1] : vector<8x288xf32> to vector<8xf32>
    %85 = vector.shape_cast %84 : vector<8xf32> to vector<8x1xf32>
    %cst_29 = arith.constant 3.906250e-03 : f32
    %86 = vector.broadcast %cst_29 : f32 to vector<8x1xf32>
    %87 = arith.mulf %85, %86 : vector<8x1xf32>
    %88 = vector.broadcast %87 : vector<8x1xf32> to vector<8x288xf32>
    %89 = arith.subf %80, %88 : vector<8x288xf32>
    %90 = vector.broadcast %81 : vector<1x288xf32> to vector<8x288xf32>
    %91 = arith.mulf %89, %90 : vector<8x288xf32>
    %92 = arith.mulf %91, %91 : vector<8x288xf32>
    %cst_30 = arith.constant dense<0.000000e+00> : vector<8xf32>
    %93 = vector.multi_reduction <add>, %92, %cst_30 [1] : vector<8x288xf32> to vector<8xf32>
    %94 = vector.shape_cast %93 : vector<8xf32> to vector<8x1xf32>
    %cst_31 = arith.constant 3.906250e-03 : f32
    %95 = vector.broadcast %cst_31 : f32 to vector<8x1xf32>
    %96 = arith.mulf %94, %95 : vector<8x1xf32>
    %cst_32 = arith.constant 9.99999974E-6 : f32
    %97 = vector.broadcast %cst_32 : f32 to vector<8x1xf32>
    %98 = arith.addf %96, %97 : vector<8x1xf32>
    %99 = math.rsqrt %98 : vector<8x1xf32>
    %100 = vector.broadcast %99 : vector<8x1xf32> to vector<8x288xf32>
    %101 = arith.mulf %89, %100 : vector<8x288xf32>
    %c0_33 = arith.constant 0 : index
    %c0_34 = arith.constant 0 : index
    %102 = vector.load %arg5[%c0_33, %c0_34] : memref<8x1xf32, #tpu.memory_space<vmem>>, vector<8x1xf32>
    %103 = vector.broadcast %102 : vector<8x1xf32> to vector<8x288xf32>
    %104 = arith.mulf %101, %103 : vector<8x288xf32>
    %c0_35 = arith.constant 0 : index
    %c0_36 = arith.constant 0 : index
    %105 = vector.load %arg6[%c0_35, %c0_36] : memref<8x1xf32, #tpu.memory_space<vmem>>, vector<8x1xf32>
    %106 = vector.broadcast %105 : vector<8x1xf32> to vector<8x288xf32>
    %107 = arith.addf %104, %106 : vector<8x288xf32>
    %cst_37 = arith.constant 0.000000e+00 : f32
    %108 = vector.broadcast %cst_37 : f32 to vector<8x288xf32>
    %109 = arith.cmpf oge, %107, %108 : vector<8x288xf32>
    %cst_38 = arith.constant 0.00999999977 : f32
    %110 = vector.broadcast %cst_38 : f32 to vector<8x288xf32>
    %111 = arith.mulf %107, %110 : vector<8x288xf32>
    %112 = arith.select %109, %107, %111 : vector<8x288xi1>, vector<8x288xf32>
    %c0_39 = arith.constant 0 : index
    %c0_40 = arith.constant 0 : index
    %c0_41 = arith.constant 0 : index
    %113 = vector.load %arg8[%c0_39, %c0_40, %c0_41] : memref<1x8x288xf32, #tpu.memory_space<vmem>>, vector<1x8x288xf32>
    %114 = vector.shape_cast %113 : vector<1x8x288xf32> to vector<8x288xf32>
    %115 = vector.shape_cast %112 : vector<8x288xf32> to vector<1x8x288xf32>
    tpu.vector_store %arg8[%c0_39, %c0_40, %c0_41], %115 {strides = array<i32>} : memref<1x8x288xf32, #tpu.memory_space<vmem>>, vector<1x8x288xf32>,
    return
  }
  func.func @transform_0(%arg0: i32) -> (i32, i32, i32) {
    %c0_i32 = arith.constant 0 : i32
    %c0_i32_0 = arith.constant 0 : i32
    %c0_i32_1 = arith.constant 0 : i32
    return %arg0, %c0_i32, %c0_i32_0 : i32, i32, i32
  }
  func.func @transform_1(%arg0: i32) -> (i32, i32, i32) {
    %c0_i32 = arith.constant 0 : i32
    %c0_i32_0 = arith.constant 0 : i32
    %c0_i32_1 = arith.constant 0 : i32
    return %arg0, %c0_i32, %c0_i32_0 : i32, i32, i32
  }
  func.func @transform_2(%arg0: i32) -> (i32, i32) {
    %c0_i32 = arith.constant 0 : i32
    %c0_i32_0 = arith.constant 0 : i32
    %c0_i32_1 = arith.constant 0 : i32
    return %c0_i32, %c0_i32_0 : i32, i32
  }
  func.func @transform_3(%arg0: i32) -> (i32, i32) {
    %c0_i32 = arith.constant 0 : i32
    %c0_i32_0 = arith.constant 0 : i32
    %c0_i32_1 = arith.constant 0 : i32
    return %c0_i32, %c0_i32_0 : i32, i32
  }
  func.func @transform_4(%arg0: i32) -> (i32, i32) {
    %c0_i32 = arith.constant 0 : i32
    %c0_i32_0 = arith.constant 0 : i32
    %c0_i32_1 = arith.constant 0 : i32
    return %c0_i32, %c0_i32_0 : i32, i32
  }
  func.func @transform_5(%arg0: i32) -> (i32, i32) {
    %c0_i32 = arith.constant 0 : i32
    %c0_i32_0 = arith.constant 0 : i32
    %c0_i32_1 = arith.constant 0 : i32
    return %c0_i32, %c0_i32_0 : i32, i32
  }
  func.func @transform_6(%arg0: i32) -> (i32, i32) {
    %c0_i32 = arith.constant 0 : i32
    %c0_i32_0 = arith.constant 0 : i32
    %c0_i32_1 = arith.constant 0 : i32
    return %c0_i32, %c0_i32_0 : i32, i32
  }
  func.func @transform_7(%arg0: i32) -> (i32, i32, i32) {
    %c0_i32 = arith.constant 0 : i32
    %c0_i32_0 = arith.constant 0 : i32
    %c0_i32_1 = arith.constant 0 : i32
    return %arg0, %c0_i32, %c0_i32_0 : i32, i32, i32
  }
}

module attributes {stable_mosaic.version = 11 : i64} {
  func.func @kernel(%arg0: i32, %arg1: memref<1x8x272xf32, #tpu.memory_space<vmem>>, %arg2: memref<2x8xf32, #tpu.memory_space<vmem>>, %arg3: memref<2x1xf32, #tpu.memory_space<vmem>>, %arg4: memref<1x2x256xf32, #tpu.memory_space<vmem>>) attributes {dimension_semantics = [#tpu.dimension_semantics<parallel>], iteration_bounds = array<i64: 2>, scalar_prefetch = 0 : i64, scratch_operands = 0 : i64, tpu.core_type = #tpu.core_type<tc>, window_params = [{transform_indices = @transform_0, window_bounds = array<i64: 1, 8, 272>}, {pipeline_mode = #tpu.pipeline_mode<synchronous>, transform_indices = @transform_1, window_bounds = array<i64: 2, 8>}, {pipeline_mode = #tpu.pipeline_mode<synchronous>, transform_indices = @transform_2, window_bounds = array<i64: 2, 1>}, {transform_indices = @transform_3, window_bounds = array<i64: 1, 2, 256>}]} {
    %c0 = arith.constant 0 : index
    %c0_0 = arith.constant 0 : index
    %c0_1 = arith.constant 0 : index
    %0 = vector.load %arg1[%c0, %c0_0, %c0_1] : memref<1x8x272xf32, #tpu.memory_space<vmem>>, vector<1x8x272xf32>
    %1 = vector.shape_cast %0 : vector<1x8x272xf32> to vector<8x272xf32>
    %2 = arith.truncf %1 : vector<8x272xf32> to vector<8x272xbf16>
    %c0_2 = arith.constant 0 : index
    %c0_3 = arith.constant 0 : index
    %3 = vector.load %arg2[%c0_2, %c0_3] : memref<2x8xf32, #tpu.memory_space<vmem>>, vector<2x8xf32>
    %4 = arith.truncf %3 : vector<2x8xf32> to vector<2x8xbf16>
    %5 = vector.extract_strided_slice %2 {offsets = [0, 0], sizes = [8, 256], strides = [1, 1]} : vector<8x272xbf16> to vector<8x256xbf16>
    %cst = arith.constant dense<0.000000e+00> : vector<2x256xf32>
    %6 = tpu.matmul %4, %5, %cst {dimension_numbers = #tpu.dot_dimension_numbers<[1], [0], [0], [1], [0, 0, 1, 1], [], []>} : vector<2x8xbf16>, vector<8x256xbf16>, vector<2x256xf32> -> vector<2x256xf32>
    %c0_4 = arith.constant 0 : index
    %c0_5 = arith.constant 0 : index
    %7 = vector.load %arg3[%c0_4, %c0_5] : memref<2x1xf32, #tpu.memory_space<vmem>>, vector<2x1xf32>
    %8 = vector.broadcast %7 : vector<2x1xf32> to vector<2x256xf32>
    %9 = arith.addf %6, %8 : vector<2x256xf32>
    %c0_6 = arith.constant 0 : index
    %c0_7 = arith.constant 0 : index
    %c0_8 = arith.constant 0 : index
    %10 = vector.load %arg4[%c0_6, %c0_7, %c0_8] : memref<1x2x256xf32, #tpu.memory_space<vmem>>, vector<1x2x256xf32>
    %11 = vector.shape_cast %10 : vector<1x2x256xf32> to vector<2x256xf32>
    %12 = vector.shape_cast %9 : vector<2x256xf32> to vector<1x2x256xf32>
    tpu.vector_store %arg4[%c0_6, %c0_7, %c0_8], %12 {strides = array<i32>} : memref<1x2x256xf32, #tpu.memory_space<vmem>>, vector<1x2x256xf32>,
    return
  }
  func.func @transform_0(%arg0: i32) -> (i32, i32, i32) {
    %c0_i32 = arith.constant 0 : i32
    %c0_i32_0 = arith.constant 0 : i32
    %c0_i32_1 = arith.constant 0 : i32
    return %arg0, %c0_i32, %c0_i32_0 : i32, i32, i32
  }
  func.func @transform_1(%arg0: i32) -> (i32, i32) {
    %c0_i32 = arith.constant 0 : i32
    %c0_i32_0 = arith.constant 0 : i32
    %c0_i32_1 = arith.constant 0 : i32
    return %c0_i32, %c0_i32_0 : i32, i32
  }
  func.func @transform_2(%arg0: i32) -> (i32, i32) {
    %c0_i32 = arith.constant 0 : i32
    %c0_i32_0 = arith.constant 0 : i32
    %c0_i32_1 = arith.constant 0 : i32
    return %c0_i32, %c0_i32_0 : i32, i32
  }
  func.func @transform_3(%arg0: i32) -> (i32, i32, i32) {
    %c0_i32 = arith.constant 0 : i32
    %c0_i32_0 = arith.constant 0 : i32
    %c0_i32_1 = arith.constant 0 : i32
    return %arg0, %c0_i32, %c0_i32_0 : i32, i32, i32
  }
}

</mosaic_0001>

<bundles_post_ra>
// kernel: tile.58
= control target key start
LH: loop header
LB: loop body
LE: loop exit
PB: predicated region body
PF: predicated region fallthrough
CT: control target
= control target key end

     0   :  { %s28_s0 = inlined_call_operand.vmem [shape: f32[18], index: 0, kind: input, shape index: {}]   ;;  %s29_s1 = inlined_call_operand.vmem [shape: f32[16,18], index: 1, kind: output, shape index: {}]  }
   0x1   :  { %v4_v0 = vld [vmem:[%s28_s0] ss:$0 sm:$0xff] }
   0x2   :  { %5 = vst [vmem:[%s29_s1] sm:$0xff] %v4_v0 }
   0x3   :  { %8 = vst [vmem:[%s29_s1 + $0x8] sm:$0xff] %v4_v0 }

// kernel: tile.59
= control target key start
LH: loop header
LB: loop body
LE: loop exit
PB: predicated region body
PF: predicated region fallthrough
CT: control target
= control target key end

     0   :  { %vm9_vm0 = vcmask 15360   ;;  %s169_s10 = smov 108   ;;  %s170_s13 = smov 126   ;;  %vm22_vm1 = vcmask 31744   ;;  %vm3_vm2 = vcmask 146432   ;;  %vm13_vm3 = vcmask 130048   ;;  %s257_s0 = inlined_call_operand.vmem [shape: f32[16,18], index: 0, kind: input, shape index: {}]   ;;  %s258_s1 = inlined_call_operand.vmem [shape: f32[1,288], index: 1, kind: output, shape index: {}]  }
   0x1   :  { %v139_v0 = vld [vmem:[%s257_s0 + $0x6] sm:$0x1]   ;;  %v135_v1 = vld [vmem:[%s257_s0 + $0x7] sm:$0x1]   ;;  %v141_v4 = vld [vmem:[%s257_s0 + $0x5] sm:$0x1]  }
   0x2   :  { %34 = vrot.lane.b32.xlu1 %v139_v0, %s169_s10  ;;  %v136_v2 = vld [vmem:[%s257_s0 + $0x7] sm:$0x1]   ;;  %v137_v5 = vld [vmem:[%s257_s0 + $0xe] sm:$0x1]   ;;  %s171_s20 = smov 90   ;;  %s172_s23 = smov 106  }
   0x3   :  { %v10_v3 = vsel %vm9_vm0, %v136_v2, %v135_v1  ;;  %v138_v6 = vld [vmem:[%s257_s0 + $0xe] sm:$0x1]   ;;  %47 = vrot.lane.b32.xlu2 %v141_v4, %s171_s20  ;;  %v140_v7 = vld [vmem:[%s257_s0 + $0xd] sm:$0x1]   ;;  %v142_v9 = vld [vmem:[%s257_s0 + $0xc] sm:$0x1]  }
   0x4   :  { %11 = vrot.lane.b32.xlu0 %v10_v3, %s170_s13  ;;  %v23_v8 = vsel %vm22_vm1, %v138_v6, %v137_v5  ;;  %s173_s26 = smov 124   ;;  %s174_s27 = smov 88   ;;  %v144_v10 = vld [vmem:[%s257_s0 + $0xb] sm:$0x1]   ;;  %v143_v11 = vld [vmem:[%s257_s0 + $0x4] sm:$0x1]  }
   0x5   :  { %s175_s3 = smov 70   ;;  %v145_v12 = vld [vmem:[%s257_s0 + $0x3] sm:$0x1]   ;;  %s176_s6 = smov 72   ;;  %v147_v13 = vld [vmem:[%s257_s0 + $0x2] sm:$0x1]  }
   0x6   :  { %s177_s7 = smov 54   ;;  %v146_v14 = vld [vmem:[%s257_s0 + $0xa] sm:$0x1]   ;;  %s178_s12 = smov 36   ;;  %v148_v15 = vld [vmem:[%s257_s0 + $0x9] sm:$0x1]  }
   0x7   :  { %s179_s15 = smov 52   ;;  %s180_s16 = smov 34   ;;  %v150_v16 = vld [vmem:[%s257_s0 + $0x8] sm:$0x1]   ;;  %v149_v17 = vld [vmem:[%s257_s0 + $0x1] sm:$0x1]  }
   0x8   :  { %s181_s21 = smov 16   ;;  %v151_v18 = vld [vmem:[%s257_s0 + $0xf] sm:$0x1]   ;;  %s182_s24 = smov 18   ;;  %v2_v19 = vld [vmem:[%s257_s0] sm:$0x1]  }
   0x9   :  { %s183_s25 = smov 14   ;;  %4 = vst.msk [vmem:[#allocation0] sm:$0x1] %vm3_vm2, %v2_v19   ;;  %vm16_vm4 = vcmask 1048560   ;;  %vm36_vm5 = vcmask 1032032   ;;  %vm49_vm6 = vcmask 884432  }
   0xa   :  { %40 = vrot.lane.b32.xlu1 %v140_v7, %s172_s23  ;;  %vm26_vm7 = vcmask 113664   ;;  %vm29_vm8 = vcmask 1048544   ;;  %vm42_vm9 = vcmask 1015632   ;;  %vm55_vm10 = vcmask 868032  }
   0xb   :  { %53 = vrot.lane.b32.xlu2 %v142_v9, %s174_s27  ;;  %vm114_vm11 = vcmask 261232   ;;  %vm68_vm12 = vcmask 720432   ;;  %vm62_vm13 = vcmask 736832   ;;  %vm75_vm14 = vcmask 589232  }
   0xc   :  { %24 = vrot.lane.b32.xlu0 %v23_v8, %s173_s26  ;;  %vm88_vm15 = vcmask 441632   ;;  %vm81_vm0 = vcmask 572832   ;;  %vm94_vm1 = vcmask 425232   ;;  %vm107_vm2 = vcmask 277632  }
  0x12   :  { %66 = vrot.lane.b32.xlu1 %v144_v10, %s175_s3 }
  0x13   :  { %73 = vrot.lane.b32.xlu2 %v145_v12, %s177_s7 }
  0x14   :  { %60 = vrot.lane.b32.xlu0 %v143_v11, %s176_s6 }
  0x1a   :  { %86 = vrot.lane.b32.xlu1 %v147_v13, %s178_s12 }
  0x1b   :  { %92 = vrot.lane.b32.xlu2 %v148_v15, %s180_s16 }
  0x1c   :  { %79 = vrot.lane.b32.xlu0 %v146_v14, %s179_s15 }
  0x22   :  { %105 = vrot.lane.b32.xlu1 %v150_v16, %s181_s21 }
  0x23   :  { %112 = vrot.lane.b32.xlu2 %v151_v18, %s183_s25 }
  0x24   :  { %99 = vrot.lane.b32.xlu0 %v149_v17, %s182_s24 }
  0x5d   :  { %v48_v20 = vpop.permute.xlu2 %47  }
  0x65   :  { %v54_v21 = vpop.permute.xlu2 %53  }
  0x6d   :  { %v74_v22 = vpop.permute.xlu2 %73  }
  0x74   :  { %v35_v23 = vpop.permute.xlu1 %34  }
  0x75   :  { %v93_v25 = vpop.permute.xlu2 %92  }
  0x76   :  { %v12_v24 = vpop.permute.xlu0 %11  }
  0x77   :  { %15 = vst.msk [vmem:[#allocation0 + $0x8] sm:$0x1] %vm13_vm3, %v12_v24   ;;  %vm101_vm3 = vcmask 294032  }
  0x78   :  { %17 = vst.msk [vmem:[#allocation0] sm:$0x1] %vm16_vm4, %v12_v24  }
  0x79   :  { %37 = vst.msk [vmem:[#allocation0] sm:$0x1] %vm36_vm5, %v35_v23  }
  0x7a   :  { %50 = vst.msk [vmem:[#allocation0] sm:$0x1] %vm49_vm6, %v48_v20  }
  0x7c   :  { %v41_v26 = vpop.permute.xlu1 %40  }
  0x7d   :  { %v113_v28 = vpop.permute.xlu2 %112  }
  0x7e   :  { %v25_v27 = vpop.permute.xlu0 %24  }
  0x7f   :  { %28 = vst.msk [vmem:[#allocation0 + $0x10] sm:$0x1] %vm26_vm7, %v25_v27  }
  0x80   :  { %31 = vst.msk [vmem:[#allocation0 + $0x8] sm:$0x1] %vm29_vm8, %v25_v27  }
  0x81   :  { %44 = vst.msk [vmem:[#allocation0 + $0x8] sm:$0x1] %vm42_vm9, %v41_v26  }
  0x82   :  { %57 = vst.msk [vmem:[#allocation0 + $0x8] sm:$0x1] %vm55_vm10, %v54_v21  }
  0x83   :  { %116 = vst.msk [vmem:[#allocation0 + $0x10] sm:$0x1] %vm114_vm11, %v113_v28  }
  0x84   :  { %v67_v29 = vpop.permute.xlu1 %66  }
  0x85   :  { %70 = vst.msk [vmem:[#allocation0 + $0x8] sm:$0x1] %vm68_vm12, %v67_v29  }
  0x86   :  { %v61_v30 = vpop.permute.xlu0 %60  }
  0x87   :  { %63 = vst.msk [vmem:[#allocation0] sm:$0x1] %vm62_vm13, %v61_v30  }
  0x88   :  { %76 = vst.msk [vmem:[#allocation0] sm:$0x1] %vm75_vm14, %v74_v22  }
  0x8a   :  { %v130_v31 = vld [vmem:[#allocation0 + $0x10] sm:$0x1] }
  0x8b   :  { %153 = vst [vmem:[%s258_s1 + $0x2] sm:$0x1] %v130_v31 }
  0x8c   :  { %v87_v32 = vpop.permute.xlu1 %86  }
  0x8d   :  { %89 = vst.msk [vmem:[#allocation0] sm:$0x1] %vm88_vm15, %v87_v32  }
  0x8e   :  { %v80_v33 = vpop.permute.xlu0 %79  }
  0x8f   :  { %83 = vst.msk [vmem:[#allocation0 + $0x8] sm:$0x1] %vm81_vm0, %v80_v33  }
  0x90   :  { %96 = vst.msk [vmem:[#allocation0 + $0x8] sm:$0x1] %vm94_vm1, %v93_v25  }
  0x94   :  { %v106_v34 = vpop.permute.xlu1 %105  }
  0x95   :  { %109 = vst.msk [vmem:[#allocation0 + $0x8] sm:$0x1] %vm107_vm2, %v106_v34  }
  0x96   :  { %v100_v35 = vpop.permute.xlu0 %99  }
  0x97   :  { %102 = vst.msk [vmem:[#allocation0] sm:$0x1] %vm101_vm3, %v100_v35  }
  0x9c   :  { %v124_v36 = vld [vmem:[#allocation0 + $0x8] sm:$0x1] }
  0x9d   :  { %152 = vst [vmem:[%s258_s1 + $0x1] sm:$0x1] %v124_v36 }
  0x9e   :  { %v119_v37 = vld [vmem:[#allocation0] sm:$0x1] }
  0x9f   :  { %122 = vst [vmem:[%s258_s1] sm:$0x1] %v119_v37 }

// kernel: residual_unet_forward.18
= control target key start
LH: loop header
LB: loop body
LE: loop exit
PB: predicated region body
PF: predicated region fallthrough
CT: control target
= control target key end

     0   :  { %s1059_s18 = smov 0   ;;  %s1198_s0 = inlined_call_operand.vmem [shape: f32[2,4,342], index: 0, kind: input, shape index: {}]   ;;  %s1199_s1 = inlined_call_operand.vmem [shape: f32[72,4], index: 1, kind: input, shape index: {}]   ;;  %s1200_s2 = inlined_call_operand.vmem [shape: f32[8,1], index: 2, kind: input, shape index: {}]   ;;  %s1201_s3 = inlined_call_operand.vmem [shape: f32[8,1], index: 3, kind: input, shape index: {}]   ;;  %s1202_s4 = inlined_call_operand.vmem [shape: f32[1,288], index: 4, kind: input, shape index: {}]   ;;  %s1203_s5 = inlined_call_operand.vmem [shape: f32[2,8,288], index: 5, kind: output, shape index: {}]  }
   0x1 LB: > { %s953_s19 = sadd.s32 4294967295, %s1018_s18   ;;  %p957_p0 = scmp.ge.s32.totalorder %s1018_s18, 1  ;;  %s1018_s18 = sphi %s1059_s18, %s15_s18  }
   0x2   : > { %p187_p1 = scmp.lt.s32.totalorder %s1018_s18, 3 }
   0x4   : > { %p188_p2 = pnand %p957_p0, %p187_p1 }
   0x5   : > { %p215_p3 = scmp.lt.s32.totalorder (!%p188_p2), %s953_s19, 1  ;;  %s1020_s24 = smov (!%p188_p2), 127  }
   0x6   : > { %191 = sbr.rel (%p188_p2) target bundleno = 666 (0x29a), region = 40  ;;  %s1021_s25 = smov (!%p188_p2), 126  }
   0x7   : > { %s1022_s26 = smov (!%p188_p2), 110   ;;  %s1023_s27 = smov (!%p188_p2), 109  }
   0x8   : > { %s1024_s28 = smov (!%p188_p2), 108   ;;  %s1025_s29 = smov (!%p188_p2), 92  }
   0x9   : > { %s1026_s30 = smov (!%p188_p2), 91   ;;  %s1027_s6 = smov (!%p188_p2), 90  }
   0xb   : > { %s1205_s19 = smov (!%p215_p3, %s953_s19), 1  ;;  %vm280_vm0 = vcmask 1041408   ;;  %v241_v14 = vld [vmem:[%s1199_s1] sm:$0xff]  ;;  %vm276_vm1 = vcmask 31744   ;;  %vm386_vm2 = vcmask 1031168   ;;  %v243_v20 = vld [vmem:[%s1199_s1 + $0x10] sm:$0xff] }
   0xc   : > { %s989_s20 = smul.u32 12, %s1205_s19  ;;  %v1087_v15 = vpack.c.bf16 %v241_v14, %v241_v14  ;;  %v1096_v21 = vpack.c.bf16 %v243_v20, %v243_v20  ;;  %v242_v22 = vld [vmem:[%s1199_s1 + $0x8] sm:$0xff]  ;;  %vm273_vm3 = vcmask 1039360   ;;  %vm449_vm4 = vcmask 900096   ;;  %v244_v42 = vld [vmem:[%s1199_s1 + $0x18] sm:$0xff]  ;;  %v247_v14 = vld [vmem:[%s1199_s1 + $0x30] sm:$0xff] }
   0xd   : > { %v251_v26 = vpack.c.bf16 %v242_v22, %v242_v22  ;;  %v253_v47 = vpack.c.bf16 %v244_v42, %v244_v42  ;;  %vm512_vm5 = vcmask 891904   ;;  %vm575_vm6 = vcmask 883712   ;;  %v246_v58 = vld [vmem:[%s1199_s1 + $0x28] sm:$0xff]  ;;  %s990_s8 = smul.u32 24, %s1205_s19 }
   0xe   : > { %s219_s23 = scalar_lea.vmem %s1198_s0, %s989_s20  ;;  %v255_v62 = vpack.c.bf16 %v246_v58, %v246_v58  ;;  %vm638_vm7 = vcmask 752640   ;;  %vm701_vm8 = vcmask 744448   ;;  %vm764_vm9 = vcmask 736256  }
   0xf   : > { %v227_v0 = vld [vmem:[%s219_s23 + $0x8] sm:$0xf]  ;;  %v226_v1 = vld [vmem:[%s219_s23] sm:$0xff]  ;;  %vm833_vm10 = vcmask 261120   ;;  %s224_s11 = scalar_lea.vmem %s1203_s5, %s990_s8 }
  0x10   : > { %232 = vst [vmem:[#allocation1 + $0x10] ss:$2 sm:$0xff] %v227_v0 }
  0x11   : > { %230 = vst [vmem:[#allocation1] ss:$2 sm:$0xff] %v226_v1 }
  0x17   : > { %v235_v2 = vld.sshfl [vmem:[#allocation1 + $0x10] sm:$0xff pattern:$0x75316420] }
  0x18   : > { %v240_v3 = vpack.c.bf16 %v235_v2, %v235_v2  ;;  %v233_v4 = vld.sshfl [vmem:[#allocation1] sm:$0xff pattern:$0x75316420]  ;;  %v234_v5 = vld.sshfl [vmem:[#allocation1 + $0x8] sm:$0xff pattern:$0x75316420] }
  0x19   : > { %v239_v6 = vpack.c.bf16 %v234_v5, %v233_v4 }
  0x1a   : > { %v263_v7 = vunpack.c.l.b16 %v240_v3 }
  0x1b   : > { %v262_v8 = vunpack.c.h.b16 %v239_v6  ;;  %v261_v11 = vunpack.c.l.b16 %v239_v6 }
  0x1c   : > { %v266_v9 = vpack.c.b16 %v263_v7, %v263_v7 }
  0x1d   : > { %v1073_v10 = vpack.c.b16 %v262_v8, %v262_v8  ;;  %v264_v12 = vpack.c.b16 %v261_v11, %v261_v11 }
  0x1e   : > { %271 = vrot.lane.b32.xlu0 %v266_v9, %s1020_s24  ;;  %v339_v28 = vsel %vm280_vm0, %v266_v9, 0 }
  0x1f   : > { %269 = vrot.lane.b32.xlu1 %v1073_v10, %s1020_s24  ;;  %382 = vrot.lane.b32.xlu2 %v1073_v10, %s1021_s25  ;;  %v333_v13 = vsel %vm280_vm0, %v264_v12, 0  ;;  %v336_v33 = vsel %vm280_vm0, %v1073_v10, 0 }
  0x20   : > { %348 = vmatpush.bf16.msra.mxu3 %v333_v13 }
  0x23   : > { %963 = vmatmul.msk.bf16.vlgmr.msra.gmra.mxu3 %vm276_vm1, %v1087_v15 }
  0x26   : > { %267 = vrot.lane.b32.xlu0 %v264_v12, %s1020_s24 }
  0x27   : > { %380 = vrot.lane.b32.xlu1 %v264_v12, %s1021_s25  ;;  %384 = vrot.lane.b32.xlu2 %v266_v9, %s1021_s25 }
  0x2e   : > { %445 = vrot.lane.b32.xlu0 %v1073_v10, %s1022_s26 }
  0x2f   : > { %447 = vrot.lane.b32.xlu1 %v266_v9, %s1022_s26  ;;  %443 = vrot.lane.b32.xlu2 %v264_v12, %s1022_s26 }
  0x36   : > { %510 = vrot.lane.b32.xlu0 %v266_v9, %s1023_s27 }
  0x37   : > { %506 = vrot.lane.b32.xlu1 %v264_v12, %s1023_s27  ;;  %508 = vrot.lane.b32.xlu2 %v1073_v10, %s1023_s27 }
  0x3e   : > { %569 = vrot.lane.b32.xlu0 %v264_v12, %s1024_s28 }
  0x3f   : > { %571 = vrot.lane.b32.xlu1 %v1073_v10, %s1024_s28  ;;  %632 = vrot.lane.b32.xlu2 %v264_v12, %s1025_s29 }
  0x46   : > { %634 = vrot.lane.b32.xlu0 %v1073_v10, %s1025_s29 }
  0x47   : > { %573 = vrot.lane.b32.xlu1 %v266_v9, %s1024_s28  ;;  %636 = vrot.lane.b32.xlu2 %v266_v9, %s1025_s29 }
  0x4e   : > { %697 = vrot.lane.b32.xlu0 %v1073_v10, %s1026_s30 }
  0x4f   : > { %699 = vrot.lane.b32.xlu1 %v266_v9, %s1026_s30  ;;  %695 = vrot.lane.b32.xlu2 %v264_v12, %s1026_s30 }
  0x56   : > { %762 = vrot.lane.b32.xlu0 %v266_v9, %s1027_s6  ;;  %v245_v9 = vld [vmem:[%s1199_s1 + $0x20] sm:$0xff] }
  0x57   : > { %758 = vrot.lane.b32.xlu1 %v264_v12, %s1027_s6  ;;  %760 = vrot.lane.b32.xlu2 %v1073_v10, %s1027_s6  ;;  %v254_v12 = vpack.c.bf16 %v245_v9, %v245_v9 }
  0x79   : > { %v383_v16 = vpop.permute.xlu2 %382 }
  0x81   : > { %v385_v17 = vpop.permute.xlu2 %384 }
  0x82   : > { %v388_v18 = vsel %vm386_vm2, %v383_v16, %v385_v17  ;;  %v399_v37 = vsel %vm280_vm0, %v385_v17, 0 }
  0x83   : > { %v396_v19 = vsel %vm280_vm0, %v388_v18, 0 }
  0x84   : > { %421 = vmatpush.bf16.msrb.mxu3 %v396_v19  ;;  %v256_v19 = vpack.c.bf16 %v247_v14, %v247_v14 }
  0x87   : > { %967 = vmatmul.msk.bf16.vlgmr.msrb.gmra.mxu3 %vm276_vm1, %v1096_v21 }
  0x89   : > { %v444_v38 = vpop.permute.xlu2 %443 }
  0x90   : > { %v272_v23 = vpop.permute.xlu0 %271 }
  0x91   : > { %v270_v24 = vpop.permute.xlu1 %269  ;;  %v288_v25 = vsel %vm280_vm0, %v272_v23, 0  ;;  %v509_v48 = vpop.permute.xlu2 %508 }
  0x92   : > { %323 = vmatpush.bf16.msra.mxu2 %v288_v25  ;;  %v275_v27 = vsel %vm273_vm3, %v270_v24, %v272_v23 }
  0x93   : > { %v285_v29 = vsel %vm280_vm0, %v275_v27, 0 }
  0x94   : > { %310 = vmatpush.bf16.msra.mxu1 %v285_v29 }
  0x95   : > { %962 = vmatmul.msk.bf16.vlgmr.msra.gmra.mxu2 %vm276_vm1, %v251_v26 }
  0x97   : > { %961 = vmatmul.msk.bf16.vlgmr.msra.gmra.mxu1 %vm276_vm1, %v251_v26 }
  0x98   : > { %374 = vmatpush.bf16.msrb.mxu1 %v339_v28  ;;  %v268_v30 = vpop.permute.xlu0 %267 }
  0x99   : > { %v381_v31 = vpop.permute.xlu1 %380  ;;  %v274_v32 = vsel %vm273_vm3, %v268_v30, %v270_v24  ;;  %v633_v56 = vpop.permute.xlu2 %632  ;;  %v248_v24 = vld [vmem:[%s1199_s1 + $0x38] sm:$0xff] }
  0x9a   : > { %v282_v34 = vsel %vm280_vm0, %v274_v32, 0  ;;  %v387_v35 = vsel %vm386_vm2, %v381_v31, %v383_v16  ;;  %v257_v27 = vpack.c.bf16 %v248_v24, %v248_v24  ;;  %v249_v32 = vld [vmem:[%s1199_s1 + $0x40] sm:$0xff] }
  0x9b   : > { %297 = vmatpush.bf16.msra.mxu0 %v282_v34  ;;  %v393_v36 = vsel %vm280_vm0, %v387_v35, 0 }
  0x9c   : > { %408 = vmatpush.bf16.msrb.mxu2 %v393_v36 }
  0x9e   : > { %960 = vmatmul.msk.bf16.vlgmr.msra.gmra.mxu0 %vm276_vm1, %v251_v26 }
  0x9f   : > { %361 = vmatpush.bf16.msrb.mxu0 %v336_v33  ;;  %v258_v33 = vpack.c.bf16 %v249_v32, %v249_v32 }
  0xa0   : > { %v446_v39 = vpop.permute.xlu0 %445 }
  0xa1   : > { %v448_v40 = vpop.permute.xlu1 %447  ;;  %v450_v41 = vsel %vm449_vm4, %v444_v38, %v446_v39  ;;  %v637_v63 = vpop.permute.xlu2 %636 }
  0xa2   : > { %v462_v43 = vsel %vm280_vm0, %v448_v40, 0  ;;  %v451_v44 = vsel %vm449_vm4, %v446_v39, %v448_v40  ;;  %v456_v45 = vsel %vm280_vm0, %v450_v41, 0 }
  0xa3   : > { %434 = vmatpush.bf16.msra.mxu0 %v399_v37  ;;  %v459_v46 = vsel %vm280_vm0, %v451_v44, 0  ;;  %497 = vmatpush.bf16.msra.mxu3 %v462_v43 }
  0xa4   : > { %471 = vmatpush.bf16.msra.mxu1 %v456_v45  ;;  %484 = vmatpush.bf16.msra.mxu2 %v459_v46 }
  0xa5   : > { %966 = vmatmul.msk.bf16.vlgmr.msrb.gmra.mxu2 %vm276_vm1, %v1096_v21 }
  0xa6   : > { %971 = vmatmul.msk.bf16.vlgmr.msra.gmra.mxu3 %vm276_vm1, %v253_v47  ;;  %v350_v34 = vpop.f32.mrf.mxu3 }
  0xa7   : > { %965 = vmatmul.msk.bf16.vlgmr.msrb.gmra.mxu1 %vm276_vm1, %v1087_v15 }
  0xa8   : > { %v511_v49 = vpop.permute.xlu0 %510 }
  0xa9   : > { %v507_v50 = vpop.permute.xlu1 %506  ;;  %v514_v51 = vsel %vm512_vm5, %v509_v48, %v511_v49  ;;  %v525_v52 = vsel %vm280_vm0, %v511_v49, 0  ;;  %v696_v10 = vpop.permute.xlu2 %695 }
  0xaa   : > { %v513_v53 = vsel %vm512_vm5, %v507_v50, %v509_v48  ;;  %v522_v54 = vsel %vm280_vm0, %v514_v51, 0  ;;  %560 = vmatpush.bf16.msrb.mxu2 %v525_v52 }
  0xab   : > { %547 = vmatpush.bf16.msrb.mxu1 %v522_v54  ;;  %v519_v55 = vsel %vm280_vm0, %v513_v53, 0 }
  0xae   : > { %964 = vmatmul.msk.bf16.vlgmr.msrb.gmra.mxu0 %vm276_vm1, %v1087_v15  ;;  %v352_v35 = vpop.f32.mrf.mxu3 }
  0xaf   : > { %534 = vmatpush.bf16.msrb.mxu0 %v519_v55 }
  0xb0   : > { %v570_v57 = vpop.permute.xlu0 %569 }
  0xb1   : > { %v572_v59 = vpop.permute.xlu1 %571  ;;  %v761_v22 = vpop.permute.xlu2 %760 }
  0xb2   : > { %v576_v60 = vsel %vm575_vm6, %v570_v57, %v572_v59 }
  0xb3   : > { %v582_v61 = vsel %vm280_vm0, %v576_v60, 0 }
  0xb4   : > { %597 = vmatpush.bf16.msrb.mxu3 %v582_v61 }
  0xb5   : > { %970 = vmatmul.msk.bf16.vlgmr.msra.gmra.mxu2 %vm276_vm1, %v253_v47 }
  0xb7   : > { %969 = vmatmul.msk.bf16.vlgmr.msra.gmra.mxu1 %vm276_vm1, %v253_v47  ;;  %975 = vmatmul.msk.bf16.vlgmr.msrb.gmra.mxu3 %vm276_vm1, %v255_v62 }
  0xb8   : > { %v635_v0 = vpop.permute.xlu0 %634 }
  0xb9   : > { %v574_v1 = vpop.permute.xlu1 %573  ;;  %v639_v2 = vsel %vm638_vm7, %v633_v56, %v635_v0  ;;  %v640_v3 = vsel %vm638_vm7, %v635_v0, %v637_v63 }
  0xba   : > { %v577_v4 = vsel %vm575_vm6, %v572_v59, %v574_v1  ;;  %v588_v5 = vsel %vm280_vm0, %v574_v1, 0  ;;  %v645_v6 = vsel %vm280_vm0, %v639_v2, 0  ;;  %v648_v7 = vsel %vm280_vm0, %v640_v3, 0 }
  0xbb   : > { %660 = vmatpush.bf16.msra.mxu2 %v645_v6  ;;  %673 = vmatpush.bf16.msra.mxu3 %v648_v7  ;;  %v585_v8 = vsel %vm280_vm0, %v577_v4, 0 }
  0xbc   : > { %623 = vmatpush.bf16.msra.mxu1 %v588_v5 }
  0xbe   : > { %968 = vmatmul.msk.bf16.vlgmr.msra.gmra.mxu0 %vm276_vm1, %v1096_v21  ;;  %v651_v21 = vsel %vm280_vm0, %v637_v63, 0 }
  0xbf   : > { %610 = vmatpush.bf16.msra.mxu0 %v585_v8 }
  0xc0   : > { %v698_v11 = vpop.permute.xlu0 %697 }
  0xc1   : > { %v700_v13 = vpop.permute.xlu1 %699  ;;  %v702_v16 = vsel %vm701_vm8, %v696_v10, %v698_v11 }
  0xc2   : > { %v714_v15 = vsel %vm280_vm0, %v700_v13, 0  ;;  %v703_v17 = vsel %vm701_vm8, %v698_v11, %v700_v13  ;;  %v708_v20 = vsel %vm280_vm0, %v702_v16, 0 }
  0xc3   : > { %v711_v18 = vsel %vm280_vm0, %v703_v17, 0  ;;  %749 = vmatpush.bf16.msrb.mxu3 %v714_v15 }
  0xc5   : > { %974 = vmatmul.msk.bf16.vlgmr.msrb.gmra.mxu2 %vm276_vm1, %v254_v12 }
  0xc6   : > { %736 = vmatpush.bf16.msrb.mxu2 %v711_v18 }
  0xc7   : > { %973 = vmatmul.msk.bf16.vlgmr.msrb.gmra.mxu1 %vm276_vm1, %v254_v12  ;;  %979 = vmatmul.msk.bf16.vlgmr.msra.gmra.mxu3 %vm276_vm1, %v256_v19 }
  0xc8   : > { %723 = vmatpush.bf16.msrb.mxu1 %v708_v20  ;;  %v763_v23 = vpop.permute.xlu0 %762 }
  0xc9   : > { %v766_v25 = vsel %vm764_vm9, %v761_v22, %v763_v23  ;;  %v777_v26 = vsel %vm280_vm0, %v763_v23, 0  ;;  %v759_v29 = vpop.permute.xlu1 %758 }
  0xca   : > { %v774_v28 = vsel %vm280_vm0, %v766_v25, 0  ;;  %v765_v30 = vsel %vm764_vm9, %v759_v29, %v761_v22 }
  0xcb   : > { %v771_v31 = vsel %vm280_vm0, %v765_v30, 0 }
  0xce   : > { %972 = vmatmul.msk.bf16.vlgmr.msrb.gmra.mxu0 %vm276_vm1, %v254_v12 }
  0xcf   : > { %686 = vmatpush.bf16.msrb.mxu0 %v651_v21 }
  0xd5   : > { %978 = vmatmul.msk.bf16.vlgmr.msra.gmra.mxu2 %vm276_vm1, %v256_v19 }
  0xd6   : > { %812 = vmatpush.bf16.msra.mxu2 %v777_v26 }
  0xd7   : > { %977 = vmatmul.msk.bf16.vlgmr.msra.gmra.mxu1 %vm276_vm1, %v255_v62  ;;  %983 = vmatmul.msk.bf16.vlgmr.msrb.gmra.mxu3 %vm276_vm1, %v257_v27 }
  0xd8   : > { %799 = vmatpush.bf16.msra.mxu1 %v774_v28 }
  0xde   : > { %976 = vmatmul.msk.bf16.vlgmr.msra.gmra.mxu0 %vm276_vm1, %v255_v62 }
  0xdf   : > { %786 = vmatpush.bf16.msra.mxu0 %v771_v31 }
  0xe5   : > { %982 = vmatmul.msk.bf16.vlgmr.msrb.gmra.mxu2 %vm276_vm1, %v257_v27 }
  0xe7   : > { %981 = vmatmul.msk.bf16.vlgmr.msrb.gmra.mxu1 %vm276_vm1, %v257_v27 }
  0xee   : > { %980 = vmatmul.msk.bf16.vlgmr.msrb.gmra.mxu0 %vm276_vm1, %v256_v19 }
  0xf5   : > { %986 = vmatmul.msk.bf16.vlgmr.msra.gmra.mxu2 %vm276_vm1, %v258_v33 }
  0xf7   : > { %985 = vmatmul.msk.bf16.vlgmr.msra.gmra.mxu1 %vm276_vm1, %v258_v33 }
  0xfe   : > { %984 = vmatmul.msk.bf16.vlgmr.msra.gmra.mxu0 %vm276_vm1, %v258_v33 }
 0x10a   : > { %v423_v36 = vpop.f32.mrf.mxu3 }
 0x112   : > { %v425_v38 = vpop.f32.mrf.mxu3 }
 0x114   : > { %v312_v37 = vpop.f32.mrf.mxu1 }
 0x118   : > { %v325_v39 = vpop.f32.mrf.mxu2 }
 0x11b   : > { %v299_v40 = vpop.f32.mrf.mxu0 }
 0x11c   : > { %v314_v41 = vpop.f32.mrf.mxu1  ;;  %v351_v42 = vadd.f32 %v350_v34, %v299_v40 }
 0x120   : > { %v327_v43 = vpop.f32.mrf.mxu2 }
 0x123   : > { %v301_v44 = vpop.f32.mrf.mxu0 }
 0x124   : > { %v376_v45 = vpop.f32.mrf.mxu1 }
 0x125   : > { %v377_v46 = vadd.f32 %v376_v45, %v325_v39 }
 0x128   : > { %v410_v47 = vpop.f32.mrf.mxu2 }
 0x129   : > { %v440_v48 = vadd.f32 %v410_v47, %v351_v42  ;;  %v499_v49 = vpop.f32.mrf.mxu3 }
 0x12b   : > { %v363_v50 = vpop.f32.mrf.mxu0 }
 0x12c   : > { %v364_v51 = vadd.f32 %v363_v50, %v312_v37  ;;  %v378_v52 = vpop.f32.mrf.mxu1  ;;  %v821_v37 = vld [vmem:[%s1202_s4] sm:$0x7] }
 0x12d   : > { %v825_v42 = vperm.slane %v821_v37, 2  ;;  %v824_v45 = vperm.slane %v821_v37, 1 }
 0x12e   : > { %v441_v53 = vadd.f32 %v423_v36, %v364_v51 }
 0x130   : > { %v412_v54 = vpop.f32.mrf.mxu2 }
 0x131   : > { %v501_v55 = vpop.f32.mrf.mxu3 }
 0x133   : > { %v365_v56 = vpop.f32.mrf.mxu0 }
 0x134   : > { %v473_v57 = vpop.f32.mrf.mxu1 }
 0x135   : > { %v503_v25 = vadd.f32 %v473_v57, %v440_v48 }
 0x138   : > { %v486_v58 = vpop.f32.mrf.mxu2 }
 0x139   : > { %v504_v23 = vadd.f32 %v486_v58, %v441_v53  ;;  %v868_v58 = vld [vmem:[%s1200_s2] sm:$0xff] }
 0x13a   : > { %v599_v59 = vpop.f32.mrf.mxu3 }
 0x13b   : > { %v436_v60 = vpop.f32.mrf.mxu0 }
 0x13c   : > { %v442_v61 = vadd.f32 %v436_v60, %v377_v46  ;;  %v475_v62 = vpop.f32.mrf.mxu1  ;;  %v823_v46 = vperm.slane %v821_v37, 0  ;;  %v877_v60 = vld [vmem:[%s1201_s3] sm:$0xff] }
 0x13e   : > { %v505_v63 = vadd.f32 %v499_v49, %v442_v61 }
 0x140   : > { %v488_v0 = vpop.f32.mrf.mxu2 }
 0x142   : > { %v601_v1 = vpop.f32.mrf.mxu3 }
 0x143   : > { %v438_v2 = vpop.f32.mrf.mxu0 }
 0x144   : > { %v549_v3 = vpop.f32.mrf.mxu1 }
 0x145   : > { %v567_v26 = vadd.f32 %v549_v3, %v504_v23 }
 0x148   : > { %v562_v4 = vpop.f32.mrf.mxu2 }
 0x149   : > { %v568_v24 = vadd.f32 %v562_v4, %v505_v63 }
 0x14a   : > { %v675_v5 = vpop.f32.mrf.mxu3 }
 0x14b   : > { %v536_v6 = vpop.f32.mrf.mxu0 }
 0x14c   : > { %v551_v7 = vpop.f32.mrf.mxu1  ;;  %v566_v29 = vadd.f32 %v536_v6, %v503_v25 }
 0x14e   : > { %v629_v34 = vadd.f32 %v599_v59, %v566_v29  ;;  %v1028_v59 = vmov 0  }
 0x14f   : > { %1008 = vset.pattern.permute.xlu2 %v1028_v59  ;;  %1009 = vset.pattern.permute.xlu0 %v1028_v59 }
 0x150   : > { %v564_v8 = vpop.f32.mrf.mxu2  ;;  %871 = vperm.xlu2 %1008, %v868_v58  }
 0x152   : > { %v677_v9 = vpop.f32.mrf.mxu3 }
 0x153   : > { %v538_v10 = vpop.f32.mrf.mxu0 }
 0x154   : > { %v625_v11 = vpop.f32.mrf.mxu1 }
 0x155   : > { %v631_v28 = vadd.f32 %v625_v11, %v568_v24 }
 0x158   : > { %v662_v12 = vpop.f32.mrf.mxu2  ;;  %880 = vperm.xlu2 %1008, %v877_v60  }
 0x159   : > { %v692_v38 = vadd.f32 %v662_v12, %v629_v34 }
 0x15a   : > { %v751_v13 = vpop.f32.mrf.mxu3 }
 0x15b   : > { %v612_v14 = vpop.f32.mrf.mxu0 }
 0x15c   : > { %v627_v15 = vpop.f32.mrf.mxu1  ;;  %v630_v30 = vadd.f32 %v612_v14, %v567_v26 }
 0x15e   : > { %v693_v35 = vadd.f32 %v675_v5, %v630_v30 }
 0x160   : > { %v664_v16 = vpop.f32.mrf.mxu2 }
 0x162   : > { %v753_v17 = vpop.f32.mrf.mxu3 }
 0x163   : > { %v614_v18 = vpop.f32.mrf.mxu0 }
 0x164   : > { %v725_v19 = vpop.f32.mrf.mxu1 }
 0x165   : > { %v755_v43 = vadd.f32 %v725_v19, %v692_v38 }
 0x168   : > { %v738_v20 = vpop.f32.mrf.mxu2 }
 0x169   : > { %v756_v39 = vadd.f32 %v738_v20, %v693_v35 }
 0x16b   : > { %v688_v21 = vpop.f32.mrf.mxu0 }
 0x16c   : > { %v727_v22 = vpop.f32.mrf.mxu1  ;;  %v694_v31 = vadd.f32 %v688_v21, %v631_v28 }
 0x16e   : > { %v757_v36 = vadd.f32 %v751_v13, %v694_v31 }
 0x170   : > { %v740_v27 = vpop.f32.mrf.mxu2 }
 0x173   : > { %v690_v32 = vpop.f32.mrf.mxu0 }
 0x174   : > { %v801_v33 = vpop.f32.mrf.mxu1 }
 0x175   : > { %v819_v44 = vadd.f32 %v801_v33, %v756_v39 }
 0x177   : > { %v830_v51 = vmul.f32 %v824_v45, %v819_v44 }
 0x178   : > { %v814_v40 = vpop.f32.mrf.mxu2 }
 0x179   : > { %v820_v41 = vadd.f32 %v814_v40, %v757_v36 }
 0x17b   : > { %v788_v47 = vpop.f32.mrf.mxu0  ;;  %v831_v50 = vmul.f32 %v825_v42, %v820_v41 }
 0x17c   : > { %v818_v48 = vadd.f32 %v788_v47, %v755_v43  ;;  %v803_v49 = vpop.f32.mrf.mxu1 }
 0x17d   : > { %v834_v55 = vsel %vm833_vm10, %v831_v50, 0.0 }
 0x17e   : > { %v829_v52 = vmul.f32 %v823_v46, %v818_v48 }
 0x180   : > { %v816_v53 = vpop.f32.mrf.mxu2  ;;  %v832_v54 = vadd.f32 %v830_v51, %v829_v52 }
 0x182   : > { %v835_v56 = vadd.f32 %v834_v55, %v832_v54 }
 0x183   : > { %v790_v57 = vpop.f32.mrf.mxu0 }
 0x184   : > { %836 = vadd.xlane.f32.xlu0 %v835_v56 }
 0x1aa   : > { %v872_v18 = vpop.permute.xlu2 %871 }
 0x1b2   : > { %v881_v28 = vpop.permute.xlu2 %880 }
 0x1f7   : > { %v837_v61 = vpop.xlane.xlu0 %836 }
 0x1f8   : > { %v838_v62 = vmul.f32 0.00390625, %v837_v61 }
 0x1fa   : > { %v839_v63 = vsub.f32 %v818_v48, %v838_v62  ;;  %v840_v0 = vsub.f32 %v819_v44, %v838_v62  ;;  %v841_v1 = vsub.f32 %v820_v41, %v838_v62 }
 0x1fc   : > { %v842_v2 = vmul.f32 %v839_v63, %v823_v46  ;;  %v843_v3 = vmul.f32 %v840_v0, %v824_v45  ;;  %v844_v4 = vmul.f32 %v841_v1, %v825_v42 }
 0x1fe   : > { %v845_v5 = vmul.f32 %v842_v2, %v842_v2  ;;  %v846_v6 = vmul.f32 %v843_v3, %v843_v3  ;;  %v847_v7 = vmul.f32 %v844_v4, %v844_v4 }
 0x200   : > { %v848_v8 = vadd.f32 %v846_v6, %v845_v5  ;;  %v849_v9 = vsel %vm833_vm10, %v847_v7, 0.0 }
 0x202   : > { %v850_v10 = vadd.f32 %v849_v9, %v848_v8 }
 0x204   : > { %851 = vadd.xlane.f32.xlu1 %v850_v10 }
 0x277   : > { %v852_v11 = vpop.xlane.xlu1 %851 }
 0x278   : > { %v853_v12 = vmul.f32 0.00390625, %v852_v11 }
 0x27a   : > { %v854_v13 = vadd.f32 1e-05, %v853_v12 }
 0x27c   : > { %1010 = vrsqrt.f32 %v854_v13  ;;  %vm861_vm12 = vweird.f32 %v854_v13 }
 0x282   : > { %v1011_v14 = vpop.eup %1010 }
 0x283   : > { %v856_v15 = vmul.f32 %v1011_v14, %v854_v13  ;;  %vm862_vm11 = vweird.f32 %v1011_v14 }
 0x284   : > { %vm863_vm13 = vmor %vm861_vm12, %vm862_vm11 }
 0x285   : > { %v857_v16 = vmul.f32 %v1011_v14, %v856_v15 }
 0x287   : > { %v858_v17 = vmul.f32 0.5, %v857_v16 }
 0x289   : > { %v859_v19 = vsub.f32 1.5, %v858_v17 }
 0x28b   : > { %v860_v20 = vmul.f32 %v1011_v14, %v859_v19 }
 0x28d   : > { %v864_v21 = vsel %vm863_vm13, %v1011_v14, %v860_v20 }
 0x28e   : > { %v865_v22 = vmul.f32 %v864_v21, %v839_v63  ;;  %v866_v23 = vmul.f32 %v864_v21, %v840_v0  ;;  %v867_v24 = vmul.f32 %v864_v21, %v841_v1 }
 0x290   : > { %v874_v25 = vmul.f32 %v872_v18, %v865_v22  ;;  %v875_v26 = vmul.f32 %v872_v18, %v866_v23  ;;  %v876_v27 = vmul.f32 %v872_v18, %v867_v24 }
 0x292   : > { %v883_v29 = vadd.f32 %v881_v28, %v874_v25  ;;  %v884_v30 = vadd.f32 %v881_v28, %v875_v26  ;;  %v885_v31 = vadd.f32 %v881_v28, %v876_v27 }
 0x294   : > { %vm886_vm14 = vcmp.ge.f32.partialorder %v883_v29, 0.0  ;;  %vm887_vm15 = vcmp.ge.f32.partialorder %v884_v30, 0.0  ;;  %vm888_vm0 = vcmp.ge.f32.partialorder %v885_v31, 0.0  ;;  %v889_v32 = vmul.f32 0.01, %v883_v29 }
 0x295   : > { %v890_v33 = vmul.f32 0.01, %v884_v30  ;;  %v891_v34 = vmul.f32 0.01, %v885_v31 }
 0x296   : > { %v892_v35 = vsel %vm886_vm14, %v883_v29, %v889_v32 }
 0x297   : > { %v893_v36 = vsel %vm887_vm15, %v884_v30, %v890_v33  ;;  %v894_v37 = vsel %vm888_vm0, %v885_v31, %v891_v34  ;;  %895 = vst [vmem:[%s224_s11] sm:$0xff] %v892_v35 }
 0x298   : > { %896 = vst [vmem:[%s224_s11 + $0x8] sm:$0xff] %v893_v36 }
 0x299   : > { %897 = vst.msk [vmem:[%s224_s11 + $0x10] sm:$0xff] %vm833_vm10, %v894_v37 }
 0x29a PF: > { %s15_s18 = sadd.s32 1, %s1018_s18  }
 0x29b   : > { %p12_p4 = scmp.ge.s32.totalorder %s15_s18, 4  }
 0x29d   :  { %14 = sbr.rel (!%p12_p4) target bundleno = 1 (0x1), region = 71 }

// kernel: residual_unet_forward.19
= control target key start
LH: loop header
LB: loop body
LE: loop exit
PB: predicated region body
PF: predicated region fallthrough
CT: control target
= control target key end

     0   :  { %s1048_s18 = smov 0   ;;  %s1192_s0 = inlined_call_operand.vmem [shape: f32[2,8,342], index: 0, kind: input, shape index: {}]   ;;  %s1193_s1 = inlined_call_operand.vmem [shape: f32[72,8], index: 1, kind: input, shape index: {}]   ;;  %s1194_s2 = inlined_call_operand.vmem [shape: f32[8,1], index: 2, kind: input, shape index: {}]   ;;  %s1195_s3 = inlined_call_operand.vmem [shape: f32[8,1], index: 3, kind: input, shape index: {}]   ;;  %s1196_s4 = inlined_call_operand.vmem [shape: f32[1,288], index: 4, kind: input, shape index: {}]   ;;  %s1197_s5 = inlined_call_operand.vmem [shape: f32[2,8,288], index: 5, kind: output, shape index: {}]  }
   0x1 LB: > { %s943_s19 = sadd.s32 4294967295, %s1007_s18   ;;  %p947_p0 = scmp.ge.s32.totalorder %s1007_s18, 1  ;;  %s1007_s18 = sphi %s1048_s18, %s15_s18  }
   0x2   : > { %p187_p1 = scmp.lt.s32.totalorder %s1007_s18, 3 }
   0x4   : > { %p188_p2 = pnand %p947_p0, %p187_p1 }
   0x5   : > { %p215_p3 = scmp.lt.s32.totalorder (!%p188_p2), %s943_s19, 1  ;;  %s1009_s24 = smov (!%p188_p2), 127  }
   0x6   : > { %191 = sbr.rel (%p188_p2) target bundleno = 658 (0x292), region = 40  ;;  %s1010_s25 = smov (!%p188_p2), 126  }
   0x7   : > { %s1011_s26 = smov (!%p188_p2), 110   ;;  %s1012_s27 = smov (!%p188_p2), 109  }
   0x8   : > { %s1013_s28 = smov (!%p188_p2), 108   ;;  %s1014_s29 = smov (!%p188_p2), 92  }
   0x9   : > { %s1015_s30 = smov (!%p188_p2), 91   ;;  %s1016_s6 = smov (!%p188_p2), 90  }
   0xb   : > { %s1199_s19 = smov (!%p215_p3, %s943_s19), 1  ;;  %vm270_vm0 = vcmask 1043456   ;;  %v231_v12 = vld [vmem:[%s1193_s1] sm:$0xff]  ;;  %vm266_vm1 = vcmask 64512   ;;  %vm376_vm2 = vcmask 1031168   ;;  %v233_v18 = vld [vmem:[%s1193_s1 + $0x10] sm:$0xff] }
   0xc   : > { %s979_s20 = smul.u32 24, %s1199_s19  ;;  %v1078_v13 = vpack.c.bf16 %v231_v12, %v231_v12  ;;  %v1087_v19 = vpack.c.bf16 %v233_v18, %v233_v18  ;;  %vm263_vm3 = vcmask 1039360   ;;  %v232_v20 = vld [vmem:[%s1193_s1 + $0x8] sm:$0xff]  ;;  %vm439_vm4 = vcmask 900096   ;;  %v234_v39 = vld [vmem:[%s1193_s1 + $0x18] sm:$0xff]  ;;  %v237_v12 = vld [vmem:[%s1193_s1 + $0x30] sm:$0xff] }
   0xd   : > { %v241_v25 = vpack.c.bf16 %v232_v20, %v232_v20  ;;  %v243_v45 = vpack.c.bf16 %v234_v39, %v234_v39  ;;  %vm502_vm5 = vcmask 891904   ;;  %vm565_vm6 = vcmask 883712   ;;  %v236_v55 = vld [vmem:[%s1193_s1 + $0x28] sm:$0xff] }
   0xe   : > { %s219_s23 = scalar_lea.vmem %s1192_s0, %s979_s20  ;;  %v245_v60 = vpack.c.bf16 %v236_v55, %v236_v55  ;;  %vm628_vm7 = vcmask 752640   ;;  %vm691_vm8 = vcmask 744448   ;;  %vm754_vm9 = vcmask 736256   ;;  %s224_s11 = scalar_lea.vmem %s1197_s5, %s979_s20 }
   0xf   : > { %v228_v0 = vld [vmem:[%s219_s23 + $0x10] sm:$0xff]  ;;  %v226_v1 = vld [vmem:[%s219_s23] sm:$0xff]  ;;  %v227_v2 = vld [vmem:[%s219_s23 + $0x8] sm:$0xff]  ;;  %vm823_vm10 = vcmask 261120  }
  0x10   : > { %v230_v3 = vpack.c.bf16 %v228_v0, %v228_v0  ;;  %v229_v4 = vpack.c.bf16 %v227_v2, %v226_v1 }
  0x12   : > { %v253_v5 = vunpack.c.l.b16 %v230_v3  ;;  %v252_v6 = vunpack.c.h.b16 %v229_v4  ;;  %v251_v9 = vunpack.c.l.b16 %v229_v4 }
  0x14   : > { %v256_v7 = vpack.c.b16 %v253_v5, %v253_v5  ;;  %v1064_v8 = vpack.c.b16 %v252_v6, %v252_v6  ;;  %v254_v10 = vpack.c.b16 %v251_v9, %v251_v9 }
  0x16   : > { %261 = vrot.lane.b32.xlu0 %v256_v7, %s1009_s24  ;;  %259 = vrot.lane.b32.xlu1 %v1064_v8, %s1009_s24  ;;  %v323_v11 = vsel %vm270_vm0, %v254_v10, 0  ;;  %v329_v26 = vsel %vm270_vm0, %v256_v7, 0  ;;  %v326_v32 = vsel %vm270_vm0, %v1064_v8, 0 }
  0x17   : > { %372 = vrot.lane.b32.xlu2 %v1064_v8, %s1010_s25  ;;  %338 = vmatpush.bf16.msra.mxu3 %v323_v11 }
  0x1a   : > { %953 = vmatmul.msk.bf16.vlgmr.msra.gmra.mxu3 %vm266_vm1, %v1078_v13 }
  0x1e   : > { %370 = vrot.lane.b32.xlu1 %v254_v10, %s1010_s25  ;;  %257 = vrot.lane.b32.xlu0 %v254_v10, %s1009_s24 }
  0x1f   : > { %374 = vrot.lane.b32.xlu2 %v256_v7, %s1010_s25 }
  0x26   : > { %437 = vrot.lane.b32.xlu1 %v256_v7, %s1011_s26  ;;  %435 = vrot.lane.b32.xlu0 %v1064_v8, %s1011_s26 }
  0x27   : > { %433 = vrot.lane.b32.xlu2 %v254_v10, %s1011_s26 }
  0x2e   : > { %496 = vrot.lane.b32.xlu1 %v254_v10, %s1012_s27  ;;  %500 = vrot.lane.b32.xlu0 %v256_v7, %s1012_s27 }
  0x2f   : > { %498 = vrot.lane.b32.xlu2 %v1064_v8, %s1012_s27 }
  0x36   : > { %561 = vrot.lane.b32.xlu1 %v1064_v8, %s1013_s28  ;;  %559 = vrot.lane.b32.xlu0 %v254_v10, %s1013_s28 }
  0x37   : > { %622 = vrot.lane.b32.xlu2 %v254_v10, %s1014_s29 }
  0x3e   : > { %563 = vrot.lane.b32.xlu1 %v256_v7, %s1013_s28  ;;  %624 = vrot.lane.b32.xlu0 %v1064_v8, %s1014_s29 }
  0x3f   : > { %626 = vrot.lane.b32.xlu2 %v256_v7, %s1014_s29 }
  0x46   : > { %689 = vrot.lane.b32.xlu1 %v256_v7, %s1015_s30  ;;  %687 = vrot.lane.b32.xlu0 %v1064_v8, %s1015_s30 }
  0x47   : > { %685 = vrot.lane.b32.xlu2 %v254_v10, %s1015_s30 }
  0x4e   : > { %752 = vrot.lane.b32.xlu0 %v256_v7, %s1016_s6  ;;  %748 = vrot.lane.b32.xlu1 %v254_v10, %s1016_s6  ;;  %v235_v7 = vld [vmem:[%s1193_s1 + $0x20] sm:$0xff] }
  0x4f   : > { %750 = vrot.lane.b32.xlu2 %v1064_v8, %s1016_s6  ;;  %v244_v11 = vpack.c.bf16 %v235_v7, %v235_v7 }
  0x71   : > { %v373_v14 = vpop.permute.xlu2 %372 }
  0x79   : > { %v375_v15 = vpop.permute.xlu2 %374 }
  0x7a   : > { %v378_v16 = vsel %vm376_vm2, %v373_v14, %v375_v15  ;;  %v389_v35 = vsel %vm270_vm0, %v375_v15, 0 }
  0x7b   : > { %v386_v17 = vsel %vm270_vm0, %v378_v16, 0  ;;  %v246_v16 = vpack.c.bf16 %v237_v12, %v237_v12 }
  0x7c   : > { %411 = vmatpush.bf16.msrb.mxu3 %v386_v17 }
  0x7f   : > { %957 = vmatmul.msk.bf16.vlgmr.msrb.gmra.mxu3 %vm266_vm1, %v1087_v19 }
  0x81   : > { %v434_v36 = vpop.permute.xlu2 %433 }
  0x88   : > { %v262_v21 = vpop.permute.xlu0 %261  ;;  %v260_v22 = vpop.permute.xlu1 %259 }
  0x89   : > { %v278_v23 = vsel %vm270_vm0, %v262_v21, 0  ;;  %v265_v24 = vsel %vm263_vm3, %v260_v22, %v262_v21  ;;  %v499_v46 = vpop.permute.xlu2 %498 }
  0x8a   : > { %313 = vmatpush.bf16.msra.mxu2 %v278_v23  ;;  %v275_v27 = vsel %vm270_vm0, %v265_v24, 0 }
  0x8b   : > { %300 = vmatpush.bf16.msra.mxu1 %v275_v27 }
  0x8d   : > { %952 = vmatmul.msk.bf16.vlgmr.msra.gmra.mxu2 %vm266_vm1, %v241_v25 }
  0x8e   : > { %951 = vmatmul.msk.bf16.vlgmr.msra.gmra.mxu1 %vm266_vm1, %v241_v25 }
  0x8f   : > { %364 = vmatpush.bf16.msrb.mxu1 %v329_v26 }
  0x90   : > { %v371_v28 = vpop.permute.xlu1 %370  ;;  %v258_v29 = vpop.permute.xlu0 %257 }
  0x91   : > { %v264_v30 = vsel %vm263_vm3, %v258_v29, %v260_v22  ;;  %v377_v31 = vsel %vm376_vm2, %v371_v28, %v373_v14  ;;  %v623_v54 = vpop.permute.xlu2 %622  ;;  %v238_v22 = vld [vmem:[%s1193_s1 + $0x38] sm:$0xff] }
  0x92   : > { %v272_v33 = vsel %vm270_vm0, %v264_v30, 0  ;;  %v383_v34 = vsel %vm270_vm0, %v377_v31, 0  ;;  %v247_v24 = vpack.c.bf16 %v238_v22, %v238_v22  ;;  %v239_v30 = vld [vmem:[%s1193_s1 + $0x40] sm:$0xff] }
  0x93   : > { %287 = vmatpush.bf16.msra.mxu0 %v272_v33  ;;  %398 = vmatpush.bf16.msrb.mxu2 %v383_v34  ;;  %v248_v31 = vpack.c.bf16 %v239_v30, %v239_v30 }
  0x96   : > { %950 = vmatmul.msk.bf16.vlgmr.msra.gmra.mxu0 %vm266_vm1, %v241_v25 }
  0x97   : > { %351 = vmatpush.bf16.msrb.mxu0 %v326_v32 }
  0x98   : > { %v438_v37 = vpop.permute.xlu1 %437  ;;  %v436_v38 = vpop.permute.xlu0 %435 }
  0x99   : > { %v452_v40 = vsel %vm270_vm0, %v438_v37, 0  ;;  %v440_v41 = vsel %vm439_vm4, %v434_v36, %v436_v38  ;;  %v441_v42 = vsel %vm439_vm4, %v436_v38, %v438_v37  ;;  %v627_v61 = vpop.permute.xlu2 %626 }
  0x9a   : > { %v446_v43 = vsel %vm270_vm0, %v440_v41, 0  ;;  %v449_v44 = vsel %vm270_vm0, %v441_v42, 0  ;;  %487 = vmatpush.bf16.msra.mxu3 %v452_v40 }
  0x9b   : > { %424 = vmatpush.bf16.msra.mxu0 %v389_v35  ;;  %461 = vmatpush.bf16.msra.mxu1 %v446_v43 }
  0x9c   : > { %474 = vmatpush.bf16.msra.mxu2 %v449_v44 }
  0x9d   : > { %956 = vmatmul.msk.bf16.vlgmr.msrb.gmra.mxu2 %vm266_vm1, %v1087_v19  ;;  %961 = vmatmul.msk.bf16.vlgmr.msra.gmra.mxu3 %vm266_vm1, %v243_v45  ;;  %v340_v32 = vpop.f32.mrf.mxu3 }
  0x9e   : > { %955 = vmatmul.msk.bf16.vlgmr.msrb.gmra.mxu1 %vm266_vm1, %v1078_v13 }
  0xa0   : > { %v497_v47 = vpop.permute.xlu1 %496  ;;  %v501_v48 = vpop.permute.xlu0 %500 }
  0xa1   : > { %v503_v49 = vsel %vm502_vm5, %v497_v47, %v499_v46  ;;  %v504_v50 = vsel %vm502_vm5, %v499_v46, %v501_v48  ;;  %v515_v51 = vsel %vm270_vm0, %v501_v48, 0  ;;  %v686_v8 = vpop.permute.xlu2 %685 }
  0xa2   : > { %v512_v52 = vsel %vm270_vm0, %v504_v50, 0  ;;  %550 = vmatpush.bf16.msrb.mxu2 %v515_v51  ;;  %v509_v53 = vsel %vm270_vm0, %v503_v49, 0 }
  0xa3   : > { %537 = vmatpush.bf16.msrb.mxu1 %v512_v52 }
  0xa5   : > { %v342_v33 = vpop.f32.mrf.mxu3 }
  0xa6   : > { %954 = vmatmul.msk.bf16.vlgmr.msrb.gmra.mxu0 %vm266_vm1, %v1078_v13 }
  0xa7   : > { %524 = vmatpush.bf16.msrb.mxu0 %v509_v53 }
  0xa8   : > { %v562_v56 = vpop.permute.xlu1 %561  ;;  %v560_v57 = vpop.permute.xlu0 %559 }
  0xa9   : > { %v566_v58 = vsel %vm565_vm6, %v560_v57, %v562_v56  ;;  %v751_v20 = vpop.permute.xlu2 %750 }
  0xaa   : > { %v572_v59 = vsel %vm270_vm0, %v566_v58, 0 }
  0xab   : > { %587 = vmatpush.bf16.msrb.mxu3 %v572_v59 }
  0xad   : > { %960 = vmatmul.msk.bf16.vlgmr.msra.gmra.mxu2 %vm266_vm1, %v243_v45 }
  0xae   : > { %959 = vmatmul.msk.bf16.vlgmr.msra.gmra.mxu1 %vm266_vm1, %v243_v45  ;;  %965 = vmatmul.msk.bf16.vlgmr.msrb.gmra.mxu3 %vm266_vm1, %v245_v60 }
  0xb0   : > { %v564_v62 = vpop.permute.xlu1 %563  ;;  %v625_v63 = vpop.permute.xlu0 %624 }
  0xb1   : > { %v567_v0 = vsel %vm565_vm6, %v562_v56, %v564_v62  ;;  %v578_v1 = vsel %vm270_vm0, %v564_v62, 0  ;;  %v629_v2 = vsel %vm628_vm7, %v623_v54, %v625_v63  ;;  %v630_v3 = vsel %vm628_vm7, %v625_v63, %v627_v61 }
  0xb2   : > { %v635_v4 = vsel %vm270_vm0, %v629_v2, 0  ;;  %v638_v5 = vsel %vm270_vm0, %v630_v3, 0  ;;  %613 = vmatpush.bf16.msra.mxu1 %v578_v1  ;;  %v575_v6 = vsel %vm270_vm0, %v567_v0, 0 }
  0xb3   : > { %650 = vmatpush.bf16.msra.mxu2 %v635_v4  ;;  %663 = vmatpush.bf16.msra.mxu3 %v638_v5 }
  0xb6   : > { %958 = vmatmul.msk.bf16.vlgmr.msra.gmra.mxu0 %vm266_vm1, %v1087_v19  ;;  %v641_v19 = vsel %vm270_vm0, %v627_v61, 0 }
  0xb7   : > { %600 = vmatpush.bf16.msra.mxu0 %v575_v6 }
  0xb8   : > { %v690_v9 = vpop.permute.xlu1 %689  ;;  %v688_v10 = vpop.permute.xlu0 %687 }
  0xb9   : > { %v704_v13 = vsel %vm270_vm0, %v690_v9, 0  ;;  %v692_v14 = vsel %vm691_vm8, %v686_v8, %v688_v10  ;;  %v693_v15 = vsel %vm691_vm8, %v688_v10, %v690_v9 }
  0xba   : > { %739 = vmatpush.bf16.msrb.mxu3 %v704_v13  ;;  %v698_v17 = vsel %vm270_vm0, %v692_v14, 0  ;;  %v701_v18 = vsel %vm270_vm0, %v693_v15, 0 }
  0xbd   : > { %964 = vmatmul.msk.bf16.vlgmr.msrb.gmra.mxu2 %vm266_vm1, %v244_v11 }
  0xbe   : > { %963 = vmatmul.msk.bf16.vlgmr.msrb.gmra.mxu1 %vm266_vm1, %v244_v11  ;;  %969 = vmatmul.msk.bf16.vlgmr.msra.gmra.mxu3 %vm266_vm1, %v246_v16 }
  0xbf   : > { %713 = vmatpush.bf16.msrb.mxu1 %v698_v17  ;;  %726 = vmatpush.bf16.msrb.mxu2 %v701_v18 }
  0xc0   : > { %v753_v21 = vpop.permute.xlu0 %752  ;;  %v749_v27 = vpop.permute.xlu1 %748 }
  0xc1   : > { %v756_v23 = vsel %vm754_vm9, %v751_v20, %v753_v21  ;;  %v767_v26 = vsel %vm270_vm0, %v753_v21, 0  ;;  %v755_v28 = vsel %vm754_vm9, %v749_v27, %v751_v20 }
  0xc2   : > { %v764_v25 = vsel %vm270_vm0, %v756_v23, 0  ;;  %v761_v29 = vsel %vm270_vm0, %v755_v28, 0 }
  0xc6   : > { %962 = vmatmul.msk.bf16.vlgmr.msrb.gmra.mxu0 %vm266_vm1, %v244_v11 }
  0xc7   : > { %676 = vmatpush.bf16.msrb.mxu0 %v641_v19 }
  0xcd   : > { %968 = vmatmul.msk.bf16.vlgmr.msra.gmra.mxu2 %vm266_vm1, %v246_v16 }
  0xce   : > { %967 = vmatmul.msk.bf16.vlgmr.msra.gmra.mxu1 %vm266_vm1, %v245_v60  ;;  %973 = vmatmul.msk.bf16.vlgmr.msrb.gmra.mxu3 %vm266_vm1, %v247_v24 }
  0xcf   : > { %802 = vmatpush.bf16.msra.mxu2 %v767_v26  ;;  %789 = vmatpush.bf16.msra.mxu1 %v764_v25 }
  0xd6   : > { %966 = vmatmul.msk.bf16.vlgmr.msra.gmra.mxu0 %vm266_vm1, %v245_v60 }
  0xd7   : > { %776 = vmatpush.bf16.msra.mxu0 %v761_v29 }
  0xdd   : > { %972 = vmatmul.msk.bf16.vlgmr.msrb.gmra.mxu2 %vm266_vm1, %v247_v24 }
  0xde   : > { %971 = vmatmul.msk.bf16.vlgmr.msrb.gmra.mxu1 %vm266_vm1, %v247_v24 }
  0xe6   : > { %970 = vmatmul.msk.bf16.vlgmr.msrb.gmra.mxu0 %vm266_vm1, %v246_v16 }
  0xed   : > { %976 = vmatmul.msk.bf16.vlgmr.msra.gmra.mxu2 %vm266_vm1, %v248_v31 }
  0xee   : > { %975 = vmatmul.msk.bf16.vlgmr.msra.gmra.mxu1 %vm266_vm1, %v248_v31 }
  0xf6   : > { %974 = vmatmul.msk.bf16.vlgmr.msra.gmra.mxu0 %vm266_vm1, %v248_v31 }
 0x102   : > { %v413_v34 = vpop.f32.mrf.mxu3 }
 0x10a   : > { %v415_v36 = vpop.f32.mrf.mxu3 }
 0x10b   : > { %v302_v35 = vpop.f32.mrf.mxu1 }
 0x110   : > { %v315_v37 = vpop.f32.mrf.mxu2 }
 0x113   : > { %v289_v38 = vpop.f32.mrf.mxu0  ;;  %v304_v39 = vpop.f32.mrf.mxu1 }
 0x114   : > { %v341_v40 = vadd.f32 %v340_v32, %v289_v38 }
 0x118   : > { %v317_v41 = vpop.f32.mrf.mxu2 }
 0x11b   : > { %v291_v42 = vpop.f32.mrf.mxu0  ;;  %v366_v43 = vpop.f32.mrf.mxu1 }
 0x11c   : > { %v367_v44 = vadd.f32 %v366_v43, %v315_v37 }
 0x120   : > { %v400_v45 = vpop.f32.mrf.mxu2  ;;  %v489_v46 = vpop.f32.mrf.mxu3 }
 0x121   : > { %v430_v47 = vadd.f32 %v400_v45, %v341_v40 }
 0x123   : > { %v353_v48 = vpop.f32.mrf.mxu0  ;;  %v368_v49 = vpop.f32.mrf.mxu1 }
 0x124   : > { %v354_v50 = vadd.f32 %v353_v48, %v302_v35  ;;  %v811_v35 = vld [vmem:[%s1196_s4] sm:$0x7] }
 0x125   : > { %v815_v40 = vperm.slane %v811_v35, 2  ;;  %v814_v43 = vperm.slane %v811_v35, 1 }
 0x126   : > { %v431_v51 = vadd.f32 %v413_v34, %v354_v50 }
 0x128   : > { %v402_v52 = vpop.f32.mrf.mxu2  ;;  %v491_v53 = vpop.f32.mrf.mxu3 }
 0x12b   : > { %v355_v54 = vpop.f32.mrf.mxu0  ;;  %v463_v55 = vpop.f32.mrf.mxu1 }
 0x12c   : > { %v493_v23 = vadd.f32 %v463_v55, %v430_v47 }
 0x130   : > { %v476_v56 = vpop.f32.mrf.mxu2 }
 0x131   : > { %v589_v57 = vpop.f32.mrf.mxu3  ;;  %v494_v21 = vadd.f32 %v476_v56, %v431_v51  ;;  %v858_v56 = vld [vmem:[%s1194_s2] sm:$0xff] }
 0x133   : > { %v426_v58 = vpop.f32.mrf.mxu0  ;;  %v465_v59 = vpop.f32.mrf.mxu1 }
 0x134   : > { %v432_v60 = vadd.f32 %v426_v58, %v367_v44  ;;  %v813_v44 = vperm.slane %v811_v35, 0  ;;  %v867_v58 = vld [vmem:[%s1195_s3] sm:$0xff] }
 0x136   : > { %v495_v61 = vadd.f32 %v489_v46, %v432_v60 }
 0x138   : > { %v478_v62 = vpop.f32.mrf.mxu2 }
 0x139   : > { %v591_v63 = vpop.f32.mrf.mxu3 }
 0x13b   : > { %v428_v0 = vpop.f32.mrf.mxu0  ;;  %v539_v1 = vpop.f32.mrf.mxu1 }
 0x13c   : > { %v557_v24 = vadd.f32 %v539_v1, %v494_v21 }
 0x140   : > { %v552_v2 = vpop.f32.mrf.mxu2 }
 0x141   : > { %v665_v3 = vpop.f32.mrf.mxu3  ;;  %v558_v22 = vadd.f32 %v552_v2, %v495_v61 }
 0x143   : > { %v526_v4 = vpop.f32.mrf.mxu0  ;;  %v541_v5 = vpop.f32.mrf.mxu1 }
 0x144   : > { %v556_v27 = vadd.f32 %v526_v4, %v493_v23 }
 0x146   : > { %v619_v32 = vadd.f32 %v589_v57, %v556_v27  ;;  %v1017_v57 = vmov 0  }
 0x147   : > { %997 = vset.pattern.permute.xlu2 %v1017_v57  ;;  %998 = vset.pattern.permute.xlu0 %v1017_v57 }
 0x148   : > { %v554_v6 = vpop.f32.mrf.mxu2  ;;  %861 = vperm.xlu2 %997, %v858_v56  }
 0x149   : > { %v667_v7 = vpop.f32.mrf.mxu3 }
 0x14b   : > { %v528_v8 = vpop.f32.mrf.mxu0  ;;  %v615_v9 = vpop.f32.mrf.mxu1 }
 0x14c   : > { %v621_v26 = vadd.f32 %v615_v9, %v558_v22 }
 0x150   : > { %v652_v10 = vpop.f32.mrf.mxu2  ;;  %870 = vperm.xlu2 %997, %v867_v58  }
 0x151   : > { %v741_v11 = vpop.f32.mrf.mxu3  ;;  %v682_v36 = vadd.f32 %v652_v10, %v619_v32 }
 0x153   : > { %v602_v12 = vpop.f32.mrf.mxu0  ;;  %v617_v13 = vpop.f32.mrf.mxu1 }
 0x154   : > { %v620_v28 = vadd.f32 %v602_v12, %v557_v24 }
 0x156   : > { %v683_v33 = vadd.f32 %v665_v3, %v620_v28 }
 0x158   : > { %v654_v14 = vpop.f32.mrf.mxu2 }
 0x159   : > { %v743_v15 = vpop.f32.mrf.mxu3 }
 0x15b   : > { %v604_v16 = vpop.f32.mrf.mxu0  ;;  %v715_v17 = vpop.f32.mrf.mxu1 }
 0x15c   : > { %v745_v41 = vadd.f32 %v715_v17, %v682_v36 }
 0x160   : > { %v728_v18 = vpop.f32.mrf.mxu2 }
 0x161   : > { %v746_v37 = vadd.f32 %v728_v18, %v683_v33 }
 0x163   : > { %v678_v19 = vpop.f32.mrf.mxu0  ;;  %v717_v20 = vpop.f32.mrf.mxu1 }
 0x164   : > { %v684_v29 = vadd.f32 %v678_v19, %v621_v26 }
 0x166   : > { %v747_v34 = vadd.f32 %v741_v11, %v684_v29 }
 0x168   : > { %v730_v25 = vpop.f32.mrf.mxu2 }
 0x16b   : > { %v680_v30 = vpop.f32.mrf.mxu0  ;;  %v791_v31 = vpop.f32.mrf.mxu1 }
 0x16c   : > { %v809_v42 = vadd.f32 %v791_v31, %v746_v37 }
 0x16e   : > { %v820_v49 = vmul.f32 %v814_v43, %v809_v42 }
 0x170   : > { %v804_v38 = vpop.f32.mrf.mxu2 }
 0x171   : > { %v810_v39 = vadd.f32 %v804_v38, %v747_v34 }
 0x173   : > { %v778_v45 = vpop.f32.mrf.mxu0  ;;  %v793_v46 = vpop.f32.mrf.mxu1  ;;  %v821_v48 = vmul.f32 %v815_v40, %v810_v39 }
 0x174   : > { %v808_v47 = vadd.f32 %v778_v45, %v745_v41 }
 0x175   : > { %v824_v53 = vsel %vm823_vm10, %v821_v48, 0.0 }
 0x176   : > { %v819_v50 = vmul.f32 %v813_v44, %v808_v47 }
 0x178   : > { %v806_v51 = vpop.f32.mrf.mxu2  ;;  %v822_v52 = vadd.f32 %v820_v49, %v819_v50 }
 0x17a   : > { %v825_v54 = vadd.f32 %v824_v53, %v822_v52 }
 0x17b   : > { %v780_v55 = vpop.f32.mrf.mxu0 }
 0x17c   : > { %826 = vadd.xlane.f32.xlu0 %v825_v54 }
 0x1a2   : > { %v862_v16 = vpop.permute.xlu2 %861 }
 0x1aa   : > { %v871_v26 = vpop.permute.xlu2 %870 }
 0x1ef   : > { %v827_v59 = vpop.xlane.xlu0 %826 }
 0x1f0   : > { %v828_v60 = vmul.f32 0.00390625, %v827_v59 }
 0x1f2   : > { %v829_v61 = vsub.f32 %v808_v47, %v828_v60  ;;  %v830_v62 = vsub.f32 %v809_v42, %v828_v60  ;;  %v831_v63 = vsub.f32 %v810_v39, %v828_v60 }
 0x1f4   : > { %v832_v0 = vmul.f32 %v829_v61, %v813_v44  ;;  %v833_v1 = vmul.f32 %v830_v62, %v814_v43  ;;  %v834_v2 = vmul.f32 %v831_v63, %v815_v40 }
 0x1f6   : > { %v835_v3 = vmul.f32 %v832_v0, %v832_v0  ;;  %v836_v4 = vmul.f32 %v833_v1, %v833_v1  ;;  %v837_v5 = vmul.f32 %v834_v2, %v834_v2 }
 0x1f8   : > { %v838_v6 = vadd.f32 %v836_v4, %v835_v3  ;;  %v839_v7 = vsel %vm823_vm10, %v837_v5, 0.0 }
 0x1fa   : > { %v840_v8 = vadd.f32 %v839_v7, %v838_v6 }
 0x1fc   : > { %841 = vadd.xlane.f32.xlu1 %v840_v8 }
 0x26f   : > { %v842_v9 = vpop.xlane.xlu1 %841 }
 0x270   : > { %v843_v10 = vmul.f32 0.00390625, %v842_v9 }
 0x272   : > { %v844_v11 = vadd.f32 1e-05, %v843_v10 }
 0x274   : > { %999 = vrsqrt.f32 %v844_v11  ;;  %vm851_vm12 = vweird.f32 %v844_v11 }
 0x27a   : > { %v1000_v12 = vpop.eup %999 }
 0x27b   : > { %v846_v13 = vmul.f32 %v1000_v12, %v844_v11  ;;  %vm852_vm11 = vweird.f32 %v1000_v12 }
 0x27c   : > { %vm853_vm13 = vmor %vm851_vm12, %vm852_vm11 }
 0x27d   : > { %v847_v14 = vmul.f32 %v1000_v12, %v846_v13 }
 0x27f   : > { %v848_v15 = vmul.f32 0.5, %v847_v14 }
 0x281   : > { %v849_v17 = vsub.f32 1.5, %v848_v15 }
 0x283   : > { %v850_v18 = vmul.f32 %v1000_v12, %v849_v17 }
 0x285   : > { %v854_v19 = vsel %vm853_vm13, %v1000_v12, %v850_v18 }
 0x286   : > { %v855_v20 = vmul.f32 %v854_v19, %v829_v61  ;;  %v856_v21 = vmul.f32 %v854_v19, %v830_v62  ;;  %v857_v22 = vmul.f32 %v854_v19, %v831_v63 }
 0x288   : > { %v864_v23 = vmul.f32 %v862_v16, %v855_v20  ;;  %v865_v24 = vmul.f32 %v862_v16, %v856_v21  ;;  %v866_v25 = vmul.f32 %v862_v16, %v857_v22 }
 0x28a   : > { %v873_v27 = vadd.f32 %v871_v26, %v864_v23  ;;  %v874_v28 = vadd.f32 %v871_v26, %v865_v24  ;;  %v875_v29 = vadd.f32 %v871_v26, %v866_v25 }
 0x28c   : > { %vm876_vm14 = vcmp.ge.f32.partialorder %v873_v27, 0.0  ;;  %vm877_vm15 = vcmp.ge.f32.partialorder %v874_v28, 0.0  ;;  %vm878_vm0 = vcmp.ge.f32.partialorder %v875_v29, 0.0  ;;  %v879_v30 = vmul.f32 0.01, %v873_v27 }
 0x28d   : > { %v880_v31 = vmul.f32 0.01, %v874_v28  ;;  %v881_v32 = vmul.f32 0.01, %v875_v29 }
 0x28e   : > { %v882_v33 = vsel %vm876_vm14, %v873_v27, %v879_v30 }
 0x28f   : > { %v883_v34 = vsel %vm877_vm15, %v874_v28, %v880_v31  ;;  %v884_v35 = vsel %vm878_vm0, %v875_v29, %v881_v32  ;;  %885 = vst [vmem:[%s224_s11] sm:$0xff] %v882_v33 }
 0x290   : > { %886 = vst [vmem:[%s224_s11 + $0x8] sm:$0xff] %v883_v34 }
 0x291   : > { %887 = vst.msk [vmem:[%s224_s11 + $0x10] sm:$0xff] %vm823_vm10, %v884_v35 }
 0x292 PF: > { %s15_s18 = sadd.s32 1, %s1007_s18  }
 0x293   : > { %p12_p4 = scmp.ge.s32.totalorder %s15_s18, 4  }
 0x295   :  { %14 = sbr.rel (!%p12_p4) target bundleno = 1 (0x1), region = 70 }

// kernel: residual_unet_forward.20
= control target key start
LH: loop header
LB: loop body
LE: loop exit
PB: predicated region body
PF: predicated region fallthrough
CT: control target
= control target key end

     0   :  { %s1119_s21 = smov 0   ;;  %s1264_s0 = inlined_call_operand.vmem [shape: f32[2,8,342], index: 0, kind: input, shape index: {}]   ;;  %s1265_s1 = inlined_call_operand.vmem [shape: f32[72,8], index: 1, kind: input, shape index: {}]   ;;  %s1266_s2 = inlined_call_operand.vmem [shape: f32[8,1], index: 2, kind: input, shape index: {}]   ;;  %s1267_s3 = inlined_call_operand.vmem [shape: f32[8,1], index: 3, kind: input, shape index: {}]   ;;  %s1268_s4 = inlined_call_operand.vmem [shape: f32[1,288], index: 4, kind: input, shape index: {}]   ;;  %s1269_s5 = inlined_call_operand.vmem [shape: f32[2,8,288], index: 5, kind: input, shape index: {}]   ;;  %s1270_s6 = inlined_call_operand.vmem [shape: f32[2,8,288], index: 6, kind: output, shape index: {}]  }
   0x1 LB: > { %s1008_s22 = sadd.s32 4294967295, %s1073_s21   ;;  %p1012_p0 = scmp.ge.s32.totalorder %s1073_s21, 1  ;;  %s1073_s21 = sphi %s1119_s21, %s16_s21  }
   0x2   : > { %p222_p1 = scmp.lt.s32.totalorder %s1073_s21, 3 }
   0x4   : > { %p223_p2 = pnand %p1012_p0, %p222_p1 }
   0x5   : > { %p257_p3 = scmp.lt.s32.totalorder (!%p223_p2), %s1008_s22, 1  ;;  %s1075_s27 = smov (!%p223_p2), 127  }
   0x6   : > { %226 = sbr.rel (%p223_p2) target bundleno = 660 (0x294), region = 44  ;;  %s1076_s28 = smov (!%p223_p2), 126  }
   0x7   : > { %s1077_s29 = smov (!%p223_p2), 110   ;;  %s1078_s30 = smov (!%p223_p2), 109  }
   0x8   : > { %s1079_s7 = smov (!%p223_p2), 108   ;;  %s1080_s8 = smov (!%p223_p2), 92  }
   0x9   : > { %s1081_s9 = smov (!%p223_p2), 91   ;;  %s1082_s10 = smov (!%p223_p2), 90  }
   0xb   : > { %s1272_s22 = smov (!%p257_p3, %s1008_s22), 1  ;;  %vm317_vm0 = vcmask 1043456   ;;  %v278_v12 = vld [vmem:[%s1265_s1] sm:$0xff]  ;;  %vm313_vm1 = vcmask 64512   ;;  %vm423_vm2 = vcmask 1031168   ;;  %v280_v18 = vld [vmem:[%s1265_s1 + $0x10] sm:$0xff] }
   0xc   : > { %s1127_s23 = smul.u32 24, %s1272_s22  ;;  %v1147_v13 = vpack.c.bf16 %v278_v12, %v278_v12  ;;  %v1156_v19 = vpack.c.bf16 %v280_v18, %v280_v18  ;;  %vm310_vm3 = vcmask 1039360   ;;  %v279_v20 = vld [vmem:[%s1265_s1 + $0x8] sm:$0xff]  ;;  %vm486_vm4 = vcmask 900096   ;;  %v281_v39 = vld [vmem:[%s1265_s1 + $0x18] sm:$0xff]  ;;  %v284_v12 = vld [vmem:[%s1265_s1 + $0x30] sm:$0xff] }
   0xd   : > { %v288_v25 = vpack.c.bf16 %v279_v20, %v279_v20  ;;  %v290_v45 = vpack.c.bf16 %v281_v39, %v281_v39  ;;  %vm549_vm5 = vcmask 891904   ;;  %vm612_vm6 = vcmask 883712   ;;  %v283_v55 = vld [vmem:[%s1265_s1 + $0x28] sm:$0xff] }
   0xe   : > { %s261_s26 = scalar_lea.vmem %s1264_s0, %s1127_s23  ;;  %v292_v60 = vpack.c.bf16 %v283_v55, %v283_v55  ;;  %vm675_vm7 = vcmask 752640   ;;  %vm738_vm8 = vcmask 744448   ;;  %vm801_vm9 = vcmask 736256   ;;  %s266_s15 = scalar_lea.vmem %s1269_s5, %s1127_s23 }
   0xf   : > { %v275_v0 = vld [vmem:[%s261_s26 + $0x10] sm:$0xff]  ;;  %v273_v1 = vld [vmem:[%s261_s26] sm:$0xff]  ;;  %v274_v2 = vld [vmem:[%s261_s26 + $0x8] sm:$0xff]  ;;  %vm870_vm10 = vcmask 261120   ;;  %s271_s18 = scalar_lea.vmem %s1270_s6, %s1127_s23 }
  0x10   : > { %v277_v3 = vpack.c.bf16 %v275_v0, %v275_v0  ;;  %v276_v4 = vpack.c.bf16 %v274_v2, %v273_v1 }
  0x12   : > { %v300_v5 = vunpack.c.l.b16 %v277_v3  ;;  %v299_v6 = vunpack.c.h.b16 %v276_v4  ;;  %v298_v9 = vunpack.c.l.b16 %v276_v4 }
  0x14   : > { %v303_v7 = vpack.c.b16 %v300_v5, %v300_v5  ;;  %v1133_v8 = vpack.c.b16 %v299_v6, %v299_v6  ;;  %v301_v10 = vpack.c.b16 %v298_v9, %v298_v9 }
  0x16   : > { %308 = vrot.lane.b32.xlu0 %v303_v7, %s1075_s27  ;;  %306 = vrot.lane.b32.xlu1 %v1133_v8, %s1075_s27  ;;  %v370_v11 = vsel %vm317_vm0, %v301_v10, 0  ;;  %v376_v26 = vsel %vm317_vm0, %v303_v7, 0  ;;  %v373_v32 = vsel %vm317_vm0, %v1133_v8, 0 }
  0x17   : > { %419 = vrot.lane.b32.xlu2 %v1133_v8, %s1076_s28  ;;  %385 = vmatpush.bf16.msra.mxu3 %v370_v11 }
  0x1a   : > { %1019 = vmatmul.msk.bf16.vlgmr.msra.gmra.mxu3 %vm313_vm1, %v1147_v13 }
  0x1e   : > { %417 = vrot.lane.b32.xlu1 %v301_v10, %s1076_s28  ;;  %304 = vrot.lane.b32.xlu0 %v301_v10, %s1075_s27 }
  0x1f   : > { %421 = vrot.lane.b32.xlu2 %v303_v7, %s1076_s28 }
  0x26   : > { %484 = vrot.lane.b32.xlu1 %v303_v7, %s1077_s29  ;;  %482 = vrot.lane.b32.xlu0 %v1133_v8, %s1077_s29 }
  0x27   : > { %480 = vrot.lane.b32.xlu2 %v301_v10, %s1077_s29 }
  0x2e   : > { %543 = vrot.lane.b32.xlu1 %v301_v10, %s1078_s30  ;;  %547 = vrot.lane.b32.xlu0 %v303_v7, %s1078_s30 }
  0x2f   : > { %545 = vrot.lane.b32.xlu2 %v1133_v8, %s1078_s30 }
  0x36   : > { %608 = vrot.lane.b32.xlu1 %v1133_v8, %s1079_s7  ;;  %606 = vrot.lane.b32.xlu0 %v301_v10, %s1079_s7 }
  0x37   : > { %669 = vrot.lane.b32.xlu2 %v301_v10, %s1080_s8 }
  0x3e   : > { %610 = vrot.lane.b32.xlu1 %v303_v7, %s1079_s7  ;;  %671 = vrot.lane.b32.xlu0 %v1133_v8, %s1080_s8 }
  0x3f   : > { %673 = vrot.lane.b32.xlu2 %v303_v7, %s1080_s8 }
  0x46   : > { %736 = vrot.lane.b32.xlu1 %v303_v7, %s1081_s9  ;;  %734 = vrot.lane.b32.xlu0 %v1133_v8, %s1081_s9 }
  0x47   : > { %732 = vrot.lane.b32.xlu2 %v301_v10, %s1081_s9 }
  0x4e   : > { %799 = vrot.lane.b32.xlu0 %v303_v7, %s1082_s10  ;;  %795 = vrot.lane.b32.xlu1 %v301_v10, %s1082_s10  ;;  %v282_v7 = vld [vmem:[%s1265_s1 + $0x20] sm:$0xff] }
  0x4f   : > { %797 = vrot.lane.b32.xlu2 %v1133_v8, %s1082_s10  ;;  %v291_v11 = vpack.c.bf16 %v282_v7, %v282_v7 }
  0x71   : > { %v420_v14 = vpop.permute.xlu2 %419 }
  0x79   : > { %v422_v15 = vpop.permute.xlu2 %421 }
  0x7a   : > { %v425_v16 = vsel %vm423_vm2, %v420_v14, %v422_v15  ;;  %v436_v35 = vsel %vm317_vm0, %v422_v15, 0 }
  0x7b   : > { %v433_v17 = vsel %vm317_vm0, %v425_v16, 0  ;;  %v293_v16 = vpack.c.bf16 %v284_v12, %v284_v12 }
  0x7c   : > { %458 = vmatpush.bf16.msrb.mxu3 %v433_v17 }
  0x7f   : > { %1023 = vmatmul.msk.bf16.vlgmr.msrb.gmra.mxu3 %vm313_vm1, %v1156_v19 }
  0x81   : > { %v481_v36 = vpop.permute.xlu2 %480 }
  0x88   : > { %v309_v21 = vpop.permute.xlu0 %308  ;;  %v307_v22 = vpop.permute.xlu1 %306 }
  0x89   : > { %v325_v23 = vsel %vm317_vm0, %v309_v21, 0  ;;  %v312_v24 = vsel %vm310_vm3, %v307_v22, %v309_v21  ;;  %v546_v46 = vpop.permute.xlu2 %545 }
  0x8a   : > { %360 = vmatpush.bf16.msra.mxu2 %v325_v23  ;;  %v322_v27 = vsel %vm317_vm0, %v312_v24, 0 }
  0x8b   : > { %347 = vmatpush.bf16.msra.mxu1 %v322_v27 }
  0x8d   : > { %1018 = vmatmul.msk.bf16.vlgmr.msra.gmra.mxu2 %vm313_vm1, %v288_v25 }
  0x8e   : > { %1017 = vmatmul.msk.bf16.vlgmr.msra.gmra.mxu1 %vm313_vm1, %v288_v25 }
  0x8f   : > { %411 = vmatpush.bf16.msrb.mxu1 %v376_v26 }
  0x90   : > { %v418_v28 = vpop.permute.xlu1 %417  ;;  %v305_v29 = vpop.permute.xlu0 %304 }
  0x91   : > { %v311_v30 = vsel %vm310_vm3, %v305_v29, %v307_v22  ;;  %v424_v31 = vsel %vm423_vm2, %v418_v28, %v420_v14  ;;  %v670_v54 = vpop.permute.xlu2 %669  ;;  %v285_v22 = vld [vmem:[%s1265_s1 + $0x38] sm:$0xff] }
  0x92   : > { %v319_v33 = vsel %vm317_vm0, %v311_v30, 0  ;;  %v430_v34 = vsel %vm317_vm0, %v424_v31, 0  ;;  %v294_v24 = vpack.c.bf16 %v285_v22, %v285_v22  ;;  %v286_v30 = vld [vmem:[%s1265_s1 + $0x40] sm:$0xff] }
  0x93   : > { %334 = vmatpush.bf16.msra.mxu0 %v319_v33  ;;  %445 = vmatpush.bf16.msrb.mxu2 %v430_v34  ;;  %v295_v31 = vpack.c.bf16 %v286_v30, %v286_v30 }
  0x96   : > { %1016 = vmatmul.msk.bf16.vlgmr.msra.gmra.mxu0 %vm313_vm1, %v288_v25 }
  0x97   : > { %398 = vmatpush.bf16.msrb.mxu0 %v373_v32 }
  0x98   : > { %v485_v37 = vpop.permute.xlu1 %484  ;;  %v483_v38 = vpop.permute.xlu0 %482 }
  0x99   : > { %v499_v40 = vsel %vm317_vm0, %v485_v37, 0  ;;  %v487_v41 = vsel %vm486_vm4, %v481_v36, %v483_v38  ;;  %v488_v42 = vsel %vm486_vm4, %v483_v38, %v485_v37  ;;  %v674_v61 = vpop.permute.xlu2 %673 }
  0x9a   : > { %v493_v43 = vsel %vm317_vm0, %v487_v41, 0  ;;  %v496_v44 = vsel %vm317_vm0, %v488_v42, 0  ;;  %534 = vmatpush.bf16.msra.mxu3 %v499_v40 }
  0x9b   : > { %471 = vmatpush.bf16.msra.mxu0 %v436_v35  ;;  %508 = vmatpush.bf16.msra.mxu1 %v493_v43 }
  0x9c   : > { %521 = vmatpush.bf16.msra.mxu2 %v496_v44 }
  0x9d   : > { %1022 = vmatmul.msk.bf16.vlgmr.msrb.gmra.mxu2 %vm313_vm1, %v1156_v19  ;;  %1027 = vmatmul.msk.bf16.vlgmr.msra.gmra.mxu3 %vm313_vm1, %v290_v45  ;;  %v387_v32 = vpop.f32.mrf.mxu3 }
  0x9e   : > { %1021 = vmatmul.msk.bf16.vlgmr.msrb.gmra.mxu1 %vm313_vm1, %v1147_v13 }
  0xa0   : > { %v544_v47 = vpop.permute.xlu1 %543  ;;  %v548_v48 = vpop.permute.xlu0 %547 }
  0xa1   : > { %v550_v49 = vsel %vm549_vm5, %v544_v47, %v546_v46  ;;  %v551_v50 = vsel %vm549_vm5, %v546_v46, %v548_v48  ;;  %v562_v51 = vsel %vm317_vm0, %v548_v48, 0  ;;  %v733_v8 = vpop.permute.xlu2 %732 }
  0xa2   : > { %v559_v52 = vsel %vm317_vm0, %v551_v50, 0  ;;  %597 = vmatpush.bf16.msrb.mxu2 %v562_v51  ;;  %v556_v53 = vsel %vm317_vm0, %v550_v49, 0 }
  0xa3   : > { %584 = vmatpush.bf16.msrb.mxu1 %v559_v52 }
  0xa5   : > { %v389_v33 = vpop.f32.mrf.mxu3 }
  0xa6   : > { %1020 = vmatmul.msk.bf16.vlgmr.msrb.gmra.mxu0 %vm313_vm1, %v1147_v13 }
  0xa7   : > { %571 = vmatpush.bf16.msrb.mxu0 %v556_v53 }
  0xa8   : > { %v609_v56 = vpop.permute.xlu1 %608  ;;  %v607_v57 = vpop.permute.xlu0 %606 }
  0xa9   : > { %v613_v58 = vsel %vm612_vm6, %v607_v57, %v609_v56  ;;  %v798_v20 = vpop.permute.xlu2 %797 }
  0xaa   : > { %v619_v59 = vsel %vm317_vm0, %v613_v58, 0 }
  0xab   : > { %634 = vmatpush.bf16.msrb.mxu3 %v619_v59 }
  0xad   : > { %1026 = vmatmul.msk.bf16.vlgmr.msra.gmra.mxu2 %vm313_vm1, %v290_v45 }
  0xae   : > { %1025 = vmatmul.msk.bf16.vlgmr.msra.gmra.mxu1 %vm313_vm1, %v290_v45  ;;  %1031 = vmatmul.msk.bf16.vlgmr.msrb.gmra.mxu3 %vm313_vm1, %v292_v60 }
  0xb0   : > { %v611_v62 = vpop.permute.xlu1 %610  ;;  %v672_v63 = vpop.permute.xlu0 %671 }
  0xb1   : > { %v614_v0 = vsel %vm612_vm6, %v609_v56, %v611_v62  ;;  %v625_v1 = vsel %vm317_vm0, %v611_v62, 0  ;;  %v676_v2 = vsel %vm675_vm7, %v670_v54, %v672_v63  ;;  %v677_v3 = vsel %vm675_vm7, %v672_v63, %v674_v61 }
  0xb2   : > { %v682_v4 = vsel %vm317_vm0, %v676_v2, 0  ;;  %v685_v5 = vsel %vm317_vm0, %v677_v3, 0  ;;  %660 = vmatpush.bf16.msra.mxu1 %v625_v1  ;;  %v622_v6 = vsel %vm317_vm0, %v614_v0, 0 }
  0xb3   : > { %697 = vmatpush.bf16.msra.mxu2 %v682_v4  ;;  %710 = vmatpush.bf16.msra.mxu3 %v685_v5 }
  0xb6   : > { %1024 = vmatmul.msk.bf16.vlgmr.msra.gmra.mxu0 %vm313_vm1, %v1156_v19  ;;  %v688_v19 = vsel %vm317_vm0, %v674_v61, 0 }
  0xb7   : > { %647 = vmatpush.bf16.msra.mxu0 %v622_v6 }
  0xb8   : > { %v737_v9 = vpop.permute.xlu1 %736  ;;  %v735_v10 = vpop.permute.xlu0 %734 }
  0xb9   : > { %v751_v13 = vsel %vm317_vm0, %v737_v9, 0  ;;  %v739_v14 = vsel %vm738_vm8, %v733_v8, %v735_v10  ;;  %v740_v15 = vsel %vm738_vm8, %v735_v10, %v737_v9 }
  0xba   : > { %786 = vmatpush.bf16.msrb.mxu3 %v751_v13  ;;  %v745_v17 = vsel %vm317_vm0, %v739_v14, 0  ;;  %v748_v18 = vsel %vm317_vm0, %v740_v15, 0 }
  0xbd   : > { %1030 = vmatmul.msk.bf16.vlgmr.msrb.gmra.mxu2 %vm313_vm1, %v291_v11 }
  0xbe   : > { %1029 = vmatmul.msk.bf16.vlgmr.msrb.gmra.mxu1 %vm313_vm1, %v291_v11  ;;  %1035 = vmatmul.msk.bf16.vlgmr.msra.gmra.mxu3 %vm313_vm1, %v293_v16 }
  0xbf   : > { %760 = vmatpush.bf16.msrb.mxu1 %v745_v17  ;;  %773 = vmatpush.bf16.msrb.mxu2 %v748_v18 }
  0xc0   : > { %v800_v21 = vpop.permute.xlu0 %799  ;;  %v796_v27 = vpop.permute.xlu1 %795 }
  0xc1   : > { %v803_v23 = vsel %vm801_vm9, %v798_v20, %v800_v21  ;;  %v814_v26 = vsel %vm317_vm0, %v800_v21, 0  ;;  %v802_v28 = vsel %vm801_vm9, %v796_v27, %v798_v20 }
  0xc2   : > { %v811_v25 = vsel %vm317_vm0, %v803_v23, 0  ;;  %v808_v29 = vsel %vm317_vm0, %v802_v28, 0 }
  0xc6   : > { %1028 = vmatmul.msk.bf16.vlgmr.msrb.gmra.mxu0 %vm313_vm1, %v291_v11 }
  0xc7   : > { %723 = vmatpush.bf16.msrb.mxu0 %v688_v19 }
  0xcd   : > { %1034 = vmatmul.msk.bf16.vlgmr.msra.gmra.mxu2 %vm313_vm1, %v293_v16 }
  0xce   : > { %1033 = vmatmul.msk.bf16.vlgmr.msra.gmra.mxu1 %vm313_vm1, %v292_v60  ;;  %1039 = vmatmul.msk.bf16.vlgmr.msrb.gmra.mxu3 %vm313_vm1, %v294_v24 }
  0xcf   : > { %849 = vmatpush.bf16.msra.mxu2 %v814_v26  ;;  %836 = vmatpush.bf16.msra.mxu1 %v811_v25 }
  0xd6   : > { %1032 = vmatmul.msk.bf16.vlgmr.msra.gmra.mxu0 %vm313_vm1, %v292_v60 }
  0xd7   : > { %823 = vmatpush.bf16.msra.mxu0 %v808_v29 }
  0xdd   : > { %1038 = vmatmul.msk.bf16.vlgmr.msrb.gmra.mxu2 %vm313_vm1, %v294_v24 }
  0xde   : > { %1037 = vmatmul.msk.bf16.vlgmr.msrb.gmra.mxu1 %vm313_vm1, %v294_v24 }
  0xe6   : > { %1036 = vmatmul.msk.bf16.vlgmr.msrb.gmra.mxu0 %vm313_vm1, %v293_v16 }
  0xed   : > { %1042 = vmatmul.msk.bf16.vlgmr.msra.gmra.mxu2 %vm313_vm1, %v295_v31 }
  0xee   : > { %1041 = vmatmul.msk.bf16.vlgmr.msra.gmra.mxu1 %vm313_vm1, %v295_v31 }
  0xf6   : > { %1040 = vmatmul.msk.bf16.vlgmr.msra.gmra.mxu0 %vm313_vm1, %v295_v31 }
 0x102   : > { %v460_v34 = vpop.f32.mrf.mxu3 }
 0x10a   : > { %v462_v36 = vpop.f32.mrf.mxu3 }
 0x10b   : > { %v349_v35 = vpop.f32.mrf.mxu1 }
 0x110   : > { %v362_v37 = vpop.f32.mrf.mxu2 }
 0x113   : > { %v336_v38 = vpop.f32.mrf.mxu0  ;;  %v351_v39 = vpop.f32.mrf.mxu1 }
 0x114   : > { %v388_v40 = vadd.f32 %v387_v32, %v336_v38 }
 0x118   : > { %v364_v41 = vpop.f32.mrf.mxu2 }
 0x11b   : > { %v338_v42 = vpop.f32.mrf.mxu0  ;;  %v413_v43 = vpop.f32.mrf.mxu1 }
 0x11c   : > { %v414_v44 = vadd.f32 %v413_v43, %v362_v37 }
 0x120   : > { %v447_v45 = vpop.f32.mrf.mxu2  ;;  %v536_v46 = vpop.f32.mrf.mxu3 }
 0x121   : > { %v477_v47 = vadd.f32 %v447_v45, %v388_v40 }
 0x123   : > { %v400_v48 = vpop.f32.mrf.mxu0  ;;  %v415_v49 = vpop.f32.mrf.mxu1 }
 0x124   : > { %v401_v50 = vadd.f32 %v400_v48, %v349_v35  ;;  %v858_v35 = vld [vmem:[%s1268_s4] sm:$0x7] }
 0x125   : > { %v862_v40 = vperm.slane %v858_v35, 2  ;;  %v861_v43 = vperm.slane %v858_v35, 1 }
 0x126   : > { %v478_v51 = vadd.f32 %v460_v34, %v401_v50 }
 0x128   : > { %v449_v52 = vpop.f32.mrf.mxu2  ;;  %v538_v53 = vpop.f32.mrf.mxu3 }
 0x12b   : > { %v402_v54 = vpop.f32.mrf.mxu0  ;;  %v510_v55 = vpop.f32.mrf.mxu1 }
 0x12c   : > { %v540_v23 = vadd.f32 %v510_v55, %v477_v47 }
 0x130   : > { %v523_v56 = vpop.f32.mrf.mxu2 }
 0x131   : > { %v636_v57 = vpop.f32.mrf.mxu3  ;;  %v541_v21 = vadd.f32 %v523_v56, %v478_v51  ;;  %v905_v56 = vld [vmem:[%s1266_s2] sm:$0xff] }
 0x133   : > { %v473_v58 = vpop.f32.mrf.mxu0  ;;  %v512_v59 = vpop.f32.mrf.mxu1 }
 0x134   : > { %v479_v60 = vadd.f32 %v473_v58, %v414_v44  ;;  %v860_v44 = vperm.slane %v858_v35, 0  ;;  %v914_v58 = vld [vmem:[%s1267_s3] sm:$0xff] }
 0x136   : > { %v542_v61 = vadd.f32 %v536_v46, %v479_v60 }
 0x138   : > { %v525_v62 = vpop.f32.mrf.mxu2 }
 0x139   : > { %v638_v63 = vpop.f32.mrf.mxu3 }
 0x13b   : > { %v475_v0 = vpop.f32.mrf.mxu0  ;;  %v586_v1 = vpop.f32.mrf.mxu1 }
 0x13c   : > { %v604_v24 = vadd.f32 %v586_v1, %v541_v21 }
 0x140   : > { %v599_v2 = vpop.f32.mrf.mxu2 }
 0x141   : > { %v712_v3 = vpop.f32.mrf.mxu3  ;;  %v605_v22 = vadd.f32 %v599_v2, %v542_v61 }
 0x143   : > { %v573_v4 = vpop.f32.mrf.mxu0  ;;  %v588_v5 = vpop.f32.mrf.mxu1 }
 0x144   : > { %v603_v27 = vadd.f32 %v573_v4, %v540_v23 }
 0x146   : > { %v666_v32 = vadd.f32 %v636_v57, %v603_v27  ;;  %v1083_v57 = vmov 0   ;;  %v924_v27 = vld [vmem:[%s266_s15 + $0x8] sm:$0xff] }
 0x147   : > { %1063 = vset.pattern.permute.xlu2 %v1083_v57  ;;  %1064 = vset.pattern.permute.xlu0 %v1083_v57 }
 0x148   : > { %v601_v6 = vpop.f32.mrf.mxu2  ;;  %908 = vperm.xlu2 %1063, %v905_v56  }
 0x149   : > { %v714_v7 = vpop.f32.mrf.mxu3 }
 0x14b   : > { %v575_v8 = vpop.f32.mrf.mxu0  ;;  %v662_v9 = vpop.f32.mrf.mxu1 }
 0x14c   : > { %v668_v26 = vadd.f32 %v662_v9, %v605_v22 }
 0x150   : > { %v699_v10 = vpop.f32.mrf.mxu2  ;;  %917 = vperm.xlu2 %1063, %v914_v58  }
 0x151   : > { %v788_v11 = vpop.f32.mrf.mxu3  ;;  %v729_v36 = vadd.f32 %v699_v10, %v666_v32 }
 0x153   : > { %v649_v12 = vpop.f32.mrf.mxu0  ;;  %v664_v13 = vpop.f32.mrf.mxu1 }
 0x154   : > { %v667_v28 = vadd.f32 %v649_v12, %v604_v24 }
 0x156   : > { %v730_v33 = vadd.f32 %v712_v3, %v667_v28  ;;  %v925_v28 = vld [vmem:[%s266_s15 + $0x10] sm:$0xff] }
 0x158   : > { %v701_v14 = vpop.f32.mrf.mxu2 }
 0x159   : > { %v790_v15 = vpop.f32.mrf.mxu3 }
 0x15b   : > { %v651_v16 = vpop.f32.mrf.mxu0  ;;  %v762_v17 = vpop.f32.mrf.mxu1 }
 0x15c   : > { %v792_v41 = vadd.f32 %v762_v17, %v729_v36 }
 0x160   : > { %v775_v18 = vpop.f32.mrf.mxu2 }
 0x161   : > { %v793_v37 = vadd.f32 %v775_v18, %v730_v33 }
 0x163   : > { %v725_v19 = vpop.f32.mrf.mxu0  ;;  %v764_v20 = vpop.f32.mrf.mxu1 }
 0x164   : > { %v731_v29 = vadd.f32 %v725_v19, %v668_v26  ;;  %v923_v26 = vld [vmem:[%s266_s15] sm:$0xff] }
 0x166   : > { %v794_v34 = vadd.f32 %v788_v11, %v731_v29 }
 0x168   : > { %v777_v25 = vpop.f32.mrf.mxu2 }
 0x16b   : > { %v727_v30 = vpop.f32.mrf.mxu0  ;;  %v838_v31 = vpop.f32.mrf.mxu1 }
 0x16c   : > { %v856_v42 = vadd.f32 %v838_v31, %v793_v37 }
 0x16e   : > { %v867_v49 = vmul.f32 %v861_v43, %v856_v42 }
 0x170   : > { %v851_v38 = vpop.f32.mrf.mxu2 }
 0x171   : > { %v857_v39 = vadd.f32 %v851_v38, %v794_v34 }
 0x173   : > { %v825_v45 = vpop.f32.mrf.mxu0  ;;  %v840_v46 = vpop.f32.mrf.mxu1  ;;  %v868_v48 = vmul.f32 %v862_v40, %v857_v39 }
 0x174   : > { %v855_v47 = vadd.f32 %v825_v45, %v792_v41 }
 0x175   : > { %v871_v53 = vsel %vm870_vm10, %v868_v48, 0.0 }
 0x176   : > { %v866_v50 = vmul.f32 %v860_v44, %v855_v47 }
 0x178   : > { %v853_v51 = vpop.f32.mrf.mxu2  ;;  %v869_v52 = vadd.f32 %v867_v49, %v866_v50 }
 0x17a   : > { %v872_v54 = vadd.f32 %v871_v53, %v869_v52 }
 0x17b   : > { %v827_v55 = vpop.f32.mrf.mxu0 }
 0x17c   : > { %873 = vadd.xlane.f32.xlu0 %v872_v54 }
 0x1a2   : > { %v909_v16 = vpop.permute.xlu2 %908 }
 0x1aa   : > { %v918_v29 = vpop.permute.xlu2 %917 }
 0x1ef   : > { %v874_v59 = vpop.xlane.xlu0 %873 }
 0x1f0   : > { %v875_v60 = vmul.f32 0.00390625, %v874_v59 }
 0x1f2   : > { %v876_v61 = vsub.f32 %v855_v47, %v875_v60  ;;  %v877_v62 = vsub.f32 %v856_v42, %v875_v60  ;;  %v878_v63 = vsub.f32 %v857_v39, %v875_v60 }
 0x1f4   : > { %v879_v0 = vmul.f32 %v876_v61, %v860_v44  ;;  %v880_v1 = vmul.f32 %v877_v62, %v861_v43  ;;  %v881_v2 = vmul.f32 %v878_v63, %v862_v40 }
 0x1f6   : > { %v882_v3 = vmul.f32 %v879_v0, %v879_v0  ;;  %v883_v4 = vmul.f32 %v880_v1, %v880_v1  ;;  %v884_v5 = vmul.f32 %v881_v2, %v881_v2 }
 0x1f8   : > { %v885_v6 = vadd.f32 %v883_v4, %v882_v3  ;;  %v886_v7 = vsel %vm870_vm10, %v884_v5, 0.0 }
 0x1fa   : > { %v887_v8 = vadd.f32 %v886_v7, %v885_v6 }
 0x1fc   : > { %888 = vadd.xlane.f32.xlu1 %v887_v8 }
 0x26f   : > { %v889_v9 = vpop.xlane.xlu1 %888 }
 0x270   : > { %v890_v10 = vmul.f32 0.00390625, %v889_v9 }
 0x272   : > { %v891_v11 = vadd.f32 1e-05, %v890_v10 }
 0x274   : > { %1065 = vrsqrt.f32 %v891_v11  ;;  %vm898_vm12 = vweird.f32 %v891_v11 }
 0x27a   : > { %v1066_v12 = vpop.eup %1065 }
 0x27b   : > { %v893_v13 = vmul.f32 %v1066_v12, %v891_v11  ;;  %vm899_vm11 = vweird.f32 %v1066_v12 }
 0x27c   : > { %vm900_vm13 = vmor %vm898_vm12, %vm899_vm11 }
 0x27d   : > { %v894_v14 = vmul.f32 %v1066_v12, %v893_v13 }
 0x27f   : > { %v895_v15 = vmul.f32 0.5, %v894_v14 }
 0x281   : > { %v896_v17 = vsub.f32 1.5, %v895_v15 }
 0x283   : > { %v897_v18 = vmul.f32 %v1066_v12, %v896_v17 }
 0x285   : > { %v901_v19 = vsel %vm900_vm13, %v1066_v12, %v897_v18 }
 0x286   : > { %v902_v20 = vmul.f32 %v901_v19, %v876_v61  ;;  %v903_v21 = vmul.f32 %v901_v19, %v877_v62  ;;  %v904_v22 = vmul.f32 %v901_v19, %v878_v63 }
 0x288   : > { %v911_v23 = vmul.f32 %v909_v16, %v902_v20  ;;  %v912_v24 = vmul.f32 %v909_v16, %v903_v21  ;;  %v913_v25 = vmul.f32 %v909_v16, %v904_v22 }
 0x28a   : > { %v920_v30 = vadd.f32 %v918_v29, %v911_v23  ;;  %v921_v31 = vadd.f32 %v918_v29, %v912_v24  ;;  %v922_v32 = vadd.f32 %v918_v29, %v913_v25 }
 0x28c   : > { %v926_v33 = vadd.f32 %v923_v26, %v920_v30  ;;  %v927_v34 = vadd.f32 %v924_v27, %v921_v31  ;;  %v928_v35 = vadd.f32 %v925_v28, %v922_v32 }
 0x28e   : > { %vm929_vm14 = vcmp.ge.f32.partialorder %v926_v33, 0.0  ;;  %vm930_vm15 = vcmp.ge.f32.partialorder %v927_v34, 0.0  ;;  %vm931_vm0 = vcmp.ge.f32.partialorder %v928_v35, 0.0  ;;  %v932_v36 = vmul.f32 0.01, %v926_v33 }
 0x28f   : > { %v933_v37 = vmul.f32 0.01, %v927_v34  ;;  %v934_v38 = vmul.f32 0.01, %v928_v35 }
 0x290   : > { %v935_v39 = vsel %vm929_vm14, %v926_v33, %v932_v36 }
 0x291   : > { %v936_v40 = vsel %vm930_vm15, %v927_v34, %v933_v37  ;;  %v937_v41 = vsel %vm931_vm0, %v928_v35, %v934_v38  ;;  %938 = vst [vmem:[%s271_s18] sm:$0xff] %v935_v39 }
 0x292   : > { %939 = vst [vmem:[%s271_s18 + $0x8] sm:$0xff] %v936_v40 }
 0x293   : > { %940 = vst.msk [vmem:[%s271_s18 + $0x10] sm:$0xff] %vm870_vm10, %v937_v41 }
 0x294 PF: > { %s16_s21 = sadd.s32 1, %s1073_s21  }
 0x295   : > { %p13_p4 = scmp.ge.s32.totalorder %s16_s21, 4  }
 0x297   :  { %15 = sbr.rel (!%p13_p4) target bundleno = 1 (0x1), region = 77 }

// kernel: residual_unet_forward.22
= control target key start
LH: loop header
LB: loop body
LE: loop exit
PB: predicated region body
PF: predicated region fallthrough
CT: control target
= control target key end

     0   :  { %s434_s15 = smov 0   ;;  %s479_s0 = inlined_call_operand.vmem [shape: f32[2,32,72], index: 0, kind: input, shape index: {}]   ;;  %s480_s1 = inlined_call_operand.vmem [shape: f32[16,32], index: 1, kind: input, shape index: {}]   ;;  %s481_s2 = inlined_call_operand.vmem [shape: f32[16,1], index: 2, kind: input, shape index: {}]   ;;  %s482_s3 = inlined_call_operand.vmem [shape: f32[16,1], index: 3, kind: input, shape index: {}]   ;;  %s483_s4 = inlined_call_operand.vmem [shape: f32[2,16,64], index: 4, kind: output, shape index: {}]  }
   0x1 LB: > { %s370_s16 = sadd.s32 4294967295, %s406_s15   ;;  %p374_p0 = scmp.ge.s32.totalorder %s406_s15, 1  ;;  %s406_s15 = sphi %s434_s15, %s14_s15  }
   0x2   : > { %p162_p1 = scmp.lt.s32.totalorder %s406_s15, 3 }
   0x4   : > { %p163_p2 = pnand %p374_p0, %p162_p1 }
   0x5   : > { %p188_p3 = scmp.lt.s32.totalorder (!%p163_p2), %s370_s16, 1 }
   0x6   : > { %166 = sbr.rel (%p163_p2) target bundleno = 431 (0x1af), region = 36 }
   0xb   : > { %s485_s16 = smov (!%p188_p3, %s370_s16), 1  ;;  %v207_v14 = vld [vmem:[%s480_s1] sm:$0xff]  ;;  %v208_v15 = vld [vmem:[%s480_s1 + $0x8] sm:$0xff]  ;;  %vm222_vm0 = vcmask 261120   ;;  %vm240_vm1 = vcmask 523264   ;;  %v408_v22 = vmov 0  }
   0xc   : > { %s382_s17 = sshll.u32 %s485_s16, 5  ;;  %v209_v16 = vpack.c.bf16 %v208_v15, %v207_v14  ;;  %v299_v21 = vld [vmem:[%s482_s3] sm:$0xff]  ;;  %394 = vset.pattern.permute.xlu0 %v408_v22  ;;  %395 = vset.pattern.permute.xlu1 %v408_v22  ;;  %v286_v34 = vld [vmem:[%s481_s2 + $0x8] sm:$0xff]  ;;  %s383_s7 = sshll.u32 %s485_s16, 4 }
   0xd   : > { %s192_s20 = scalar_lea.vmem %s479_s0, %s382_s17  ;;  %393 = vset.pattern.permute.xlu2 %v408_v22  ;;  %v285_v30 = vld [vmem:[%s481_s2] sm:$0xff]  ;;  %v300_v35 = vld [vmem:[%s482_s3 + $0x8] sm:$0xff]  ;;  %s197_s10 = scalar_lea.vmem %s483_s4, %s383_s7 }
   0xe   : > { %v201_v0 = vld [vmem:[%s192_s20 + $0x10] sm:$0xff]  ;;  %v202_v1 = vld [vmem:[%s192_s20 + $0x18] sm:$0xff]  ;;  %v199_v2 = vld [vmem:[%s192_s20] sm:$0xff]  ;;  %289 = vperm.xlu2 %393, %v285_v30  }
   0xf   : > { %v205_v3 = vpack.c.bf16 %v201_v0, %v201_v0  ;;  %v206_v4 = vpack.c.bf16 %v202_v1, %v202_v1  ;;  %v200_v5 = vld [vmem:[%s192_s20 + $0x8] sm:$0xff]  ;;  %v203_v6 = vpack.c.bf16 %v199_v2, %v199_v2 }
  0x10   : > { %v204_v7 = vpack.c.bf16 %v200_v5, %v200_v5 }
  0x11   : > { %v216_v8 = vunpack.c.l.b16 %v205_v3  ;;  %v217_v9 = vunpack.c.l.b16 %v206_v4  ;;  %v214_v10 = vunpack.c.l.b16 %v203_v6 }
  0x12   : > { %v215_v11 = vunpack.c.l.b16 %v204_v7 }
  0x13   : > { %v219_v12 = vpack.c.b16 %v217_v9, %v216_v8 }
  0x14   : > { %v218_v13 = vpack.c.b16 %v215_v11, %v214_v10 }
  0x15   : > { %232 = vmatpush.bf16.msra.mxu0 %v219_v12 }
  0x16   : > { %294 = vperm.xlu2 %393, %v286_v34  }
  0x19   : > { %233 = vmatpush.bf16.msra.mxu0 %v218_v13 }
  0x1c   : > { %379 = vmatmul.msk.bf16.vlgmr.msra.gmra.mxu0 %vm222_vm0, %v209_v16 }
  0x68   : > { %v290_v51 = vpop.permute.xlu2 %289 }
  0x70   : > { %v295_v62 = vpop.permute.xlu2 %294 }
  0x99   : > { %v235_v17 = vpop.f32.mrf.mxu0 }
  0x9a   : > { %v241_v18 = vsel %vm240_vm1, %v235_v17, 0.0 }
  0x9b   : > { %242 = vadd.xlane.f32.xlu0 %v241_v18 }
  0xa1   : > { %v237_v19 = vpop.f32.mrf.mxu0 }
  0xa2   : > { %v244_v20 = vsel %vm240_vm1, %v237_v19, 0.0 }
  0xa3   : > { %245 = vadd.xlane.f32.xlu0 %v244_v20 }
  0xb7   : > { %303 = vperm.xlu0 %394, %v299_v21  }
 0x10e   : > { %v243_v23 = vpop.xlane.xlu0 %242 }
 0x10f   : > { %v247_v24 = vmul.f32 0.015625, %v243_v23 }
 0x111   : > { %v249_v25 = vsub.f32 %v235_v17, %v247_v24 }
 0x113   : > { %v251_v26 = vmul.f32 %v249_v25, %v249_v25 }
 0x115   : > { %v253_v27 = vsel %vm240_vm1, %v251_v26, 0.0 }
 0x116   : > { %254 = vadd.xlane.f32.xlu1 %v253_v27  ;;  %v246_v28 = vpop.xlane.xlu0 %245 }
 0x117   : > { %v248_v29 = vmul.f32 0.015625, %v246_v28 }
 0x119   : > { %v250_v31 = vsub.f32 %v237_v19, %v248_v29 }
 0x11b   : > { %v252_v32 = vmul.f32 %v250_v31, %v250_v31 }
 0x11d   : > { %v256_v33 = vsel %vm240_vm1, %v252_v32, 0.0 }
 0x11e   : > { %257 = vadd.xlane.f32.xlu1 %v256_v33 }
 0x129   : > { %v304_v55 = vpop.permute.xlu0 %303 }
 0x137   : > { %308 = vperm.xlu1 %395, %v300_v35  }
 0x189   : > { %v255_v36 = vpop.xlane.xlu1 %254 }
 0x18a   : > { %v259_v37 = vmul.f32 0.015625, %v255_v36 }
 0x18c   : > { %v261_v38 = vadd.f32 1e-05, %v259_v37 }
 0x18e   : > { %396 = vrsqrt.f32 %v261_v38  ;;  %vm269_vm3 = vweird.f32 %v261_v38 }
 0x191   : > { %v258_v39 = vpop.xlane.xlu1 %257 }
 0x192   : > { %v260_v40 = vmul.f32 0.015625, %v258_v39 }
 0x194   : > { %v397_v41 = vpop.eup %396  ;;  %v262_v42 = vadd.f32 1e-05, %v260_v40 }
 0x195   : > { %v264_v43 = vmul.f32 %v397_v41, %v261_v38  ;;  %vm270_vm2 = vweird.f32 %v397_v41 }
 0x196   : > { %398 = vrsqrt.f32 %v262_v42  ;;  %vm271_vm4 = vmor %vm269_vm3, %vm270_vm2  ;;  %vm279_vm6 = vweird.f32 %v262_v42 }
 0x197   : > { %v265_v44 = vmul.f32 %v397_v41, %v264_v43 }
 0x199   : > { %v266_v45 = vmul.f32 0.5, %v265_v44 }
 0x19b   : > { %v267_v46 = vsub.f32 1.5, %v266_v45 }
 0x19c   : > { %v399_v47 = vpop.eup %398 }
 0x19d   : > { %v274_v48 = vmul.f32 %v399_v47, %v262_v42  ;;  %v268_v49 = vmul.f32 %v397_v41, %v267_v46  ;;  %vm280_vm5 = vweird.f32 %v399_v47 }
 0x19e   : > { %vm281_vm7 = vmor %vm279_vm6, %vm280_vm5 }
 0x19f   : > { %v275_v50 = vmul.f32 %v399_v47, %v274_v48  ;;  %v272_v52 = vsel %vm271_vm4, %v397_v41, %v268_v49 }
 0x1a0   : > { %v283_v53 = vmul.f32 %v272_v52, %v249_v25 }
 0x1a1   : > { %v276_v54 = vmul.f32 0.5, %v275_v50 }
 0x1a2   : > { %v297_v56 = vmul.f32 %v290_v51, %v283_v53 }
 0x1a3   : > { %v277_v57 = vsub.f32 1.5, %v276_v54 }
 0x1a4   : > { %v311_v58 = vadd.f32 %v304_v55, %v297_v56 }
 0x1a5   : > { %v278_v59 = vmul.f32 %v399_v47, %v277_v57 }
 0x1a6   : > { %313 = vst.msk [vmem:[%s197_s10] sm:$0xff] %vm240_vm1, %v311_v58 }
 0x1a7   : > { %v282_v60 = vsel %vm281_vm7, %v399_v47, %v278_v59 }
 0x1a8   : > { %v284_v61 = vmul.f32 %v282_v60, %v250_v31 }
 0x1a9   : > { %v309_v63 = vpop.permute.xlu1 %308 }
 0x1aa   : > { %v298_v0 = vmul.f32 %v295_v62, %v284_v61 }
 0x1ac   : > { %v312_v1 = vadd.f32 %v309_v63, %v298_v0 }
 0x1ae   : > { %314 = vst.msk [vmem:[%s197_s10 + $0x8] sm:$0xff] %vm240_vm1, %v312_v1 }
 0x1af PF: > { %s14_s15 = sadd.s32 1, %s406_s15  }
 0x1b0   : > { %p11_p4 = scmp.ge.s32.totalorder %s14_s15, 4  }
 0x1b2   :  { %13 = sbr.rel (!%p11_p4) target bundleno = 1 (0x1), region = 66 }

// kernel: tile.73
= control target key start
LH: loop header
LB: loop body
LE: loop exit
PB: predicated region body
PF: predicated region fallthrough
CT: control target
= control target key end

     0   :  { %s22_s0 = inlined_call_operand.vmem [shape: f32[9], index: 0, kind: input, shape index: {}]   ;;  %s23_s1 = inlined_call_operand.vmem [shape: f32[8,9], index: 1, kind: output, shape index: {}]  }
   0x1   :  { %v4_v0 = vld [vmem:[%s22_s0] ss:$0 sm:$0xff] }
   0x2   :  { %5 = vst [vmem:[%s23_s1] sm:$0xff] %v4_v0 }

// kernel: tile.74
= control target key start
LH: loop header
LB: loop body
LE: loop exit
PB: predicated region body
PF: predicated region fallthrough
CT: control target
= control target key end

     0   :  { %s67_s10 = smov 63   ;;  %s68_s11 = smov 45   ;;  %vm3_vm0 = vcmask 72704   ;;  %vm9_vm1 = vcmask 589304   ;;  %vm15_vm2 = vcmask 515504   ;;  %vm21_vm3 = vcmask 441704   ;;  %s111_s0 = inlined_call_operand.vmem [shape: f32[8,9], index: 0, kind: input, shape index: {}]   ;;  %s112_s1 = inlined_call_operand.vmem [shape: f32[1,72], index: 1, kind: output, shape index: {}]  }
   0x1   :  { %v53_v0 = vld [vmem:[%s111_s0 + $0x7] sm:$0x1]   ;;  %v55_v1 = vld [vmem:[%s111_s0 + $0x5] sm:$0x1]   ;;  %v57_v2 = vld [vmem:[%s111_s0 + $0x3] sm:$0x1]  }
   0x2   :  { %7 = vrot.lane.b32.xlu0 %v53_v0, %s67_s10  ;;  %19 = vrot.lane.b32.xlu1 %v55_v1, %s68_s11  ;;  %s69_s14 = smov 27   ;;  %v54_v3 = vld [vmem:[%s111_s0 + $0x6] sm:$0x1]   ;;  %v56_v4 = vld [vmem:[%s111_s0 + $0x4] sm:$0x1]   ;;  %s70_s21 = smov 54  }
   0x3   :  { %31 = vrot.lane.b32.xlu2 %v57_v2, %s69_s14  ;;  %v58_v5 = vld [vmem:[%s111_s0 + $0x2] sm:$0x1]   ;;  %s71_s22 = smov 36   ;;  %s72_s23 = smov 18   ;;  %v59_v6 = vld [vmem:[%s111_s0 + $0x1] sm:$0x1]  }
   0x4   :  { %s73_s26 = smov 9   ;;  %v2_v7 = vld [vmem:[%s111_s0] sm:$0x1]   ;;  %vm27_vm4 = vcmask 367904   ;;  %vm33_vm5 = vcmask 294104   ;;  %vm39_vm6 = vcmask 220304  }
   0x5   :  { %4 = vst.msk [vmem:[#allocation0] sm:$0x1] %vm3_vm0, %v2_v7   ;;  %vm45_vm7 = vcmask 146504  }
   0xa   :  { %13 = vrot.lane.b32.xlu0 %v54_v3, %s70_s21  ;;  %25 = vrot.lane.b32.xlu1 %v56_v4, %s71_s22 }
   0xb   :  { %37 = vrot.lane.b32.xlu2 %v58_v5, %s72_s23 }
  0x12   :  { %43 = vrot.lane.b32.xlu0 %v59_v6, %s73_s26 }
  0x5d   :  { %v32_v8 = vpop.permute.xlu2 %31  }
  0x65   :  { %v38_v9 = vpop.permute.xlu2 %37  }
  0x74   :  { %v8_v10 = vpop.permute.xlu0 %7   ;;  %v20_v11 = vpop.permute.xlu1 %19  }
  0x75   :  { %10 = vst.msk [vmem:[#allocation0] sm:$0x1] %vm9_vm1, %v8_v10  }
  0x7c   :  { %v14_v12 = vpop.permute.xlu0 %13   ;;  %v26_v13 = vpop.permute.xlu1 %25  }
  0x7d   :  { %16 = vst.msk [vmem:[#allocation0] sm:$0x1] %vm15_vm2, %v14_v12  }
  0x7e   :  { %22 = vst.msk [vmem:[#allocation0] sm:$0x1] %vm21_vm3, %v20_v11  }
  0x7f   :  { %28 = vst.msk [vmem:[#allocation0] sm:$0x1] %vm27_vm4, %v26_v13  }
  0x80   :  { %34 = vst.msk [vmem:[#allocation0] sm:$0x1] %vm33_vm5, %v32_v8  }
  0x81   :  { %40 = vst.msk [vmem:[#allocation0] sm:$0x1] %vm39_vm6, %v38_v9  }
  0x84   :  { %v44_v14 = vpop.permute.xlu0 %43  }
  0x85   :  { %46 = vst.msk [vmem:[#allocation0] sm:$0x1] %vm45_vm7, %v44_v14  }
  0x8c   :  { %v49_v15 = vld [vmem:[#allocation0] sm:$0x1] }
  0x8d   :  { %52 = vst [vmem:[%s112_s1] sm:$0x1] %v49_v15 }

// kernel: tile.78
= control target key start
LH: loop header
LB: loop body
LE: loop exit
PB: predicated region body
PF: predicated region fallthrough
CT: control target
= control target key end

     0   :  { %s22_s0 = inlined_call_operand.vmem [shape: f32[10], index: 0, kind: input, shape index: {}]   ;;  %s23_s1 = inlined_call_operand.vmem [shape: f32[8,10], index: 1, kind: output, shape index: {}]  }
   0x1   :  { %v4_v0 = vld [vmem:[%s22_s0] ss:$0 sm:$0xff] }
   0x2   :  { %5 = vst [vmem:[%s23_s1] sm:$0xff] %v4_v0 }

// kernel: tile.79
= control target key start
LH: loop header
LB: loop body
LE: loop exit
PB: predicated region body
PF: predicated region fallthrough
CT: control target
= control target key end

     0   :  { %s67_s10 = smov 70   ;;  %s68_s11 = smov 50   ;;  %vm3_vm0 = vcmask 80896   ;;  %vm9_vm1 = vcmask 654896   ;;  %vm15_vm2 = vcmask 572896   ;;  %vm21_vm3 = vcmask 490896   ;;  %s111_s0 = inlined_call_operand.vmem [shape: f32[8,10], index: 0, kind: input, shape index: {}]   ;;  %s112_s1 = inlined_call_operand.vmem [shape: f32[1,80], index: 1, kind: output, shape index: {}]  }
   0x1   :  { %v53_v0 = vld [vmem:[%s111_s0 + $0x7] sm:$0x1]   ;;  %v55_v1 = vld [vmem:[%s111_s0 + $0x5] sm:$0x1]   ;;  %v57_v2 = vld [vmem:[%s111_s0 + $0x3] sm:$0x1]  }
   0x2   :  { %7 = vrot.lane.b32.xlu0 %v53_v0, %s67_s10  ;;  %19 = vrot.lane.b32.xlu1 %v55_v1, %s68_s11  ;;  %s69_s14 = smov 30   ;;  %v54_v3 = vld [vmem:[%s111_s0 + $0x6] sm:$0x1]   ;;  %v56_v4 = vld [vmem:[%s111_s0 + $0x4] sm:$0x1]   ;;  %s70_s21 = smov 60  }
   0x3   :  { %31 = vrot.lane.b32.xlu2 %v57_v2, %s69_s14  ;;  %v58_v5 = vld [vmem:[%s111_s0 + $0x2] sm:$0x1]   ;;  %s71_s22 = smov 40   ;;  %s72_s23 = smov 20   ;;  %v59_v6 = vld [vmem:[%s111_s0 + $0x1] sm:$0x1]  }
   0x4   :  { %s73_s26 = smov 10   ;;  %v2_v7 = vld [vmem:[%s111_s0] sm:$0x1]   ;;  %vm27_vm4 = vcmask 408896   ;;  %vm33_vm5 = vcmask 326896   ;;  %vm39_vm6 = vcmask 244896  }
   0x5   :  { %4 = vst.msk [vmem:[#allocation0] sm:$0x1] %vm3_vm0, %v2_v7   ;;  %vm45_vm7 = vcmask 162896  }
   0xa   :  { %13 = vrot.lane.b32.xlu0 %v54_v3, %s70_s21  ;;  %25 = vrot.lane.b32.xlu1 %v56_v4, %s71_s22 }
   0xb   :  { %37 = vrot.lane.b32.xlu2 %v58_v5, %s72_s23 }
  0x12   :  { %43 = vrot.lane.b32.xlu0 %v59_v6, %s73_s26 }
  0x5d   :  { %v32_v8 = vpop.permute.xlu2 %31  }
  0x65   :  { %v38_v9 = vpop.permute.xlu2 %37  }
  0x74   :  { %v8_v10 = vpop.permute.xlu0 %7   ;;  %v20_v11 = vpop.permute.xlu1 %19  }
  0x75   :  { %10 = vst.msk [vmem:[#allocation0] sm:$0x1] %vm9_vm1, %v8_v10  }
  0x7c   :  { %v14_v12 = vpop.permute.xlu0 %13   ;;  %v26_v13 = vpop.permute.xlu1 %25  }
  0x7d   :  { %16 = vst.msk [vmem:[#allocation0] sm:$0x1] %vm15_vm2, %v14_v12  }
  0x7e   :  { %22 = vst.msk [vmem:[#allocation0] sm:$0x1] %vm21_vm3, %v20_v11  }
  0x7f   :  { %28 = vst.msk [vmem:[#allocation0] sm:$0x1] %vm27_vm4, %v26_v13  }
  0x80   :  { %34 = vst.msk [vmem:[#allocation0] sm:$0x1] %vm33_vm5, %v32_v8  }
  0x81   :  { %40 = vst.msk [vmem:[#allocation0] sm:$0x1] %vm39_vm6, %v38_v9  }
  0x84   :  { %v44_v14 = vpop.permute.xlu0 %43  }
  0x85   :  { %46 = vst.msk [vmem:[#allocation0] sm:$0x1] %vm45_vm7, %v44_v14  }
  0x8c   :  { %v49_v15 = vld [vmem:[#allocation0] sm:$0x1] }
  0x8d   :  { %52 = vst [vmem:[%s112_s1] sm:$0x1] %v49_v15 }

// kernel: residual_unet_forward.21
= control target key start
LH: loop header
LB: loop body
LE: loop exit
PB: predicated region body
PF: predicated region fallthrough
CT: control target
= control target key end

     0   :  { %s596_s18 = smov 0   ;;  %s666_s0 = inlined_call_operand.vmem [shape: f32[2,32,90], index: 0, kind: input, shape index: {}]   ;;  %s667_s1 = inlined_call_operand.vmem [shape: f32[64,32], index: 1, kind: input, shape index: {}]   ;;  %s668_s2 = inlined_call_operand.vmem [shape: f32[16,1], index: 2, kind: input, shape index: {}]   ;;  %s669_s3 = inlined_call_operand.vmem [shape: f32[16,1], index: 3, kind: input, shape index: {}]   ;;  %s670_s4 = inlined_call_operand.vmem [shape: f32[1,72], index: 4, kind: input, shape index: {}]   ;;  %s671_s5 = inlined_call_operand.vmem [shape: f32[2,16,72], index: 5, kind: output, shape index: {}]  }
   0x1 LB: > { %s517_s19 = sadd.s32 4294967295, %s560_s18   ;;  %p521_p0 = scmp.ge.s32.totalorder %s560_s18, 1  ;;  %s560_s18 = sphi %s596_s18, %s15_s18  }
   0x2   : > { %p187_p1 = scmp.lt.s32.totalorder %s560_s18, 3 }
   0x4   : > { %p188_p2 = pnand %p521_p0, %p187_p1 }
   0x5   : > { %p215_p3 = scmp.lt.s32.totalorder (!%p188_p2), %s517_s19, 1  ;;  %s562_s24 = smov (!%p188_p2), 127  }
   0x6   : > { %191 = sbr.rel (%p188_p2) target bundleno = 569 (0x239), region = 40  ;;  %s563_s25 = smov (!%p188_p2), 119  }
   0x7   : > { %s564_s26 = smov (!%p188_p2), 118  }
   0xb   : > { %s673_s19 = smov (!%p215_p3, %s517_s19), 1  ;;  %v234_v14 = vld [vmem:[%s667_s1] sm:$0xff]  ;;  %v235_v15 = vld [vmem:[%s667_s1 + $0x8] sm:$0xff]  ;;  %vm271_vm0 = vcmask 261120   ;;  %v236_v22 = vld [vmem:[%s667_s1 + $0x10] sm:$0xff]  ;;  %vm379_vm1 = vcmask 588800  }
   0xc   : > { %s532_s20 = sshll.u32 %s673_s19, 5  ;;  %v242_v16 = vpack.c.bf16 %v234_v14, %v234_v14  ;;  %v243_v17 = vpack.c.bf16 %v235_v15, %v235_v15  ;;  %v237_v23 = vld [vmem:[%s667_s1 + $0x18] sm:$0xff]  ;;  %v244_v24 = vpack.c.bf16 %v236_v22, %v236_v22  ;;  %v238_v26 = vld [vmem:[%s667_s1 + $0x20] sm:$0xff]  ;;  %v239_v27 = vld [vmem:[%s667_s1 + $0x28] sm:$0xff]  ;;  %s533_s30 = sshll.u32 %s673_s19, 4 }
   0xd   : > { %s219_s23 = scalar_lea.vmem %s666_s0, %s532_s20  ;;  %v245_v25 = vpack.c.bf16 %v237_v23, %v237_v23  ;;  %v246_v32 = vpack.c.bf16 %v238_v26, %v238_v26  ;;  %v247_v33 = vpack.c.bf16 %v239_v27, %v239_v27  ;;  %v240_v34 = vld [vmem:[%s667_s1 + $0x30] sm:$0xff]  ;;  %v241_v35 = vld [vmem:[%s667_s1 + $0x38] sm:$0xff]  ;;  %v549_v53 = vld [vmem:[%s670_s4] ss:$0 sm:$0xff]  ;;  %s224_s8 = scalar_lea.vmem %s671_s5, %s533_s30 }
   0xe   : > { %v228_v0 = vld [vmem:[%s219_s23 + $0x10] sm:$0xff]  ;;  %v229_v1 = vld [vmem:[%s219_s23 + $0x18] sm:$0xff]  ;;  %v226_v2 = vld [vmem:[%s219_s23] sm:$0xff]  ;;  %v291_v18 = vunpack.c.l.b16 %v242_v16  ;;  %v292_v19 = vunpack.c.l.b16 %v243_v17  ;;  %v252_v28 = vunpack.c.l.b16 %v244_v24  ;;  %v248_v40 = vpack.c.bf16 %v240_v34, %v240_v34 }
   0xf   : > { %v232_v3 = vpack.c.bf16 %v228_v0, %v228_v0  ;;  %v233_v4 = vpack.c.bf16 %v229_v1, %v229_v1  ;;  %v227_v5 = vld [vmem:[%s219_s23 + $0x8] sm:$0xff]  ;;  %v230_v6 = vpack.c.bf16 %v226_v2, %v226_v2  ;;  %v253_v29 = vunpack.c.l.b16 %v245_v25 }
  0x10   : > { %v231_v7 = vpack.c.bf16 %v227_v5, %v227_v5  ;;  %v293_v20 = vpack.c.b16 %v292_v19, %v291_v18  ;;  %v315_v38 = vunpack.c.l.b16 %v246_v32  ;;  %v316_v39 = vunpack.c.l.b16 %v247_v33  ;;  %v440_v19 = vld [vmem:[%s669_s3] sm:$0xff] }
  0x11   : > { %v261_v8 = vunpack.c.l.b16 %v232_v3  ;;  %v262_v9 = vunpack.c.l.b16 %v233_v4  ;;  %v259_v10 = vunpack.c.l.b16 %v230_v6  ;;  %v254_v37 = vpack.c.b16 %v253_v29, %v252_v28  ;;  %v427_v3 = vld [vmem:[%s668_s2 + $0x8] sm:$0xff]  ;;  %v426_v4 = vld [vmem:[%s668_s2] sm:$0xff] }
  0x12   : > { %v260_v11 = vunpack.c.l.b16 %v231_v7  ;;  %v249_v41 = vpack.c.bf16 %v241_v35, %v241_v35  ;;  %v317_v44 = vpack.c.b16 %v316_v39, %v315_v38  ;;  %v345_v45 = vunpack.c.l.b16 %v248_v40  ;;  %v441_v6 = vld [vmem:[%s669_s3 + $0x8] sm:$0xff] }
  0x13   : > { %v264_v12 = vpack.c.b16 %v262_v9, %v261_v8  ;;  %v565_v5 = vmov 0  }
  0x14   : > { %v263_v13 = vpack.c.b16 %v260_v11, %v259_v10  ;;  %v346_v46 = vunpack.c.l.b16 %v249_v41  ;;  %547 = vset.pattern.permute.xlu1 %v565_v5  ;;  %546 = vset.pattern.permute.xlu0 %v565_v5 }
  0x15   : > { %267 = vrot.lane.b32.xlu1 %v264_v12, %s562_s24  ;;  %320 = vrot.lane.b32.xlu0 %v264_v12, %s563_s25 }
  0x16   : > { %348 = vrot.lane.b32.xlu2 %v263_v13, %s564_s26  ;;  %305 = vmatpush.bf16.msra.mxu1 %v264_v12  ;;  %v347_v47 = vpack.c.b16 %v346_v46, %v345_v45 }
  0x17   : > { %548 = vset.pattern.permute.xlu2 %v565_v5 }
  0x1a   : > { %306 = vmatpush.bf16.msra.mxu1 %v263_v13 }
  0x1d   : > { %350 = vrot.lane.b32.xlu0 %v264_v12, %s564_s26  ;;  %318 = vrot.lane.b32.xlu1 %v263_v13, %s563_s25 }
  0x1e   : > { %265 = vrot.lane.b32.xlu2 %v263_v13, %s562_s24  ;;  %527 = vmatmul.msk.bf16.vlgmr.msra.gmra.mxu1 %vm271_vm0, %v293_v20 }
  0x70   : > { %v349_v21 = vpop.permute.xlu2 %348 }
  0x78   : > { %v266_v36 = vpop.permute.xlu2 %265 }
  0x87   : > { %v268_v30 = vpop.permute.xlu1 %267  ;;  %v321_v31 = vpop.permute.xlu0 %320 }
  0x88   : > { %333 = vmatpush.bf16.msra.mxu2 %v321_v31  ;;  %281 = vmatpush.bf16.msra.mxu0 %v268_v30 }
  0x8c   : > { %282 = vmatpush.bf16.msra.mxu0 %v266_v36 }
  0x8f   : > { %v351_v42 = vpop.permute.xlu0 %350  ;;  %v319_v43 = vpop.permute.xlu1 %318  ;;  %526 = vmatmul.msk.bf16.vlgmr.msra.gmra.mxu0 %vm271_vm0, %v254_v37 }
  0x90   : > { %334 = vmatpush.bf16.msra.mxu2 %v319_v43  ;;  %363 = vmatpush.bf16.msra.mxu3 %v351_v42 }
  0x93   : > { %528 = vmatmul.msk.bf16.vlgmr.msra.gmra.mxu2 %vm271_vm0, %v317_v44 }
  0x94   : > { %364 = vmatpush.bf16.msra.mxu3 %v349_v21 }
  0x97   : > { %529 = vmatmul.msk.bf16.vlgmr.msra.gmra.mxu3 %vm271_vm0, %v347_v47 }
  0x9b   : > { %v308_v49 = vpop.f32.mrf.mxu1 }
  0xa3   : > { %v310_v57 = vpop.f32.mrf.mxu1 }
 0x10c   : > { %v284_v48 = vpop.f32.mrf.mxu0 }
 0x10d   : > { %v309_v50 = vadd.f32 %v308_v49, %v284_v48 }
 0x114   : > { %v286_v56 = vpop.f32.mrf.mxu0 }
 0x115   : > { %v311_v60 = vadd.f32 %v310_v57, %v286_v56 }
 0x116   : > { %v336_v51 = vpop.f32.mrf.mxu2 }
 0x117   : > { %v341_v52 = vadd.f32 %v336_v51, %v309_v50 }
 0x11a   : > { %v366_v54 = vpop.f32.mrf.mxu3 }
 0x11b   : > { %v371_v55 = vadd.f32 %v366_v54, %v341_v52 }
 0x11d   : > { %v377_v58 = vmul.f32 %v549_v53, %v371_v55 }
 0x11e   : > { %v338_v59 = vpop.f32.mrf.mxu2 }
 0x11f   : > { %v380_v61 = vsel %vm379_vm1, %v377_v58, 0.0  ;;  %v342_v62 = vadd.f32 %v338_v59, %v311_v60 }
 0x120   : > { %381 = vadd.xlane.f32.xlu0 %v380_v61 }
 0x122   : > { %v368_v63 = vpop.f32.mrf.mxu3 }
 0x123   : > { %v372_v0 = vadd.f32 %v368_v63, %v342_v62 }
 0x125   : > { %v378_v1 = vmul.f32 %v549_v53, %v372_v0 }
 0x127   : > { %v383_v2 = vsel %vm379_vm1, %v378_v1, 0.0 }
 0x128   : > { %384 = vadd.xlane.f32.xlu1 %v383_v2 }
 0x134   : > { %430 = vperm.xlu0 %546, %v426_v4  }
 0x141   : > { %435 = vperm.xlu1 %547, %v427_v3  }
 0x149   : > { %449 = vperm.xlu1 %547, %v441_v6  }
 0x193   : > { %v382_v7 = vpop.xlane.xlu0 %381 }
 0x194   : > { %v386_v8 = vmul.f32 0.015625, %v382_v7 }
 0x196   : > { %v388_v9 = vsub.f32 %v371_v55, %v386_v8 }
 0x198   : > { %v390_v10 = vmul.f32 %v549_v53, %v388_v9 }
 0x19a   : > { %v392_v11 = vmul.f32 %v390_v10, %v390_v10 }
 0x19b   : > { %v385_v12 = vpop.xlane.xlu1 %384 }
 0x19c   : > { %v387_v13 = vmul.f32 0.015625, %v385_v12  ;;  %v394_v14 = vsel %vm379_vm1, %v392_v11, 0.0 }
 0x19d   : > { %395 = vadd.xlane.f32.xlu2 %v394_v14 }
 0x19e   : > { %v389_v15 = vsub.f32 %v372_v0, %v387_v13 }
 0x1a0   : > { %v391_v16 = vmul.f32 %v549_v53, %v389_v15 }
 0x1a2   : > { %v393_v17 = vmul.f32 %v391_v16, %v391_v16 }
 0x1a4   : > { %v397_v18 = vsel %vm379_vm1, %v393_v17, 0.0 }
 0x1a5   : > { %398 = vadd.xlane.f32.xlu2 %v397_v18 }
 0x1a6   : > { %v431_v36 = vpop.permute.xlu0 %430 }
 0x1b3   : > { %v436_v39 = vpop.permute.xlu1 %435 }
 0x1bb   : > { %v450_v50 = vpop.permute.xlu1 %449 }
 0x1bd   : > { %444 = vperm.xlu2 %548, %v440_v19  }
 0x210   : > { %v396_v20 = vpop.xlane.xlu2 %395 }
 0x211   : > { %v400_v21 = vmul.f32 0.015625, %v396_v20 }
 0x213   : > { %v402_v22 = vadd.f32 1e-05, %v400_v21 }
 0x215   : > { %550 = vrsqrt.f32 %v402_v22  ;;  %vm410_vm3 = vweird.f32 %v402_v22 }
 0x218   : > { %v399_v23 = vpop.xlane.xlu2 %398 }
 0x219   : > { %v401_v24 = vmul.f32 0.015625, %v399_v23 }
 0x21b   : > { %v551_v25 = vpop.eup %550  ;;  %v403_v26 = vadd.f32 1e-05, %v401_v24 }
 0x21c   : > { %v405_v27 = vmul.f32 %v551_v25, %v402_v22  ;;  %vm411_vm2 = vweird.f32 %v551_v25 }
 0x21d   : > { %552 = vrsqrt.f32 %v403_v26  ;;  %vm412_vm4 = vmor %vm410_vm3, %vm411_vm2  ;;  %vm420_vm6 = vweird.f32 %v403_v26 }
 0x21e   : > { %v406_v28 = vmul.f32 %v551_v25, %v405_v27 }
 0x220   : > { %v407_v29 = vmul.f32 0.5, %v406_v28  ;;  %v445_v40 = vpop.permute.xlu2 %444 }
 0x222   : > { %v408_v30 = vsub.f32 1.5, %v407_v29 }
 0x223   : > { %v553_v31 = vpop.eup %552 }
 0x224   : > { %v415_v32 = vmul.f32 %v553_v31, %v403_v26  ;;  %v409_v33 = vmul.f32 %v551_v25, %v408_v30  ;;  %vm421_vm5 = vweird.f32 %v553_v31 }
 0x225   : > { %vm422_vm7 = vmor %vm420_vm6, %vm421_vm5 }
 0x226   : > { %v416_v34 = vmul.f32 %v553_v31, %v415_v32  ;;  %v413_v35 = vsel %vm412_vm4, %v551_v25, %v409_v33 }
 0x227   : > { %v424_v37 = vmul.f32 %v413_v35, %v388_v9 }
 0x228   : > { %v417_v38 = vmul.f32 0.5, %v416_v34 }
 0x229   : > { %v438_v41 = vmul.f32 %v431_v36, %v424_v37 }
 0x22a   : > { %v418_v42 = vsub.f32 1.5, %v417_v38 }
 0x22b   : > { %v452_v43 = vadd.f32 %v445_v40, %v438_v41 }
 0x22c   : > { %v419_v44 = vmul.f32 %v553_v31, %v418_v42 }
 0x22d   : > { %vm454_vm8 = vcmp.ge.f32.partialorder %v452_v43, 0.0  ;;  %v456_v45 = vmul.f32 0.01, %v452_v43 }
 0x22e   : > { %v423_v46 = vsel %vm422_vm7, %v553_v31, %v419_v44 }
 0x22f   : > { %v425_v47 = vmul.f32 %v423_v46, %v389_v15  ;;  %v458_v48 = vsel %vm454_vm8, %v452_v43, %v456_v45 }
 0x230   : > { %460 = vst.msk [vmem:[%s224_s8] sm:$0xff] %vm379_vm1, %v458_v48 }
 0x231   : > { %v439_v49 = vmul.f32 %v436_v39, %v425_v47 }
 0x233   : > { %v453_v51 = vadd.f32 %v450_v50, %v439_v49 }
 0x235   : > { %vm455_vm9 = vcmp.ge.f32.partialorder %v453_v51, 0.0  ;;  %v457_v52 = vmul.f32 0.01, %v453_v51 }
 0x237   : > { %v459_v53 = vsel %vm455_vm9, %v453_v51, %v457_v52 }
 0x238   : > { %461 = vst.msk [vmem:[%s224_s8 + $0x8] sm:$0xff] %vm379_vm1, %v459_v53 }
 0x239 PF: > { %s15_s18 = sadd.s32 1, %s560_s18  }
 0x23a   : > { %p12_p4 = scmp.ge.s32.totalorder %s15_s18, 4  }
 0x23c   :  { %14 = sbr.rel (!%p12_p4) target bundleno = 1 (0x1), region = 70 }

// kernel: residual_unet_forward.23
= control target key start
LH: loop header
LB: loop body
LE: loop exit
PB: predicated region body
PF: predicated region fallthrough
CT: control target
= control target key end

     0   :  { %s818_s21 = smov 0   ;;  %s927_s0 = inlined_call_operand.vmem [shape: f32[2,16,110], index: 0, kind: input, shape index: {}]   ;;  %s928_s1 = inlined_call_operand.vmem [shape: f32[144,16], index: 1, kind: input, shape index: {}]   ;;  %s929_s2 = inlined_call_operand.vmem [shape: f32[16,1], index: 2, kind: input, shape index: {}]   ;;  %s930_s3 = inlined_call_operand.vmem [shape: f32[16,1], index: 3, kind: input, shape index: {}]   ;;  %s931_s4 = inlined_call_operand.vmem [shape: f32[1,80], index: 4, kind: input, shape index: {}]   ;;  %s932_s5 = inlined_call_operand.vmem [shape: f32[2,16,80], index: 5, kind: input, shape index: {}]   ;;  %s933_s6 = inlined_call_operand.vmem [shape: f32[2,16,80], index: 6, kind: output, shape index: {}]  }
   0x1 LB: > { %s716_s22 = sadd.s32 4294967295, %s772_s21   ;;  %p720_p0 = scmp.ge.s32.totalorder %s772_s21, 1  ;;  %s772_s21 = sphi %s818_s21, %s16_s21  }
   0x2   : > { %p222_p1 = scmp.lt.s32.totalorder %s772_s21, 3 }
   0x4   : > { %p223_p2 = pnand %p720_p0, %p222_p1 }
   0x5   : > { %p257_p3 = scmp.lt.s32.totalorder (!%p223_p2), %s716_s22, 1  ;;  %s774_s27 = smov (!%p223_p2), 118  }
   0x6   : > { %226 = sbr.rel (%p223_p2) target bundleno = 587 (0x24b), region = 44  ;;  %s775_s28 = smov (!%p223_p2), 127  }
   0x7   : > { %s776_s29 = smov (!%p223_p2), 108   ;;  %s777_s30 = smov (!%p223_p2), 117  }
   0x8   : > { %s778_s7 = smov (!%p223_p2), 126   ;;  %s779_s8 = smov (!%p223_p2), 107  }
   0x9   : > { %s780_s9 = smov (!%p223_p2), 116   ;;  %s781_s10 = smov (!%p223_p2), 106  }
   0xb   : > { %s935_s22 = smov (!%p257_p3, %s716_s22), 1  ;;  %v277_v7 = vld [vmem:[%s928_s1] sm:$0xff]  ;;  %v278_v8 = vld [vmem:[%s928_s1 + $0x8] sm:$0xff]  ;;  %vm326_vm0 = vcmask 130048   ;;  %v279_v14 = vld [vmem:[%s928_s1 + $0x10] sm:$0xff]  ;;  %vm562_vm1 = vcmask 654336  }
   0xc   : > { %s826_s23 = sshll.u32 %s935_s22, 4  ;;  %v295_v9 = vpack.c.bf16 %v277_v7, %v277_v7  ;;  %v296_v10 = vpack.c.bf16 %v278_v8, %v278_v8  ;;  %v280_v15 = vld [vmem:[%s928_s1 + $0x18] sm:$0xff]  ;;  %v283_v17 = vld [vmem:[%s928_s1 + $0x30] sm:$0xff]  ;;  %v297_v19 = vpack.c.bf16 %v279_v14, %v279_v14  ;;  %v281_v27 = vld [vmem:[%s928_s1 + $0x20] sm:$0xff] }
   0xd   : > { %s261_s26 = scalar_lea.vmem %s927_s0, %s826_s23  ;;  %v284_v18 = vld [vmem:[%s928_s1 + $0x38] sm:$0xff]  ;;  %v298_v20 = vpack.c.bf16 %v280_v15, %v280_v15  ;;  %v301_v21 = vpack.c.bf16 %v283_v17, %v283_v17  ;;  %v282_v28 = vld [vmem:[%s928_s1 + $0x28] sm:$0xff]  ;;  %v299_v29 = vpack.c.bf16 %v281_v27, %v281_v27  ;;  %v285_v38 = vld [vmem:[%s928_s1 + $0x40] sm:$0xff]  ;;  %s266_s15 = scalar_lea.vmem %s932_s5, %s826_s23 }
   0xe   : > { %v273_v0 = vld [vmem:[%s261_s26] sm:$0xff]  ;;  %v274_v1 = vld [vmem:[%s261_s26 + $0x8] sm:$0xff]  ;;  %v346_v11 = vunpack.c.l.b16 %v295_v9  ;;  %v347_v12 = vunpack.c.l.b16 %v296_v10  ;;  %v302_v22 = vpack.c.bf16 %v284_v18, %v284_v18  ;;  %v315_v23 = vunpack.c.l.b16 %v297_v19  ;;  %v287_v40 = vld [vmem:[%s928_s1 + $0x50] sm:$0xff]  ;;  %s271_s18 = scalar_lea.vmem %s933_s6, %s826_s23 }
   0xf   : > { %v275_v2 = vpack.c.bf16 %v273_v0, %v273_v0  ;;  %v276_v3 = vpack.c.bf16 %v274_v1, %v274_v1  ;;  %v316_v24 = vunpack.c.l.b16 %v298_v20  ;;  %v396_v25 = vunpack.c.l.b16 %v301_v21  ;;  %v286_v39 = vld [vmem:[%s928_s1 + $0x48] sm:$0xff]  ;;  %v288_v41 = vld [vmem:[%s928_s1 + $0x58] sm:$0xff]  ;;  %v291_v42 = vld [vmem:[%s928_s1 + $0x70] sm:$0xff] }
  0x10   : > { %v348_v13 = vpack.c.b16 %v347_v12, %v346_v11  ;;  %v397_v26 = vunpack.c.l.b16 %v302_v22  ;;  %v300_v30 = vpack.c.bf16 %v282_v28, %v282_v28  ;;  %v369_v36 = vunpack.c.l.b16 %v299_v29  ;;  %v292_v43 = vld [vmem:[%s928_s1 + $0x78] sm:$0xff]  ;;  %v289_v59 = vld [vmem:[%s928_s1 + $0x60] sm:$0xff]  ;;  %v290_v60 = vld [vmem:[%s928_s1 + $0x68] sm:$0xff] }
  0x11   : > { %v320_v4 = vunpack.c.l.b16 %v275_v2  ;;  %v321_v5 = vunpack.c.l.b16 %v276_v3  ;;  %v317_v34 = vpack.c.b16 %v316_v24, %v315_v23  ;;  %v303_v47 = vpack.c.bf16 %v285_v38, %v285_v38  ;;  %v294_v7 = vld [vmem:[%s928_s1 + $0x88] sm:$0xff] }
  0x12   : > { %v398_v35 = vpack.c.b16 %v397_v26, %v396_v25  ;;  %v370_v37 = vunpack.c.l.b16 %v300_v30  ;;  %v304_v48 = vpack.c.bf16 %v286_v39, %v286_v39  ;;  %v305_v49 = vpack.c.bf16 %v287_v40, %v287_v40  ;;  %v761_v40 = vld [vmem:[%s931_s4] ss:$0 sm:$0xff] }
  0x13   : > { %v322_v6 = vpack.c.b16 %v321_v5, %v320_v4  ;;  %v306_v50 = vpack.c.bf16 %v288_v41, %v288_v41  ;;  %v309_v51 = vpack.c.bf16 %v291_v42, %v291_v42  ;;  %v310_v52 = vpack.c.bf16 %v292_v43, %v292_v43 }
  0x14   : > { %v371_v44 = vpack.c.b16 %v370_v37, %v369_v36  ;;  %v423_v53 = vunpack.c.l.b16 %v303_v47  ;;  %v424_v54 = vunpack.c.l.b16 %v304_v48  ;;  %v450_v55 = vunpack.c.l.b16 %v305_v49 }
  0x15   : > { %399 = vrot.lane.b32.xlu1 %v322_v6, %s774_s27  ;;  %323 = vrot.lane.b32.xlu0 %v322_v6, %s775_s28  ;;  %v451_v56 = vunpack.c.l.b16 %v306_v50  ;;  %v504_v57 = vunpack.c.l.b16 %v309_v51  ;;  %v505_v58 = vunpack.c.l.b16 %v310_v52  ;;  %v307_v1 = vpack.c.bf16 %v289_v59, %v289_v59 }
  0x16   : > { %480 = vrot.lane.b32.xlu2 %v322_v6, %s776_s29  ;;  %360 = vmatpush.bf16.msra.mxu1 %v322_v6  ;;  %v425_v62 = vpack.c.b16 %v424_v54, %v423_v53  ;;  %v308_v2 = vpack.c.bf16 %v290_v60, %v290_v60  ;;  %v312_v10 = vpack.c.bf16 %v294_v7, %v294_v7  ;;  %v782_v23 = vmov 0   ;;  %v609_v54 = vld [vmem:[%s929_s2] sm:$0xff] }
  0x17   : > { %v452_v0 = vpack.c.b16 %v451_v56, %v450_v55  ;;  %v506_v3 = vpack.c.b16 %v505_v58, %v504_v57  ;;  %v477_v4 = vunpack.c.l.b16 %v307_v1  ;;  %758 = vset.pattern.permute.xlu2 %v782_v23  ;;  %760 = vset.pattern.permute.xlu1 %v782_v23 }
  0x18   : > { %v478_v5 = vunpack.c.l.b16 %v308_v2  ;;  %v532_v12 = vunpack.c.l.b16 %v312_v10  ;;  %759 = vset.pattern.permute.xlu0 %v782_v23 }
  0x19   : > { %728 = vmatmul.msk.bf16.vlgmr.msra.gmra.mxu1 %vm326_vm0, %v348_v13 }
  0x1a   : > { %v479_v8 = vpack.c.b16 %v478_v5, %v477_v4  ;;  %v623_v4 = vld [vmem:[%s930_s3] sm:$0xff]  ;;  %v624_v5 = vld [vmem:[%s930_s3 + $0x8] sm:$0xff] }
  0x1d   : > { %426 = vrot.lane.b32.xlu1 %v322_v6, %s777_s30  ;;  %372 = vrot.lane.b32.xlu0 %v322_v6, %s778_s7 }
  0x1e   : > { %507 = vrot.lane.b32.xlu2 %v322_v6, %s779_s8 }
  0x25   : > { %453 = vrot.lane.b32.xlu0 %v322_v6, %s780_s9  ;;  %534 = vrot.lane.b32.xlu1 %v322_v6, %s781_s10  ;;  %v293_v6 = vld [vmem:[%s928_s1 + $0x80] sm:$0xff] }
  0x26   : > { %v311_v9 = vpack.c.bf16 %v293_v6, %v293_v6 }
  0x28   : > { %v531_v11 = vunpack.c.l.b16 %v311_v9 }
  0x2a   : > { %v533_v13 = vpack.c.b16 %v532_v12, %v531_v11 }
  0x70   : > { %v481_v16 = vpop.permute.xlu2 %480 }
  0x78   : > { %v508_v31 = vpop.permute.xlu2 %507 }
  0x87   : > { %v400_v32 = vpop.permute.xlu1 %399  ;;  %v324_v33 = vpop.permute.xlu0 %323 }
  0x88   : > { %337 = vmatpush.bf16.msra.mxu0 %v324_v33  ;;  %412 = vmatpush.bf16.msra.mxu3 %v400_v32 }
  0x8b   : > { %727 = vmatmul.msk.bf16.vlgmr.msra.gmra.mxu0 %vm326_vm0, %v317_v34  ;;  %730 = vmatmul.msk.bf16.vlgmr.msra.gmra.mxu3 %vm326_vm0, %v398_v35 }
  0x8c   : > { %520 = vmatpush.bf16.msrb.mxu3 %v508_v31 }
  0x8f   : > { %v427_v45 = vpop.permute.xlu1 %426  ;;  %v373_v46 = vpop.permute.xlu0 %372 }
  0x90   : > { %385 = vmatpush.bf16.msra.mxu2 %v373_v46  ;;  %439 = vmatpush.bf16.msrb.mxu0 %v427_v45 }
  0x93   : > { %729 = vmatmul.msk.bf16.vlgmr.msra.gmra.mxu2 %vm326_vm0, %v371_v44 }
  0x94   : > { %493 = vmatpush.bf16.msrb.mxu2 %v481_v16 }
  0x96   : > { %v362_v15 = vpop.f32.mrf.mxu1 }
  0x97   : > { %v454_v61 = vpop.permute.xlu0 %453  ;;  %v535_v63 = vpop.permute.xlu1 %534 }
  0x98   : > { %466 = vmatpush.bf16.msrb.mxu1 %v454_v61  ;;  %547 = vmatpush.bf16.msra.mxu0 %v535_v63  ;;  %v610_v63 = vld [vmem:[%s929_s2 + $0x8] sm:$0xff] }
  0x9b   : > { %731 = vmatmul.msk.bf16.vlgmr.msrb.gmra.mxu0 %vm326_vm0, %v425_v62  ;;  %732 = vmatmul.msk.bf16.vlgmr.msrb.gmra.mxu1 %vm326_vm0, %v452_v0 }
  0x9c   : > { %734 = vmatmul.msk.bf16.vlgmr.msrb.gmra.mxu3 %vm326_vm0, %v506_v3 }
  0x9e   : > { %v364_v20 = vpop.f32.mrf.mxu1 }
  0xa3   : > { %733 = vmatmul.msk.bf16.vlgmr.msrb.gmra.mxu2 %vm326_vm0, %v479_v8 }
  0xab   : > { %735 = vmatmul.msk.bf16.vlgmr.msra.gmra.mxu0 %vm326_vm0, %v533_v13 }
 0x108   : > { %v339_v14 = vpop.f32.mrf.mxu0 }
 0x109   : > { %v363_v19 = vadd.f32 %v362_v15, %v339_v14 }
 0x10e   : > { %v414_v17 = vpop.f32.mrf.mxu3 }
 0x110   : > { %v341_v16 = vpop.f32.mrf.mxu0 }
 0x111   : > { %v365_v27 = vadd.f32 %v364_v20, %v341_v16 }
 0x116   : > { %v387_v18 = vpop.f32.mrf.mxu2  ;;  %v416_v24 = vpop.f32.mrf.mxu3 }
 0x117   : > { %v392_v22 = vadd.f32 %v387_v18, %v363_v19 }
 0x118   : > { %v441_v21 = vpop.f32.mrf.mxu0  ;;  %v468_v28 = vpop.f32.mrf.mxu1 }
 0x119   : > { %v419_v25 = vadd.f32 %v414_v17, %v392_v22 }
 0x11b   : > { %v446_v30 = vadd.f32 %v441_v21, %v419_v25 }
 0x11d   : > { %v473_v32 = vadd.f32 %v468_v28, %v446_v30  ;;  %v637_v28 = vld [vmem:[%s266_s15] sm:$0xff] }
 0x11e   : > { %v389_v26 = vpop.f32.mrf.mxu2 }
 0x11f   : > { %v393_v31 = vadd.f32 %v389_v26, %v365_v27  ;;  %v522_v34 = vpop.f32.mrf.mxu3 }
 0x120   : > { %v443_v29 = vpop.f32.mrf.mxu0  ;;  %v470_v41 = vpop.f32.mrf.mxu1 }
 0x121   : > { %v420_v33 = vadd.f32 %v416_v24, %v393_v31 }
 0x123   : > { %v447_v38 = vadd.f32 %v443_v29, %v420_v33 }
 0x125   : > { %v474_v43 = vadd.f32 %v470_v41, %v447_v38 }
 0x126   : > { %v495_v35 = vpop.f32.mrf.mxu2 }
 0x127   : > { %v500_v36 = vadd.f32 %v495_v35, %v473_v32  ;;  %v524_v48 = vpop.f32.mrf.mxu3 }
 0x128   : > { %v549_v37 = vpop.f32.mrf.mxu0 }
 0x129   : > { %v527_v39 = vadd.f32 %v522_v34, %v500_v36 }
 0x12b   : > { %v554_v42 = vadd.f32 %v549_v37, %v527_v39  ;;  %v638_v39 = vld [vmem:[%s266_s15 + $0x8] sm:$0xff] }
 0x12d   : > { %v560_v44 = vmul.f32 %v761_v40, %v554_v42 }
 0x12e   : > { %v497_v45 = vpop.f32.mrf.mxu2 }
 0x12f   : > { %v501_v46 = vadd.f32 %v497_v45, %v474_v43  ;;  %v563_v47 = vsel %vm562_vm1, %v560_v44, 0.0 }
 0x130   : > { %564 = vadd.xlane.f32.xlu2 %v563_v47  ;;  %v551_v50 = vpop.f32.mrf.mxu0 }
 0x131   : > { %v528_v49 = vadd.f32 %v524_v48, %v501_v46 }
 0x133   : > { %v555_v51 = vadd.f32 %v551_v50, %v528_v49 }
 0x135   : > { %v561_v52 = vmul.f32 %v761_v40, %v555_v51 }
 0x137   : > { %v566_v53 = vsel %vm562_vm1, %v561_v52, 0.0 }
 0x138   : > { %567 = vadd.xlane.f32.xlu0 %v566_v53 }
 0x148   : > { %613 = vperm.xlu2 %758, %v609_v54  }
 0x14c   : > { %618 = vperm.xlu0 %759, %v610_v63  }
 0x1a3   : > { %v565_v55 = vpop.xlane.xlu2 %564 }
 0x1a4   : > { %v569_v56 = vmul.f32 0.015625, %v565_v55 }
 0x1a6   : > { %v571_v57 = vsub.f32 %v554_v42, %v569_v56 }
 0x1a8   : > { %v573_v58 = vmul.f32 %v761_v40, %v571_v57 }
 0x1aa   : > { %v575_v59 = vmul.f32 %v573_v58, %v573_v58 }
 0x1ab   : > { %v568_v60 = vpop.xlane.xlu0 %567  ;;  %v614_v6 = vpop.permute.xlu2 %613 }
 0x1ac   : > { %v570_v61 = vmul.f32 0.015625, %v568_v60  ;;  %v577_v62 = vsel %vm562_vm1, %v575_v59, 0.0 }
 0x1ad   : > { %578 = vadd.xlane.f32.xlu1 %v577_v62 }
 0x1ae   : > { %v572_v0 = vsub.f32 %v555_v51, %v570_v61 }
 0x1b0   : > { %v574_v1 = vmul.f32 %v761_v40, %v572_v0 }
 0x1b2   : > { %v576_v2 = vmul.f32 %v574_v1, %v574_v1 }
 0x1b4   : > { %v580_v3 = vsel %vm562_vm1, %v576_v2, 0.0 }
 0x1b5   : > { %581 = vadd.xlane.f32.xlu2 %v580_v3 }
 0x1be   : > { %v619_v32 = vpop.permute.xlu0 %618 }
 0x1c6   : > { %627 = vperm.xlu1 %760, %v623_v4  }
 0x1cd   : > { %632 = vperm.xlu2 %758, %v624_v5  }
 0x220   : > { %v579_v7 = vpop.xlane.xlu1 %578 }
 0x221   : > { %v583_v8 = vmul.f32 0.015625, %v579_v7 }
 0x223   : > { %v585_v9 = vadd.f32 1e-05, %v583_v8 }
 0x225   : > { %762 = vrsqrt.f32 %v585_v9  ;;  %vm593_vm3 = vweird.f32 %v585_v9 }
 0x228   : > { %v582_v10 = vpop.xlane.xlu2 %581 }
 0x229   : > { %v584_v11 = vmul.f32 0.015625, %v582_v10 }
 0x22b   : > { %v763_v12 = vpop.eup %762  ;;  %v586_v13 = vadd.f32 1e-05, %v584_v11 }
 0x22c   : > { %v588_v14 = vmul.f32 %v763_v12, %v585_v9  ;;  %vm594_vm2 = vweird.f32 %v763_v12 }
 0x22d   : > { %764 = vrsqrt.f32 %v586_v13  ;;  %vm595_vm4 = vmor %vm593_vm3, %vm594_vm2  ;;  %vm603_vm6 = vweird.f32 %v586_v13 }
 0x22e   : > { %v589_v15 = vmul.f32 %v763_v12, %v588_v14 }
 0x230   : > { %v590_v16 = vmul.f32 0.5, %v589_v15  ;;  %v633_v38 = vpop.permute.xlu2 %632 }
 0x232   : > { %v591_v17 = vsub.f32 1.5, %v590_v16 }
 0x233   : > { %v765_v18 = vpop.eup %764 }
 0x234   : > { %v598_v19 = vmul.f32 %v765_v18, %v586_v13  ;;  %v592_v20 = vmul.f32 %v763_v12, %v591_v17  ;;  %vm604_vm5 = vweird.f32 %v765_v18 }
 0x235   : > { %vm605_vm7 = vmor %vm603_vm6, %vm604_vm5 }
 0x236   : > { %v599_v21 = vmul.f32 %v765_v18, %v598_v19  ;;  %v596_v22 = vsel %vm595_vm4, %v763_v12, %v592_v20 }
 0x237   : > { %v607_v23 = vmul.f32 %v596_v22, %v571_v57 }
 0x238   : > { %v600_v24 = vmul.f32 0.5, %v599_v21  ;;  %v628_v25 = vpop.permute.xlu1 %627 }
 0x239   : > { %v621_v26 = vmul.f32 %v614_v6, %v607_v23 }
 0x23a   : > { %v601_v27 = vsub.f32 1.5, %v600_v24 }
 0x23b   : > { %v635_v29 = vadd.f32 %v628_v25, %v621_v26 }
 0x23c   : > { %v602_v30 = vmul.f32 %v765_v18, %v601_v27 }
 0x23d   : > { %v639_v31 = vadd.f32 %v637_v28, %v635_v29 }
 0x23e   : > { %v606_v33 = vsel %vm605_vm7, %v765_v18, %v602_v30 }
 0x23f   : > { %vm641_vm8 = vcmp.ge.f32.partialorder %v639_v31, 0.0  ;;  %v643_v34 = vmul.f32 0.01, %v639_v31  ;;  %v608_v35 = vmul.f32 %v606_v33, %v572_v0 }
 0x241   : > { %v645_v36 = vsel %vm641_vm8, %v639_v31, %v643_v34  ;;  %v622_v37 = vmul.f32 %v619_v32, %v608_v35 }
 0x242   : > { %647 = vst.msk [vmem:[%s271_s18] sm:$0xff] %vm562_vm1, %v645_v36 }
 0x243   : > { %v636_v40 = vadd.f32 %v633_v38, %v622_v37 }
 0x245   : > { %v640_v41 = vadd.f32 %v638_v39, %v636_v40 }
 0x247   : > { %vm642_vm9 = vcmp.ge.f32.partialorder %v640_v41, 0.0  ;;  %v644_v42 = vmul.f32 0.01, %v640_v41 }
 0x249   : > { %v646_v43 = vsel %vm642_vm9, %v640_v41, %v644_v42 }
 0x24a   : > { %648 = vst.msk [vmem:[%s271_s18 + $0x8] sm:$0xff] %vm562_vm1, %v646_v43 }
 0x24b PF: > { %s16_s21 = sadd.s32 1, %s772_s21  }
 0x24c   : > { %p13_p4 = scmp.ge.s32.totalorder %s16_s21, 4  }
 0x24e   :  { %15 = sbr.rel (!%p13_p4) target bundleno = 1 (0x1), region = 77 }

// kernel: residual_unet_forward.25
= control target key start
LH: loop header
LB: loop body
LE: loop exit
PB: predicated region body
PF: predicated region fallthrough
CT: control target
= control target key end

     0   :  { %s548_s15 = smov 0   ;;  %s639_s0 = inlined_call_operand.vmem [shape: f32[2,64,20], index: 0, kind: input, shape index: {}]   ;;  %s640_s1 = inlined_call_operand.vmem [shape: f32[32,64], index: 1, kind: input, shape index: {}]   ;;  %s641_s2 = inlined_call_operand.vmem [shape: f32[32,1], index: 2, kind: input, shape index: {}]   ;;  %s642_s3 = inlined_call_operand.vmem [shape: f32[32,1], index: 3, kind: input, shape index: {}]   ;;  %s643_s4 = inlined_call_operand.vmem [shape: f32[2,32,16], index: 4, kind: output, shape index: {}]  }
   0x1 LB: > { %s475_s16 = sadd.s32 4294967295, %s520_s15   ;;  %p479_p0 = scmp.ge.s32.totalorder %s520_s15, 1  ;;  %s520_s15 = sphi %s548_s15, %s14_s15  }
   0x2   : > { %p162_p1 = scmp.lt.s32.totalorder %s520_s15, 3 }
   0x4   : > { %p163_p2 = pnand %p479_p0, %p162_p1 }
   0x5   : > { %p188_p3 = scmp.lt.s32.totalorder (!%p163_p2), %s475_s16, 1 }
   0x6   : > { %166 = sbr.rel (%p163_p2) target bundleno = 504 (0x1f8), region = 36 }
   0xb   : > { %s645_s16 = smov (!%p188_p3, %s475_s16), 1  ;;  %v215_v27 = vld [vmem:[%s640_s1] sm:$0xff]  ;;  %v216_v29 = vld [vmem:[%s640_s1 + $0x8] sm:$0xff]  ;;  %v217_v30 = vld [vmem:[%s640_s1 + $0x10] sm:$0xff]  ;;  %vm245_vm0 = vcmask 523264   ;;  %v522_v34 = vmov 0  }
   0xc   : > { %s488_s17 = sshll.u32 %s645_s16, 6  ;;  %v218_v31 = vld [vmem:[%s640_s1 + $0x18] sm:$0xff]  ;;  %v219_v32 = vpack.c.bf16 %v216_v29, %v215_v27  ;;  %505 = vset.pattern.permute.xlu1 %v522_v34  ;;  %503 = vset.pattern.permute.xlu2 %v522_v34  ;;  %vm271_vm1 = vcmask 130048   ;;  %v360_v39 = vld [vmem:[%s641_s2] sm:$0xff]  ;;  %v362_v44 = vld [vmem:[%s641_s2 + $0x10] sm:$0xff]  ;;  %s489_s21 = sshll.u32 %s645_s16, 5 }
   0xd   : > { %s192_s20 = scalar_lea.vmem %s639_s0, %s488_s17  ;;  %v220_v33 = vpack.c.bf16 %v218_v31, %v217_v30  ;;  %504 = vset.pattern.permute.xlu0 %v522_v34  ;;  %366 = vperm.xlu2 %503, %v360_v39   ;;  %v389_v45 = vld [vmem:[%s642_s3 + $0x8] sm:$0xff]  ;;  %v363_v61 = vld [vmem:[%s641_s2 + $0x18] sm:$0xff]  ;;  %v388_v62 = vld [vmem:[%s642_s3] sm:$0xff]  ;;  %s622_s24 = scalar_lea.vmem %s643_s4, %s489_s21 }
   0xe   : > { %v205_v0 = vld [vmem:[%s192_s20 + $0x30] sm:$0xff]  ;;  %v206_v1 = vld [vmem:[%s192_s20 + $0x38] sm:$0xff]  ;;  %v203_v2 = vld [vmem:[%s192_s20 + $0x20] sm:$0xff] }
   0xf   : > { %v213_v3 = vpack.c.bf16 %v205_v0, %v205_v0  ;;  %v214_v4 = vpack.c.bf16 %v206_v1, %v206_v1  ;;  %v204_v5 = vld [vmem:[%s192_s20 + $0x28] sm:$0xff]  ;;  %v211_v6 = vpack.c.bf16 %v203_v2, %v203_v2  ;;  %v201_v7 = vld [vmem:[%s192_s20 + $0x10] sm:$0xff]  ;;  %v202_v8 = vld [vmem:[%s192_s20 + $0x18] sm:$0xff] }
  0x10   : > { %v212_v9 = vpack.c.bf16 %v204_v5, %v204_v5  ;;  %v209_v10 = vpack.c.bf16 %v201_v7, %v201_v7  ;;  %v210_v14 = vpack.c.bf16 %v202_v8, %v202_v8  ;;  %v199_v15 = vld [vmem:[%s192_s20] sm:$0xff]  ;;  %v200_v17 = vld [vmem:[%s192_s20 + $0x8] sm:$0xff]  ;;  %v391_v63 = vld [vmem:[%s642_s3 + $0x18] sm:$0xff] }
  0x11   : > { %v235_v11 = vunpack.c.l.b16 %v213_v3  ;;  %v236_v12 = vunpack.c.l.b16 %v214_v4  ;;  %v233_v13 = vunpack.c.l.b16 %v211_v6  ;;  %v207_v19 = vpack.c.bf16 %v199_v15, %v199_v15  ;;  %v361_v3 = vld [vmem:[%s641_s2 + $0x8] sm:$0xff]  ;;  %v390_v6 = vld [vmem:[%s642_s3 + $0x10] sm:$0xff] }
  0x12   : > { %v234_v16 = vunpack.c.l.b16 %v212_v9  ;;  %v231_v21 = vunpack.c.l.b16 %v209_v10  ;;  %v232_v22 = vunpack.c.l.b16 %v210_v14  ;;  %v208_v23 = vpack.c.bf16 %v200_v17, %v200_v17 }
  0x13   : > { %v240_v18 = vpack.c.b16 %v236_v12, %v235_v11  ;;  %v229_v25 = vunpack.c.l.b16 %v207_v19 }
  0x14   : > { %v239_v20 = vpack.c.b16 %v234_v16, %v233_v13  ;;  %v238_v24 = vpack.c.b16 %v232_v22, %v231_v21  ;;  %v230_v26 = vunpack.c.l.b16 %v208_v23 }
  0x15   : > { %256 = vmatpush.bf16.msra.mxu0 %v240_v18  ;;  %490 = vmatpush.bf16.msra.mxu1 %v240_v18 }
  0x16   : > { %v237_v28 = vpack.c.b16 %v230_v26, %v229_v25 }
  0x19   : > { %257 = vmatpush.bf16.msra.mxu0 %v239_v20  ;;  %491 = vmatpush.bf16.msra.mxu1 %v239_v20 }
  0x1d   : > { %258 = vmatpush.bf16.msra.mxu0 %v238_v24  ;;  %492 = vmatpush.bf16.msra.mxu1 %v238_v24 }
  0x21   : > { %259 = vmatpush.bf16.msra.mxu0 %v237_v28  ;;  %493 = vmatpush.bf16.msra.mxu1 %v237_v28 }
  0x24   : > { %484 = vmatmul.msk.bf16.vlgmr.msra.gmra.mxu0 %vm245_vm0, %v219_v32  ;;  %485 = vmatmul.msk.bf16.vlgmr.msra.gmra.mxu1 %vm245_vm0, %v220_v33 }
  0x67   : > { %v367_v8 = vpop.permute.xlu2 %366 }
  0xa1   : > { %v261_v35 = vpop.f32.mrf.mxu0  ;;  %v266_v36 = vpop.f32.mrf.mxu1 }
  0xa2   : > { %v278_v37 = vsel %vm271_vm1, %v266_v36, 0.0  ;;  %v272_v38 = vsel %vm271_vm1, %v261_v35, 0.0 }
  0xa3   : > { %279 = vadd.xlane.f32.xlu1 %v278_v37  ;;  %273 = vadd.xlane.f32.xlu0 %v272_v38 }
  0xa9   : > { %v263_v40 = vpop.f32.mrf.mxu0  ;;  %v268_v41 = vpop.f32.mrf.mxu1 }
  0xaa   : > { %v281_v42 = vsel %vm271_vm1, %v268_v41, 0.0  ;;  %v275_v43 = vsel %vm271_vm1, %v263_v40, 0.0 }
  0xab   : > { %282 = vadd.xlane.f32.xlu1 %v281_v42  ;;  %276 = vadd.xlane.f32.xlu0 %v275_v43 }
  0xc4   : > { %376 = vperm.xlu1 %505, %v362_v44  }
  0xcc   : > { %399 = vperm.xlu1 %505, %v389_v45  }
 0x116   : > { %v280_v46 = vpop.xlane.xlu1 %279  ;;  %v274_v47 = vpop.xlane.xlu0 %273 }
 0x117   : > { %v286_v48 = vmul.f32 0.0625, %v280_v46  ;;  %v284_v49 = vmul.f32 0.0625, %v274_v47 }
 0x119   : > { %v587_v50 = vsub.f32 %v266_v36, %v286_v48  ;;  %v288_v51 = vsub.f32 %v261_v35, %v284_v49 }
 0x11b   : > { %v292_v52 = vmul.f32 %v288_v51, %v288_v51  ;;  %v294_v53 = vmul.f32 %v587_v50, %v587_v50 }
 0x11d   : > { %v296_v54 = vsel %vm271_vm1, %v292_v52, 0.0  ;;  %v302_v55 = vsel %vm271_vm1, %v294_v53, 0.0 }
 0x11e   : > { %v283_v56 = vpop.xlane.xlu1 %282  ;;  %297 = vadd.xlane.f32.xlu2 %v296_v54  ;;  %303 = vadd.xlane.f32.xlu0 %v302_v55  ;;  %v277_v0 = vpop.xlane.xlu0 %276 }
 0x11f   : > { %v287_v57 = vmul.f32 0.0625, %v283_v56  ;;  %v285_v1 = vmul.f32 0.0625, %v277_v0 }
 0x121   : > { %v291_v58 = vsub.f32 %v268_v41, %v287_v57  ;;  %v603_v2 = vsub.f32 %v263_v40, %v285_v1 }
 0x123   : > { %v295_v59 = vmul.f32 %v291_v58, %v291_v58  ;;  %v293_v4 = vmul.f32 %v603_v2, %v603_v2 }
 0x125   : > { %v305_v60 = vsel %vm271_vm1, %v295_v59, 0.0  ;;  %v299_v5 = vsel %vm271_vm1, %v293_v4, 0.0 }
 0x126   : > { %306 = vadd.xlane.f32.xlu1 %v305_v60 }
 0x132   : > { %371 = vperm.xlu0 %504, %v361_v3  }
 0x136   : > { %381 = vperm.xlu2 %503, %v363_v61   ;;  %v614_v7 = vpop.permute.xlu1 %376 }
 0x13e   : > { %394 = vperm.xlu2 %503, %v388_v62   ;;  %v616_v9 = vpop.permute.xlu1 %399 }
 0x13f   : > { %409 = vperm.xlu1 %505, %v391_v63  }
 0x167   : > { %300 = vadd.xlane.f32.xlu2 %v299_v5 }
 0x17f   : > { %404 = vperm.xlu2 %503, %v390_v6  }
 0x191   : > { %v298_v10 = vpop.xlane.xlu2 %297  ;;  %v304_v36 = vpop.xlane.xlu0 %303 }
 0x192   : > { %v308_v11 = vmul.f32 0.0625, %v298_v10  ;;  %v310_v40 = vmul.f32 0.0625, %v304_v36 }
 0x194   : > { %v312_v12 = vadd.f32 1e-05, %v308_v11  ;;  %v314_v41 = vadd.f32 1e-05, %v310_v40 }
 0x196   : > { %506 = vrsqrt.f32 %v312_v12  ;;  %vm322_vm3 = vweird.f32 %v312_v12  ;;  %vm342_vm9 = vweird.f32 %v314_v41 }
 0x199   : > { %v307_v13 = vpop.xlane.xlu1 %306  ;;  %v382_v20 = vpop.permute.xlu2 %381 }
 0x19a   : > { %v311_v14 = vmul.f32 0.0625, %v307_v13 }
 0x19c   : > { %v507_v15 = vpop.eup %506  ;;  %v315_v16 = vadd.f32 1e-05, %v311_v14 }
 0x19d   : > { %v317_v17 = vmul.f32 %v507_v15, %v312_v12  ;;  %vm323_vm2 = vweird.f32 %v507_v15 }
 0x19e   : > { %508 = vrsqrt.f32 %v315_v16  ;;  %vm324_vm4 = vmor %vm322_vm3, %vm323_vm2  ;;  %vm352_vm6 = vweird.f32 %v315_v16 }
 0x19f   : > { %v318_v18 = vmul.f32 %v507_v15, %v317_v17  ;;  %510 = vrsqrt.f32 %v314_v41 }
 0x1a1   : > { %v319_v19 = vmul.f32 0.5, %v318_v18  ;;  %v395_v31 = vpop.permute.xlu2 %394 }
 0x1a3   : > { %v320_v21 = vsub.f32 1.5, %v319_v19 }
 0x1a4   : > { %v509_v22 = vpop.eup %508  ;;  %v372_v0 = vpop.permute.xlu0 %371 }
 0x1a5   : > { %v347_v23 = vmul.f32 %v509_v22, %v315_v16  ;;  %v321_v24 = vmul.f32 %v507_v15, %v320_v21  ;;  %vm353_vm5 = vweird.f32 %v509_v22  ;;  %v511_v42 = vpop.eup %510 }
 0x1a6   : > { %vm354_vm7 = vmor %vm352_vm6, %vm353_vm5  ;;  %v337_v43 = vmul.f32 %v511_v42, %v314_v41  ;;  %vm343_vm8 = vweird.f32 %v511_v42 }
 0x1a7   : > { %v348_v25 = vmul.f32 %v509_v22, %v347_v23  ;;  %v325_v26 = vsel %vm324_vm4, %v507_v15, %v321_v24  ;;  %vm344_vm10 = vmor %vm342_vm9, %vm343_vm8 }
 0x1a8   : > { %v356_v27 = vmul.f32 %v325_v26, %v288_v51  ;;  %v338_v44 = vmul.f32 %v511_v42, %v337_v43 }
 0x1a9   : > { %v349_v28 = vmul.f32 0.5, %v348_v25 }
 0x1aa   : > { %v384_v29 = vmul.f32 %v367_v8, %v356_v27  ;;  %v339_v45 = vmul.f32 0.5, %v338_v44 }
 0x1ab   : > { %v350_v30 = vsub.f32 1.5, %v349_v28 }
 0x1ac   : > { %v412_v32 = vadd.f32 %v395_v31, %v384_v29  ;;  %v340_v46 = vsub.f32 1.5, %v339_v45 }
 0x1ad   : > { %v351_v33 = vmul.f32 %v509_v22, %v350_v30 }
 0x1ae   : > { %416 = vst.msk [vmem:[%s622_s24] sm:$0xff] %vm271_vm1, %v412_v32  ;;  %v341_v47 = vmul.f32 %v511_v42, %v340_v46 }
 0x1af   : > { %v355_v34 = vsel %vm354_vm7, %v509_v22, %v351_v33 }
 0x1b0   : > { %v359_v35 = vmul.f32 %v355_v34, %v291_v58  ;;  %v345_v49 = vsel %vm344_vm10, %v511_v42, %v341_v47 }
 0x1b1   : > { %v410_v38 = vpop.permute.xlu1 %409  ;;  %v358_v53 = vmul.f32 %v345_v49, %v587_v50 }
 0x1b2   : > { %v387_v37 = vmul.f32 %v382_v20, %v359_v35 }
 0x1b3   : > { %v386_v54 = vmul.f32 %v614_v7, %v358_v53 }
 0x1b4   : > { %v415_v39 = vadd.f32 %v410_v38, %v387_v37 }
 0x1b6   : > { %419 = vst.msk [vmem:[%s622_s24 + $0x18] sm:$0xff] %vm271_vm1, %v415_v39 }
 0x1da   : > { %v301_v48 = vpop.xlane.xlu2 %300 }
 0x1db   : > { %v309_v51 = vmul.f32 0.0625, %v301_v48 }
 0x1dd   : > { %v313_v52 = vadd.f32 1e-05, %v309_v51 }
 0x1df   : > { %512 = vrsqrt.f32 %v313_v52  ;;  %vm332_vm12 = vweird.f32 %v313_v52 }
 0x1e2   : > { %v405_v55 = vpop.permute.xlu2 %404 }
 0x1e3   : > { %v414_v56 = vadd.f32 %v405_v55, %v386_v54 }
 0x1e5   : > { %v513_v57 = vpop.eup %512  ;;  %418 = vst.msk [vmem:[%s622_s24 + $0x10] sm:$0xff] %vm271_vm1, %v414_v56 }
 0x1e6   : > { %v327_v58 = vmul.f32 %v513_v57, %v313_v52  ;;  %vm333_vm11 = vweird.f32 %v513_v57 }
 0x1e7   : > { %vm334_vm13 = vmor %vm332_vm12, %vm333_vm11 }
 0x1e8   : > { %v328_v59 = vmul.f32 %v513_v57, %v327_v58 }
 0x1ea   : > { %v329_v60 = vmul.f32 0.5, %v328_v59 }
 0x1ec   : > { %v330_v61 = vsub.f32 1.5, %v329_v60 }
 0x1ee   : > { %v331_v62 = vmul.f32 %v513_v57, %v330_v61 }
 0x1f0   : > { %v335_v63 = vsel %vm334_vm13, %v513_v57, %v331_v62 }
 0x1f1   : > { %v357_v50 = vmul.f32 %v335_v63, %v603_v2 }
 0x1f3   : > { %v385_v1 = vmul.f32 %v372_v0, %v357_v50 }
 0x1f5   : > { %v413_v3 = vadd.f32 %v616_v9, %v385_v1 }
 0x1f7   : > { %417 = vst.msk [vmem:[%s622_s24 + $0x8] sm:$0xff] %vm271_vm1, %v413_v3 }
 0x1f8 PF: > { %s14_s15 = sadd.s32 1, %s520_s15  }
 0x1f9   : > { %p11_p4 = scmp.ge.s32.totalorder %s14_s15, 4  }
 0x1fb   :  { %13 = sbr.rel (!%p11_p4) target bundleno = 1 (0x1), region = 66 }

// kernel: tile.83
= control target key start
LH: loop header
LB: loop body
LE: loop exit
PB: predicated region body
PF: predicated region fallthrough
CT: control target
= control target key end

     0   :  { %s22_s0 = inlined_call_operand.vmem [shape: f32[5], index: 0, kind: input, shape index: {}]   ;;  %s23_s1 = inlined_call_operand.vmem [shape: f32[4,5], index: 1, kind: output, shape index: {}]  }
   0x1   :  { %v4_v0 = vld [vmem:[%s22_s0] ss:$0 sm:$0xff] }
   0x2   :  { %5 = vst [vmem:[%s23_s1] sm:$0xf] %v4_v0 }

// kernel: tile.84
= control target key start
LH: loop header
LB: loop body
LE: loop exit
PB: predicated region body
PF: predicated region fallthrough
CT: control target
= control target key end

     0   :  { %s37_s8 = smov 5   ;;  %s38_s9 = smov 10   ;;  %vm7_vm0 = vcmask 39936   ;;  %vm13_vm1 = vcmask 162936   ;;  %vm19_vm2 = vcmask 121936   ;;  %vm25_vm3 = vcmask 80936   ;;  %s55_s0 = inlined_call_operand.vmem [shape: f32[4,5], index: 0, kind: input, shape index: {}]   ;;  %s56_s1 = inlined_call_operand.vmem [shape: f32[1,20], index: 1, kind: output, shape index: {}]  }
   0x1   :  { %v4_v0 = vld [vmem:[%s55_s0] sm:$0xf]  ;;  %s36_s0 = smov 15  }
   0x2   :  { %5 = vst [vmem:[#allocation1] sm:$0xf] %v4_v0 }
   0x9   :  { %v10_v1 = vld [vmem:[#allocation1 + $0x3] sm:$0x1]   ;;  %v22_v2 = vld [vmem:[#allocation1 + $0x1] sm:$0x1]   ;;  %v16_v3 = vld [vmem:[#allocation1 + $0x2] sm:$0x1]  }
   0xa   :  { %11 = vrot.lane.b32.xlu0 %v10_v1, %s36_s0  ;;  %23 = vrot.lane.b32.xlu1 %v22_v2, %s37_s8  ;;  %v6_v4 = vld [vmem:[#allocation1] sm:$0x1]  }
   0xb   :  { %8 = vst.msk [vmem:[#allocation0] sm:$0x1] %vm7_vm0, %v6_v4  }
  0x12   :  { %17 = vrot.lane.b32.xlu0 %v16_v3, %s38_s9 }
  0x7c   :  { %v12_v5 = vpop.permute.xlu0 %11   ;;  %v24_v6 = vpop.permute.xlu1 %23  }
  0x7d   :  { %14 = vst.msk [vmem:[#allocation0] sm:$0x1] %vm13_vm1, %v12_v5  }
  0x84   :  { %v18_v7 = vpop.permute.xlu0 %17  }
  0x85   :  { %20 = vst.msk [vmem:[#allocation0] sm:$0x1] %vm19_vm2, %v18_v7  }
  0x86   :  { %26 = vst.msk [vmem:[#allocation0] sm:$0x1] %vm25_vm3, %v24_v6  }
  0x8d   :  { %v29_v8 = vld [vmem:[#allocation0] sm:$0x1] }
  0x8e   :  { %32 = vst [vmem:[%s56_s1] sm:$0x1] %v29_v8 }

// kernel: tile.88
= control target key start
LH: loop header
LB: loop body
LE: loop exit
PB: predicated region body
PF: predicated region fallthrough
CT: control target
= control target key end

     0   :  { %s22_s0 = inlined_call_operand.vmem [shape: f32[6], index: 0, kind: input, shape index: {}]   ;;  %s23_s1 = inlined_call_operand.vmem [shape: f32[4,6], index: 1, kind: output, shape index: {}]  }
   0x1   :  { %v4_v0 = vld [vmem:[%s22_s0] ss:$0 sm:$0xff] }
   0x2   :  { %5 = vst [vmem:[%s23_s1] sm:$0xf] %v4_v0 }

// kernel: tile.89
= control target key start
LH: loop header
LB: loop body
LE: loop exit
PB: predicated region body
PF: predicated region fallthrough
CT: control target
= control target key end

     0   :  { %s37_s8 = smov 6   ;;  %s38_s9 = smov 12   ;;  %vm7_vm0 = vcmask 48128   ;;  %vm13_vm1 = vcmask 195728   ;;  %vm19_vm2 = vcmask 146528   ;;  %vm25_vm3 = vcmask 97328   ;;  %s55_s0 = inlined_call_operand.vmem [shape: f32[4,6], index: 0, kind: input, shape index: {}]   ;;  %s56_s1 = inlined_call_operand.vmem [shape: f32[1,24], index: 1, kind: output, shape index: {}]  }
   0x1   :  { %v4_v0 = vld [vmem:[%s55_s0] sm:$0xf]  ;;  %s36_s0 = smov 18  }
   0x2   :  { %5 = vst [vmem:[#allocation1] sm:$0xf] %v4_v0 }
   0x9   :  { %v10_v1 = vld [vmem:[#allocation1 + $0x3] sm:$0x1]   ;;  %v22_v2 = vld [vmem:[#allocation1 + $0x1] sm:$0x1]   ;;  %v16_v3 = vld [vmem:[#allocation1 + $0x2] sm:$0x1]  }
   0xa   :  { %11 = vrot.lane.b32.xlu0 %v10_v1, %s36_s0  ;;  %23 = vrot.lane.b32.xlu1 %v22_v2, %s37_s8  ;;  %v6_v4 = vld [vmem:[#allocation1] sm:$0x1]  }
   0xb   :  { %8 = vst.msk [vmem:[#allocation0] sm:$0x1] %vm7_vm0, %v6_v4  }
  0x12   :  { %17 = vrot.lane.b32.xlu0 %v16_v3, %s38_s9 }
  0x7c   :  { %v12_v5 = vpop.permute.xlu0 %11   ;;  %v24_v6 = vpop.permute.xlu1 %23  }
  0x7d   :  { %14 = vst.msk [vmem:[#allocation0] sm:$0x1] %vm13_vm1, %v12_v5  }
  0x84   :  { %v18_v7 = vpop.permute.xlu0 %17  }
  0x85   :  { %20 = vst.msk [vmem:[#allocation0] sm:$0x1] %vm19_vm2, %v18_v7  }
  0x86   :  { %26 = vst.msk [vmem:[#allocation0] sm:$0x1] %vm25_vm3, %v24_v6  }
  0x8d   :  { %v29_v8 = vld [vmem:[#allocation0] sm:$0x1] }
  0x8e   :  { %32 = vst [vmem:[%s56_s1] sm:$0x1] %v29_v8 }

// kernel: residual_unet_forward.24
= control target key start
LH: loop header
LB: loop body
LE: loop exit
PB: predicated region body
PF: predicated region fallthrough
CT: control target
= control target key end

     0   :  { %s798_s18 = smov 0   ;;  %s946_s0 = inlined_call_operand.vmem [shape: f32[2,64,30], index: 0, kind: input, shape index: {}]   ;;  %s947_s1 = inlined_call_operand.vmem [shape: f32[128,64], index: 1, kind: input, shape index: {}]   ;;  %s948_s2 = inlined_call_operand.vmem [shape: f32[32,1], index: 2, kind: input, shape index: {}]   ;;  %s949_s3 = inlined_call_operand.vmem [shape: f32[32,1], index: 3, kind: input, shape index: {}]   ;;  %s950_s4 = inlined_call_operand.vmem [shape: f32[1,20], index: 4, kind: input, shape index: {}]   ;;  %s951_s5 = inlined_call_operand.vmem [shape: f32[2,32,20], index: 5, kind: output, shape index: {}]  }
   0x1 LB: > { %s711_s19 = sadd.s32 4294967295, %s762_s18   ;;  %p715_p0 = scmp.ge.s32.totalorder %s762_s18, 1  ;;  %s762_s18 = sphi %s798_s18, %s15_s18  }
   0x2   : > { %p187_p1 = scmp.lt.s32.totalorder %s762_s18, 3 }
   0x4   : > { %p188_p2 = pnand %p715_p0, %p187_p1 }
   0x5   : > { %p215_p3 = scmp.lt.s32.totalorder (!%p188_p2), %s711_s19, 1  ;;  %s764_s24 = smov (!%p188_p2), 127  }
   0x6   : > { %191 = sbr.rel (%p188_p2) target bundleno = 599 (0x257), region = 40  ;;  %s765_s25 = smov (!%p188_p2), 123  }
   0x7   : > { %s766_s26 = smov (!%p188_p2), 122  }
   0xb   : > { %s953_s19 = smov (!%p215_p3, %s711_s19), 1  ;;  %v242_v29 = vld [vmem:[%s947_s1] sm:$0xff]  ;;  %v243_v30 = vld [vmem:[%s947_s1 + $0x8] sm:$0xff]  ;;  %vm316_vm0 = vcmask 523264   ;;  %v244_v40 = vld [vmem:[%s947_s1 + $0x10] sm:$0xff]  ;;  %vm491_vm1 = vcmask 162816  }
   0xc   : > { %s730_s20 = sshll.u32 %s953_s19, 6  ;;  %v258_v31 = vpack.c.bf16 %v242_v29, %v242_v29  ;;  %v259_v32 = vpack.c.bf16 %v243_v30, %v243_v30  ;;  %v245_v41 = vld [vmem:[%s947_s1 + $0x18] sm:$0xff]  ;;  %v260_v42 = vpack.c.bf16 %v244_v40, %v244_v40  ;;  %v246_v44 = vld [vmem:[%s947_s1 + $0x20] sm:$0xff]  ;;  %v247_v45 = vld [vmem:[%s947_s1 + $0x28] sm:$0xff]  ;;  %s731_s6 = sshll.u32 %s953_s19, 5 }
   0xd   : > { %s219_s23 = scalar_lea.vmem %s946_s0, %s730_s20  ;;  %v261_v43 = vpack.c.bf16 %v245_v41, %v245_v41  ;;  %v262_v48 = vpack.c.bf16 %v246_v44, %v246_v44  ;;  %v263_v49 = vpack.c.bf16 %v247_v45, %v247_v45  ;;  %v250_v56 = vld [vmem:[%s947_s1 + $0x40] sm:$0xff]  ;;  %v251_v57 = vld [vmem:[%s947_s1 + $0x48] sm:$0xff]  ;;  %v767_v41 = vmov 0   ;;  %s930_s9 = scalar_lea.vmem %s951_s5, %s731_s6 }
   0xe   : > { %v232_v0 = vld [vmem:[%s219_s23 + $0x30] sm:$0xff]  ;;  %v233_v1 = vld [vmem:[%s219_s23 + $0x38] sm:$0xff]  ;;  %v230_v2 = vld [vmem:[%s219_s23 + $0x20] sm:$0xff]  ;;  %v346_v33 = vunpack.c.l.b16 %v258_v31  ;;  %v347_v34 = vunpack.c.l.b16 %v259_v32  ;;  %v348_v46 = vunpack.c.l.b16 %v260_v42  ;;  %v266_v63 = vpack.c.bf16 %v250_v56, %v250_v56  ;;  %744 = vset.pattern.permute.xlu1 %v767_v41  ;;  %745 = vset.pattern.permute.xlu2 %v767_v41 }
   0xf   : > { %v240_v3 = vpack.c.bf16 %v232_v0, %v232_v0  ;;  %v241_v4 = vpack.c.bf16 %v233_v1, %v233_v1  ;;  %v231_v5 = vld [vmem:[%s219_s23 + $0x28] sm:$0xff]  ;;  %v238_v6 = vpack.c.bf16 %v230_v2, %v230_v2  ;;  %v228_v11 = vld [vmem:[%s219_s23 + $0x10] sm:$0xff]  ;;  %v229_v12 = vld [vmem:[%s219_s23 + $0x18] sm:$0xff]  ;;  %v349_v47 = vunpack.c.l.b16 %v261_v43  ;;  %746 = vset.pattern.permute.xlu0 %v767_v41 }
  0x10   : > { %v239_v7 = vpack.c.bf16 %v231_v5, %v231_v5  ;;  %v236_v16 = vpack.c.bf16 %v228_v11, %v228_v11  ;;  %v237_v17 = vpack.c.bf16 %v229_v12, %v229_v12  ;;  %v226_v18 = vld [vmem:[%s219_s23] sm:$0xff]  ;;  %v227_v19 = vld [vmem:[%s219_s23 + $0x8] sm:$0xff]  ;;  %v350_v36 = vpack.c.b16 %v347_v34, %v346_v33 }
  0x11   : > { %v298_v8 = vunpack.c.l.b16 %v240_v3  ;;  %v299_v9 = vunpack.c.l.b16 %v241_v4  ;;  %v296_v10 = vunpack.c.l.b16 %v238_v6  ;;  %v234_v22 = vpack.c.bf16 %v226_v18, %v226_v18  ;;  %v254_v58 = vld [vmem:[%s947_s1 + $0x60] sm:$0xff]  ;;  %v255_v59 = vld [vmem:[%s947_s1 + $0x68] sm:$0xff]  ;;  %v248_v3 = vld [vmem:[%s947_s1 + $0x30] sm:$0xff] }
  0x12   : > { %v297_v13 = vunpack.c.l.b16 %v239_v7  ;;  %v294_v20 = vunpack.c.l.b16 %v236_v16  ;;  %v295_v21 = vunpack.c.l.b16 %v237_v17  ;;  %v235_v23 = vpack.c.bf16 %v227_v19, %v227_v19  ;;  %v249_v4 = vld [vmem:[%s947_s1 + $0x38] sm:$0xff]  ;;  %v252_v17 = vld [vmem:[%s947_s1 + $0x50] sm:$0xff]  ;;  %v871_v40 = vld [vmem:[%s950_s4] ss:$0 sm:$0xff] }
  0x13   : > { %v303_v14 = vpack.c.b16 %v299_v9, %v298_v8  ;;  %v292_v25 = vunpack.c.l.b16 %v234_v22  ;;  %v351_v50 = vpack.c.b16 %v349_v47, %v348_v46  ;;  %v278_v53 = vunpack.c.l.b16 %v262_v48  ;;  %v253_v18 = vld [vmem:[%s947_s1 + $0x58] sm:$0xff]  ;;  %v256_v19 = vld [vmem:[%s947_s1 + $0x70] sm:$0xff] }
  0x14   : > { %v302_v15 = vpack.c.b16 %v297_v13, %v296_v10  ;;  %v301_v24 = vpack.c.b16 %v295_v21, %v294_v20  ;;  %v293_v26 = vunpack.c.l.b16 %v235_v23  ;;  %v279_v54 = vunpack.c.l.b16 %v263_v49  ;;  %v257_v20 = vld [vmem:[%s947_s1 + $0x78] sm:$0xff] }
  0x15   : > { %310 = vrot.lane.b32.xlu1 %v303_v14, %s764_s24  ;;  %397 = vrot.lane.b32.xlu0 %v303_v14, %s765_s25  ;;  %v267_v0 = vpack.c.bf16 %v251_v57, %v251_v57  ;;  %v270_v1 = vpack.c.bf16 %v254_v58, %v254_v58  ;;  %v271_v2 = vpack.c.bf16 %v255_v59, %v255_v59  ;;  %v385_v5 = vunpack.c.l.b16 %v266_v63 }
  0x16   : > { %446 = vrot.lane.b32.xlu2 %v302_v15, %s766_s26  ;;  %366 = vmatpush.bf16.msra.mxu1 %v303_v14  ;;  %v300_v27 = vpack.c.b16 %v293_v26, %v292_v25  ;;  %v282_v60 = vpack.c.b16 %v279_v54, %v278_v53  ;;  %v264_v9 = vpack.c.bf16 %v248_v3, %v248_v3 }
  0x17   : > { %v386_v6 = vunpack.c.l.b16 %v267_v0  ;;  %v436_v7 = vunpack.c.l.b16 %v270_v1  ;;  %v437_v8 = vunpack.c.l.b16 %v271_v2  ;;  %v265_v10 = vpack.c.bf16 %v249_v4, %v249_v4 }
  0x18   : > { %v268_v22 = vpack.c.bf16 %v252_v17, %v252_v17  ;;  %v269_v23 = vpack.c.bf16 %v253_v18, %v253_v18  ;;  %v273_v25 = vpack.c.bf16 %v257_v20, %v257_v20 }
  0x19   : > { %v389_v13 = vpack.c.b16 %v386_v6, %v385_v5  ;;  %v281_v16 = vunpack.c.l.b16 %v265_v10  ;;  %v584_v6 = vld [vmem:[%s948_s2] sm:$0xff] }
  0x1a   : > { %367 = vmatpush.bf16.msra.mxu1 %v302_v15  ;;  %v387_v26 = vunpack.c.l.b16 %v268_v22  ;;  %v439_v29 = vunpack.c.l.b16 %v273_v25 }
  0x1d   : > { %448 = vrot.lane.b32.xlu0 %v303_v14, %s766_s26  ;;  %395 = vrot.lane.b32.xlu1 %v302_v15, %s765_s25  ;;  %v440_v14 = vpack.c.b16 %v437_v8, %v436_v7  ;;  %v585_v7 = vld [vmem:[%s948_s2 + $0x8] sm:$0xff] }
  0x1e   : > { %308 = vrot.lane.b32.xlu2 %v302_v15, %s764_s24  ;;  %368 = vmatpush.bf16.msra.mxu1 %v301_v24  ;;  %v280_v15 = vunpack.c.l.b16 %v264_v9 }
  0x20   : > { %v283_v21 = vpack.c.b16 %v281_v16, %v280_v15 }
  0x22   : > { %369 = vmatpush.bf16.msra.mxu1 %v300_v27 }
  0x25   : > { %444 = vrot.lane.b32.xlu1 %v301_v24, %s766_s26  ;;  %393 = vrot.lane.b32.xlu0 %v301_v24, %s765_s25 }
  0x26   : > { %306 = vrot.lane.b32.xlu2 %v301_v24, %s764_s24  ;;  %722 = vmatmul.msk.bf16.vlgmr.msra.gmra.mxu1 %vm316_vm0, %v350_v36  ;;  %v272_v24 = vpack.c.bf16 %v256_v19, %v256_v19 }
  0x2d   : > { %442 = vrot.lane.b32.xlu1 %v300_v27, %s766_s26  ;;  %391 = vrot.lane.b32.xlu0 %v300_v27, %s765_s25 }
  0x2e   : > { %304 = vrot.lane.b32.xlu2 %v300_v27, %s764_s24  ;;  %v388_v27 = vunpack.c.l.b16 %v269_v23 }
  0x30   : > { %v390_v30 = vpack.c.b16 %v388_v27, %v387_v26 }
  0x36   : > { %723 = vmatmul.msk.bf16.gmra.mxu1 %vm316_vm0, %v351_v50 }
  0x70   : > { %v447_v28 = vpop.permute.xlu2 %446 }
  0x78   : > { %v309_v35 = vpop.permute.xlu2 %308 }
  0x80   : > { %v307_v39 = vpop.permute.xlu2 %306 }
  0x87   : > { %v311_v37 = vpop.permute.xlu1 %310  ;;  %v398_v38 = vpop.permute.xlu0 %397 }
  0x88   : > { %413 = vmatpush.bf16.msra.mxu2 %v398_v38  ;;  %327 = vmatpush.bf16.msra.mxu0 %v311_v37  ;;  %v305_v55 = vpop.permute.xlu2 %304 }
  0x8c   : > { %328 = vmatpush.bf16.msra.mxu0 %v309_v35 }
  0x8f   : > { %v449_v51 = vpop.permute.xlu0 %448  ;;  %v396_v52 = vpop.permute.xlu1 %395 }
  0x90   : > { %464 = vmatpush.bf16.msra.mxu3 %v449_v51  ;;  %414 = vmatpush.bf16.msra.mxu2 %v396_v52 }
  0x91   : > { %329 = vmatpush.bf16.msra.mxu0 %v307_v39 }
  0x94   : > { %465 = vmatpush.bf16.msra.mxu3 %v447_v28  ;;  %v438_v28 = vunpack.c.l.b16 %v272_v24 }
  0x95   : > { %330 = vmatpush.bf16.msra.mxu0 %v305_v55 }
  0x96   : > { %v441_v31 = vpack.c.b16 %v439_v29, %v438_v28 }
  0x97   : > { %v445_v61 = vpop.permute.xlu1 %444  ;;  %v394_v62 = vpop.permute.xlu0 %393 }
  0x98   : > { %415 = vmatpush.bf16.msra.mxu2 %v394_v62  ;;  %466 = vmatpush.bf16.msra.mxu3 %v445_v61 }
  0x99   : > { %720 = vmatmul.msk.bf16.vlgmr.msra.gmra.mxu0 %vm316_vm0, %v282_v60 }
  0x9f   : > { %v443_v11 = vpop.permute.xlu1 %442  ;;  %v392_v12 = vpop.permute.xlu0 %391 }
  0xa0   : > { %416 = vmatpush.bf16.msra.mxu2 %v392_v12  ;;  %467 = vmatpush.bf16.msra.mxu3 %v443_v11 }
  0xa3   : > { %724 = vmatmul.msk.bf16.vlgmr.msra.gmra.mxu2 %vm316_vm0, %v389_v13  ;;  %726 = vmatmul.msk.bf16.vlgmr.msra.gmra.mxu3 %vm316_vm0, %v440_v14  ;;  %v371_v33 = vpop.f32.mrf.mxu1 }
  0xa9   : > { %721 = vmatmul.msk.bf16.gmra.mxu0 %vm316_vm0, %v283_v21 }
  0xab   : > { %v373_v36 = vpop.f32.mrf.mxu1 }
  0xb3   : > { %725 = vmatmul.msk.bf16.gmra.mxu2 %vm316_vm0, %v390_v30  ;;  %727 = vmatmul.msk.bf16.gmra.mxu3 %vm316_vm0, %v441_v31  ;;  %v376_v50 = vpop.f32.mrf.mxu1 }
  0xbb   : > { %v378_v60 = vpop.f32.mrf.mxu1 }
 0x116   : > { %v332_v32 = vpop.f32.mrf.mxu0 }
 0x117   : > { %v372_v34 = vadd.f32 %v371_v33, %v332_v32  ;;  %v587_v32 = vld [vmem:[%s948_s2 + $0x18] sm:$0xff]  ;;  %v612_v33 = vld [vmem:[%s949_s3] sm:$0xff] }
 0x11e   : > { %v334_v35 = vpop.f32.mrf.mxu0 }
 0x11f   : > { %v374_v44 = vadd.f32 %v373_v36, %v334_v35  ;;  %v586_v35 = vld [vmem:[%s948_s2 + $0x10] sm:$0xff] }
 0x120   : > { %v614_v36 = vld [vmem:[%s949_s3 + $0x10] sm:$0xff] }
 0x126   : > { %v418_v37 = vpop.f32.mrf.mxu2  ;;  %v469_v38 = vpop.f32.mrf.mxu3 }
 0x127   : > { %v428_v39 = vadd.f32 %v418_v37, %v372_v34  ;;  %v337_v49 = vpop.f32.mrf.mxu0  ;;  %v613_v34 = vld [vmem:[%s949_s3 + $0x8] sm:$0xff]  ;;  %v615_v37 = vld [vmem:[%s949_s3 + $0x18] sm:$0xff] }
 0x128   : > { %v377_v52 = vadd.f32 %v376_v50, %v337_v49 }
 0x129   : > { %v479_v42 = vadd.f32 %v469_v38, %v428_v39 }
 0x12b   : > { %v487_v43 = vmul.f32 %v871_v40, %v479_v42 }
 0x12d   : > { %v492_v45 = vsel %vm491_vm1, %v487_v43, 0.0 }
 0x12e   : > { %v420_v46 = vpop.f32.mrf.mxu2  ;;  %v471_v47 = vpop.f32.mrf.mxu3  ;;  %493 = vadd.xlane.f32.xlu0 %v492_v45 }
 0x12f   : > { %v429_v48 = vadd.f32 %v420_v46, %v374_v44  ;;  %v339_v59 = vpop.f32.mrf.mxu0 }
 0x130   : > { %v379_v62 = vadd.f32 %v378_v60, %v339_v59 }
 0x131   : > { %v480_v51 = vadd.f32 %v471_v47, %v429_v48 }
 0x133   : > { %v488_v53 = vmul.f32 %v871_v40, %v480_v51 }
 0x135   : > { %v495_v54 = vsel %vm491_vm1, %v488_v53, 0.0 }
 0x136   : > { %v423_v55 = vpop.f32.mrf.mxu2  ;;  %v474_v56 = vpop.f32.mrf.mxu3  ;;  %496 = vadd.xlane.f32.xlu1 %v495_v54 }
 0x137   : > { %v430_v57 = vadd.f32 %v423_v55, %v377_v52 }
 0x139   : > { %v481_v58 = vadd.f32 %v474_v56, %v430_v57 }
 0x13b   : > { %v489_v61 = vmul.f32 %v871_v40, %v481_v58 }
 0x13d   : > { %v498_v63 = vsel %vm491_vm1, %v489_v61, 0.0 }
 0x13e   : > { %v425_v0 = vpop.f32.mrf.mxu2  ;;  %499 = vadd.xlane.f32.xlu2 %v498_v63  ;;  %v476_v2 = vpop.f32.mrf.mxu3 }
 0x13f   : > { %v431_v1 = vadd.f32 %v425_v0, %v379_v62 }
 0x141   : > { %v482_v3 = vadd.f32 %v476_v2, %v431_v1 }
 0x143   : > { %v490_v4 = vmul.f32 %v871_v40, %v482_v3 }
 0x145   : > { %v501_v5 = vsel %vm491_vm1, %v490_v4, 0.0 }
 0x146   : > { %502 = vadd.xlane.f32.xlu2 %v501_v5 }
 0x14f   : > { %590 = vperm.xlu1 %744, %v584_v6  }
 0x15e   : > { %595 = vperm.xlu2 %745, %v585_v7  }
 0x1a1   : > { %v494_v8 = vpop.xlane.xlu0 %493 }
 0x1a2   : > { %v504_v9 = vmul.f32 0.0625, %v494_v8 }
 0x1a4   : > { %v887_v10 = vsub.f32 %v479_v42, %v504_v9 }
 0x1a6   : > { %v512_v11 = vmul.f32 %v871_v40, %v887_v10 }
 0x1a8   : > { %v516_v12 = vmul.f32 %v512_v11, %v512_v11 }
 0x1a9   : > { %v497_v13 = vpop.xlane.xlu1 %496 }
 0x1aa   : > { %v505_v14 = vmul.f32 0.0625, %v497_v13  ;;  %v520_v15 = vsel %vm491_vm1, %v516_v12, 0.0 }
 0x1ab   : > { %521 = vadd.xlane.f32.xlu0 %v520_v15 }
 0x1ac   : > { %v892_v16 = vsub.f32 %v480_v51, %v505_v14 }
 0x1ae   : > { %v513_v17 = vmul.f32 %v871_v40, %v892_v16 }
 0x1b0   : > { %v517_v18 = vmul.f32 %v513_v17, %v513_v17 }
 0x1b1   : > { %v500_v19 = vpop.xlane.xlu2 %499 }
 0x1b2   : > { %v506_v20 = vmul.f32 0.0625, %v500_v19  ;;  %v523_v21 = vsel %vm491_vm1, %v517_v18, 0.0 }
 0x1b3   : > { %524 = vadd.xlane.f32.xlu1 %v523_v21 }
 0x1b4   : > { %v897_v22 = vsub.f32 %v481_v58, %v506_v20 }
 0x1b6   : > { %v514_v23 = vmul.f32 %v871_v40, %v897_v22 }
 0x1b8   : > { %v518_v24 = vmul.f32 %v514_v23, %v514_v23 }
 0x1b9   : > { %v503_v25 = vpop.xlane.xlu2 %502 }
 0x1ba   : > { %v507_v26 = vmul.f32 0.0625, %v503_v25  ;;  %v526_v27 = vsel %vm491_vm1, %v518_v24, 0.0 }
 0x1bb   : > { %527 = vadd.xlane.f32.xlu2 %v526_v27 }
 0x1bc   : > { %v902_v28 = vsub.f32 %v482_v3, %v507_v26 }
 0x1be   : > { %v515_v29 = vmul.f32 %v871_v40, %v902_v28 }
 0x1c0   : > { %v519_v30 = vmul.f32 %v515_v29, %v515_v29 }
 0x1c1   : > { %v591_v38 = vpop.permute.xlu1 %590  ;;  %v596_v42 = vpop.permute.xlu2 %595 }
 0x1c2   : > { %v529_v31 = vsel %vm491_vm1, %v519_v30, 0.0 }
 0x1c3   : > { %530 = vadd.xlane.f32.xlu0 %v529_v31 }
 0x1cc   : > { %605 = vperm.xlu1 %744, %v587_v32  }
 0x1d3   : > { %618 = vperm.xlu2 %745, %v612_v33  }
 0x1d4   : > { %623 = vperm.xlu1 %744, %v613_v34  }
 0x1d7   : > { %600 = vperm.xlu0 %746, %v586_v35  }
 0x1db   : > { %628 = vperm.xlu2 %745, %v614_v36  }
 0x1dc   : > { %633 = vperm.xlu1 %744, %v615_v37  }
 0x21e   : > { %v522_v39 = vpop.xlane.xlu0 %521 }
 0x21f   : > { %v532_v40 = vmul.f32 0.0625, %v522_v39 }
 0x221   : > { %v536_v41 = vadd.f32 1e-05, %v532_v40 }
 0x223   : > { %748 = vrsqrt.f32 %v536_v41  ;;  %vm546_vm3 = vweird.f32 %v536_v41 }
 0x226   : > { %v525_v43 = vpop.xlane.xlu1 %524 }
 0x227   : > { %v533_v44 = vmul.f32 0.0625, %v525_v43 }
 0x229   : > { %v749_v45 = vpop.eup %748  ;;  %v537_v46 = vadd.f32 1e-05, %v533_v44 }
 0x22a   : > { %v541_v47 = vmul.f32 %v749_v45, %v536_v41  ;;  %vm547_vm2 = vweird.f32 %v749_v45 }
 0x22b   : > { %750 = vrsqrt.f32 %v537_v46  ;;  %vm548_vm4 = vmor %vm546_vm3, %vm547_vm2  ;;  %vm556_vm7 = vweird.f32 %v537_v46 }
 0x22c   : > { %v542_v48 = vmul.f32 %v749_v45, %v541_v47 }
 0x22e   : > { %v543_v49 = vmul.f32 0.5, %v542_v48  ;;  %v528_v50 = vpop.xlane.xlu2 %527 }
 0x22f   : > { %v534_v51 = vmul.f32 0.0625, %v528_v50 }
 0x230   : > { %v544_v52 = vsub.f32 1.5, %v543_v49 }
 0x231   : > { %v751_v53 = vpop.eup %750  ;;  %v538_v54 = vadd.f32 1e-05, %v534_v51 }
 0x232   : > { %v551_v55 = vmul.f32 %v751_v53, %v537_v46  ;;  %v545_v56 = vmul.f32 %v749_v45, %v544_v52  ;;  %vm557_vm5 = vweird.f32 %v751_v53 }
 0x233   : > { %752 = vrsqrt.f32 %v538_v54  ;;  %vm558_vm8 = vmor %vm556_vm7, %vm557_vm5  ;;  %vm566_vm10 = vweird.f32 %v538_v54 }
 0x234   : > { %v552_v57 = vmul.f32 %v751_v53, %v551_v55  ;;  %v549_v58 = vsel %vm548_vm4, %v749_v45, %v545_v56 }
 0x235   : > { %v580_v59 = vmul.f32 %v549_v58, %v887_v10 }
 0x236   : > { %v553_v60 = vmul.f32 0.5, %v552_v57  ;;  %v531_v61 = vpop.xlane.xlu0 %530  ;;  %v619_v1 = vpop.permute.xlu2 %618 }
 0x237   : > { %v608_v62 = vmul.f32 %v591_v38, %v580_v59  ;;  %v535_v63 = vmul.f32 0.0625, %v531_v61 }
 0x238   : > { %v554_v0 = vsub.f32 1.5, %v553_v60 }
 0x239   : > { %v753_v2 = vpop.eup %752  ;;  %v636_v3 = vadd.f32 %v619_v1, %v608_v62  ;;  %v539_v4 = vadd.f32 1e-05, %v535_v63 }
 0x23a   : > { %v561_v5 = vmul.f32 %v753_v2, %v538_v54  ;;  %v555_v6 = vmul.f32 %v751_v53, %v554_v0  ;;  %vm567_vm9 = vweird.f32 %v753_v2 }
 0x23b   : > { %vm640_vm6 = vcmp.ge.f32.partialorder %v636_v3, 0.0  ;;  %v644_v7 = vmul.f32 0.01, %v636_v3  ;;  %754 = vrsqrt.f32 %v539_v4  ;;  %vm568_vm11 = vmor %vm566_vm10, %vm567_vm9  ;;  %vm576_vm14 = vweird.f32 %v539_v4 }
 0x23c   : > { %v562_v8 = vmul.f32 %v753_v2, %v561_v5  ;;  %v559_v12 = vsel %vm558_vm8, %v751_v53, %v555_v6 }
 0x23d   : > { %v648_v9 = vsel %vm640_vm6, %v636_v3, %v644_v7  ;;  %v581_v15 = vmul.f32 %v559_v12, %v892_v16 }
 0x23e   : > { %v563_v10 = vmul.f32 0.5, %v562_v8  ;;  %652 = vst.msk [vmem:[%s930_s9] sm:$0xff] %vm491_vm1, %v648_v9  ;;  %v606_v11 = vpop.permute.xlu1 %605  ;;  %v629_v32 = vpop.permute.xlu2 %628 }
 0x23f   : > { %v609_v20 = vmul.f32 %v596_v42, %v581_v15 }
 0x240   : > { %v564_v13 = vsub.f32 1.5, %v563_v10 }
 0x241   : > { %v755_v14 = vpop.eup %754 }
 0x242   : > { %v571_v17 = vmul.f32 %v755_v14, %v539_v4  ;;  %v565_v18 = vmul.f32 %v753_v2, %v564_v13  ;;  %vm577_vm12 = vweird.f32 %v755_v14 }
 0x243   : > { %vm578_vm15 = vmor %vm576_vm14, %vm577_vm12 }
 0x244   : > { %v572_v19 = vmul.f32 %v755_v14, %v571_v17  ;;  %v569_v21 = vsel %vm568_vm11, %v753_v2, %v565_v18 }
 0x245   : > { %v582_v27 = vmul.f32 %v569_v21, %v897_v22 }
 0x246   : > { %v573_v23 = vmul.f32 0.5, %v572_v19  ;;  %v624_v24 = vpop.permute.xlu1 %623 }
 0x247   : > { %v637_v25 = vadd.f32 %v624_v24, %v609_v20 }
 0x248   : > { %v574_v26 = vsub.f32 1.5, %v573_v23 }
 0x249   : > { %vm641_vm13 = vcmp.ge.f32.partialorder %v637_v25, 0.0  ;;  %v645_v29 = vmul.f32 0.01, %v637_v25  ;;  %v601_v30 = vpop.permute.xlu0 %600 }
 0x24a   : > { %v575_v16 = vmul.f32 %v755_v14, %v574_v26  ;;  %v610_v31 = vmul.f32 %v601_v30, %v582_v27 }
 0x24b   : > { %v649_v33 = vsel %vm641_vm13, %v637_v25, %v645_v29 }
 0x24c   : > { %v579_v34 = vsel %vm578_vm15, %v755_v14, %v575_v16  ;;  %653 = vst.msk [vmem:[%s930_s9 + $0x8] sm:$0xff] %vm491_vm1, %v649_v33  ;;  %v638_v35 = vadd.f32 %v629_v32, %v610_v31 }
 0x24d   : > { %v583_v36 = vmul.f32 %v579_v34, %v902_v28 }
 0x24e   : > { %vm642_vm0 = vcmp.ge.f32.partialorder %v638_v35, 0.0  ;;  %v646_v37 = vmul.f32 0.01, %v638_v35  ;;  %v634_v39 = vpop.permute.xlu1 %633 }
 0x24f   : > { %v611_v22 = vmul.f32 %v606_v11, %v583_v36 }
 0x250   : > { %v650_v38 = vsel %vm642_vm0, %v638_v35, %v646_v37 }
 0x251   : > { %654 = vst.msk [vmem:[%s930_s9 + $0x10] sm:$0xff] %vm491_vm1, %v650_v38  ;;  %v639_v40 = vadd.f32 %v634_v39, %v611_v22 }
 0x253   : > { %vm643_vm2 = vcmp.ge.f32.partialorder %v639_v40, 0.0  ;;  %v647_v41 = vmul.f32 0.01, %v639_v40 }
 0x255   : > { %v651_v42 = vsel %vm643_vm2, %v639_v40, %v647_v41 }
 0x256   : > { %655 = vst.msk [vmem:[%s930_s9 + $0x18] sm:$0xff] %vm491_vm1, %v651_v42 }
 0x257 PF: > { %s15_s18 = sadd.s32 1, %s762_s18  }
 0x258   : > { %p12_p4 = scmp.ge.s32.totalorder %s15_s18, 4  }
 0x25a   :  { %14 = sbr.rel (!%p12_p4) target bundleno = 1 (0x1), region = 70 }

// kernel: residual_unet_forward.27
= control target key start
LH: loop header
LB: loop body
LE: loop exit
PB: predicated region body
PF: predicated region fallthrough
CT: control target
= control target key end

     0   :  { %s337_s9 = smov 0   ;;  %s390_s0 = inlined_call_operand.vmem [shape: f32[2,32,20], index: 0, kind: input, shape index: {}]   ;;  %s391_s1 = inlined_call_operand.vmem [shape: f32[64,32], index: 1, kind: input, shape index: {}]   ;;  %s392_s2 = inlined_call_operand.vmem [shape: f32[2,64,16], index: 2, kind: output, shape index: {}]  }
   0x1 LB: > { %s283_s10 = sadd.s32 4294967295, %s320_s9   ;;  %p287_p0 = scmp.ge.s32.totalorder %s320_s9, 1  ;;  %s320_s9 = sphi %s337_s9, %s12_s9  }
   0x2   : > { %p112_p1 = scmp.lt.s32.totalorder %s320_s9, 3 }
   0x4   : > { %p113_p2 = pnand %p287_p0, %p112_p1 }
   0x5   : > { %p134_p3 = scmp.lt.s32.totalorder (!%p113_p2), %s283_s10, 1 }
   0x6   : > { %116 = sbr.rel (%p113_p2) target bundleno = 171 (0xab), region = 28 }
   0xb   : > { %s394_s10 = smov (!%p134_p3, %s283_s10), 1  ;;  %v153_v13 = vld [vmem:[%s391_s1] sm:$0xff]  ;;  %v154_v14 = vld [vmem:[%s391_s1 + $0x8] sm:$0xff]  ;;  %v155_v16 = vld [vmem:[%s391_s1 + $0x10] sm:$0xff]  ;;  %vm177_vm0 = vcmask 261120   ;;  %vm219_vm1 = vcmask 130048  }
   0xc   : > { %s298_s11 = sshll.u32 %s394_s10, 5  ;;  %v156_v17 = vld [vmem:[%s391_s1 + $0x18] sm:$0xff]  ;;  %v157_v18 = vld [vmem:[%s391_s1 + $0x20] sm:$0xff]  ;;  %v158_v19 = vld [vmem:[%s391_s1 + $0x28] sm:$0xff]  ;;  %v161_v22 = vpack.c.bf16 %v154_v14, %v153_v13  ;;  %s299_s3 = sshll.u32 %s394_s10, 6 }
   0xd   : > { %s138_s14 = scalar_lea.vmem %s390_s0, %s298_s11  ;;  %v159_v20 = vld [vmem:[%s391_s1 + $0x30] sm:$0xff]  ;;  %v160_v21 = vld [vmem:[%s391_s1 + $0x38] sm:$0xff]  ;;  %v162_v23 = vpack.c.bf16 %v156_v17, %v155_v16  ;;  %v163_v24 = vpack.c.bf16 %v158_v19, %v157_v18  ;;  %s143_s6 = scalar_lea.vmem %s392_s2, %s299_s3 }
   0xe   : > { %v147_v0 = vld [vmem:[%s138_s14 + $0x10] sm:$0xff]  ;;  %v148_v1 = vld [vmem:[%s138_s14 + $0x18] sm:$0xff]  ;;  %v145_v2 = vld [vmem:[%s138_s14] sm:$0xff]  ;;  %v164_v25 = vpack.c.bf16 %v160_v21, %v159_v20 }
   0xf   : > { %v151_v3 = vpack.c.bf16 %v147_v0, %v147_v0  ;;  %v152_v4 = vpack.c.bf16 %v148_v1, %v148_v1  ;;  %v146_v5 = vld [vmem:[%s138_s14 + $0x8] sm:$0xff]  ;;  %v149_v6 = vpack.c.bf16 %v145_v2, %v145_v2 }
  0x10   : > { %v150_v7 = vpack.c.bf16 %v146_v5, %v146_v5 }
  0x11   : > { %v171_v8 = vunpack.c.l.b16 %v151_v3  ;;  %v172_v9 = vunpack.c.l.b16 %v152_v4  ;;  %v169_v10 = vunpack.c.l.b16 %v149_v6 }
  0x12   : > { %v170_v11 = vunpack.c.l.b16 %v150_v7 }
  0x13   : > { %v174_v12 = vpack.c.b16 %v172_v9, %v171_v8 }
  0x14   : > { %v173_v15 = vpack.c.b16 %v170_v11, %v169_v10 }
  0x15   : > { %196 = vmatpush.bf16.msra.mxu0 %v174_v12  ;;  %300 = vmatpush.bf16.msra.mxu1 %v174_v12 }
  0x16   : > { %301 = vmatpush.bf16.msra.mxu2 %v174_v12  ;;  %302 = vmatpush.bf16.msra.mxu3 %v174_v12 }
  0x19   : > { %197 = vmatpush.bf16.msra.mxu0 %v173_v15  ;;  %303 = vmatpush.bf16.msra.mxu1 %v173_v15 }
  0x1a   : > { %304 = vmatpush.bf16.msra.mxu2 %v173_v15  ;;  %305 = vmatpush.bf16.msra.mxu3 %v173_v15 }
  0x1c   : > { %292 = vmatmul.msk.bf16.vlgmr.msra.gmra.mxu0 %vm177_vm0, %v161_v22  ;;  %293 = vmatmul.msk.bf16.vlgmr.msra.gmra.mxu1 %vm177_vm0, %v162_v23 }
  0x1d   : > { %294 = vmatmul.msk.bf16.vlgmr.msra.gmra.mxu2 %vm177_vm0, %v163_v24  ;;  %295 = vmatmul.msk.bf16.vlgmr.msra.gmra.mxu3 %vm177_vm0, %v164_v25 }
  0x99   : > { %v199_v26 = vpop.f32.mrf.mxu0  ;;  %v204_v27 = vpop.f32.mrf.mxu1 }
  0x9a   : > { %220 = vst.msk [vmem:[%s143_s6] sm:$0xff] %vm219_vm1, %v199_v26 }
  0x9b   : > { %222 = vst.msk [vmem:[%s143_s6 + $0x10] sm:$0xff] %vm219_vm1, %v204_v27 }
  0xa0   : > { %v209_v28 = vpop.f32.mrf.mxu2  ;;  %v214_v29 = vpop.f32.mrf.mxu3 }
  0xa1   : > { %224 = vst.msk [vmem:[%s143_s6 + $0x20] sm:$0xff] %vm219_vm1, %v209_v28  ;;  %v201_v30 = vpop.f32.mrf.mxu0  ;;  %v206_v31 = vpop.f32.mrf.mxu1 }
  0xa2   : > { %226 = vst.msk [vmem:[%s143_s6 + $0x30] sm:$0xff] %vm219_vm1, %v214_v29 }
  0xa3   : > { %221 = vst.msk [vmem:[%s143_s6 + $0x8] sm:$0xff] %vm219_vm1, %v201_v30 }
  0xa4   : > { %223 = vst.msk [vmem:[%s143_s6 + $0x18] sm:$0xff] %vm219_vm1, %v206_v31 }
  0xa8   : > { %v211_v32 = vpop.f32.mrf.mxu2  ;;  %v216_v33 = vpop.f32.mrf.mxu3 }
  0xa9   : > { %225 = vst.msk [vmem:[%s143_s6 + $0x28] sm:$0xff] %vm219_vm1, %v211_v32 }
  0xaa   : > { %227 = vst.msk [vmem:[%s143_s6 + $0x38] sm:$0xff] %vm219_vm1, %v216_v33 }
  0xab PF: > { %s12_s9 = sadd.s32 1, %s320_s9  }
  0xac   : > { %p9_p4 = scmp.ge.s32.totalorder %s12_s9, 4  }
  0xae   :  { %11 = sbr.rel (!%p9_p4) target bundleno = 1 (0x1), region = 58 }

// kernel: residual_unet_forward.26
= control target key start
LH: loop header
LB: loop body
LE: loop exit
PB: predicated region body
PF: predicated region fallthrough
CT: control target
= control target key end

     0   :  { %s1122_s21 = smov 0   ;;  %s1372_s0 = inlined_call_operand.vmem [shape: f32[2,32,42], index: 0, kind: input, shape index: {}]   ;;  %s1373_s1 = inlined_call_operand.vmem [shape: f32[288,32], index: 1, kind: input, shape index: {}]   ;;  %s1374_s2 = inlined_call_operand.vmem [shape: f32[32,1], index: 2, kind: input, shape index: {}]   ;;  %s1375_s3 = inlined_call_operand.vmem [shape: f32[32,1], index: 3, kind: input, shape index: {}]   ;;  %s1376_s4 = inlined_call_operand.vmem [shape: f32[1,24], index: 4, kind: input, shape index: {}]   ;;  %s1377_s5 = inlined_call_operand.vmem [shape: f32[2,32,24], index: 5, kind: input, shape index: {}]   ;;  %s1378_s6 = inlined_call_operand.vmem [shape: f32[2,32,24], index: 6, kind: output, shape index: {}]  }
   0x1 LB: > { %s1005_s22 = sadd.s32 4294967295, %s1076_s21   ;;  %p1009_p0 = scmp.ge.s32.totalorder %s1076_s21, 1  ;;  %s1076_s21 = sphi %s1122_s21, %s16_s21  }
   0x2   : > { %p222_p1 = scmp.lt.s32.totalorder %s1076_s21, 3 }
   0x4   : > { %p223_p2 = pnand %p1009_p0, %p222_p1 }
   0x5   : > { %p257_p3 = scmp.lt.s32.totalorder (!%p223_p2), %s1005_s22, 1  ;;  %s1078_s27 = smov (!%p223_p2), 126  }
   0x6   : > { %226 = sbr.rel (%p223_p2) target bundleno = 683 (0x2ab), region = 44  ;;  %s1079_s28 = smov (!%p223_p2), 127  }
   0x7   : > { %s1080_s29 = smov (!%p223_p2), 122   ;;  %s1081_s30 = smov (!%p223_p2), 121  }
   0x8   : > { %s1082_s7 = smov (!%p223_p2), 116   ;;  %s1083_s8 = smov (!%p223_p2), 115  }
   0x9   : > { %s1084_s9 = smov (!%p223_p2), 120   ;;  %s1085_s10 = smov (!%p223_p2), 114  }
   0xb   : > { %s1380_s22 = smov (!%p257_p3, %s1005_s22), 1  ;;  %v289_v16 = vld [vmem:[%s1373_s1 + $0x40] sm:$0xff]  ;;  %v290_v17 = vld [vmem:[%s1373_s1 + $0x48] sm:$0xff]  ;;  %v287_v21 = vld [vmem:[%s1373_s1 + $0x30] sm:$0xff]  ;;  %vm379_vm0 = vcmask 261120   ;;  %vm765_vm1 = vcmask 195584  }
   0xc   : > { %s1130_s23 = sshll.u32 %s1380_s22, 5  ;;  %v285_v18 = vld [vmem:[%s1373_s1 + $0x20] sm:$0xff]  ;;  %v286_v19 = vld [vmem:[%s1373_s1 + $0x28] sm:$0xff]  ;;  %v288_v22 = vld [vmem:[%s1373_s1 + $0x38] sm:$0xff]  ;;  %v325_v23 = vpack.c.bf16 %v289_v16, %v289_v16  ;;  %v326_v24 = vpack.c.bf16 %v290_v17, %v290_v17  ;;  %v323_v29 = vpack.c.bf16 %v287_v21, %v287_v21 }
   0xd   : > { %s261_s26 = scalar_lea.vmem %s1372_s0, %s1130_s23  ;;  %v321_v27 = vpack.c.bf16 %v285_v18, %v285_v18  ;;  %v322_v28 = vpack.c.bf16 %v286_v19, %v286_v19  ;;  %v324_v30 = vpack.c.bf16 %v288_v22, %v288_v22  ;;  %v293_v31 = vld [vmem:[%s1373_s1 + $0x60] sm:$0xff]  ;;  %v294_v32 = vld [vmem:[%s1373_s1 + $0x68] sm:$0xff]  ;;  %v291_v49 = vld [vmem:[%s1373_s1 + $0x50] sm:$0xff]  ;;  %s1346_s15 = scalar_lea.vmem %s1377_s5, %s1130_s23 }
   0xe   : > { %v275_v0 = vld [vmem:[%s261_s26 + $0x10] sm:$0xff]  ;;  %v276_v1 = vld [vmem:[%s261_s26 + $0x18] sm:$0xff]  ;;  %v273_v2 = vld [vmem:[%s261_s26] sm:$0xff]  ;;  %v446_v33 = vunpack.c.l.b16 %v325_v23  ;;  %v447_v34 = vunpack.c.l.b16 %v326_v24  ;;  %v329_v37 = vpack.c.bf16 %v293_v31, %v293_v31  ;;  %v330_v38 = vpack.c.bf16 %v294_v32, %v294_v32  ;;  %s1354_s18 = scalar_lea.vmem %s1378_s6, %s1130_s23 }
   0xf   : > { %v279_v3 = vpack.c.bf16 %v275_v0, %v275_v0  ;;  %v280_v4 = vpack.c.bf16 %v276_v1, %v276_v1  ;;  %v274_v5 = vld [vmem:[%s261_s26 + $0x8] sm:$0xff]  ;;  %v277_v6 = vpack.c.bf16 %v273_v2, %v273_v2  ;;  %v357_v35 = vunpack.c.l.b16 %v321_v27  ;;  %v292_v50 = vld [vmem:[%s1373_s1 + $0x58] sm:$0xff]  ;;  %v297_v52 = vld [vmem:[%s1373_s1 + $0x80] sm:$0xff] }
  0x10   : > { %v278_v7 = vpack.c.bf16 %v274_v5, %v274_v5  ;;  %v358_v36 = vunpack.c.l.b16 %v322_v28  ;;  %v359_v39 = vunpack.c.l.b16 %v323_v29  ;;  %v360_v40 = vunpack.c.l.b16 %v324_v30  ;;  %v298_v53 = vld [vmem:[%s1373_s1 + $0x88] sm:$0xff]  ;;  %v281_v54 = vld [vmem:[%s1373_s1] sm:$0xff]  ;;  %v295_v0 = vld [vmem:[%s1373_s1 + $0x70] sm:$0xff] }
  0x11   : > { %v369_v8 = vunpack.c.l.b16 %v279_v3  ;;  %v370_v9 = vunpack.c.l.b16 %v280_v4  ;;  %v367_v10 = vunpack.c.l.b16 %v277_v6  ;;  %v450_v41 = vpack.c.b16 %v447_v34, %v446_v33  ;;  %v282_v55 = vld [vmem:[%s1373_s1 + $0x8] sm:$0xff]  ;;  %v296_v1 = vld [vmem:[%s1373_s1 + $0x78] sm:$0xff]  ;;  %v305_v18 = vld [vmem:[%s1373_s1 + $0xc0] sm:$0xff] }
  0x12   : > { %v368_v11 = vunpack.c.l.b16 %v278_v7  ;;  %v361_v45 = vpack.c.b16 %v358_v36, %v357_v35  ;;  %v491_v46 = vunpack.c.l.b16 %v329_v37  ;;  %v492_v47 = vunpack.c.l.b16 %v330_v38  ;;  %v306_v19 = vld [vmem:[%s1373_s1 + $0xc8] sm:$0xff]  ;;  %v299_v21 = vld [vmem:[%s1373_s1 + $0x90] sm:$0xff]  ;;  %v300_v22 = vld [vmem:[%s1373_s1 + $0x98] sm:$0xff] }
  0x13   : > { %v1136_v12 = vpack.c.b16 %v370_v9, %v369_v8  ;;  %v362_v48 = vpack.c.b16 %v360_v40, %v359_v39  ;;  %v327_v56 = vpack.c.bf16 %v291_v49, %v291_v49  ;;  %v328_v57 = vpack.c.bf16 %v292_v50, %v292_v50  ;;  %v283_v23 = vld [vmem:[%s1373_s1 + $0x10] sm:$0xff]  ;;  %v284_v24 = vld [vmem:[%s1373_s1 + $0x18] sm:$0xff]  ;;  %v309_v33 = vld [vmem:[%s1373_s1 + $0xe0] sm:$0xff] }
  0x14   : > { %v1138_v13 = vpack.c.b16 %v368_v11, %v367_v10  ;;  %v495_v51 = vpack.c.b16 %v492_v47, %v491_v46  ;;  %v333_v60 = vpack.c.bf16 %v297_v52, %v297_v52  ;;  %v334_v61 = vpack.c.bf16 %v298_v53, %v298_v53  ;;  %v310_v34 = vld [vmem:[%s1373_s1 + $0xe8] sm:$0xff]  ;;  %v307_v49 = vld [vmem:[%s1373_s1 + $0xd0] sm:$0xff]  ;;  %v308_v50 = vld [vmem:[%s1373_s1 + $0xd8] sm:$0xff] }
  0x15   : > { %454 = vrot.lane.b32.xlu1 %v1136_v12, %s1078_s27  ;;  %375 = vrot.lane.b32.xlu0 %v1136_v12, %s1079_s28  ;;  %v317_v62 = vpack.c.bf16 %v281_v54, %v281_v54  ;;  %v318_v63 = vpack.c.bf16 %v282_v55, %v282_v55  ;;  %v448_v2 = vunpack.c.l.b16 %v327_v56  ;;  %v449_v3 = vunpack.c.l.b16 %v328_v57  ;;  %v313_v52 = vld [vmem:[%s1373_s1 + $0x100] sm:$0xff]  ;;  %v314_v53 = vld [vmem:[%s1373_s1 + $0x108] sm:$0xff] }
  0x16   : > { %452 = vrot.lane.b32.xlu2 %v1138_v13, %s1078_s27  ;;  %v536_v5 = vunpack.c.l.b16 %v333_v60  ;;  %v537_v6 = vunpack.c.l.b16 %v334_v61  ;;  %v331_v7 = vpack.c.bf16 %v295_v0, %v295_v0  ;;  %v332_v8 = vpack.c.bf16 %v296_v1, %v296_v1  ;;  %v301_v54 = vld [vmem:[%s1373_s1 + $0xa0] sm:$0xff]  ;;  %v302_v55 = vld [vmem:[%s1373_s1 + $0xa8] sm:$0xff] }
  0x17   : > { %v409_v9 = vunpack.c.l.b16 %v317_v62  ;;  %v410_v10 = vunpack.c.l.b16 %v318_v63  ;;  %v451_v11 = vpack.c.b16 %v449_v3, %v448_v2  ;;  %v335_v29 = vpack.c.bf16 %v299_v21, %v299_v21  ;;  %v311_v62 = vld [vmem:[%s1373_s1 + $0xf0] sm:$0xff]  ;;  %v312_v63 = vld [vmem:[%s1373_s1 + $0xf8] sm:$0xff] }
  0x18   : > { %v494_v16 = vunpack.c.l.b16 %v332_v8  ;;  %v336_v30 = vpack.c.bf16 %v300_v22, %v300_v22  ;;  %v319_v31 = vpack.c.bf16 %v283_v23, %v283_v23  ;;  %v320_v32 = vpack.c.bf16 %v284_v24, %v284_v24 }
  0x19   : > { %v413_v17 = vpack.c.b16 %v410_v10, %v409_v9  ;;  %v538_v37 = vunpack.c.l.b16 %v335_v29  ;;  %v345_v39 = vpack.c.bf16 %v309_v33, %v309_v33  ;;  %v346_v40 = vpack.c.bf16 %v310_v34, %v310_v34 }
  0x1a   : > { %v539_v38 = vunpack.c.l.b16 %v336_v30  ;;  %v343_v56 = vpack.c.bf16 %v307_v49, %v307_v49  ;;  %v344_v57 = vpack.c.bf16 %v308_v50, %v308_v50  ;;  %v337_v60 = vpack.c.bf16 %v301_v54, %v301_v54 }
  0x1b   : > { %v671_v46 = vunpack.c.l.b16 %v345_v39  ;;  %v672_v47 = vunpack.c.l.b16 %v346_v40  ;;  %v338_v61 = vpack.c.bf16 %v302_v55, %v302_v55 }
  0x1c   : > { %v628_v0 = vunpack.c.l.b16 %v343_v56  ;;  %v629_v1 = vunpack.c.l.b16 %v344_v57 }
  0x1d   : > { %499 = vrot.lane.b32.xlu1 %v1136_v12, %s1080_s29  ;;  %373 = vrot.lane.b32.xlu0 %v1138_v13, %s1079_s28 }
  0x1e   : > { %497 = vrot.lane.b32.xlu2 %v1138_v13, %s1080_s29  ;;  %v631_v8 = vpack.c.b16 %v629_v1, %v628_v0  ;;  %v1086_v0 = vmov 0  }
  0x1f   : > { %1058 = vset.pattern.permute.xlu2 %v1086_v0  ;;  %1060 = vset.pattern.permute.xlu1 %v1086_v0 }
  0x20   : > { %1059 = vset.pattern.permute.xlu0 %v1086_v0  ;;  %v886_v0 = vld [vmem:[%s1375_s3] sm:$0xff] }
  0x25   : > { %544 = vrot.lane.b32.xlu0 %v1136_v12, %s1081_s30  ;;  %542 = vrot.lane.b32.xlu1 %v1138_v13, %s1081_s30 }
  0x26   : > { %634 = vrot.lane.b32.xlu2 %v1136_v12, %s1082_s7 }
  0x2d   : > { %679 = vrot.lane.b32.xlu0 %v1136_v12, %s1083_s8  ;;  %589 = vrot.lane.b32.xlu1 %v1136_v12, %s1084_s9 }
  0x2e   : > { %632 = vrot.lane.b32.xlu2 %v1138_v13, %s1082_s7 }
  0x35   : > { %677 = vrot.lane.b32.xlu0 %v1138_v13, %s1083_s8  ;;  %587 = vrot.lane.b32.xlu1 %v1138_v13, %s1084_s9 }
  0x36   : > { %724 = vrot.lane.b32.xlu2 %v1136_v12, %s1085_s10 }
  0x3d   : > { %722 = vrot.lane.b32.xlu0 %v1138_v13, %s1085_s10 }
  0x70   : > { %v453_v14 = vpop.permute.xlu2 %452 }
  0x78   : > { %v498_v15 = vpop.permute.xlu2 %497 }
  0x80   : > { %v635_v20 = vpop.permute.xlu2 %634 }
  0x87   : > { %v455_v25 = vpop.permute.xlu1 %454  ;;  %v376_v26 = vpop.permute.xlu0 %375 }
  0x88   : > { %392 = vmatpush.bf16.msra.mxu0 %v376_v26  ;;  %1039 = vmatpush.bf16.msra.mxu1 %v376_v26  ;;  %v633_v42 = vpop.permute.xlu2 %632  ;;  %v342_v26 = vpack.c.bf16 %v306_v19, %v306_v19 }
  0x89   : > { %470 = vmatpush.bf16.msra.mxu2 %v455_v25  ;;  %v341_v25 = vpack.c.bf16 %v305_v18, %v305_v18 }
  0x8a   : > { %v627_v36 = vunpack.c.l.b16 %v342_v26 }
  0x8b   : > { %v626_v35 = vunpack.c.l.b16 %v341_v25 }
  0x8d   : > { %471 = vmatpush.bf16.msra.mxu2 %v453_v14  ;;  %v540_v14 = vpack.c.b16 %v537_v6, %v536_v5  ;;  %v348_v5 = vpack.c.bf16 %v312_v63, %v312_v63  ;;  %v581_v6 = vunpack.c.l.b16 %v337_v60  ;;  %v1287_v63 = vld [vmem:[%s1376_s4] ss:$0 sm:$0xff] }
  0x8f   : > { %v500_v43 = vpop.permute.xlu1 %499  ;;  %v374_v44 = vpop.permute.xlu0 %373 }
  0x90   : > { %515 = vmatpush.bf16.msra.mxu3 %v500_v43  ;;  %393 = vmatpush.bf16.msra.mxu0 %v374_v44  ;;  %v725_v4 = vpop.permute.xlu2 %724  ;;  %v630_v43 = vpack.c.b16 %v627_v36, %v626_v35 }
  0x91   : > { %650 = vmatpush.bf16.msrb.mxu2 %v635_v20  ;;  %1040 = vmatpush.bf16.msra.mxu1 %v374_v44  ;;  %v541_v44 = vpack.c.b16 %v539_v38, %v538_v37 }
  0x92   : > { %1020 = vmatmul.msk.bf16.vlgmr.msra.gmra.mxu2 %vm379_vm0, %v450_v41  ;;  %v411_v41 = vunpack.c.l.b16 %v319_v31 }
  0x93   : > { %1016 = vmatmul.msk.bf16.vlgmr.msra.gmra.mxu0 %vm379_vm0, %v361_v45 }
  0x94   : > { %1017 = vmatmul.msk.bf16.vlgmr.msra.gmra.mxu1 %vm379_vm0, %v362_v48  ;;  %516 = vmatpush.bf16.msra.mxu3 %v498_v15  ;;  %v493_v15 = vunpack.c.l.b16 %v331_v7  ;;  %v582_v7 = vunpack.c.l.b16 %v338_v61 }
  0x95   : > { %429 = vmatpush.bf16.msrb.mxu1 %v1136_v12  ;;  %651 = vmatpush.bf16.msrb.mxu2 %v633_v42  ;;  %v412_v42 = vunpack.c.l.b16 %v320_v32 }
  0x96   : > { %v496_v20 = vpack.c.b16 %v494_v16, %v493_v15  ;;  %v316_v15 = vld [vmem:[%s1373_s1 + $0x118] sm:$0xff]  ;;  %v303_v16 = vld [vmem:[%s1373_s1 + $0xb0] sm:$0xff] }
  0x97   : > { %v545_v58 = vpop.permute.xlu0 %544  ;;  %1022 = vmatmul.msk.bf16.vlgmr.msra.gmra.mxu3 %vm379_vm0, %v495_v51  ;;  %v543_v59 = vpop.permute.xlu1 %542  ;;  %v414_v48 = vpack.c.b16 %v412_v42, %v411_v41  ;;  %v675_v51 = vpack.c.b16 %v672_v47, %v671_v46  ;;  %v352_v19 = vpack.c.bf16 %v316_v15, %v316_v15 }
  0x98   : > { %560 = vmatpush.bf16.msrb.mxu0 %v545_v58  ;;  %v349_v58 = vpack.c.bf16 %v313_v52, %v313_v52 }
  0x99   : > { %430 = vmatpush.bf16.msrb.mxu1 %v1138_v13  ;;  %v719_v23 = vunpack.c.l.b16 %v352_v19 }
  0x9a   : > { %v716_v2 = vunpack.c.l.b16 %v349_v58 }
  0x9c   : > { %561 = vmatpush.bf16.msrb.mxu0 %v543_v59  ;;  %v350_v59 = vpack.c.bf16 %v314_v53, %v314_v53 }
  0x9e   : > { %v717_v3 = vunpack.c.l.b16 %v350_v59 }
  0x9f   : > { %v680_v12 = vpop.permute.xlu0 %679  ;;  %v590_v13 = vpop.permute.xlu1 %589 }
  0xa0   : > { %740 = vmatpush.bf16.msra.mxu0 %v725_v4  ;;  %695 = vmatpush.bf16.msrb.mxu3 %v680_v12  ;;  %v347_v4 = vpack.c.bf16 %v311_v62, %v311_v62  ;;  %v720_v9 = vpack.c.b16 %v717_v3, %v716_v2  ;;  %v585_v12 = vpack.c.b16 %v582_v7, %v581_v6 }
  0xa1   : > { %605 = vmatpush.bf16.msra.mxu1 %v590_v13 }
  0xa2   : > { %1021 = vmatmul.msk.bf16.gmra.mxu2 %vm379_vm0, %v451_v11  ;;  %v673_v10 = vunpack.c.l.b16 %v347_v4  ;;  %v674_v11 = vunpack.c.l.b16 %v348_v5 }
  0xa3   : > { %1024 = vmatmul.msk.bf16.vlgmr.msrb.gmra.mxu0 %vm379_vm0, %v540_v14  ;;  %v315_v14 = vld [vmem:[%s1373_s1 + $0x110] sm:$0xff] }
  0xa4   : > { %1018 = vmatmul.msk.bf16.vlgmr.msrb.gmra.mxu1 %vm379_vm0, %v413_v17  ;;  %v676_v13 = vpack.c.b16 %v674_v11, %v673_v10  ;;  %v304_v17 = vld [vmem:[%s1373_s1 + $0xb8] sm:$0xff]  ;;  %v351_v18 = vpack.c.bf16 %v315_v14, %v315_v14 }
  0xa5   : > { %v340_v21 = vpack.c.bf16 %v304_v17, %v304_v17 }
  0xa6   : > { %v718_v22 = vunpack.c.l.b16 %v351_v18 }
  0xa7   : > { %1023 = vmatmul.msk.bf16.gmra.mxu3 %vm379_vm0, %v496_v20  ;;  %v678_v27 = vpop.permute.xlu0 %677  ;;  %v588_v28 = vpop.permute.xlu1 %587  ;;  %v339_v20 = vpack.c.bf16 %v303_v16, %v303_v16  ;;  %v584_v25 = vunpack.c.l.b16 %v340_v21 }
  0xa8   : > { %696 = vmatpush.bf16.msrb.mxu3 %v678_v27  ;;  %606 = vmatpush.bf16.msra.mxu1 %v588_v28  ;;  %v721_v26 = vpack.c.b16 %v719_v23, %v718_v22 }
  0xa9   : > { %v583_v24 = vunpack.c.l.b16 %v339_v20 }
  0xab   : > { %v586_v27 = vpack.c.b16 %v584_v25, %v583_v24 }
  0xaf   : > { %v723_v45 = vpop.permute.xlu0 %722 }
  0xb0   : > { %741 = vmatpush.bf16.msra.mxu0 %v723_v45 }
  0xb2   : > { %1028 = vmatmul.msk.bf16.vlgmr.msrb.gmra.mxu2 %vm379_vm0, %v630_v43 }
  0xb3   : > { %1025 = vmatmul.msk.bf16.gmra.mxu0 %vm379_vm0, %v541_v44 }
  0xb4   : > { %1019 = vmatmul.msk.bf16.gmra.mxu1 %vm379_vm0, %v414_v48 }
  0xb7   : > { %1030 = vmatmul.msk.bf16.vlgmr.msrb.gmra.mxu3 %vm379_vm0, %v675_v51 }
  0xc2   : > { %1029 = vmatmul.msk.bf16.gmra.mxu2 %vm379_vm0, %v631_v8 }
  0xc3   : > { %1032 = vmatmul.msk.bf16.vlgmr.msra.gmra.mxu0 %vm379_vm0, %v720_v9 }
  0xc4   : > { %1026 = vmatmul.msk.bf16.vlgmr.msra.gmra.mxu1 %vm379_vm0, %v585_v12 }
  0xc7   : > { %1031 = vmatmul.msk.bf16.gmra.mxu3 %vm379_vm0, %v676_v13 }
  0xd3   : > { %1033 = vmatmul.msk.bf16.gmra.mxu0 %vm379_vm0, %v721_v26 }
  0xd4   : > { %1027 = vmatmul.msk.bf16.gmra.mxu1 %vm379_vm0, %v586_v27 }
 0x110   : > { %v395_v28 = vpop.f32.mrf.mxu0 }
 0x111   : > { %v400_v29 = vpop.f32.mrf.mxu1 }
 0x115   : > { %v473_v30 = vpop.f32.mrf.mxu2 }
 0x118   : > { %v397_v31 = vpop.f32.mrf.mxu0 }
 0x119   : > { %v402_v32 = vpop.f32.mrf.mxu1 }
 0x11a   : > { %v518_v33 = vpop.f32.mrf.mxu3 }
 0x11d   : > { %v475_v34 = vpop.f32.mrf.mxu2 }
 0x120   : > { %v563_v35 = vpop.f32.mrf.mxu0 }
 0x121   : > { %v432_v36 = vpop.f32.mrf.mxu1 }
 0x122   : > { %v520_v37 = vpop.f32.mrf.mxu3  ;;  %v433_v45 = vadd.f32 %v432_v36, %v395_v28 }
 0x124   : > { %v483_v47 = vadd.f32 %v473_v30, %v433_v45 }
 0x125   : > { %v478_v40 = vpop.f32.mrf.mxu2 }
 0x126   : > { %v528_v50 = vadd.f32 %v518_v33, %v483_v47 }
 0x128   : > { %v565_v38 = vpop.f32.mrf.mxu0  ;;  %v573_v54 = vadd.f32 %v563_v35, %v528_v50 }
 0x129   : > { %v434_v39 = vpop.f32.mrf.mxu1 }
 0x12a   : > { %v523_v41 = vpop.f32.mrf.mxu3  ;;  %v435_v51 = vadd.f32 %v434_v39, %v397_v31 }
 0x12c   : > { %v484_v55 = vadd.f32 %v475_v34, %v435_v51 }
 0x12d   : > { %v480_v44 = vpop.f32.mrf.mxu2 }
 0x12e   : > { %v529_v59 = vadd.f32 %v520_v37, %v484_v55 }
 0x130   : > { %v568_v42 = vpop.f32.mrf.mxu0  ;;  %v574_v2 = vadd.f32 %v565_v38, %v529_v59 }
 0x131   : > { %v437_v43 = vpop.f32.mrf.mxu1 }
 0x132   : > { %v525_v46 = vpop.f32.mrf.mxu3  ;;  %v438_v60 = vadd.f32 %v437_v43, %v400_v29 }
 0x134   : > { %v485_v3 = vadd.f32 %v478_v40, %v438_v60 }
 0x135   : > { %v653_v52 = vpop.f32.mrf.mxu2 }
 0x136   : > { %v530_v10 = vadd.f32 %v523_v41, %v485_v3  ;;  %v889_v3 = vld [vmem:[%s1375_s3 + $0x18] sm:$0xff] }
 0x138   : > { %v570_v48 = vpop.f32.mrf.mxu0  ;;  %v575_v16 = vadd.f32 %v568_v42, %v530_v10  ;;  %v858_v42 = vld [vmem:[%s1374_s2] sm:$0xff]  ;;  %v888_v10 = vld [vmem:[%s1375_s3 + $0x10] sm:$0xff] }
 0x139   : > { %v439_v49 = vpop.f32.mrf.mxu1 }
 0x13a   : > { %v698_v53 = vpop.f32.mrf.mxu3  ;;  %v440_v11 = vadd.f32 %v439_v49, %v402_v32 }
 0x13c   : > { %v486_v17 = vadd.f32 %v480_v44, %v440_v11 }
 0x13d   : > { %v655_v1 = vpop.f32.mrf.mxu2 }
 0x13e   : > { %v531_v24 = vadd.f32 %v525_v46, %v486_v17 }
 0x140   : > { %v743_v57 = vpop.f32.mrf.mxu0  ;;  %v576_v28 = vadd.f32 %v570_v48, %v531_v24 }
 0x141   : > { %v608_v56 = vpop.f32.mrf.mxu1 }
 0x142   : > { %v618_v58 = vadd.f32 %v608_v56, %v573_v54  ;;  %v700_v5 = vpop.f32.mrf.mxu3 }
 0x144   : > { %v663_v61 = vadd.f32 %v653_v52, %v618_v58 }
 0x145   : > { %v658_v15 = vpop.f32.mrf.mxu2 }
 0x146   : > { %v708_v62 = vadd.f32 %v698_v53, %v663_v61  ;;  %v860_v61 = vld [vmem:[%s1374_s2 + $0x10] sm:$0xff] }
 0x148   : > { %v753_v4 = vadd.f32 %v743_v57, %v708_v62  ;;  %v745_v9 = vpop.f32.mrf.mxu0  ;;  %v861_v62 = vld [vmem:[%s1374_s2 + $0x18] sm:$0xff] }
 0x149   : > { %v610_v6 = vpop.f32.mrf.mxu1 }
 0x14a   : > { %v619_v7 = vadd.f32 %v610_v6, %v574_v2  ;;  %v761_v8 = vmul.f32 %v1287_v63, %v753_v4  ;;  %v703_v20 = vpop.f32.mrf.mxu3  ;;  %v887_v2 = vld [vmem:[%s1375_s3 + $0x8] sm:$0xff] }
 0x14c   : > { %v664_v12 = vadd.f32 %v655_v1, %v619_v7  ;;  %v766_v13 = vsel %vm765_vm1, %v761_v8, 0.0  ;;  %v859_v1 = vld [vmem:[%s1374_s2 + $0x8] sm:$0xff] }
 0x14d   : > { %767 = vadd.xlane.f32.xlu1 %v766_v13  ;;  %v660_v31 = vpop.f32.mrf.mxu2 }
 0x14e   : > { %v709_v14 = vadd.f32 %v700_v5, %v664_v12 }
 0x150   : > { %v754_v18 = vadd.f32 %v745_v9, %v709_v14  ;;  %v748_v23 = vpop.f32.mrf.mxu0 }
 0x151   : > { %v613_v19 = vpop.f32.mrf.mxu1 }
 0x152   : > { %v620_v21 = vadd.f32 %v613_v19, %v575_v16  ;;  %v762_v22 = vmul.f32 %v1287_v63, %v754_v18  ;;  %v705_v34 = vpop.f32.mrf.mxu3 }
 0x154   : > { %v665_v25 = vadd.f32 %v658_v15, %v620_v21  ;;  %v769_v26 = vsel %vm765_vm1, %v762_v22, 0.0 }
 0x155   : > { %770 = vadd.xlane.f32.xlu2 %v769_v26 }
 0x156   : > { %v710_v27 = vadd.f32 %v703_v20, %v665_v25 }
 0x158   : > { %v755_v29 = vadd.f32 %v748_v23, %v710_v27  ;;  %v750_v37 = vpop.f32.mrf.mxu0 }
 0x159   : > { %v615_v30 = vpop.f32.mrf.mxu1 }
 0x15a   : > { %v621_v32 = vadd.f32 %v615_v30, %v576_v28  ;;  %v763_v33 = vmul.f32 %v1287_v63, %v755_v29 }
 0x15c   : > { %v666_v35 = vadd.f32 %v660_v31, %v621_v32  ;;  %v772_v36 = vsel %vm765_vm1, %v763_v33, 0.0 }
 0x15d   : > { %773 = vadd.xlane.f32.xlu0 %v772_v36  ;;  %v914_v36 = vld [vmem:[%s1346_s15] sm:$0xff] }
 0x15e   : > { %v711_v38 = vadd.f32 %v705_v34, %v666_v35 }
 0x160   : > { %v756_v39 = vadd.f32 %v750_v37, %v711_v38 }
 0x162   : > { %v764_v40 = vmul.f32 %v1287_v63, %v756_v39 }
 0x164   : > { %v775_v41 = vsel %vm765_vm1, %v764_v40, 0.0 }
 0x165   : > { %776 = vadd.xlane.f32.xlu2 %v775_v41 }
 0x17d   : > { %864 = vperm.xlu2 %1058, %v858_v42  }
 0x1c0   : > { %v768_v43 = vpop.xlane.xlu1 %767 }
 0x1c1   : > { %v778_v44 = vmul.f32 0.0625, %v768_v43 }
 0x1c3   : > { %v1300_v45 = vsub.f32 %v753_v4, %v778_v44 }
 0x1c5   : > { %v786_v46 = vmul.f32 %v1287_v63, %v1300_v45 }
 0x1c7   : > { %v790_v47 = vmul.f32 %v786_v46, %v786_v46 }
 0x1c8   : > { %v771_v48 = vpop.xlane.xlu2 %770 }
 0x1c9   : > { %v779_v49 = vmul.f32 0.0625, %v771_v48  ;;  %v794_v50 = vsel %vm765_vm1, %v790_v47, 0.0 }
 0x1ca   : > { %795 = vadd.xlane.f32.xlu1 %v794_v50 }
 0x1cb   : > { %v1305_v51 = vsub.f32 %v754_v18, %v779_v49 }
 0x1cd   : > { %v787_v52 = vmul.f32 %v1287_v63, %v1305_v51 }
 0x1cf   : > { %v791_v53 = vmul.f32 %v787_v52, %v787_v52 }
 0x1d0   : > { %v774_v54 = vpop.xlane.xlu0 %773 }
 0x1d1   : > { %v780_v55 = vmul.f32 0.0625, %v774_v54  ;;  %v797_v56 = vsel %vm765_vm1, %v791_v53, 0.0 }
 0x1d2   : > { %798 = vadd.xlane.f32.xlu2 %v797_v56 }
 0x1d3   : > { %v1310_v57 = vsub.f32 %v755_v29, %v780_v55 }
 0x1d5   : > { %v788_v58 = vmul.f32 %v1287_v63, %v1310_v57 }
 0x1d7   : > { %v792_v59 = vmul.f32 %v788_v58, %v788_v58 }
 0x1d8   : > { %v777_v4 = vpop.xlane.xlu2 %776 }
 0x1d9   : > { %v800_v60 = vsel %vm765_vm1, %v792_v59, 0.0  ;;  %v781_v5 = vmul.f32 0.0625, %v777_v4 }
 0x1da   : > { %801 = vadd.xlane.f32.xlu0 %v800_v60 }
 0x1db   : > { %v1333_v6 = vsub.f32 %v756_v39, %v781_v5 }
 0x1dd   : > { %v789_v7 = vmul.f32 %v1287_v63, %v1333_v6 }
 0x1df   : > { %v793_v8 = vmul.f32 %v789_v7, %v789_v7 }
 0x1e0   : > { %v865_v11 = vpop.permute.xlu2 %864 }
 0x1e1   : > { %v803_v9 = vsel %vm765_vm1, %v793_v8, 0.0 }
 0x1e3   : > { %874 = vperm.xlu1 %1060, %v860_v61  }
 0x1ea   : > { %879 = vperm.xlu2 %1058, %v861_v62  }
 0x1eb   : > { %892 = vperm.xlu1 %1060, %v886_v0  }
 0x1ee   : > { %869 = vperm.xlu0 %1059, %v859_v1  }
 0x1f2   : > { %897 = vperm.xlu2 %1058, %v887_v2  }
 0x1fa   : > { %907 = vperm.xlu2 %1058, %v889_v3  }
 0x215   : > { %804 = vadd.xlane.f32.xlu1 %v803_v9 }
 0x22e   : > { %902 = vperm.xlu1 %1060, %v888_v10  }
 0x23d   : > { %v796_v12 = vpop.xlane.xlu1 %795 }
 0x23e   : > { %v806_v13 = vmul.f32 0.0625, %v796_v12  ;;  %v916_v12 = vld [vmem:[%s1346_s15 + $0x10] sm:$0xff] }
 0x240   : > { %v810_v14 = vadd.f32 1e-05, %v806_v13 }
 0x242   : > { %1062 = vrsqrt.f32 %v810_v14  ;;  %vm820_vm3 = vweird.f32 %v810_v14 }
 0x245   : > { %v799_v15 = vpop.xlane.xlu2 %798 }
 0x246   : > { %v807_v16 = vmul.f32 0.0625, %v799_v15 }
 0x248   : > { %v1063_v17 = vpop.eup %1062  ;;  %v811_v18 = vadd.f32 1e-05, %v807_v16  ;;  %v917_v16 = vld [vmem:[%s1346_s15 + $0x18] sm:$0xff] }
 0x249   : > { %v815_v19 = vmul.f32 %v1063_v17, %v810_v14  ;;  %vm821_vm2 = vweird.f32 %v1063_v17 }
 0x24a   : > { %1064 = vrsqrt.f32 %v811_v18  ;;  %vm822_vm4 = vmor %vm820_vm3, %vm821_vm2  ;;  %vm830_vm6 = vweird.f32 %v811_v18 }
 0x24b   : > { %v816_v63 = vmul.f32 %v1063_v17, %v815_v19 }
 0x24d   : > { %v817_v20 = vmul.f32 0.5, %v816_v63  ;;  %v802_v31 = vpop.xlane.xlu0 %801  ;;  %v880_v32 = vpop.permute.xlu2 %879 }
 0x24f   : > { %v818_v21 = vsub.f32 1.5, %v817_v20 }
 0x250   : > { %v1065_v22 = vpop.eup %1064 }
 0x251   : > { %v819_v23 = vmul.f32 %v1063_v17, %v818_v21  ;;  %v825_v24 = vmul.f32 %v1065_v22, %v811_v18  ;;  %vm831_vm5 = vweird.f32 %v1065_v22 }
 0x252   : > { %vm832_vm7 = vmor %vm830_vm6, %vm831_vm5 }
 0x253   : > { %v826_v25 = vmul.f32 %v1065_v22, %v825_v24  ;;  %v823_v26 = vsel %vm822_vm4, %v1063_v17, %v819_v23 }
 0x254   : > { %v854_v30 = vmul.f32 %v823_v26, %v1300_v45  ;;  %v915_v45 = vld [vmem:[%s1346_s15 + $0x8] sm:$0xff] }
 0x255   : > { %v827_v27 = vmul.f32 0.5, %v826_v25  ;;  %v875_v28 = vpop.permute.xlu1 %874  ;;  %v898_v43 = vpop.permute.xlu2 %897 }
 0x256   : > { %v882_v34 = vmul.f32 %v865_v11, %v854_v30 }
 0x257   : > { %v828_v29 = vsub.f32 1.5, %v827_v27 }
 0x259   : > { %v829_v33 = vmul.f32 %v1065_v22, %v828_v29 }
 0x25b   : > { %v833_v35 = vsel %vm832_vm7, %v1065_v22, %v829_v33 }
 0x25c   : > { %v855_v39 = vmul.f32 %v833_v35, %v1305_v51  ;;  %v808_v51 = vmul.f32 0.0625, %v802_v31 }
 0x25d   : > { %v893_v37 = vpop.permute.xlu1 %892  ;;  %v908_v17 = vpop.permute.xlu2 %907 }
 0x25e   : > { %v910_v38 = vadd.f32 %v893_v37, %v882_v34  ;;  %v812_v52 = vadd.f32 1e-05, %v808_v51 }
 0x260   : > { %v918_v40 = vadd.f32 %v914_v36, %v910_v38  ;;  %v870_v41 = vpop.permute.xlu0 %869  ;;  %1066 = vrsqrt.f32 %v812_v52  ;;  %vm840_vm11 = vweird.f32 %v812_v52 }
 0x261   : > { %v883_v42 = vmul.f32 %v870_v41, %v855_v39 }
 0x262   : > { %vm922_vm8 = vcmp.ge.f32.partialorder %v918_v40, 0.0  ;;  %v926_v44 = vmul.f32 0.01, %v918_v40 }
 0x263   : > { %v911_v46 = vadd.f32 %v898_v43, %v883_v42 }
 0x264   : > { %v930_v47 = vsel %vm922_vm8, %v918_v40, %v926_v44 }
 0x265   : > { %934 = vst.msk [vmem:[%s1354_s18] sm:$0xff] %vm765_vm1, %v930_v47  ;;  %v919_v48 = vadd.f32 %v915_v45, %v911_v46 }
 0x266   : > { %v1067_v53 = vpop.eup %1066 }
 0x267   : > { %vm923_vm9 = vcmp.ge.f32.partialorder %v919_v48, 0.0  ;;  %v927_v49 = vmul.f32 0.01, %v919_v48  ;;  %v835_v54 = vmul.f32 %v1067_v53, %v812_v52  ;;  %vm841_vm10 = vweird.f32 %v1067_v53 }
 0x268   : > { %vm842_vm12 = vmor %vm840_vm11, %vm841_vm10 }
 0x269   : > { %v931_v50 = vsel %vm923_vm9, %v919_v48, %v927_v49  ;;  %v836_v55 = vmul.f32 %v1067_v53, %v835_v54 }
 0x26a   : > { %935 = vst.msk [vmem:[%s1354_s18 + $0x8] sm:$0xff] %vm765_vm1, %v931_v50 }
 0x26b   : > { %v837_v60 = vmul.f32 0.5, %v836_v55 }
 0x26d   : > { %v838_v61 = vsub.f32 1.5, %v837_v60 }
 0x26f   : > { %v839_v0 = vmul.f32 %v1067_v53, %v838_v61 }
 0x271   : > { %v843_v3 = vsel %vm842_vm12, %v1067_v53, %v839_v0 }
 0x272   : > { %v856_v7 = vmul.f32 %v843_v3, %v1310_v57 }
 0x274   : > { %v884_v10 = vmul.f32 %v875_v28, %v856_v7 }
 0x288   : > { %v805_v56 = vpop.xlane.xlu1 %804 }
 0x289   : > { %v809_v58 = vmul.f32 0.0625, %v805_v56 }
 0x28b   : > { %v813_v59 = vadd.f32 1e-05, %v809_v58 }
 0x28d   : > { %1068 = vrsqrt.f32 %v813_v59  ;;  %vm850_vm14 = vweird.f32 %v813_v59 }
 0x293   : > { %v1069_v62 = vpop.eup %1068 }
 0x294   : > { %v845_v1 = vmul.f32 %v1069_v62, %v813_v59  ;;  %vm851_vm13 = vweird.f32 %v1069_v62 }
 0x295   : > { %vm852_vm15 = vmor %vm850_vm14, %vm851_vm13 }
 0x296   : > { %v846_v2 = vmul.f32 %v1069_v62, %v845_v1 }
 0x298   : > { %v847_v4 = vmul.f32 0.5, %v846_v2 }
 0x29a   : > { %v848_v5 = vsub.f32 1.5, %v847_v4 }
 0x29c   : > { %v849_v8 = vmul.f32 %v1069_v62, %v848_v5 }
 0x29e   : > { %v853_v9 = vsel %vm852_vm15, %v1069_v62, %v849_v8 }
 0x29f   : > { %v857_v11 = vmul.f32 %v853_v9, %v1333_v6 }
 0x2a0   : > { %v903_v13 = vpop.permute.xlu1 %902 }
 0x2a1   : > { %v885_v14 = vmul.f32 %v880_v32, %v857_v11  ;;  %v912_v15 = vadd.f32 %v903_v13, %v884_v10 }
 0x2a3   : > { %v913_v18 = vadd.f32 %v908_v17, %v885_v14  ;;  %v920_v19 = vadd.f32 %v916_v12, %v912_v15 }
 0x2a5   : > { %v921_v63 = vadd.f32 %v917_v16, %v913_v18  ;;  %vm924_vm0 = vcmp.ge.f32.partialorder %v920_v19, 0.0  ;;  %v928_v57 = vmul.f32 0.01, %v920_v19 }
 0x2a7   : > { %vm925_vm2 = vcmp.ge.f32.partialorder %v921_v63, 0.0  ;;  %v929_v20 = vmul.f32 0.01, %v921_v63  ;;  %v932_v21 = vsel %vm924_vm0, %v920_v19, %v928_v57 }
 0x2a8   : > { %936 = vst.msk [vmem:[%s1354_s18 + $0x10] sm:$0xff] %vm765_vm1, %v932_v21 }
 0x2a9   : > { %v933_v22 = vsel %vm925_vm2, %v921_v63, %v929_v20 }
 0x2aa   : > { %937 = vst.msk [vmem:[%s1354_s18 + $0x18] sm:$0xff] %vm765_vm1, %v933_v22 }
 0x2ab PF: > { %s16_s21 = sadd.s32 1, %s1076_s21  }
 0x2ac   : > { %p13_p4 = scmp.ge.s32.totalorder %s16_s21, 4  }
 0x2ae   :  { %15 = sbr.rel (!%p13_p4) target bundleno = 1 (0x1), region = 77 }

// kernel: residual_unet_forward.29
= control target key start
LH: loop header
LB: loop body
LE: loop exit
PB: predicated region body
PF: predicated region fallthrough
CT: control target
= control target key end

     0   :  { %s554_s21 = smov 0   ;;  %s609_s0 = inlined_call_operand.vmem [shape: f32[2,16,72], index: 0, kind: input, shape index: {}]   ;;  %s610_s1 = inlined_call_operand.vmem [shape: f32[2,16,72], index: 1, kind: input, shape index: {}]   ;;  %s611_s2 = inlined_call_operand.vmem [shape: f32[16,16], index: 2, kind: input, shape index: {}]   ;;  %s612_s3 = inlined_call_operand.vmem [shape: f32[16,16], index: 3, kind: input, shape index: {}]   ;;  %s613_s4 = inlined_call_operand.vmem [shape: f32[16,1], index: 4, kind: input, shape index: {}]   ;;  %s614_s5 = inlined_call_operand.vmem [shape: f32[16,1], index: 5, kind: input, shape index: {}]   ;;  %s615_s6 = inlined_call_operand.vmem [shape: f32[2,16,64], index: 6, kind: output, shape index: {}]  }
   0x1 LB: > { %s476_s22 = sadd.s32 4294967295, %s516_s21   ;;  %p480_p0 = scmp.ge.s32.totalorder %s516_s21, 1  ;;  %s516_s21 = sphi %s554_s21, %s16_s21  }
   0x2   : > { %p222_p1 = scmp.lt.s32.totalorder %s516_s21, 3 }
   0x4   : > { %p223_p2 = pnand %p480_p0, %p222_p1 }
   0x5   : > { %p257_p3 = scmp.lt.s32.totalorder (!%p223_p2), %s476_s22, 1 }
   0x6   : > { %226 = sbr.rel (%p223_p2) target bundleno = 430 (0x1ae), region = 44 }
   0xb   : > { %s617_s22 = smov (!%p257_p3, %s476_s22), 1  ;;  %v284_v11 = vld [vmem:[%s612_s3] sm:$0xff]  ;;  %v285_v12 = vld [vmem:[%s612_s3 + $0x8] sm:$0xff]  ;;  %vm293_vm0 = vcmask 130048   ;;  %vm334_vm1 = vcmask 523264   ;;  %v518_v29 = vmov 0  }
   0xc   : > { %s562_s23 = sshll.u32 %s617_s22, 4  ;;  %v277_v14 = vld [vmem:[%s611_s2] sm:$0xff]  ;;  %v278_v15 = vld [vmem:[%s611_s2 + $0x8] sm:$0xff]  ;;  %v286_v18 = vpack.c.bf16 %v285_v12, %v284_v11  ;;  %504 = vset.pattern.permute.xlu0 %v518_v29  ;;  %505 = vset.pattern.permute.xlu1 %v518_v29 }
   0xd   : > { %s266_s26 = scalar_lea.vmem %s610_s1, %s562_s23  ;;  %s261_s29 = scalar_lea.vmem %s609_s0, %s562_s23  ;;  %v279_v19 = vpack.c.bf16 %v278_v15, %v277_v14  ;;  %v393_v28 = vld [vmem:[%s614_s5] sm:$0xff]  ;;  %503 = vset.pattern.permute.xlu2 %v518_v29  ;;  %v380_v41 = vld [vmem:[%s613_s4 + $0x8] sm:$0xff] }
   0xe   : > { %v280_v0 = vld [vmem:[%s266_s26] sm:$0xff]  ;;  %v281_v1 = vld [vmem:[%s266_s26 + $0x8] sm:$0xff]  ;;  %s271_s26 = scalar_lea.vmem %s615_s6, %s562_s23 }
   0xf   : > { %v273_v2 = vld [vmem:[%s261_s29] sm:$0xff]  ;;  %v282_v3 = vpack.c.bf16 %v280_v0, %v280_v0  ;;  %v283_v4 = vpack.c.bf16 %v281_v1, %v281_v1  ;;  %v274_v5 = vld [vmem:[%s261_s29 + $0x8] sm:$0xff] }
  0x10   : > { %v275_v6 = vpack.c.bf16 %v273_v2, %v273_v2  ;;  %v276_v7 = vpack.c.bf16 %v274_v5, %v274_v5  ;;  %v379_v37 = vld [vmem:[%s613_s4] sm:$0xff]  ;;  %v394_v42 = vld [vmem:[%s614_s5 + $0x8] sm:$0xff] }
  0x11   : > { %v289_v8 = vunpack.c.l.b16 %v282_v3  ;;  %v290_v9 = vunpack.c.l.b16 %v283_v4  ;;  %383 = vperm.xlu2 %503, %v379_v37  }
  0x12   : > { %v313_v10 = vunpack.c.l.b16 %v275_v6  ;;  %v314_v13 = vunpack.c.l.b16 %v276_v7 }
  0x13   : > { %v291_v16 = vpack.c.b16 %v290_v9, %v289_v8 }
  0x14   : > { %v315_v17 = vpack.c.b16 %v314_v13, %v313_v10 }
  0x15   : > { %304 = vmatpush.bf16.msra.mxu0 %v291_v16 }
  0x16   : > { %327 = vmatpush.bf16.msra.mxu1 %v315_v17 }
  0x18   : > { %487 = vmatmul.msk.bf16.vlgmr.msra.gmra.mxu0 %vm293_vm0, %v286_v18 }
  0x19   : > { %488 = vmatmul.msk.bf16.vlgmr.msra.gmra.mxu1 %vm293_vm0, %v279_v19  ;;  %388 = vperm.xlu2 %503, %v380_v41  }
  0x6b   : > { %v384_v58 = vpop.permute.xlu2 %383 }
  0x73   : > { %v389_v5 = vpop.permute.xlu2 %388 }
  0x95   : > { %v306_v20 = vpop.f32.mrf.mxu0 }
  0x96   : > { %v329_v21 = vpop.f32.mrf.mxu1 }
  0x97   : > { %v330_v22 = vadd.f32 %v329_v21, %v306_v20 }
  0x99   : > { %v335_v23 = vsel %vm334_vm1, %v330_v22, 0.0 }
  0x9a   : > { %336 = vadd.xlane.f32.xlu0 %v335_v23 }
  0x9d   : > { %v308_v24 = vpop.f32.mrf.mxu0 }
  0x9e   : > { %v331_v25 = vpop.f32.mrf.mxu1 }
  0x9f   : > { %v332_v26 = vadd.f32 %v331_v25, %v308_v24 }
  0xa1   : > { %v338_v27 = vsel %vm334_vm1, %v332_v26, 0.0 }
  0xa2   : > { %339 = vadd.xlane.f32.xlu0 %v338_v27 }
  0xb6   : > { %397 = vperm.xlu0 %504, %v393_v28  }
 0x10d   : > { %v337_v30 = vpop.xlane.xlu0 %336 }
 0x10e   : > { %v341_v31 = vmul.f32 0.015625, %v337_v30 }
 0x110   : > { %v343_v32 = vsub.f32 %v330_v22, %v341_v31 }
 0x112   : > { %v345_v33 = vmul.f32 %v343_v32, %v343_v32 }
 0x114   : > { %v347_v34 = vsel %vm334_vm1, %v345_v33, 0.0 }
 0x115   : > { %348 = vadd.xlane.f32.xlu1 %v347_v34  ;;  %v340_v35 = vpop.xlane.xlu0 %339 }
 0x116   : > { %v342_v36 = vmul.f32 0.015625, %v340_v35 }
 0x118   : > { %v344_v38 = vsub.f32 %v332_v26, %v342_v36 }
 0x11a   : > { %v346_v39 = vmul.f32 %v344_v38, %v344_v38 }
 0x11c   : > { %v350_v40 = vsel %vm334_vm1, %v346_v39, 0.0 }
 0x11d   : > { %351 = vadd.xlane.f32.xlu1 %v350_v40 }
 0x128   : > { %v398_v62 = vpop.permute.xlu0 %397 }
 0x136   : > { %402 = vperm.xlu1 %505, %v394_v42  }
 0x188   : > { %v349_v43 = vpop.xlane.xlu1 %348 }
 0x189   : > { %v353_v44 = vmul.f32 0.015625, %v349_v43 }
 0x18b   : > { %v355_v45 = vadd.f32 1e-05, %v353_v44 }
 0x18d   : > { %506 = vrsqrt.f32 %v355_v45  ;;  %vm363_vm3 = vweird.f32 %v355_v45 }
 0x190   : > { %v352_v46 = vpop.xlane.xlu1 %351 }
 0x191   : > { %v354_v47 = vmul.f32 0.015625, %v352_v46 }
 0x193   : > { %v507_v48 = vpop.eup %506  ;;  %v356_v49 = vadd.f32 1e-05, %v354_v47 }
 0x194   : > { %v358_v50 = vmul.f32 %v507_v48, %v355_v45  ;;  %vm364_vm2 = vweird.f32 %v507_v48 }
 0x195   : > { %508 = vrsqrt.f32 %v356_v49  ;;  %vm365_vm4 = vmor %vm363_vm3, %vm364_vm2  ;;  %vm373_vm6 = vweird.f32 %v356_v49 }
 0x196   : > { %v359_v51 = vmul.f32 %v507_v48, %v358_v50 }
 0x198   : > { %v360_v52 = vmul.f32 0.5, %v359_v51 }
 0x19a   : > { %v361_v53 = vsub.f32 1.5, %v360_v52 }
 0x19b   : > { %v509_v54 = vpop.eup %508 }
 0x19c   : > { %v368_v55 = vmul.f32 %v509_v54, %v356_v49  ;;  %v362_v56 = vmul.f32 %v507_v48, %v361_v53  ;;  %vm374_vm5 = vweird.f32 %v509_v54 }
 0x19d   : > { %vm375_vm7 = vmor %vm373_vm6, %vm374_vm5 }
 0x19e   : > { %v369_v57 = vmul.f32 %v509_v54, %v368_v55  ;;  %v366_v59 = vsel %vm365_vm4, %v507_v48, %v362_v56 }
 0x19f   : > { %v377_v60 = vmul.f32 %v366_v59, %v343_v32 }
 0x1a0   : > { %v370_v61 = vmul.f32 0.5, %v369_v57 }
 0x1a1   : > { %v391_v63 = vmul.f32 %v384_v58, %v377_v60 }
 0x1a2   : > { %v371_v0 = vsub.f32 1.5, %v370_v61 }
 0x1a3   : > { %v405_v1 = vadd.f32 %v398_v62, %v391_v63 }
 0x1a4   : > { %v372_v2 = vmul.f32 %v509_v54, %v371_v0 }
 0x1a5   : > { %407 = vst.msk [vmem:[%s271_s26] sm:$0xff] %vm334_vm1, %v405_v1 }
 0x1a6   : > { %v376_v3 = vsel %vm375_vm7, %v509_v54, %v372_v2 }
 0x1a7   : > { %v378_v4 = vmul.f32 %v376_v3, %v344_v38 }
 0x1a8   : > { %v403_v6 = vpop.permute.xlu1 %402 }
 0x1a9   : > { %v392_v7 = vmul.f32 %v389_v5, %v378_v4 }
 0x1ab   : > { %v406_v8 = vadd.f32 %v403_v6, %v392_v7 }
 0x1ad   : > { %408 = vst.msk [vmem:[%s271_s26 + $0x8] sm:$0xff] %vm334_vm1, %v406_v8 }
 0x1ae PF: > { %s16_s21 = sadd.s32 1, %s516_s21  }
 0x1af   : > { %p13_p4 = scmp.ge.s32.totalorder %s16_s21, 4  }
 0x1b1   :  { %15 = sbr.rel (!%p13_p4) target bundleno = 1 (0x1), region = 77 }

// kernel: residual_unet_forward.31
= control target key start
LH: loop header
LB: loop body
LE: loop exit
PB: predicated region body
PF: predicated region fallthrough
CT: control target
= control target key end

     0   :  { %s294_s9 = smov 0   ;;  %s323_s0 = inlined_call_operand.vmem [shape: f32[2,16,72], index: 0, kind: input, shape index: {}]   ;;  %s324_s1 = inlined_call_operand.vmem [shape: f32[32,16], index: 1, kind: input, shape index: {}]   ;;  %s325_s2 = inlined_call_operand.vmem [shape: f32[2,32,64], index: 2, kind: output, shape index: {}]  }
   0x1 LB: > { %s247_s10 = sadd.s32 4294967295, %s277_s9   ;;  %p251_p0 = scmp.ge.s32.totalorder %s277_s9, 1  ;;  %s277_s9 = sphi %s294_s9, %s12_s9  }
   0x2   : > { %p112_p1 = scmp.lt.s32.totalorder %s277_s9, 3 }
   0x4   : > { %p113_p2 = pnand %p251_p0, %p112_p1 }
   0x5   : > { %p134_p3 = scmp.lt.s32.totalorder (!%p113_p2), %s247_s10, 1 }
   0x6   : > { %116 = sbr.rel (%p113_p2) target bundleno = 160 (0xa0), region = 28 }
   0xb   : > { %s327_s10 = smov (!%p134_p3, %s247_s10), 1  ;;  %v149_v4 = vld [vmem:[%s324_s1] sm:$0xff]  ;;  %v150_v7 = vld [vmem:[%s324_s1 + $0x8] sm:$0xff]  ;;  %v151_v8 = vld [vmem:[%s324_s1 + $0x10] sm:$0xff]  ;;  %vm161_vm0 = vcmask 130048   ;;  %vm187_vm1 = vcmask 523264  }
   0xc   : > { %s260_s11 = sshll.u32 %s327_s10, 4  ;;  %v152_v9 = vld [vmem:[%s324_s1 + $0x18] sm:$0xff]  ;;  %v153_v11 = vpack.c.bf16 %v150_v7, %v149_v4  ;;  %s261_s23 = sshll.u32 %s327_s10, 5 }
   0xd   : > { %s138_s14 = scalar_lea.vmem %s323_s0, %s260_s11  ;;  %v154_v12 = vpack.c.bf16 %v152_v9, %v151_v8  ;;  %s143_s26 = scalar_lea.vmem %s325_s2, %s261_s23 }
   0xe   : > { %v145_v0 = vld [vmem:[%s138_s14] sm:$0xff]  ;;  %v146_v1 = vld [vmem:[%s138_s14 + $0x8] sm:$0xff] }
   0xf   : > { %v147_v2 = vpack.c.bf16 %v145_v0, %v145_v0  ;;  %v148_v3 = vpack.c.bf16 %v146_v1, %v146_v1 }
  0x11   : > { %v157_v5 = vunpack.c.l.b16 %v147_v2  ;;  %v158_v6 = vunpack.c.l.b16 %v148_v3 }
  0x13   : > { %v159_v10 = vpack.c.b16 %v158_v6, %v157_v5 }
  0x15   : > { %175 = vmatpush.bf16.msra.mxu0 %v159_v10  ;;  %262 = vmatpush.bf16.msra.mxu1 %v159_v10 }
  0x18   : > { %256 = vmatmul.msk.bf16.vlgmr.msra.gmra.mxu0 %vm161_vm0, %v153_v11  ;;  %257 = vmatmul.msk.bf16.vlgmr.msra.gmra.mxu1 %vm161_vm0, %v154_v12 }
  0x95   : > { %v177_v13 = vpop.f32.mrf.mxu0  ;;  %v182_v14 = vpop.f32.mrf.mxu1 }
  0x96   : > { %188 = vst.msk [vmem:[%s143_s26] sm:$0xff] %vm187_vm1, %v177_v13 }
  0x97   : > { %190 = vst.msk [vmem:[%s143_s26 + $0x10] sm:$0xff] %vm187_vm1, %v182_v14 }
  0x9d   : > { %v179_v15 = vpop.f32.mrf.mxu0  ;;  %v184_v16 = vpop.f32.mrf.mxu1 }
  0x9e   : > { %189 = vst.msk [vmem:[%s143_s26 + $0x8] sm:$0xff] %vm187_vm1, %v179_v15 }
  0x9f   : > { %191 = vst.msk [vmem:[%s143_s26 + $0x18] sm:$0xff] %vm187_vm1, %v184_v16 }
  0xa0 PF: > { %s12_s9 = sadd.s32 1, %s277_s9  }
  0xa1   : > { %p9_p4 = scmp.ge.s32.totalorder %s12_s9, 4  }
  0xa3   :  { %11 = sbr.rel (!%p9_p4) target bundleno = 1 (0x1), region = 58 }

// kernel: residual_unet_forward.28
= control target key start
LH: loop header
LB: loop body
LE: loop exit
PB: predicated region body
PF: predicated region fallthrough
CT: control target
= control target key end

     0   :  { %s1141_s24 = smov 0   ;;  %s1313_s0 = inlined_call_operand.vmem [shape: f32[2,16,110], index: 0, kind: input, shape index: {}]   ;;  %s1314_s1 = inlined_call_operand.vmem [shape: f32[2,16,110], index: 1, kind: input, shape index: {}]   ;;  %s1315_s2 = inlined_call_operand.vmem [shape: f32[144,16], index: 2, kind: input, shape index: {}]   ;;  %s1316_s3 = inlined_call_operand.vmem [shape: f32[144,16], index: 3, kind: input, shape index: {}]   ;;  %s1317_s4 = inlined_call_operand.vmem [shape: f32[16,1], index: 4, kind: input, shape index: {}]   ;;  %s1318_s5 = inlined_call_operand.vmem [shape: f32[16,1], index: 5, kind: input, shape index: {}]   ;;  %s1319_s6 = inlined_call_operand.vmem [shape: f32[1,80], index: 6, kind: input, shape index: {}]   ;;  %s1320_s7 = inlined_call_operand.vmem [shape: f32[2,16,80], index: 7, kind: output, shape index: {}]  }
   0x1 LB: > { %s1025_s25 = sadd.s32 4294967295, %s1090_s24   ;;  %p1029_p0 = scmp.ge.s32.totalorder %s1090_s24, 1  ;;  %s1090_s24 = sphi %s1141_s24, %s17_s24  }
   0x2   : > { %p247_p1 = scmp.lt.s32.totalorder %s1090_s24, 3 }
   0x4   : > { %p248_p2 = pnand %p1029_p0, %p247_p1 }
   0x5   : > { %p284_p3 = scmp.lt.s32.totalorder (!%p248_p2), %s1025_s25, 1  ;;  %s1092_s30 = smov (!%p248_p2), 118  }
   0x6   : > { %251 = sbr.rel (%p248_p2) target bundleno = 619 (0x26b), region = 48  ;;  %s1093_s8 = smov (!%p248_p2), 127  }
   0x7   : > { %s1094_s9 = smov (!%p248_p2), 116   ;;  %s1095_s13 = smov (!%p248_p2), 117  }
   0x8   : > { %s1096_s14 = smov (!%p248_p2), 126   ;;  %s1097_s15 = smov (!%p248_p2), 108  }
   0x9   : > { %s1098_s16 = smov (!%p248_p2), 107   ;;  %s1099_s17 = smov (!%p248_p2), 106  }
   0xb   : > { %s1322_s25 = smov (!%p284_p3, %s1025_s25), 1  ;;  %v304_v14 = vld [vmem:[%s1315_s2] sm:$0xff]  ;;  %v305_v15 = vld [vmem:[%s1315_s2 + $0x8] sm:$0xff]  ;;  %vm353_vm0 = vcmask 130048   ;;  %v314_v22 = vld [vmem:[%s1315_s2 + $0x50] sm:$0xff]  ;;  %vm875_vm1 = vcmask 654336  }
   0xc   : > { %s1149_s26 = sshll.u32 %s1322_s25, 4  ;;  %v322_v16 = vpack.c.bf16 %v304_v14, %v304_v14  ;;  %v323_v17 = vpack.c.bf16 %v305_v15, %v305_v15  ;;  %v315_v23 = vld [vmem:[%s1315_s2 + $0x58] sm:$0xff]  ;;  %v332_v24 = vpack.c.bf16 %v314_v22, %v314_v22  ;;  %v306_v29 = vld [vmem:[%s1315_s2 + $0x10] sm:$0xff]  ;;  %v587_v38 = vld [vmem:[%s1316_s3] sm:$0xff] }
   0xd   : > { %s288_s29 = scalar_lea.vmem %s1313_s0, %s1149_s26  ;;  %s293_s12 = scalar_lea.vmem %s1314_s1, %s1149_s26  ;;  %v333_v25 = vpack.c.bf16 %v315_v23, %v315_v23  ;;  %v307_v30 = vld [vmem:[%s1315_s2 + $0x18] sm:$0xff]  ;;  %v310_v32 = vld [vmem:[%s1315_s2 + $0x30] sm:$0xff]  ;;  %v324_v34 = vpack.c.bf16 %v306_v29, %v306_v29  ;;  %v588_v39 = vld [vmem:[%s1316_s3 + $0x8] sm:$0xff]  ;;  %v605_v40 = vpack.c.bf16 %v587_v38, %v587_v38 }
   0xe   : > { %v300_v0 = vld [vmem:[%s288_s29] sm:$0xff]  ;;  %v301_v1 = vld [vmem:[%s288_s29 + $0x8] sm:$0xff]  ;;  %v373_v18 = vunpack.c.l.b16 %v322_v16  ;;  %v374_v19 = vunpack.c.l.b16 %v323_v17  ;;  %v477_v26 = vunpack.c.l.b16 %v332_v24  ;;  %v311_v33 = vld [vmem:[%s1315_s2 + $0x38] sm:$0xff]  ;;  %v325_v35 = vpack.c.bf16 %v307_v30, %v307_v30  ;;  %s298_s18 = scalar_lea.vmem %s1320_s7, %s1149_s26 }
   0xf   : > { %v302_v2 = vpack.c.bf16 %v300_v0, %v300_v0  ;;  %v303_v3 = vpack.c.bf16 %v301_v1, %v301_v1  ;;  %v583_v7 = vld [vmem:[%s293_s12] sm:$0xff]  ;;  %v584_v8 = vld [vmem:[%s293_s12 + $0x8] sm:$0xff]  ;;  %v478_v27 = vunpack.c.l.b16 %v333_v25  ;;  %v328_v36 = vpack.c.bf16 %v310_v32, %v310_v32  ;;  %v318_v63 = vld [vmem:[%s1315_s2 + $0x70] sm:$0xff] }
  0x10   : > { %v585_v9 = vpack.c.bf16 %v583_v7, %v583_v7  ;;  %v586_v10 = vpack.c.bf16 %v584_v8, %v584_v8  ;;  %v375_v20 = vpack.c.b16 %v374_v19, %v373_v18  ;;  %v329_v37 = vpack.c.bf16 %v311_v33, %v311_v33  ;;  %v308_v49 = vld [vmem:[%s1315_s2 + $0x20] sm:$0xff]  ;;  %v309_v50 = vld [vmem:[%s1315_s2 + $0x28] sm:$0xff]  ;;  %v319_v0 = vld [vmem:[%s1315_s2 + $0x78] sm:$0xff] }
  0x11   : > { %v347_v4 = vunpack.c.l.b16 %v302_v2  ;;  %v348_v5 = vunpack.c.l.b16 %v303_v3  ;;  %v479_v28 = vpack.c.b16 %v478_v27, %v477_v26  ;;  %v606_v41 = vpack.c.bf16 %v588_v39, %v588_v39  ;;  %v312_v60 = vld [vmem:[%s1315_s2 + $0x40] sm:$0xff]  ;;  %v313_v61 = vld [vmem:[%s1315_s2 + $0x48] sm:$0xff] }
  0x12   : > { %v630_v11 = vunpack.c.l.b16 %v585_v9  ;;  %v631_v12 = vunpack.c.l.b16 %v586_v10  ;;  %v342_v42 = vunpack.c.l.b16 %v324_v34  ;;  %v343_v43 = vunpack.c.l.b16 %v325_v35  ;;  %v595_v8 = vld [vmem:[%s1316_s3 + $0x40] sm:$0xff]  ;;  %v596_v9 = vld [vmem:[%s1316_s3 + $0x48] sm:$0xff] }
  0x13   : > { %v349_v6 = vpack.c.b16 %v348_v5, %v347_v4  ;;  %v423_v44 = vunpack.c.l.b16 %v328_v36  ;;  %v424_v45 = vunpack.c.l.b16 %v329_v37  ;;  %v625_v47 = vunpack.c.l.b16 %v605_v40  ;;  %v316_v16 = vld [vmem:[%s1315_s2 + $0x60] sm:$0xff]  ;;  %v317_v17 = vld [vmem:[%s1315_s2 + $0x68] sm:$0xff] }
  0x14   : > { %v632_v13 = vpack.c.b16 %v631_v12, %v630_v11  ;;  %v626_v48 = vunpack.c.l.b16 %v606_v41  ;;  %v344_v54 = vpack.c.b16 %v343_v43, %v342_v42  ;;  %v326_v56 = vpack.c.bf16 %v308_v49, %v308_v49  ;;  %v320_v29 = vld [vmem:[%s1315_s2 + $0x80] sm:$0xff]  ;;  %v321_v30 = vld [vmem:[%s1315_s2 + $0x88] sm:$0xff] }
  0x15   : > { %426 = vrot.lane.b32.xlu1 %v349_v6, %s1092_s30  ;;  %350 = vrot.lane.b32.xlu0 %v349_v6, %s1093_s8  ;;  %v425_v55 = vpack.c.b16 %v424_v45, %v423_v44  ;;  %v327_v57 = vpack.c.bf16 %v309_v50, %v309_v50  ;;  %v330_v1 = vpack.c.bf16 %v312_v60, %v312_v60  ;;  %v592_v32 = vld [vmem:[%s1316_s3 + $0x28] sm:$0xff]  ;;  %v589_v44 = vld [vmem:[%s1316_s3 + $0x10] sm:$0xff] }
  0x16   : > { %480 = vrot.lane.b32.xlu2 %v349_v6, %s1094_s9  ;;  %387 = vmatpush.bf16.msra.mxu1 %v349_v6  ;;  %v627_v51 = vpack.c.b16 %v626_v48, %v625_v47  ;;  %v396_v58 = vunpack.c.l.b16 %v326_v56  ;;  %v331_v2 = vpack.c.bf16 %v313_v61, %v313_v61  ;;  %v337_v7 = vpack.c.bf16 %v319_v0, %v319_v0  ;;  %v590_v45 = vld [vmem:[%s1316_s3 + $0x18] sm:$0xff]  ;;  %v604_v47 = vld [vmem:[%s1316_s3 + $0x88] sm:$0xff] }
  0x17   : > { %v397_v59 = vunpack.c.l.b16 %v327_v57  ;;  %v613_v10 = vpack.c.bf16 %v595_v8, %v595_v8  ;;  %v614_v11 = vpack.c.bf16 %v596_v9, %v596_v9  ;;  %v450_v12 = vunpack.c.l.b16 %v330_v1  ;;  %v600_v0 = vld [vmem:[%s1316_s3 + $0x68] sm:$0xff] }
  0x18   : > { %v532_v15 = vunpack.c.l.b16 %v337_v7  ;;  %v335_v22 = vpack.c.bf16 %v317_v17, %v317_v17  ;;  %v338_v35 = vpack.c.bf16 %v320_v29, %v320_v29  ;;  %v339_v36 = vpack.c.bf16 %v321_v30, %v321_v30 }
  0x19   : > { %1037 = vmatmul.msk.bf16.vlgmr.msra.gmra.mxu1 %vm353_vm0, %v375_v20  ;;  %v398_v5 = vpack.c.b16 %v397_v59, %v396_v58  ;;  %v736_v18 = vunpack.c.l.b16 %v613_v10  ;;  %v737_v19 = vunpack.c.l.b16 %v614_v11  ;;  %v610_v39 = vpack.c.bf16 %v592_v32, %v592_v32  ;;  %v593_v59 = vld [vmem:[%s1316_s3 + $0x30] sm:$0xff] }
  0x1a   : > { %v558_v40 = vunpack.c.l.b16 %v338_v35  ;;  %v559_v41 = vunpack.c.l.b16 %v339_v36  ;;  %v607_v48 = vpack.c.bf16 %v589_v44, %v589_v44  ;;  %v608_v49 = vpack.c.bf16 %v590_v45, %v590_v45 }
  0x1b   : > { %v738_v20 = vpack.c.b16 %v737_v19, %v736_v18  ;;  %v683_v43 = vunpack.c.l.b16 %v610_v39 }
  0x1c   : > { %v560_v50 = vpack.c.b16 %v559_v41, %v558_v40  ;;  %v655_v57 = vunpack.c.l.b16 %v607_v48  ;;  %v656_v58 = vunpack.c.l.b16 %v608_v49 }
  0x1d   : > { %453 = vrot.lane.b32.xlu1 %v349_v6, %s1095_s13  ;;  %399 = vrot.lane.b32.xlu0 %v349_v6, %s1096_s14 }
  0x1e   : > { %507 = vrot.lane.b32.xlu2 %v349_v6, %s1097_s15  ;;  %v657_v1 = vpack.c.b16 %v656_v58, %v655_v57 }
  0x25   : > { %534 = vrot.lane.b32.xlu0 %v349_v6, %s1098_s16  ;;  %561 = vrot.lane.b32.xlu1 %v349_v6, %s1099_s17  ;;  %v336_v6 = vpack.c.bf16 %v318_v63, %v318_v63  ;;  %v599_v63 = vld [vmem:[%s1316_s3 + $0x60] sm:$0xff] }
  0x26   : > { %658 = vrot.lane.b32.xlu2 %v632_v13, %s1093_s8 }
  0x27   : > { %v531_v14 = vunpack.c.l.b16 %v336_v6 }
  0x29   : > { %v533_v26 = vpack.c.b16 %v532_v15, %v531_v14 }
  0x2d   : > { %685 = vrot.lane.b32.xlu0 %v632_v13, %s1096_s14  ;;  %712 = vrot.lane.b32.xlu1 %v632_v13, %s1092_s30 }
  0x2e   : > { %739 = vrot.lane.b32.xlu2 %v632_v13, %s1095_s13 }
  0x35   : > { %766 = vrot.lane.b32.xlu0 %v632_v13, %s1094_s9  ;;  %793 = vrot.lane.b32.xlu1 %v632_v13, %s1097_s15 }
  0x36   : > { %820 = vrot.lane.b32.xlu2 %v632_v13, %s1098_s16 }
  0x3d   : > { %847 = vrot.lane.b32.xlu0 %v632_v13, %s1099_s17 }
  0x70   : > { %v481_v21 = vpop.permute.xlu2 %480 }
  0x71   : > { %493 = vmatpush.bf16.msrb.mxu1 %v481_v21  ;;  %v334_v21 = vpack.c.bf16 %v316_v16, %v316_v16 }
  0x73   : > { %v504_v27 = vunpack.c.l.b16 %v334_v21  ;;  %v602_v21 = vld [vmem:[%s1316_s3 + $0x78] sm:$0xff] }
  0x74   : > { %1041 = vmatmul.msk.bf16.vlgmr.msrb.gmra.mxu1 %vm353_vm0, %v479_v28  ;;  %v505_v28 = vunpack.c.l.b16 %v335_v22 }
  0x75   : > { %644 = vmatpush.bf16.msra.mxu1 %v632_v13  ;;  %v451_v13 = vunpack.c.l.b16 %v331_v2  ;;  %v611_v2 = vpack.c.bf16 %v593_v59, %v593_v59 }
  0x76   : > { %v506_v33 = vpack.c.b16 %v505_v28, %v504_v27 }
  0x77   : > { %v452_v24 = vpack.c.b16 %v451_v13, %v450_v12  ;;  %v709_v8 = vunpack.c.l.b16 %v611_v2  ;;  %v597_v12 = vld [vmem:[%s1316_s3 + $0x50] sm:$0xff]  ;;  %v598_v13 = vld [vmem:[%s1316_s3 + $0x58] sm:$0xff] }
  0x78   : > { %v508_v31 = vpop.permute.xlu2 %507  ;;  %v615_v16 = vpack.c.bf16 %v597_v12, %v597_v12  ;;  %v616_v17 = vpack.c.bf16 %v598_v13, %v598_v13 }
  0x7a   : > { %v763_v18 = vunpack.c.l.b16 %v615_v16  ;;  %v764_v19 = vunpack.c.l.b16 %v616_v17 }
  0x7c   : > { %v765_v22 = vpack.c.b16 %v764_v19, %v763_v18 }
  0x80   : > { %v659_v46 = vpop.permute.xlu2 %658 }
  0x84   : > { %1045 = vmatmul.msk.bf16.vlgmr.msra.gmra.mxu1 %vm353_vm0, %v627_v51 }
  0x87   : > { %v427_v52 = vpop.permute.xlu1 %426  ;;  %v351_v53 = vpop.permute.xlu0 %350 }
  0x88   : > { %364 = vmatpush.bf16.msra.mxu0 %v351_v53  ;;  %439 = vmatpush.bf16.msra.mxu3 %v427_v52  ;;  %v740_v62 = vpop.permute.xlu2 %739 }
  0x89   : > { %752 = vmatpush.bf16.msrb.mxu1 %v740_v62  ;;  %v594_v62 = vld [vmem:[%s1316_s3 + $0x38] sm:$0xff] }
  0x8b   : > { %1036 = vmatmul.msk.bf16.vlgmr.msra.gmra.mxu0 %vm353_vm0, %v344_v54  ;;  %1039 = vmatmul.msk.bf16.vlgmr.msra.gmra.mxu3 %vm353_vm0, %v425_v55  ;;  %v622_v55 = vpack.c.bf16 %v604_v47, %v604_v47 }
  0x8d   : > { %v845_v61 = vunpack.c.l.b16 %v622_v55 }
  0x8f   : > { %v454_v3 = vpop.permute.xlu1 %453  ;;  %v400_v4 = vpop.permute.xlu0 %399 }
  0x90   : > { %412 = vmatpush.bf16.msra.mxu2 %v400_v4  ;;  %466 = vmatpush.bf16.msrb.mxu0 %v454_v3  ;;  %v821_v56 = vpop.permute.xlu2 %820  ;;  %v612_v3 = vpack.c.bf16 %v594_v62, %v594_v62  ;;  %v617_v4 = vpack.c.bf16 %v599_v63, %v599_v63 }
  0x92   : > { %v710_v9 = vunpack.c.l.b16 %v612_v3  ;;  %v790_v10 = vunpack.c.l.b16 %v617_v4 }
  0x93   : > { %1038 = vmatmul.msk.bf16.vlgmr.msra.gmra.mxu2 %vm353_vm0, %v398_v5  ;;  %v618_v5 = vpack.c.bf16 %v600_v0, %v600_v0 }
  0x94   : > { %520 = vmatpush.bf16.msrb.mxu2 %v508_v31  ;;  %1049 = vmatmul.msk.bf16.vlgmr.msrb.gmra.mxu1 %vm353_vm0, %v738_v20  ;;  %v591_v31 = vld [vmem:[%s1316_s3 + $0x20] sm:$0xff]  ;;  %v711_v14 = vpack.c.b16 %v710_v9, %v709_v8  ;;  %v601_v20 = vld [vmem:[%s1316_s3 + $0x70] sm:$0xff] }
  0x95   : > { %v609_v38 = vpack.c.bf16 %v591_v31, %v591_v31  ;;  %v791_v11 = vunpack.c.l.b16 %v618_v5 }
  0x96   : > { %v389_v28 = vpop.f32.mrf.mxu1 }
  0x97   : > { %v535_v23 = vpop.permute.xlu0 %534  ;;  %v562_v25 = vpop.permute.xlu1 %561  ;;  %v682_v42 = vunpack.c.l.b16 %v609_v38  ;;  %v792_v15 = vpack.c.b16 %v791_v11, %v790_v10 }
  0x98   : > { %671 = vmatpush.bf16.msra.mxu2 %v659_v46  ;;  %547 = vmatpush.bf16.msrb.mxu3 %v535_v23  ;;  %v603_v46 = vld [vmem:[%s1316_s3 + $0x80] sm:$0xff]  ;;  %v619_v23 = vpack.c.bf16 %v601_v20, %v601_v20 }
  0x99   : > { %574 = vmatpush.bf16.msra.mxu0 %v562_v25  ;;  %v684_v51 = vpack.c.b16 %v683_v43, %v682_v42  ;;  %v621_v54 = vpack.c.bf16 %v603_v46, %v603_v46 }
  0x9a   : > { %v817_v25 = vunpack.c.l.b16 %v619_v23 }
  0x9b   : > { %1040 = vmatmul.msk.bf16.vlgmr.msrb.gmra.mxu0 %vm353_vm0, %v452_v24  ;;  %1043 = vmatmul.msk.bf16.vlgmr.msrb.gmra.mxu3 %vm353_vm0, %v533_v26  ;;  %v844_v60 = vunpack.c.l.b16 %v621_v54  ;;  %v620_v24 = vpack.c.bf16 %v602_v21, %v602_v21 }
  0x9d   : > { %v846_v7 = vpack.c.b16 %v845_v61, %v844_v60  ;;  %v818_v26 = vunpack.c.l.b16 %v620_v24  ;;  %v1079_v24 = vld [vmem:[%s1319_s6] ss:$0 sm:$0xff] }
  0x9e   : > { %v391_v29 = vpop.f32.mrf.mxu1 }
  0x9f   : > { %v686_v34 = vpop.permute.xlu0 %685  ;;  %v713_v37 = vpop.permute.xlu1 %712  ;;  %v819_v27 = vpack.c.b16 %v818_v26, %v817_v25 }
  0xa0   : > { %698 = vmatpush.bf16.msra.mxu3 %v686_v34  ;;  %725 = vmatpush.bf16.msrb.mxu0 %v713_v37 }
  0xa3   : > { %1042 = vmatmul.msk.bf16.vlgmr.msrb.gmra.mxu2 %vm353_vm0, %v506_v33 }
  0xa7   : > { %v767_v52 = vpop.permute.xlu0 %766  ;;  %v794_v53 = vpop.permute.xlu1 %793 }
  0xa8   : > { %779 = vmatpush.bf16.msrb.mxu2 %v767_v52  ;;  %806 = vmatpush.bf16.msrb.mxu3 %v794_v53 }
  0xab   : > { %1044 = vmatmul.msk.bf16.vlgmr.msra.gmra.mxu0 %vm353_vm0, %v560_v50  ;;  %1047 = vmatmul.msk.bf16.vlgmr.msra.gmra.mxu3 %vm353_vm0, %v684_v51 }
  0xac   : > { %833 = vmatpush.bf16.msra.mxu0 %v821_v56 }
  0xaf   : > { %v848_v6 = vpop.permute.xlu0 %847 }
  0xb0   : > { %860 = vmatpush.bf16.msra.mxu1 %v848_v6 }
  0xb3   : > { %1046 = vmatmul.msk.bf16.vlgmr.msra.gmra.mxu2 %vm353_vm0, %v657_v1  ;;  %1053 = vmatmul.msk.bf16.vlgmr.msra.gmra.mxu1 %vm353_vm0, %v846_v7 }
  0xbb   : > { %1048 = vmatmul.msk.bf16.vlgmr.msrb.gmra.mxu0 %vm353_vm0, %v711_v14  ;;  %1051 = vmatmul.msk.bf16.vlgmr.msrb.gmra.mxu3 %vm353_vm0, %v792_v15 }
  0xc3   : > { %1050 = vmatmul.msk.bf16.vlgmr.msrb.gmra.mxu2 %vm353_vm0, %v765_v22 }
  0xcb   : > { %1052 = vmatmul.msk.bf16.vlgmr.msra.gmra.mxu0 %vm353_vm0, %v819_v27 }
  0xf1   : > { %v495_v32 = vpop.f32.mrf.mxu1 }
  0xf9   : > { %v497_v37 = vpop.f32.mrf.mxu1 }
 0x101   : > { %v646_v44 = vpop.f32.mrf.mxu1 }
 0x108   : > { %v366_v30 = vpop.f32.mrf.mxu0 }
 0x109   : > { %v390_v38 = vadd.f32 %v389_v28, %v366_v30  ;;  %v648_v54 = vpop.f32.mrf.mxu1 }
 0x10e   : > { %v441_v31 = vpop.f32.mrf.mxu3 }
 0x110   : > { %v368_v33 = vpop.f32.mrf.mxu0 }
 0x111   : > { %v392_v45 = vadd.f32 %v391_v29, %v368_v33  ;;  %v754_v0 = vpop.f32.mrf.mxu1 }
 0x116   : > { %v414_v34 = vpop.f32.mrf.mxu2  ;;  %v443_v35 = vpop.f32.mrf.mxu3 }
 0x117   : > { %v419_v39 = vadd.f32 %v414_v34, %v390_v38 }
 0x118   : > { %v468_v36 = vpop.f32.mrf.mxu0 }
 0x119   : > { %v446_v43 = vadd.f32 %v441_v31, %v419_v39  ;;  %v756_v10 = vpop.f32.mrf.mxu1  ;;  %v922_v39 = vld [vmem:[%s1317_s4] sm:$0xff] }
 0x11b   : > { %v473_v46 = vadd.f32 %v468_v36, %v446_v43 }
 0x11d   : > { %v500_v52 = vadd.f32 %v495_v32, %v473_v46 }
 0x11e   : > { %v416_v40 = vpop.f32.mrf.mxu2  ;;  %v549_v41 = vpop.f32.mrf.mxu3 }
 0x11f   : > { %v420_v47 = vadd.f32 %v416_v40, %v392_v45  ;;  %v1100_v40 = vmov 0  }
 0x120   : > { %v470_v42 = vpop.f32.mrf.mxu0  ;;  %1076 = vset.pattern.permute.xlu1 %v1100_v40  ;;  %1078 = vset.pattern.permute.xlu0 %v1100_v40 }
 0x121   : > { %v447_v51 = vadd.f32 %v443_v35, %v420_v47  ;;  %1077 = vset.pattern.permute.xlu2 %v1100_v40 }
 0x123   : > { %v474_v55 = vadd.f32 %v470_v42, %v447_v51 }
 0x125   : > { %v501_v59 = vadd.f32 %v497_v37, %v474_v55  ;;  %v923_v55 = vld [vmem:[%s1317_s4 + $0x8] sm:$0xff] }
 0x126   : > { %v522_v48 = vpop.f32.mrf.mxu2  ;;  %v551_v50 = vpop.f32.mrf.mxu3 }
 0x127   : > { %v527_v53 = vadd.f32 %v522_v48, %v500_v52 }
 0x128   : > { %v576_v49 = vpop.f32.mrf.mxu0 }
 0x129   : > { %v554_v57 = vadd.f32 %v549_v41, %v527_v53  ;;  %v937_v41 = vld [vmem:[%s1318_s5 + $0x8] sm:$0xff] }
 0x12b   : > { %v581_v61 = vadd.f32 %v576_v49, %v554_v57 }
 0x12d   : > { %v651_v2 = vadd.f32 %v646_v44, %v581_v61 }
 0x12e   : > { %v524_v56 = vpop.f32.mrf.mxu2  ;;  %v700_v60 = vpop.f32.mrf.mxu3 }
 0x12f   : > { %v528_v62 = vadd.f32 %v524_v56, %v501_v59 }
 0x130   : > { %v578_v58 = vpop.f32.mrf.mxu0  ;;  %v862_v22 = vpop.f32.mrf.mxu1 }
 0x131   : > { %v555_v1 = vadd.f32 %v551_v50, %v528_v62 }
 0x133   : > { %v582_v5 = vadd.f32 %v578_v58, %v555_v1 }
 0x135   : > { %v652_v9 = vadd.f32 %v648_v54, %v582_v5  ;;  %v936_v54 = vld [vmem:[%s1318_s5] sm:$0xff] }
 0x136   : > { %v673_v63 = vpop.f32.mrf.mxu2  ;;  %v702_v6 = vpop.f32.mrf.mxu3 }
 0x137   : > { %v678_v4 = vadd.f32 %v673_v63, %v651_v2 }
 0x138   : > { %v727_v3 = vpop.f32.mrf.mxu0  ;;  %v864_v35 = vpop.f32.mrf.mxu1 }
 0x139   : > { %v705_v7 = vadd.f32 %v700_v60, %v678_v4 }
 0x13b   : > { %v732_v12 = vadd.f32 %v727_v3, %v705_v7 }
 0x13d   : > { %v759_v15 = vadd.f32 %v754_v0, %v732_v12 }
 0x13e   : > { %v675_v8 = vpop.f32.mrf.mxu2  ;;  %v808_v16 = vpop.f32.mrf.mxu3 }
 0x13f   : > { %v679_v13 = vadd.f32 %v675_v8, %v652_v9 }
 0x140   : > { %v729_v11 = vpop.f32.mrf.mxu0 }
 0x141   : > { %v706_v14 = vadd.f32 %v702_v6, %v679_v13 }
 0x143   : > { %v733_v20 = vadd.f32 %v729_v11, %v706_v14 }
 0x145   : > { %v760_v26 = vadd.f32 %v756_v10, %v733_v20 }
 0x146   : > { %v781_v17 = vpop.f32.mrf.mxu2  ;;  %v810_v30 = vpop.f32.mrf.mxu3 }
 0x147   : > { %v786_v18 = vadd.f32 %v781_v17, %v759_v15 }
 0x148   : > { %v835_v19 = vpop.f32.mrf.mxu0 }
 0x149   : > { %v813_v21 = vadd.f32 %v808_v16, %v786_v18 }
 0x14b   : > { %v840_v23 = vadd.f32 %v835_v19, %v813_v21 }
 0x14d   : > { %v867_v25 = vadd.f32 %v862_v22, %v840_v23 }
 0x14e   : > { %v783_v27 = vpop.f32.mrf.mxu2 }
 0x14f   : > { %v787_v28 = vadd.f32 %v783_v27, %v760_v26  ;;  %v873_v29 = vmul.f32 %v1079_v24, %v867_v25 }
 0x150   : > { %v837_v33 = vpop.f32.mrf.mxu0 }
 0x151   : > { %v814_v31 = vadd.f32 %v810_v30, %v787_v28  ;;  %v876_v32 = vsel %vm875_vm1, %v873_v29, 0.0 }
 0x152   : > { %877 = vadd.xlane.f32.xlu1 %v876_v32 }
 0x153   : > { %v841_v34 = vadd.f32 %v837_v33, %v814_v31 }
 0x155   : > { %v868_v36 = vadd.f32 %v864_v35, %v841_v34 }
 0x157   : > { %v874_v37 = vmul.f32 %v1079_v24, %v868_v36 }
 0x159   : > { %v879_v38 = vsel %vm875_vm1, %v874_v37, 0.0 }
 0x15a   : > { %880 = vadd.xlane.f32.xlu2 %v879_v38 }
 0x16b   : > { %926 = vperm.xlu1 %1076, %v922_v39  }
 0x173   : > { %945 = vperm.xlu1 %1076, %v937_v41  }
 0x1c5   : > { %v878_v42 = vpop.xlane.xlu1 %877 }
 0x1c6   : > { %v882_v43 = vmul.f32 0.015625, %v878_v42 }
 0x1c8   : > { %v884_v44 = vsub.f32 %v867_v25, %v882_v43 }
 0x1ca   : > { %v886_v45 = vmul.f32 %v1079_v24, %v884_v44 }
 0x1cc   : > { %v888_v46 = vmul.f32 %v886_v45, %v886_v45 }
 0x1cd   : > { %v881_v47 = vpop.xlane.xlu2 %880 }
 0x1ce   : > { %v883_v48 = vmul.f32 0.015625, %v881_v47  ;;  %v890_v49 = vsel %vm875_vm1, %v888_v46, 0.0 }
 0x1cf   : > { %891 = vadd.xlane.f32.xlu0 %v890_v49 }
 0x1d0   : > { %v885_v50 = vsub.f32 %v868_v36, %v883_v48 }
 0x1d2   : > { %v887_v51 = vmul.f32 %v1079_v24, %v885_v50 }
 0x1d4   : > { %v889_v52 = vmul.f32 %v887_v51, %v887_v51 }
 0x1d6   : > { %v893_v53 = vsel %vm875_vm1, %v889_v52, 0.0 }
 0x1d7   : > { %894 = vadd.xlane.f32.xlu2 %v893_v53 }
 0x1dd   : > { %v927_v10 = vpop.permute.xlu1 %926 }
 0x1e3   : > { %940 = vperm.xlu0 %1078, %v936_v54  }
 0x1e5   : > { %v946_v22 = vpop.permute.xlu1 %945 }
 0x1ef   : > { %931 = vperm.xlu2 %1077, %v923_v55  }
 0x242   : > { %v892_v56 = vpop.xlane.xlu0 %891 }
 0x243   : > { %v896_v57 = vmul.f32 0.015625, %v892_v56 }
 0x245   : > { %v898_v58 = vadd.f32 1e-05, %v896_v57 }
 0x247   : > { %1080 = vrsqrt.f32 %v898_v58  ;;  %vm906_vm3 = vweird.f32 %v898_v58 }
 0x24a   : > { %v895_v59 = vpop.xlane.xlu2 %894 }
 0x24b   : > { %v897_v60 = vmul.f32 0.015625, %v895_v59 }
 0x24d   : > { %v1081_v61 = vpop.eup %1080  ;;  %v899_v62 = vadd.f32 1e-05, %v897_v60 }
 0x24e   : > { %v901_v63 = vmul.f32 %v1081_v61, %v898_v58  ;;  %vm907_vm2 = vweird.f32 %v1081_v61 }
 0x24f   : > { %1082 = vrsqrt.f32 %v899_v62  ;;  %vm908_vm4 = vmor %vm906_vm3, %vm907_vm2  ;;  %vm916_vm6 = vweird.f32 %v899_v62 }
 0x250   : > { %v902_v0 = vmul.f32 %v1081_v61, %v901_v63 }
 0x252   : > { %v903_v1 = vmul.f32 0.5, %v902_v0  ;;  %v932_v18 = vpop.permute.xlu2 %931 }
 0x254   : > { %v904_v2 = vsub.f32 1.5, %v903_v1 }
 0x255   : > { %v1083_v3 = vpop.eup %1082  ;;  %v941_v11 = vpop.permute.xlu0 %940 }
 0x256   : > { %v911_v4 = vmul.f32 %v1083_v3, %v899_v62  ;;  %v905_v5 = vmul.f32 %v1081_v61, %v904_v2  ;;  %vm917_vm5 = vweird.f32 %v1083_v3 }
 0x257   : > { %vm918_vm8 = vmor %vm916_vm6, %vm917_vm5 }
 0x258   : > { %v912_v6 = vmul.f32 %v1083_v3, %v911_v4  ;;  %v909_v7 = vsel %vm908_vm4, %v1081_v61, %v905_v5 }
 0x259   : > { %v920_v8 = vmul.f32 %v909_v7, %v884_v44 }
 0x25a   : > { %v913_v9 = vmul.f32 0.5, %v912_v6 }
 0x25b   : > { %v934_v12 = vmul.f32 %v927_v10, %v920_v8 }
 0x25c   : > { %v914_v13 = vsub.f32 1.5, %v913_v9 }
 0x25d   : > { %v948_v14 = vadd.f32 %v941_v11, %v934_v12 }
 0x25e   : > { %v915_v15 = vmul.f32 %v1083_v3, %v914_v13 }
 0x25f   : > { %vm950_vm7 = vcmp.ge.f32.partialorder %v948_v14, 0.0  ;;  %v952_v16 = vmul.f32 0.01, %v948_v14 }
 0x260   : > { %v919_v17 = vsel %vm918_vm8, %v1083_v3, %v915_v15 }
 0x261   : > { %v954_v19 = vsel %vm950_vm7, %v948_v14, %v952_v16  ;;  %v921_v20 = vmul.f32 %v919_v17, %v885_v50 }
 0x262   : > { %956 = vst.msk [vmem:[%s298_s18] sm:$0xff] %vm875_vm1, %v954_v19 }
 0x263   : > { %v935_v21 = vmul.f32 %v932_v18, %v921_v20 }
 0x265   : > { %v949_v23 = vadd.f32 %v946_v22, %v935_v21 }
 0x267   : > { %vm951_vm9 = vcmp.ge.f32.partialorder %v949_v23, 0.0  ;;  %v953_v24 = vmul.f32 0.01, %v949_v23 }
 0x269   : > { %v955_v25 = vsel %vm951_vm9, %v949_v23, %v953_v24 }
 0x26a   : > { %957 = vst.msk [vmem:[%s298_s18 + $0x8] sm:$0xff] %vm875_vm1, %v955_v25 }
 0x26b PF: > { %s17_s24 = sadd.s32 1, %s1090_s24  }
 0x26c   : > { %p14_p4 = scmp.ge.s32.totalorder %s17_s24, 4  }
 0x26e   :  { %16 = sbr.rel (!%p14_p4) target bundleno = 1 (0x1), region = 81 }

// kernel: residual_unet_forward.33
= control target key start
LH: loop header
LB: loop body
LE: loop exit
PB: predicated region body
PF: predicated region fallthrough
CT: control target
= control target key end

     0   :  { %s549_s21 = smov 0   ;;  %s585_s0 = inlined_call_operand.vmem [shape: f32[2,8,272], index: 0, kind: input, shape index: {}]   ;;  %s586_s1 = inlined_call_operand.vmem [shape: f32[2,8,272], index: 1, kind: input, shape index: {}]   ;;  %s587_s2 = inlined_call_operand.vmem [shape: f32[8,8], index: 2, kind: input, shape index: {}]   ;;  %s588_s3 = inlined_call_operand.vmem [shape: f32[8,8], index: 3, kind: input, shape index: {}]   ;;  %s589_s4 = inlined_call_operand.vmem [shape: f32[8,1], index: 4, kind: input, shape index: {}]   ;;  %s590_s5 = inlined_call_operand.vmem [shape: f32[8,1], index: 5, kind: input, shape index: {}]   ;;  %s591_s6 = inlined_call_operand.vmem [shape: f32[2,8,256], index: 6, kind: output, shape index: {}]  }
   0x1 LB: > { %s475_s22 = sadd.s32 4294967295, %s511_s21   ;;  %p479_p0 = scmp.ge.s32.totalorder %s511_s21, 1  ;;  %s511_s21 = sphi %s549_s21, %s16_s21  }
   0x2   : > { %p222_p1 = scmp.lt.s32.totalorder %s511_s21, 3 }
   0x4   : > { %p223_p2 = pnand %p479_p0, %p222_p1 }
   0x5   : > { %p257_p3 = scmp.lt.s32.totalorder (!%p223_p2), %s475_s22, 1 }
   0x6   : > { %226 = sbr.rel (%p223_p2) target bundleno = 433 (0x1b1), region = 44 }
   0xb   : > { %s593_s22 = smov (!%p257_p3, %s475_s22), 1  ;;  %vm292_vm0 = vcmask 1043456   ;;  %v281_v10 = vld [vmem:[%s588_s3] sm:$0xff]  ;;  %vm288_vm1 = vcmask 64512   ;;  %v513_v34 = vmov 0  }
   0xc   : > { %s491_s23 = smul.u32 24, %s593_s22  ;;  %v276_v13 = vld [vmem:[%s587_s2] sm:$0xff]  ;;  %v282_v18 = vpack.c.bf16 %v281_v10, %v281_v10  ;;  %501 = vset.pattern.permute.xlu1 %v513_v34  ;;  %502 = vset.pattern.permute.xlu0 %v513_v34  ;;  %s490_s14 = sshll.u32 %s593_s22, 4 }
   0xd   : > { %v277_v21 = vpack.c.bf16 %v276_v13, %v276_v13  ;;  %v390_v33 = vld [vmem:[%s589_s4] sm:$0xff]  ;;  %s271_s17 = scalar_lea.vmem %s591_s6, %s490_s14 }
   0xe   : > { %s266_s26 = scalar_lea.vmem %s586_s1, %s491_s23  ;;  %s261_s29 = scalar_lea.vmem %s585_s0, %s491_s23  ;;  %393 = vperm.xlu1 %501, %v390_v33   ;;  %v398_v35 = vld [vmem:[%s590_s5] sm:$0xff] }
   0xf   : > { %v278_v0 = vld [vmem:[%s266_s26] sm:$0xff]  ;;  %v279_v1 = vld [vmem:[%s266_s26 + $0x8] sm:$0xff] }
  0x10   : > { %v273_v2 = vld [vmem:[%s261_s29] sm:$0xff]  ;;  %v280_v3 = vpack.c.bf16 %v279_v1, %v278_v0  ;;  %v274_v4 = vld [vmem:[%s261_s29 + $0x8] sm:$0xff] }
  0x11   : > { %v275_v5 = vpack.c.bf16 %v274_v4, %v273_v2 }
  0x12   : > { %v284_v6 = vunpack.c.l.b16 %v280_v3  ;;  %v285_v7 = vunpack.c.h.b16 %v280_v3 }
  0x13   : > { %v326_v8 = vunpack.c.l.b16 %v275_v5  ;;  %v327_v9 = vunpack.c.h.b16 %v275_v5 }
  0x14   : > { %v286_v11 = vpack.c.b16 %v284_v6, %v284_v6  ;;  %v287_v12 = vpack.c.b16 %v285_v7, %v285_v7 }
  0x15   : > { %v328_v14 = vpack.c.b16 %v326_v8, %v326_v8  ;;  %v329_v15 = vpack.c.b16 %v327_v9, %v327_v9 }
  0x16   : > { %v294_v16 = vsel %vm292_vm0, %v286_v11, 0  ;;  %v297_v17 = vsel %vm292_vm0, %v287_v12, 0  ;;  %401 = vperm.xlu1 %501, %v398_v35  }
  0x17   : > { %306 = vmatpush.bf16.msra.mxu0 %v294_v16  ;;  %319 = vmatpush.bf16.msra.mxu1 %v297_v17  ;;  %v334_v19 = vsel %vm292_vm0, %v328_v14, 0  ;;  %v337_v20 = vsel %vm292_vm0, %v329_v15, 0 }
  0x18   : > { %346 = vmatpush.bf16.msra.mxu2 %v334_v19  ;;  %359 = vmatpush.bf16.msra.mxu3 %v337_v20 }
  0x1a   : > { %484 = vmatmul.msk.bf16.vlgmr.msra.gmra.mxu0 %vm288_vm1, %v282_v18  ;;  %485 = vmatmul.msk.bf16.vlgmr.msra.gmra.mxu1 %vm288_vm1, %v282_v18 }
  0x1b   : > { %486 = vmatmul.msk.bf16.vlgmr.msra.gmra.mxu2 %vm288_vm1, %v277_v21  ;;  %487 = vmatmul.msk.bf16.vlgmr.msra.gmra.mxu3 %vm288_vm1, %v277_v21 }
  0x80   : > { %v394_v50 = vpop.permute.xlu1 %393 }
  0x88   : > { %v402_v58 = vpop.permute.xlu1 %401 }
  0x97   : > { %v308_v22 = vpop.f32.mrf.mxu0  ;;  %v321_v23 = vpop.f32.mrf.mxu1 }
  0x9e   : > { %v348_v24 = vpop.f32.mrf.mxu2  ;;  %v361_v25 = vpop.f32.mrf.mxu3 }
  0x9f   : > { %v349_v26 = vadd.f32 %v348_v24, %v308_v22  ;;  %v362_v27 = vadd.f32 %v361_v25, %v321_v23  ;;  %v310_v28 = vpop.f32.mrf.mxu0  ;;  %v323_v29 = vpop.f32.mrf.mxu1 }
  0xa1   : > { %v365_v30 = vadd.f32 %v362_v27, %v349_v26 }
  0xa3   : > { %366 = vadd.xlane.f32.xlu0 %v365_v30 }
  0xa6   : > { %v350_v31 = vpop.f32.mrf.mxu2  ;;  %v363_v32 = vpop.f32.mrf.mxu3 }
 0x116   : > { %v367_v36 = vpop.xlane.xlu0 %366 }
 0x117   : > { %v368_v37 = vmul.f32 0.00390625, %v367_v36 }
 0x119   : > { %v369_v38 = vsub.f32 %v349_v26, %v368_v37  ;;  %v370_v39 = vsub.f32 %v362_v27, %v368_v37 }
 0x11b   : > { %v371_v40 = vmul.f32 %v369_v38, %v369_v38  ;;  %v372_v41 = vmul.f32 %v370_v39, %v370_v39 }
 0x11d   : > { %v373_v42 = vadd.f32 %v372_v41, %v371_v40 }
 0x11f   : > { %374 = vadd.xlane.f32.xlu0 %v373_v42 }
 0x192   : > { %v375_v43 = vpop.xlane.xlu0 %374 }
 0x193   : > { %v376_v44 = vmul.f32 0.00390625, %v375_v43 }
 0x195   : > { %v377_v45 = vadd.f32 1e-05, %v376_v44 }
 0x197   : > { %503 = vrsqrt.f32 %v377_v45  ;;  %vm384_vm3 = vweird.f32 %v377_v45 }
 0x19d   : > { %v504_v46 = vpop.eup %503 }
 0x19e   : > { %v379_v47 = vmul.f32 %v504_v46, %v377_v45  ;;  %vm385_vm2 = vweird.f32 %v504_v46 }
 0x19f   : > { %vm386_vm4 = vmor %vm384_vm3, %vm385_vm2 }
 0x1a0   : > { %v380_v48 = vmul.f32 %v504_v46, %v379_v47 }
 0x1a2   : > { %v381_v49 = vmul.f32 0.5, %v380_v48 }
 0x1a4   : > { %v382_v51 = vsub.f32 1.5, %v381_v49 }
 0x1a6   : > { %v383_v52 = vmul.f32 %v504_v46, %v382_v51 }
 0x1a8   : > { %v387_v53 = vsel %vm386_vm4, %v504_v46, %v383_v52 }
 0x1a9   : > { %v388_v54 = vmul.f32 %v387_v53, %v369_v38  ;;  %v389_v55 = vmul.f32 %v387_v53, %v370_v39 }
 0x1ab   : > { %v396_v56 = vmul.f32 %v394_v50, %v388_v54  ;;  %v397_v57 = vmul.f32 %v394_v50, %v389_v55 }
 0x1ad   : > { %v404_v59 = vadd.f32 %v402_v58, %v396_v56  ;;  %v405_v60 = vadd.f32 %v402_v58, %v397_v57 }
 0x1af   : > { %406 = vst [vmem:[%s271_s17] sm:$0xff] %v404_v59 }
 0x1b0   : > { %407 = vst [vmem:[%s271_s17 + $0x8] sm:$0xff] %v405_v60 }
 0x1b1 PF: > { %s16_s21 = sadd.s32 1, %s511_s21  }
 0x1b2   : > { %p13_p4 = scmp.ge.s32.totalorder %s16_s21, 4  }
 0x1b4   :  { %15 = sbr.rel (!%p13_p4) target bundleno = 1 (0x1), region = 77 }

// kernel: residual_unet_forward.35
= control target key start
LH: loop header
LB: loop body
LE: loop exit
PB: predicated region body
PF: predicated region fallthrough
CT: control target
= control target key end

     0   :  { %s340_s12 = smov 0   ;;  %s367_s0 = inlined_call_operand.vmem [shape: f32[2,8,272], index: 0, kind: input, shape index: {}]   ;;  %s368_s1 = inlined_call_operand.vmem [shape: f32[2,8], index: 1, kind: input, shape index: {}]   ;;  %s369_s2 = inlined_call_operand.vmem [shape: f32[2,1], index: 2, kind: input, shape index: {}]   ;;  %s370_s3 = inlined_call_operand.vmem [shape: f32[2,2,256], index: 3, kind: output, shape index: {}]  }
   0x1 LB: > { %s287_s13 = sadd.s32 4294967295, %s317_s12   ;;  %p291_p0 = scmp.ge.s32.totalorder %s317_s12, 1  ;;  %s317_s12 = sphi %s340_s12, %s13_s12  }
   0x2   : > { %p137_p1 = scmp.lt.s32.totalorder %s317_s12, 3 }
   0x4   : > { %p138_p2 = pnand %p291_p0, %p137_p1 }
   0x5   : > { %p161_p3 = scmp.lt.s32.totalorder (!%p138_p2), %s287_s13, 1 }
   0x6   : > { %141 = sbr.rel (%p138_p2) target bundleno = 160 (0xa0), region = 32 }
   0xb   : > { %v319_v0 = vmov 0   ;;  %v177_v1 = vld [vmem:[%s369_s2] sm:$0x3]  ;;  %s372_s13 = smov (!%p161_p3, %s287_s13), 1  ;;  %vm192_vm0 = vcmask 1043456   ;;  %vm188_vm1 = vcmask 64512  }
   0xc   : > { %310 = vset.pattern.permute.xlu0 %v319_v0  ;;  %s300_s16 = smul.u32 24, %s372_s13  ;;  %v175_v7 = vld [vmem:[%s368_s1] sm:$0x3]  ;;  %s299_s22 = sshll.u32 %s372_s13, 2  ;;  %vm228_vm2 = vcmask 1041408  }
   0xd   : > { %180 = vperm.xlu0 %310, %v177_v1   ;;  %v176_v12 = vpack.c.bf16 %v175_v7, %v175_v7  ;;  %s170_s25 = scalar_lea.vmem %s370_s3, %s299_s22 }
   0xe   : > { %s165_s19 = scalar_lea.vmem %s367_s0, %s300_s16 }
   0xf   : > { %v172_v2 = vld [vmem:[%s165_s19] sm:$0xff]  ;;  %v173_v3 = vld [vmem:[%s165_s19 + $0x8] sm:$0xff] }
  0x10   : > { %v174_v4 = vpack.c.bf16 %v173_v3, %v172_v2 }
  0x12   : > { %v184_v5 = vunpack.c.l.b16 %v174_v4  ;;  %v185_v6 = vunpack.c.h.b16 %v174_v4 }
  0x14   : > { %v186_v8 = vpack.c.b16 %v184_v5, %v184_v5  ;;  %v187_v9 = vpack.c.b16 %v185_v6, %v185_v6 }
  0x16   : > { %v194_v10 = vsel %vm192_vm0, %v186_v8, 0  ;;  %v197_v11 = vsel %vm192_vm0, %v187_v9, 0 }
  0x17   : > { %206 = vmatpush.bf16.msra.mxu0 %v194_v10  ;;  %219 = vmatpush.bf16.msra.mxu1 %v197_v11 }
  0x1a   : > { %295 = vmatmul.msk.bf16.vlgmr.msra.gmra.mxu0 %vm188_vm1, %v176_v12  ;;  %296 = vmatmul.msk.bf16.vlgmr.msra.gmra.mxu1 %vm188_vm1, %v176_v12 }
  0x7f   : > { %v181_v13 = vpop.permute.xlu0 %180 }
  0x97   : > { %v208_v14 = vpop.f32.mrf.mxu0  ;;  %v221_v15 = vpop.f32.mrf.mxu1 }
  0x98   : > { %v222_v16 = vadd.f32 %v221_v15, %v181_v13  ;;  %v209_v17 = vadd.f32 %v208_v14, %v181_v13 }
  0x9a   : > { %v227_v18 = vrot.slane %v222_v16, 6 }
  0x9c   : > { %v229_v19 = vsel %vm228_vm2, %v209_v17, %v227_v18 }
  0x9d   : > { %231 = vst [vmem:[%s170_s25] sm:$0xf] %v229_v19 }
  0x9f   : > { %v210_v20 = vpop.f32.mrf.mxu0  ;;  %v223_v21 = vpop.f32.mrf.mxu1 }
  0xa0 PF: > { %s13_s12 = sadd.s32 1, %s317_s12  }
  0xa1   : > { %p10_p4 = scmp.ge.s32.totalorder %s13_s12, 4  }
  0xa3   :  { %12 = sbr.rel (!%p10_p4) target bundleno = 1 (0x1), region = 62 }

// kernel: residual_unet_forward.32
= control target key start
LH: loop header
LB: loop body
LE: loop exit
PB: predicated region body
PF: predicated region fallthrough
CT: control target
= control target key end

     0   :  { %s1753_s24 = smov 0   ;;  %s2117_s0 = inlined_call_operand.vmem [shape: f32[2,8,342], index: 0, kind: input, shape index: {}]   ;;  %s2118_s1 = inlined_call_operand.vmem [shape: f32[2,8,342], index: 1, kind: input, shape index: {}]   ;;  %s2119_s2 = inlined_call_operand.vmem [shape: f32[72,8], index: 2, kind: input, shape index: {}]   ;;  %s2120_s3 = inlined_call_operand.vmem [shape: f32[72,8], index: 3, kind: input, shape index: {}]   ;;  %s2121_s4 = inlined_call_operand.vmem [shape: f32[8,1], index: 4, kind: input, shape index: {}]   ;;  %s2122_s5 = inlined_call_operand.vmem [shape: f32[8,1], index: 5, kind: input, shape index: {}]   ;;  %s2123_s6 = inlined_call_operand.vmem [shape: f32[1,288], index: 6, kind: input, shape index: {}]   ;;  %s2124_s7 = inlined_call_operand.vmem [shape: f32[2,8,288], index: 7, kind: output, shape index: {}]  }
   0x1 LB: > { %s1610_s25 = sadd.s32 4294967295, %s1702_s24   ;;  %p1614_p0 = scmp.ge.s32.totalorder %s1702_s24, 1  ;;  %s1702_s24 = sphi %s1753_s24, %s17_s24  }
   0x2   : > { %p247_p1 = scmp.lt.s32.totalorder %s1702_s24, 3 }
   0x4   : > { %p248_p2 = pnand %p1614_p0, %p247_p1 }
   0x5   : > { %p284_p3 = scmp.lt.s32.totalorder (!%p248_p2), %s1610_s25, 1  ;;  %s1704_s30 = smov (!%p248_p2), 127  }
   0x6   : > { %251 = sbr.rel (%p248_p2) target bundleno = 770 (0x302), region = 48  ;;  %s1705_s8 = smov (!%p248_p2), 126  }
   0x7   : > { %s1706_s9 = smov (!%p248_p2), 110   ;;  %s1707_s10 = smov (!%p248_p2), 109  }
   0x8   : > { %s1708_s11 = smov (!%p248_p2), 108   ;;  %s1709_s12 = smov (!%p248_p2), 92  }
   0x9   : > { %s1710_s16 = smov (!%p248_p2), 91   ;;  %s1711_s17 = smov (!%p248_p2), 90  }
   0xb   : > { %s2126_s25 = smov (!%p284_p3, %s1610_s25), 1  ;;  %vm344_vm0 = vcmask 1043456   ;;  %v305_v19 = vld [vmem:[%s2119_s2] sm:$0xff]  ;;  %vm340_vm1 = vcmask 64512   ;;  %vm450_vm2 = vcmask 1031168   ;;  %v307_v25 = vld [vmem:[%s2119_s2 + $0x10] sm:$0xff] }
   0xc   : > { %s1761_s26 = smul.u32 24, %s2126_s25  ;;  %v1839_v20 = vpack.c.bf16 %v305_v19, %v305_v19  ;;  %v1857_v28 = vpack.c.bf16 %v307_v25, %v307_v25  ;;  %v306_v33 = vld [vmem:[%s2119_s2 + $0x8] sm:$0xff]  ;;  %v308_v38 = vld [vmem:[%s2119_s2 + $0x18] sm:$0xff]  ;;  %vm337_vm3 = vcmask 1039360   ;;  %vm513_vm4 = vcmask 900096   ;;  %v311_v25 = vld [vmem:[%s2119_s2 + $0x30] sm:$0xff] }
   0xd   : > { %v315_v37 = vpack.c.bf16 %v306_v33, %v306_v33  ;;  %v1884_v39 = vpack.c.bf16 %v308_v38, %v308_v38  ;;  %vm576_vm5 = vcmask 891904   ;;  %vm639_vm6 = vcmask 883712  }
   0xe   : > { %s288_s29 = scalar_lea.vmem %s2117_s0, %s1761_s26  ;;  %s1805_s15 = scalar_lea.vmem %s2118_s1, %s1761_s26  ;;  %vm702_vm7 = vcmask 752640   ;;  %vm765_vm8 = vcmask 744448   ;;  %vm828_vm9 = vcmask 736256   ;;  %vm1478_vm10 = vcmask 261120  }
   0xf   : > { %v302_v0 = vld [vmem:[%s288_s29 + $0x10] sm:$0xff]  ;;  %v300_v1 = vld [vmem:[%s288_s29] sm:$0xff]  ;;  %v301_v2 = vld [vmem:[%s288_s29 + $0x8] sm:$0xff]  ;;  %s298_s20 = scalar_lea.vmem %s2124_s7, %s1761_s26 }
  0x10   : > { %v304_v3 = vpack.c.bf16 %v302_v0, %v302_v0  ;;  %v303_v4 = vpack.c.bf16 %v301_v2, %v300_v1  ;;  %v885_v11 = vld [vmem:[%s1805_s15] sm:$0xff]  ;;  %v886_v12 = vld [vmem:[%s1805_s15 + $0x8] sm:$0xff]  ;;  %v887_v26 = vld [vmem:[%s1805_s15 + $0x10] sm:$0xff] }
  0x11   : > { %v888_v13 = vpack.c.bf16 %v886_v12, %v885_v11  ;;  %v889_v27 = vpack.c.bf16 %v887_v26, %v887_v26  ;;  %v310_v2 = vld [vmem:[%s2119_s2 + $0x28] sm:$0xff] }
  0x12   : > { %v327_v5 = vunpack.c.l.b16 %v304_v3  ;;  %v325_v6 = vunpack.c.l.b16 %v303_v4  ;;  %v326_v7 = vunpack.c.h.b16 %v303_v4 }
  0x13   : > { %v911_v14 = vunpack.c.h.b16 %v888_v13  ;;  %v910_v15 = vunpack.c.l.b16 %v888_v13  ;;  %v912_v29 = vunpack.c.l.b16 %v889_v27 }
  0x14   : > { %v1767_v8 = vpack.c.b16 %v327_v5, %v327_v5  ;;  %v328_v9 = vpack.c.b16 %v325_v6, %v325_v6  ;;  %v1769_v10 = vpack.c.b16 %v326_v7, %v326_v7 }
  0x15   : > { %v1819_v16 = vpack.c.b16 %v911_v14, %v911_v14  ;;  %v1821_v17 = vpack.c.b16 %v910_v15, %v910_v15  ;;  %v1863_v30 = vpack.c.b16 %v912_v29, %v912_v29 }
  0x16   : > { %335 = vrot.lane.b32.xlu1 %v1767_v8, %s1704_s30  ;;  %331 = vrot.lane.b32.xlu0 %v328_v9, %s1704_s30  ;;  %v397_v18 = vsel %vm344_vm0, %v328_v9, 0  ;;  %v400_v42 = vsel %vm344_vm0, %v1769_v10, 0  ;;  %v403_v45 = vsel %vm344_vm0, %v1767_v8, 0 }
  0x17   : > { %446 = vrot.lane.b32.xlu2 %v1769_v10, %s1705_s8  ;;  %412 = vmatpush.bf16.msra.mxu3 %v397_v18 }
  0x1a   : > { %1621 = vmatmul.msk.bf16.vlgmr.msra.gmra.mxu3 %vm340_vm1, %v1839_v20 }
  0x1e   : > { %333 = vrot.lane.b32.xlu0 %v1769_v10, %s1704_s30  ;;  %444 = vrot.lane.b32.xlu1 %v328_v9, %s1705_s8 }
  0x1f   : > { %448 = vrot.lane.b32.xlu2 %v1767_v8, %s1705_s8 }
  0x26   : > { %509 = vrot.lane.b32.xlu1 %v1769_v10, %s1706_s9  ;;  %507 = vrot.lane.b32.xlu0 %v328_v9, %s1706_s9 }
  0x27   : > { %511 = vrot.lane.b32.xlu2 %v1767_v8, %s1706_s9 }
  0x2e   : > { %572 = vrot.lane.b32.xlu1 %v1769_v10, %s1707_s10  ;;  %570 = vrot.lane.b32.xlu0 %v328_v9, %s1707_s10 }
  0x2f   : > { %574 = vrot.lane.b32.xlu2 %v1767_v8, %s1707_s10 }
  0x36   : > { %635 = vrot.lane.b32.xlu1 %v1769_v10, %s1708_s11  ;;  %633 = vrot.lane.b32.xlu0 %v328_v9, %s1708_s11 }
  0x37   : > { %637 = vrot.lane.b32.xlu2 %v1767_v8, %s1708_s11 }
  0x3e   : > { %698 = vrot.lane.b32.xlu1 %v1769_v10, %s1709_s12  ;;  %696 = vrot.lane.b32.xlu0 %v328_v9, %s1709_s12 }
  0x3f   : > { %700 = vrot.lane.b32.xlu2 %v1767_v8, %s1709_s12 }
  0x46   : > { %761 = vrot.lane.b32.xlu1 %v1769_v10, %s1710_s16  ;;  %759 = vrot.lane.b32.xlu0 %v328_v9, %s1710_s16 }
  0x47   : > { %763 = vrot.lane.b32.xlu2 %v1767_v8, %s1710_s16 }
  0x4e   : > { %824 = vrot.lane.b32.xlu1 %v1769_v10, %s1711_s17  ;;  %822 = vrot.lane.b32.xlu0 %v328_v9, %s1711_s17 }
  0x4f   : > { %826 = vrot.lane.b32.xlu2 %v1767_v8, %s1711_s17  ;;  %v319_v8 = vpack.c.bf16 %v310_v2, %v310_v2 }
  0x56   : > { %972 = vrot.lane.b32.xlu1 %v1819_v16, %s1704_s30  ;;  %970 = vrot.lane.b32.xlu0 %v1821_v17, %s1704_s30 }
  0x57   : > { %974 = vrot.lane.b32.xlu2 %v1863_v30, %s1704_s30 }
  0x5e   : > { %1034 = vrot.lane.b32.xlu1 %v1819_v16, %s1705_s8  ;;  %1032 = vrot.lane.b32.xlu0 %v1821_v17, %s1705_s8 }
  0x5f   : > { %1036 = vrot.lane.b32.xlu2 %v1863_v30, %s1705_s8 }
  0x66   : > { %1096 = vrot.lane.b32.xlu1 %v1819_v16, %s1706_s9  ;;  %1094 = vrot.lane.b32.xlu0 %v1821_v17, %s1706_s9 }
  0x67   : > { %1098 = vrot.lane.b32.xlu2 %v1863_v30, %s1706_s9 }
  0x6e   : > { %1158 = vrot.lane.b32.xlu1 %v1819_v16, %s1707_s10  ;;  %1156 = vrot.lane.b32.xlu0 %v1821_v17, %s1707_s10 }
  0x6f   : > { %1160 = vrot.lane.b32.xlu2 %v1863_v30, %s1707_s10 }
  0x71   : > { %v447_v21 = vpop.permute.xlu2 %446 }
  0x76   : > { %1220 = vrot.lane.b32.xlu1 %v1819_v16, %s1708_s11  ;;  %1218 = vrot.lane.b32.xlu0 %v1821_v17, %s1708_s11 }
  0x77   : > { %1222 = vrot.lane.b32.xlu2 %v1863_v30, %s1708_s11 }
  0x79   : > { %v449_v22 = vpop.permute.xlu2 %448 }
  0x7a   : > { %v452_v23 = vsel %vm450_vm2, %v447_v21, %v449_v22  ;;  %v463_v50 = vsel %vm344_vm0, %v449_v22, 0  ;;  %v309_v22 = vld [vmem:[%s2119_s2 + $0x20] sm:$0xff] }
  0x7b   : > { %v460_v24 = vsel %vm344_vm0, %v452_v23, 0 }
  0x7c   : > { %485 = vmatpush.bf16.msrb.mxu3 %v460_v24  ;;  %v318_v24 = vpack.c.bf16 %v309_v22, %v309_v22 }
  0x7e   : > { %1282 = vrot.lane.b32.xlu1 %v1819_v16, %s1709_s12  ;;  %1280 = vrot.lane.b32.xlu0 %v1821_v17, %s1709_s12 }
  0x7f   : > { %1625 = vmatmul.msk.bf16.vlgmr.msrb.gmra.mxu3 %vm340_vm1, %v1857_v28  ;;  %1284 = vrot.lane.b32.xlu2 %v1863_v30, %s1709_s12 }
  0x81   : > { %v512_v31 = vpop.permute.xlu2 %511 }
  0x82   : > { %v526_v32 = vsel %vm344_vm0, %v512_v31, 0 }
  0x83   : > { %561 = vmatpush.bf16.msra.mxu3 %v526_v32 }
  0x86   : > { %1344 = vrot.lane.b32.xlu1 %v1819_v16, %s1710_s16  ;;  %1342 = vrot.lane.b32.xlu0 %v1821_v17, %s1710_s16 }
  0x87   : > { %1346 = vrot.lane.b32.xlu2 %v1863_v30, %s1710_s16 }
  0x88   : > { %v336_v34 = vpop.permute.xlu1 %335  ;;  %v332_v35 = vpop.permute.xlu0 %331 }
  0x89   : > { %v352_v36 = vsel %vm344_vm0, %v336_v34, 0  ;;  %v575_v51 = vpop.permute.xlu2 %574 }
  0x8a   : > { %387 = vmatpush.bf16.msra.mxu2 %v352_v36  ;;  %v589_v58 = vsel %vm344_vm0, %v575_v51, 0 }
  0x8d   : > { %1620 = vmatmul.msk.bf16.vlgmr.msra.gmra.mxu2 %vm340_vm1, %v315_v37 }
  0x8e   : > { %1406 = vrot.lane.b32.xlu1 %v1819_v16, %s1711_s17  ;;  %1404 = vrot.lane.b32.xlu0 %v1821_v17, %s1711_s17 }
  0x8f   : > { %1629 = vmatmul.msk.bf16.vlgmr.msra.gmra.mxu3 %vm340_vm1, %v1884_v39  ;;  %1408 = vrot.lane.b32.xlu2 %v1863_v30, %s1711_s17 }
  0x90   : > { %v334_v40 = vpop.permute.xlu0 %333  ;;  %v445_v41 = vpop.permute.xlu1 %444 }
  0x91   : > { %v338_v43 = vsel %vm337_vm3, %v332_v35, %v334_v40  ;;  %v339_v44 = vsel %vm337_vm3, %v334_v40, %v336_v34  ;;  %v451_v46 = vsel %vm450_vm2, %v445_v41, %v447_v21  ;;  %v638_v59 = vpop.permute.xlu2 %637  ;;  %v312_v35 = vld [vmem:[%s2119_s2 + $0x38] sm:$0xff]  ;;  %v920_v40 = vsel %vm344_vm0, %v1821_v17, 0  ;;  %v890_v17 = vld [vmem:[%s2120_s3] sm:$0xff] }
  0x92   : > { %v346_v47 = vsel %vm344_vm0, %v338_v43, 0  ;;  %v349_v48 = vsel %vm344_vm0, %v339_v44, 0  ;;  %v457_v49 = vsel %vm344_vm0, %v451_v46, 0  ;;  %v652_v21 = vsel %vm344_vm0, %v638_v59, 0 }
  0x93   : > { %361 = vmatpush.bf16.msra.mxu0 %v346_v47  ;;  %374 = vmatpush.bf16.msra.mxu1 %v349_v48  ;;  %v899_v48 = vpack.c.bf16 %v890_v17, %v890_v17 }
  0x94   : > { %472 = vmatpush.bf16.msrb.mxu2 %v457_v49 }
  0x96   : > { %1618 = vmatmul.msk.bf16.vlgmr.msra.gmra.mxu0 %vm340_vm1, %v315_v37  ;;  %1619 = vmatmul.msk.bf16.vlgmr.msra.gmra.mxu1 %vm340_vm1, %v315_v37  ;;  %v321_v37 = vpack.c.bf16 %v312_v35, %v312_v35 }
  0x97   : > { %425 = vmatpush.bf16.msrb.mxu0 %v400_v42  ;;  %438 = vmatpush.bf16.msrb.mxu1 %v403_v45 }
  0x98   : > { %v510_v52 = vpop.permute.xlu1 %509  ;;  %v508_v53 = vpop.permute.xlu0 %507 }
  0x99   : > { %v515_v54 = vsel %vm513_vm4, %v510_v52, %v512_v31  ;;  %v514_v55 = vsel %vm513_vm4, %v508_v53, %v510_v52  ;;  %v701_v3 = vpop.permute.xlu2 %700  ;;  %v923_v53 = vsel %vm344_vm0, %v1819_v16, 0 }
  0x9a   : > { %v523_v56 = vsel %vm344_vm0, %v515_v54, 0  ;;  %v520_v57 = vsel %vm344_vm0, %v514_v55, 0  ;;  %v715_v32 = vsel %vm344_vm0, %v701_v3, 0  ;;  %v926_v54 = vsel %vm344_vm0, %v1863_v30, 0  ;;  %v891_v30 = vld [vmem:[%s2120_s3 + $0x8] sm:$0xff] }
  0x9b   : > { %498 = vmatpush.bf16.msra.mxu0 %v463_v50  ;;  %535 = vmatpush.bf16.msra.mxu1 %v520_v57 }
  0x9c   : > { %548 = vmatpush.bf16.msra.mxu2 %v523_v56 }
  0x9d   : > { %1624 = vmatmul.msk.bf16.vlgmr.msrb.gmra.mxu2 %vm340_vm1, %v1857_v28 }
  0xa0   : > { %624 = vmatpush.bf16.msrb.mxu2 %v589_v58  ;;  %v573_v60 = vpop.permute.xlu1 %572  ;;  %v571_v61 = vpop.permute.xlu0 %570  ;;  %v313_v58 = vld [vmem:[%s2119_s2 + $0x40] sm:$0xff] }
  0xa1   : > { %v578_v62 = vsel %vm576_vm5, %v573_v60, %v575_v51  ;;  %v577_v63 = vsel %vm576_vm5, %v571_v61, %v573_v60  ;;  %v764_v9 = vpop.permute.xlu2 %763  ;;  %v322_v16 = vpack.c.bf16 %v313_v58, %v313_v58 }
  0xa2   : > { %v586_v0 = vsel %vm344_vm0, %v578_v62, 0  ;;  %v583_v1 = vsel %vm344_vm0, %v577_v63, 0  ;;  %v778_v15 = vsel %vm344_vm0, %v764_v9, 0  ;;  %v900_v62 = vpack.c.bf16 %v891_v30, %v891_v30 }
  0xa6   : > { %1622 = vmatmul.msk.bf16.vlgmr.msrb.gmra.mxu0 %vm340_vm1, %v1839_v20  ;;  %1623 = vmatmul.msk.bf16.vlgmr.msrb.gmra.mxu1 %vm340_vm1, %v1839_v20 }
  0xa7   : > { %598 = vmatpush.bf16.msrb.mxu0 %v583_v1  ;;  %611 = vmatpush.bf16.msrb.mxu1 %v586_v0 }
  0xa8   : > { %v636_v4 = vpop.permute.xlu1 %635  ;;  %v634_v5 = vpop.permute.xlu0 %633 }
  0xa9   : > { %v640_v6 = vsel %vm639_vm6, %v634_v5, %v636_v4  ;;  %v641_v12 = vsel %vm639_vm6, %v636_v4, %v638_v59  ;;  %v827_v34 = vpop.permute.xlu2 %826  ;;  %v414_v4 = vpop.f32.mrf.mxu3 }
  0xaa   : > { %v646_v7 = vsel %vm344_vm0, %v640_v6, 0  ;;  %v649_v20 = vsel %vm344_vm0, %v641_v12, 0  ;;  %v841_v36 = vsel %vm344_vm0, %v827_v34, 0  ;;  %v892_v6 = vld [vmem:[%s2120_s3 + $0x10] sm:$0xff] }
  0xab   : > { %661 = vmatpush.bf16.msrb.mxu3 %v646_v7 }
  0xad   : > { %1628 = vmatmul.msk.bf16.vlgmr.msra.gmra.mxu2 %vm340_vm1, %v1884_v39 }
  0xae   : > { %1633 = vmatmul.msk.bf16.vlgmr.msrb.gmra.mxu3 %vm340_vm1, %v319_v8 }
  0xb0   : > { %v699_v10 = vpop.permute.xlu1 %698  ;;  %v697_v11 = vpop.permute.xlu0 %696 }
  0xb1   : > { %v703_v13 = vsel %vm702_vm7, %v697_v11, %v699_v10  ;;  %v704_v14 = vsel %vm702_vm7, %v699_v10, %v701_v3  ;;  %v975_v50 = vpop.permute.xlu2 %974  ;;  %v901_v10 = vpack.c.bf16 %v892_v6, %v892_v6  ;;  %v416_v12 = vpop.f32.mrf.mxu3 }
  0xb2   : > { %v709_v18 = vsel %vm344_vm0, %v703_v13, 0  ;;  %v712_v19 = vsel %vm344_vm0, %v704_v14, 0  ;;  %v988_v2 = vsel %vm344_vm0, %v975_v50, 0 }
  0xb3   : > { %724 = vmatpush.bf16.msra.mxu2 %v709_v18  ;;  %737 = vmatpush.bf16.msra.mxu3 %v712_v19 }
  0xb6   : > { %1626 = vmatmul.msk.bf16.vlgmr.msra.gmra.mxu0 %vm340_vm1, %v1857_v28  ;;  %1627 = vmatmul.msk.bf16.vlgmr.msra.gmra.mxu1 %vm340_vm1, %v1884_v39  ;;  %v320_v28 = vpack.c.bf16 %v311_v25, %v311_v25 }
  0xb7   : > { %813 = vmatpush.bf16.msrb.mxu3 %v778_v15  ;;  %674 = vmatpush.bf16.msra.mxu0 %v649_v20 }
  0xb8   : > { %687 = vmatpush.bf16.msra.mxu1 %v652_v21  ;;  %v762_v23 = vpop.permute.xlu1 %761  ;;  %v760_v29 = vpop.permute.xlu0 %759 }
  0xb9   : > { %v767_v26 = vsel %vm765_vm8, %v762_v23, %v764_v9  ;;  %v766_v31 = vsel %vm765_vm8, %v760_v29, %v762_v23  ;;  %v1037_v55 = vpop.permute.xlu2 %1036 }
  0xba   : > { %v775_v27 = vsel %vm344_vm0, %v767_v26, 0  ;;  %v772_v33 = vsel %vm344_vm0, %v766_v31, 0  ;;  %v1050_v56 = vsel %vm344_vm0, %v1037_v55, 0 }
  0xbd   : > { %1632 = vmatmul.msk.bf16.vlgmr.msrb.gmra.mxu2 %vm340_vm1, %v318_v24 }
  0xbe   : > { %1637 = vmatmul.msk.bf16.vlgmr.msra.gmra.mxu3 %vm340_vm1, %v320_v28  ;;  %800 = vmatpush.bf16.msrb.mxu2 %v775_v27 }
  0xbf   : > { %935 = vmatpush.bf16.msra.mxu3 %v920_v40 }
  0xc0   : > { %v825_v38 = vpop.permute.xlu1 %824  ;;  %v823_v39 = vpop.permute.xlu0 %822 }
  0xc1   : > { %v830_v41 = vsel %vm828_vm9, %v825_v38, %v827_v34  ;;  %v829_v42 = vsel %vm828_vm9, %v823_v39, %v825_v38  ;;  %v1099_v5 = vpop.permute.xlu2 %1098 }
  0xc2   : > { %v838_v43 = vsel %vm344_vm0, %v830_v41, 0  ;;  %v835_v44 = vsel %vm344_vm0, %v829_v42, 0  ;;  %v1112_v7 = vsel %vm344_vm0, %v1099_v5, 0 }
  0xc6   : > { %1630 = vmatmul.msk.bf16.vlgmr.msrb.gmra.mxu0 %vm340_vm1, %v318_v24  ;;  %1631 = vmatmul.msk.bf16.vlgmr.msrb.gmra.mxu1 %vm340_vm1, %v318_v24  ;;  %v894_v24 = vld [vmem:[%s2120_s3 + $0x20] sm:$0xff] }
  0xc7   : > { %750 = vmatpush.bf16.msrb.mxu0 %v715_v32  ;;  %787 = vmatpush.bf16.msrb.mxu1 %v772_v33  ;;  %v2030_v26 = vpack.c.bf16 %v894_v24, %v894_v24 }
  0xc8   : > { %v973_v45 = vpop.permute.xlu1 %972  ;;  %v971_v46 = vpop.permute.xlu0 %970 }
  0xc9   : > { %v976_v47 = vsel %vm337_vm3, %v971_v46, %v973_v45  ;;  %v977_v51 = vsel %vm337_vm3, %v973_v45, %v975_v50  ;;  %v1161_v18 = vpop.permute.xlu2 %1160 }
  0xca   : > { %v982_v49 = vsel %vm344_vm0, %v976_v47, 0  ;;  %v985_v52 = vsel %vm344_vm0, %v977_v51, 0  ;;  %v1174_v39 = vsel %vm344_vm0, %v1161_v18, 0  ;;  %v895_v47 = vld [vmem:[%s2120_s3 + $0x28] sm:$0xff] }
  0xcd   : > { %1636 = vmatmul.msk.bf16.vlgmr.msra.gmra.mxu2 %vm340_vm1, %v320_v28 }
  0xce   : > { %1641 = vmatmul.msk.bf16.vlgmr.msrb.gmra.mxu3 %vm340_vm1, %v321_v37  ;;  %876 = vmatpush.bf16.msra.mxu2 %v841_v36 }
  0xcf   : > { %1010 = vmatpush.bf16.msrb.mxu3 %v985_v52  ;;  %v2052_v52 = vpack.c.bf16 %v895_v47, %v895_v47 }
  0xd0   : > { %v1035_v57 = vpop.permute.xlu1 %1034  ;;  %v1033_v60 = vpop.permute.xlu0 %1032 }
  0xd1   : > { %v1039_v59 = vsel %vm450_vm2, %v1035_v57, %v1037_v55  ;;  %v1038_v63 = vsel %vm450_vm2, %v1033_v60, %v1035_v57 }
  0xd2   : > { %v1047_v61 = vsel %vm344_vm0, %v1039_v59, 0  ;;  %v1044_v3 = vsel %vm344_vm0, %v1038_v63, 0 }
  0xd6   : > { %1634 = vmatmul.msk.bf16.vlgmr.msra.gmra.mxu0 %vm340_vm1, %v319_v8  ;;  %1635 = vmatmul.msk.bf16.vlgmr.msra.gmra.mxu1 %vm340_vm1, %v319_v8 }
  0xd7   : > { %850 = vmatpush.bf16.msra.mxu0 %v835_v44  ;;  %863 = vmatpush.bf16.msra.mxu1 %v838_v43  ;;  %v893_v44 = vld [vmem:[%s2120_s3 + $0x18] sm:$0xff] }
  0xd8   : > { %v1097_v0 = vpop.permute.xlu1 %1096  ;;  %v1095_v1 = vpop.permute.xlu0 %1094  ;;  %v902_v17 = vpack.c.bf16 %v893_v44, %v893_v44  ;;  %v897_v44 = vld [vmem:[%s2120_s3 + $0x38] sm:$0xff] }
  0xd9   : > { %v1101_v14 = vsel %vm513_vm4, %v1097_v0, %v1099_v5  ;;  %v1100_v15 = vsel %vm513_vm4, %v1095_v1, %v1097_v0 }
  0xda   : > { %v1109_v19 = vsel %vm344_vm0, %v1101_v14, 0  ;;  %v1106_v20 = vsel %vm344_vm0, %v1100_v15, 0 }
  0xdd   : > { %1640 = vmatmul.msk.bf16.vlgmr.msrb.gmra.mxu2 %vm340_vm1, %v321_v37 }
  0xde   : > { %1645 = vmatmul.msk.bf16.vlgmr.msra.gmra.mxu3 %vm340_vm1, %v899_v48  ;;  %997 = vmatpush.bf16.msrb.mxu2 %v982_v49 }
  0xdf   : > { %1085 = vmatpush.bf16.msra.mxu3 %v1050_v56 }
  0xe0   : > { %v1159_v8 = vpop.permute.xlu1 %1158  ;;  %v1157_v9 = vpop.permute.xlu0 %1156 }
  0xe1   : > { %v1162_v11 = vsel %vm576_vm5, %v1157_v9, %v1159_v8  ;;  %v1163_v34 = vsel %vm576_vm5, %v1159_v8, %v1161_v18 }
  0xe2   : > { %v1168_v13 = vsel %vm344_vm0, %v1162_v11, 0  ;;  %v1171_v38 = vsel %vm344_vm0, %v1163_v34, 0 }
  0xe6   : > { %1638 = vmatmul.msk.bf16.vlgmr.msrb.gmra.mxu0 %vm340_vm1, %v320_v28  ;;  %1639 = vmatmul.msk.bf16.vlgmr.msrb.gmra.mxu1 %vm340_vm1, %v321_v37  ;;  %v1223_v28 = vpop.permute.xlu2 %1222 }
  0xe7   : > { %948 = vmatpush.bf16.msrb.mxu0 %v923_v53  ;;  %961 = vmatpush.bf16.msrb.mxu1 %v926_v54  ;;  %v1236_v60 = vsel %vm344_vm0, %v1223_v28, 0 }
  0xe8   : > { %v1221_v22 = vpop.permute.xlu1 %1220  ;;  %v1219_v23 = vpop.permute.xlu0 %1218 }
  0xe9   : > { %v1224_v25 = vsel %vm639_vm6, %v1219_v23, %v1221_v22  ;;  %v1225_v29 = vsel %vm639_vm6, %v1221_v22, %v1223_v28 }
  0xea   : > { %v1230_v27 = vsel %vm344_vm0, %v1224_v25, 0  ;;  %v1233_v32 = vsel %vm344_vm0, %v1225_v29, 0  ;;  %v898_v25 = vld [vmem:[%s2120_s3 + $0x40] sm:$0xff] }
  0xeb   : > { %v907_v29 = vpack.c.bf16 %v898_v25, %v898_v25 }
  0xed   : > { %1644 = vmatmul.msk.bf16.vlgmr.msra.gmra.mxu2 %vm340_vm1, %v322_v16 }
  0xee   : > { %1649 = vmatmul.msk.bf16.vlgmr.msrb.gmra.mxu3 %vm340_vm1, %v900_v62  ;;  %1072 = vmatpush.bf16.msra.mxu2 %v1047_v61  ;;  %v1285_v40 = vpop.permute.xlu2 %1284 }
  0xef   : > { %1183 = vmatpush.bf16.msrb.mxu3 %v1168_v13  ;;  %v1298_v41 = vsel %vm344_vm0, %v1285_v40, 0 }
  0xf0   : > { %v1283_v42 = vpop.permute.xlu1 %1282 }
  0xf1   : > { %v1287_v46 = vsel %vm702_vm7, %v1283_v42, %v1285_v40 }
  0xf2   : > { %v1295_v51 = vsel %vm344_vm0, %v1287_v46, 0  ;;  %v906_v46 = vpack.c.bf16 %v897_v44, %v897_v44 }
  0xf6   : > { %1642 = vmatmul.msk.bf16.vlgmr.msra.gmra.mxu0 %vm340_vm1, %v322_v16  ;;  %1643 = vmatmul.msk.bf16.vlgmr.msra.gmra.mxu1 %vm340_vm1, %v322_v16  ;;  %v1347_v1 = vpop.permute.xlu2 %1346 }
  0xf7   : > { %1023 = vmatpush.bf16.msra.mxu0 %v988_v2  ;;  %1059 = vmatpush.bf16.msra.mxu1 %v1044_v3  ;;  %v896_v2 = vld [vmem:[%s2120_s3 + $0x30] sm:$0xff]  ;;  %v1360_v5 = vsel %vm344_vm0, %v1347_v1, 0 }
  0xf8   : > { %v1345_v57 = vpop.permute.xlu1 %1344  ;;  %v905_v6 = vpack.c.bf16 %v896_v2, %v896_v2 }
  0xf9   : > { %v1349_v13 = vsel %vm765_vm8, %v1345_v57, %v1347_v1 }
  0xfa   : > { %v1357_v22 = vsel %vm344_vm0, %v1349_v13, 0 }
  0xfd   : > { %1648 = vmatmul.msk.bf16.vlgmr.msrb.gmra.mxu2 %vm340_vm1, %v900_v62 }
  0xfe   : > { %1653 = vmatmul.msk.bf16.vlgmr.msra.gmra.mxu3 %vm340_vm1, %v901_v10  ;;  %1147 = vmatpush.bf16.msrb.mxu2 %v1112_v7 }
  0xff   : > { %1258 = vmatpush.bf16.msra.mxu3 %v1233_v32 }
 0x100   : > { %v1407_v7 = vpop.permute.xlu1 %1406 }
 0x102   : > { %v487_v21 = vpop.f32.mrf.mxu3 }
 0x106   : > { %1646 = vmatmul.msk.bf16.vlgmr.msrb.gmra.mxu0 %vm340_vm1, %v899_v48  ;;  %1647 = vmatmul.msk.bf16.vlgmr.msrb.gmra.mxu1 %vm340_vm1, %v899_v48  ;;  %v1281_v48 = vpop.permute.xlu0 %1280 }
 0x107   : > { %1121 = vmatpush.bf16.msrb.mxu0 %v1106_v20  ;;  %1134 = vmatpush.bf16.msrb.mxu1 %v1109_v19  ;;  %v1286_v56 = vsel %vm702_vm7, %v1281_v48, %v1283_v42 }
 0x108   : > { %v1292_v61 = vsel %vm344_vm0, %v1286_v56, 0 }
 0x10a   : > { %v489_v31 = vpop.f32.mrf.mxu3 }
 0x10d   : > { %1652 = vmatmul.msk.bf16.vlgmr.msra.gmra.mxu2 %vm340_vm1, %v901_v10 }
 0x10e   : > { %1657 = vmatmul.msk.bf16.vlgmr.msrb.gmra.mxu3 %vm340_vm1, %v2030_v26  ;;  %1245 = vmatpush.bf16.msra.mxu2 %v1230_v27 }
 0x10f   : > { %1333 = vmatpush.bf16.msrb.mxu3 %v1298_v41 }
 0x110   : > { %v389_v33 = vpop.f32.mrf.mxu2 }
 0x112   : > { %v563_v43 = vpop.f32.mrf.mxu3 }
 0x113   : > { %v363_v35 = vpop.f32.mrf.mxu0  ;;  %v376_v36 = vpop.f32.mrf.mxu1 }
 0x114   : > { %v415_v37 = vadd.f32 %v414_v4, %v363_v35 }
 0x116   : > { %1650 = vmatmul.msk.bf16.vlgmr.msra.gmra.mxu0 %vm340_vm1, %v900_v62  ;;  %1651 = vmatmul.msk.bf16.vlgmr.msra.gmra.mxu1 %vm340_vm1, %v901_v10  ;;  %v1343_v62 = vpop.permute.xlu0 %1342 }
 0x117   : > { %1196 = vmatpush.bf16.msra.mxu0 %v1171_v38  ;;  %1209 = vmatpush.bf16.msra.mxu1 %v1174_v39  ;;  %v1348_v14 = vsel %vm765_vm8, %v1343_v62, %v1345_v57 }
 0x118   : > { %v391_v45 = vpop.f32.mrf.mxu2  ;;  %v1354_v23 = vsel %vm344_vm0, %v1348_v14, 0 }
 0x11a   : > { %v565_v53 = vpop.f32.mrf.mxu3 }
 0x11b   : > { %v365_v49 = vpop.f32.mrf.mxu0  ;;  %v378_v50 = vpop.f32.mrf.mxu1 }
 0x11d   : > { %1656 = vmatmul.msk.bf16.vlgmr.msrb.gmra.mxu2 %vm340_vm1, %v902_v17 }
 0x11e   : > { %1661 = vmatmul.msk.bf16.vlgmr.msra.gmra.mxu3 %vm340_vm1, %v2052_v52  ;;  %1320 = vmatpush.bf16.msrb.mxu2 %v1295_v51  ;;  %v1405_v8 = vpop.permute.xlu0 %1404 }
 0x11f   : > { %v1410_v9 = vsel %vm828_vm9, %v1405_v8, %v1407_v7 }
 0x120   : > { %v474_v54 = vpop.f32.mrf.mxu2  ;;  %v1416_v10 = vsel %vm344_vm0, %v1410_v9, 0 }
 0x121   : > { %v504_v55 = vadd.f32 %v474_v54, %v415_v37  ;;  %1431 = vmatpush.bf16.msra.mxu3 %v1416_v10 }
 0x123   : > { %v427_v58 = vpop.f32.mrf.mxu0  ;;  %v440_v59 = vpop.f32.mrf.mxu1 }
 0x124   : > { %v428_v16 = vadd.f32 %v427_v58, %v376_v36  ;;  %v441_v30 = vadd.f32 %v440_v59, %v389_v33  ;;  %v1409_v33 = vpop.permute.xlu2 %1408 }
 0x125   : > { %v1422_v42 = vsel %vm344_vm0, %v1409_v33, 0 }
 0x126   : > { %v505_v63 = vadd.f32 %v487_v21, %v428_v16  ;;  %1654 = vmatmul.msk.bf16.vlgmr.msrb.gmra.mxu0 %vm340_vm1, %v902_v17  ;;  %1655 = vmatmul.msk.bf16.vlgmr.msrb.gmra.mxu1 %vm340_vm1, %v902_v17 }
 0x127   : > { %1271 = vmatpush.bf16.msrb.mxu0 %v1236_v60  ;;  %1307 = vmatpush.bf16.msrb.mxu1 %v1292_v61 }
 0x128   : > { %v476_v0 = vpop.f32.mrf.mxu2 }
 0x12b   : > { %v429_v3 = vpop.f32.mrf.mxu0  ;;  %v442_v4 = vpop.f32.mrf.mxu1 }
 0x12d   : > { %1660 = vmatmul.msk.bf16.vlgmr.msra.gmra.mxu2 %vm340_vm1, %v2052_v52 }
 0x12e   : > { %1665 = vmatmul.msk.bf16.vlgmr.msrb.gmra.mxu3 %vm340_vm1, %v905_v6  ;;  %1395 = vmatpush.bf16.msra.mxu2 %v1360_v5 }
 0x130   : > { %v550_v11 = vpop.f32.mrf.mxu2 }
 0x131   : > { %v568_v12 = vadd.f32 %v550_v11, %v505_v63  ;;  %v663_v15 = vpop.f32.mrf.mxu3 }
 0x133   : > { %v500_v18 = vpop.f32.mrf.mxu0  ;;  %v537_v19 = vpop.f32.mrf.mxu1 }
 0x134   : > { %v506_v20 = vadd.f32 %v500_v18, %v441_v30  ;;  %v567_v21 = vadd.f32 %v537_v19, %v504_v55 }
 0x136   : > { %v569_v24 = vadd.f32 %v563_v43, %v506_v20  ;;  %1658 = vmatmul.msk.bf16.vlgmr.msra.gmra.mxu0 %vm340_vm1, %v2030_v26  ;;  %1659 = vmatmul.msk.bf16.vlgmr.msra.gmra.mxu1 %vm340_vm1, %v2030_v26  ;;  %v1411_v26 = vsel %vm828_vm9, %v1407_v7, %v1409_v33 }
 0x137   : > { %1369 = vmatpush.bf16.msra.mxu0 %v1354_v23  ;;  %1382 = vmatpush.bf16.msra.mxu1 %v1357_v22  ;;  %v1419_v41 = vsel %vm344_vm0, %v1411_v26, 0 }
 0x138   : > { %v552_v27 = vpop.f32.mrf.mxu2 }
 0x139   : > { %v665_v28 = vpop.f32.mrf.mxu3 }
 0x13b   : > { %v502_v31 = vpop.f32.mrf.mxu0  ;;  %v539_v32 = vpop.f32.mrf.mxu1 }
 0x13d   : > { %1664 = vmatmul.msk.bf16.vlgmr.msrb.gmra.mxu2 %vm340_vm1, %v905_v6 }
 0x13e   : > { %1669 = vmatmul.msk.bf16.vlgmr.msra.gmra.mxu3 %vm340_vm1, %v907_v29 }
 0x140   : > { %v626_v34 = vpop.f32.mrf.mxu2 }
 0x141   : > { %v632_v35 = vadd.f32 %v626_v34, %v569_v24  ;;  %v739_v36 = vpop.f32.mrf.mxu3 }
 0x143   : > { %v600_v37 = vpop.f32.mrf.mxu0  ;;  %v613_v38 = vpop.f32.mrf.mxu1 }
 0x144   : > { %v630_v39 = vadd.f32 %v600_v37, %v567_v21  ;;  %v631_v40 = vadd.f32 %v613_v38, %v568_v12 }
 0x146   : > { %v693_v43 = vadd.f32 %v663_v15, %v630_v39  ;;  %1662 = vmatmul.msk.bf16.vlgmr.msrb.gmra.mxu0 %vm340_vm1, %v2052_v52  ;;  %1663 = vmatmul.msk.bf16.vlgmr.msrb.gmra.mxu1 %vm340_vm1, %v905_v6 }
 0x147   : > { %1444 = vmatpush.bf16.msrb.mxu0 %v1419_v41  ;;  %1457 = vmatpush.bf16.msrb.mxu1 %v1422_v42 }
 0x148   : > { %v628_v45 = vpop.f32.mrf.mxu2 }
 0x149   : > { %v741_v17 = vpop.f32.mrf.mxu3 }
 0x14b   : > { %v602_v47 = vpop.f32.mrf.mxu0  ;;  %v615_v48 = vpop.f32.mrf.mxu1 }
 0x14d   : > { %1668 = vmatmul.msk.bf16.vlgmr.msra.gmra.mxu2 %vm340_vm1, %v906_v46 }
 0x150   : > { %v726_v49 = vpop.f32.mrf.mxu2 }
 0x151   : > { %v756_v50 = vadd.f32 %v726_v49, %v693_v43  ;;  %v815_v51 = vpop.f32.mrf.mxu3 }
 0x153   : > { %v676_v53 = vpop.f32.mrf.mxu0  ;;  %v689_v52 = vpop.f32.mrf.mxu1 }
 0x154   : > { %v694_v54 = vadd.f32 %v676_v53, %v631_v40  ;;  %v695_v55 = vadd.f32 %v689_v52, %v632_v35 }
 0x156   : > { %v757_v56 = vadd.f32 %v739_v36, %v694_v54  ;;  %1666 = vmatmul.msk.bf16.vlgmr.msra.gmra.mxu0 %vm340_vm1, %v906_v46  ;;  %1667 = vmatmul.msk.bf16.vlgmr.msra.gmra.mxu1 %vm340_vm1, %v906_v46 }
 0x158   : > { %v728_v57 = vpop.f32.mrf.mxu2 }
 0x159   : > { %v817_v58 = vpop.f32.mrf.mxu3 }
 0x15b   : > { %v678_v59 = vpop.f32.mrf.mxu0  ;;  %v691_v16 = vpop.f32.mrf.mxu1 }
 0x160   : > { %v802_v30 = vpop.f32.mrf.mxu2 }
 0x161   : > { %v820_v60 = vadd.f32 %v802_v30, %v757_v56  ;;  %v937_v61 = vpop.f32.mrf.mxu3 }
 0x163   : > { %v752_v62 = vpop.f32.mrf.mxu0  ;;  %v789_v63 = vpop.f32.mrf.mxu1 }
 0x164   : > { %v758_v0 = vadd.f32 %v752_v62, %v695_v55  ;;  %v819_v1 = vadd.f32 %v789_v63, %v756_v50 }
 0x166   : > { %v821_v2 = vadd.f32 %v815_v51, %v758_v0  ;;  %1670 = vmatmul.msk.bf16.vlgmr.msrb.gmra.mxu0 %vm340_vm1, %v907_v29  ;;  %1671 = vmatmul.msk.bf16.vlgmr.msrb.gmra.mxu1 %vm340_vm1, %v907_v29 }
 0x168   : > { %v804_v3 = vpop.f32.mrf.mxu2 }
 0x169   : > { %v939_v4 = vpop.f32.mrf.mxu3 }
 0x16b   : > { %v754_v5 = vpop.f32.mrf.mxu0  ;;  %v791_v6 = vpop.f32.mrf.mxu1 }
 0x170   : > { %v878_v7 = vpop.f32.mrf.mxu2 }
 0x171   : > { %v884_v8 = vadd.f32 %v878_v7, %v821_v2  ;;  %v1012_v9 = vpop.f32.mrf.mxu3 }
 0x173   : > { %v852_v10 = vpop.f32.mrf.mxu0  ;;  %v865_v11 = vpop.f32.mrf.mxu1 }
 0x174   : > { %v882_v12 = vadd.f32 %v852_v10, %v819_v1  ;;  %v883_v13 = vadd.f32 %v865_v11, %v820_v60 }
 0x176   : > { %v967_v14 = vadd.f32 %v937_v61, %v882_v12 }
 0x178   : > { %v880_v15 = vpop.f32.mrf.mxu2 }
 0x179   : > { %v1014_v18 = vpop.f32.mrf.mxu3 }
 0x17b   : > { %v854_v19 = vpop.f32.mrf.mxu0  ;;  %v867_v20 = vpop.f32.mrf.mxu1 }
 0x180   : > { %v999_v21 = vpop.f32.mrf.mxu2 }
 0x181   : > { %v1029_v22 = vadd.f32 %v999_v21, %v967_v14  ;;  %v1087_v23 = vpop.f32.mrf.mxu3 }
 0x183   : > { %v950_v24 = vpop.f32.mrf.mxu0  ;;  %v963_v25 = vpop.f32.mrf.mxu1 }
 0x184   : > { %v968_v27 = vadd.f32 %v950_v24, %v883_v13  ;;  %v969_v28 = vadd.f32 %v963_v25, %v884_v8 }
 0x186   : > { %v1030_v29 = vadd.f32 %v1012_v9, %v968_v27 }
 0x188   : > { %v1001_v31 = vpop.f32.mrf.mxu2 }
 0x189   : > { %v1089_v32 = vpop.f32.mrf.mxu3 }
 0x18b   : > { %v952_v33 = vpop.f32.mrf.mxu0  ;;  %v965_v34 = vpop.f32.mrf.mxu1 }
 0x190   : > { %v1074_v35 = vpop.f32.mrf.mxu2 }
 0x191   : > { %v1092_v26 = vadd.f32 %v1074_v35, %v1030_v29  ;;  %v1185_v36 = vpop.f32.mrf.mxu3 }
 0x193   : > { %v1025_v37 = vpop.f32.mrf.mxu0  ;;  %v1061_v38 = vpop.f32.mrf.mxu1 }
 0x194   : > { %v1031_v39 = vadd.f32 %v1025_v37, %v969_v28  ;;  %v1091_v40 = vadd.f32 %v1061_v38, %v1029_v22  ;;  %v1466_v22 = vld [vmem:[%s2123_s6] sm:$0x7] }
 0x195   : > { %v1468_v25 = vperm.slane %v1466_v22, 0  ;;  %v1469_v27 = vperm.slane %v1466_v22, 1  ;;  %v1470_v32 = vperm.slane %v1466_v22, 2 }
 0x196   : > { %v1093_v41 = vadd.f32 %v1087_v23, %v1031_v39 }
 0x198   : > { %v1076_v42 = vpop.f32.mrf.mxu2 }
 0x199   : > { %v1187_v43 = vpop.f32.mrf.mxu3 }
 0x19b   : > { %v1027_v44 = vpop.f32.mrf.mxu0  ;;  %v1063_v45 = vpop.f32.mrf.mxu1 }
 0x19c   : > { %v1513_v44 = vld [vmem:[%s2121_s4] sm:$0xff]  ;;  %v1712_v45 = vmov 0  }
 0x19d   : > { %1692 = vset.pattern.permute.xlu2 %v1712_v45  ;;  %1693 = vset.pattern.permute.xlu0 %v1712_v45 }
 0x19e   : > { %1516 = vperm.xlu2 %1692, %v1513_v44  }
 0x1a0   : > { %v1149_v46 = vpop.f32.mrf.mxu2 }
 0x1a1   : > { %v1260_v17 = vpop.f32.mrf.mxu3  ;;  %v1155_v8 = vadd.f32 %v1149_v46, %v1093_v41  ;;  %v1522_v46 = vld [vmem:[%s2122_s5] sm:$0xff] }
 0x1a3   : > { %v1123_v47 = vpop.f32.mrf.mxu0  ;;  %v1136_v48 = vpop.f32.mrf.mxu1 }
 0x1a4   : > { %v1153_v49 = vadd.f32 %v1123_v47, %v1091_v40  ;;  %v1154_v9 = vadd.f32 %v1136_v48, %v1092_v26 }
 0x1a6   : > { %v1215_v50 = vadd.f32 %v1185_v36, %v1153_v49  ;;  %1525 = vperm.xlu2 %1692, %v1522_v46  }
 0x1a8   : > { %v1151_v51 = vpop.f32.mrf.mxu2 }
 0x1a9   : > { %v1262_v53 = vpop.f32.mrf.mxu3 }
 0x1ab   : > { %v1125_v52 = vpop.f32.mrf.mxu0  ;;  %v1138_v54 = vpop.f32.mrf.mxu1 }
 0x1b0   : > { %v1247_v55 = vpop.f32.mrf.mxu2 }
 0x1b1   : > { %v1335_v56 = vpop.f32.mrf.mxu3  ;;  %v1277_v11 = vadd.f32 %v1247_v55, %v1215_v50 }
 0x1b3   : > { %v1198_v57 = vpop.f32.mrf.mxu0  ;;  %v1211_v58 = vpop.f32.mrf.mxu1 }
 0x1b4   : > { %v1216_v12 = vadd.f32 %v1198_v57, %v1154_v9  ;;  %v1217_v13 = vadd.f32 %v1211_v58, %v1155_v8 }
 0x1b6   : > { %v1278_v20 = vadd.f32 %v1260_v17, %v1216_v12 }
 0x1b8   : > { %v1249_v59 = vpop.f32.mrf.mxu2 }
 0x1b9   : > { %v1337_v16 = vpop.f32.mrf.mxu3 }
 0x1bb   : > { %v1200_v30 = vpop.f32.mrf.mxu0  ;;  %v1213_v60 = vpop.f32.mrf.mxu1 }
 0x1c0   : > { %v1322_v61 = vpop.f32.mrf.mxu2 }
 0x1c1   : > { %v1433_v62 = vpop.f32.mrf.mxu3  ;;  %v1340_v23 = vadd.f32 %v1322_v61, %v1278_v20 }
 0x1c3   : > { %v1273_v63 = vpop.f32.mrf.mxu0  ;;  %v1309_v0 = vpop.f32.mrf.mxu1 }
 0x1c4   : > { %v1279_v18 = vadd.f32 %v1273_v63, %v1217_v13  ;;  %v1339_v19 = vadd.f32 %v1309_v0, %v1277_v11 }
 0x1c6   : > { %v1341_v24 = vadd.f32 %v1335_v56, %v1279_v18 }
 0x1c8   : > { %v1324_v1 = vpop.f32.mrf.mxu2 }
 0x1c9   : > { %v1435_v2 = vpop.f32.mrf.mxu3 }
 0x1cb   : > { %v1275_v3 = vpop.f32.mrf.mxu0  ;;  %v1311_v4 = vpop.f32.mrf.mxu1 }
 0x1d0   : > { %v1397_v5 = vpop.f32.mrf.mxu2 }
 0x1d1   : > { %v1403_v28 = vadd.f32 %v1397_v5, %v1341_v24 }
 0x1d3   : > { %v1371_v6 = vpop.f32.mrf.mxu0  ;;  %v1384_v7 = vpop.f32.mrf.mxu1 }
 0x1d4   : > { %v1401_v21 = vadd.f32 %v1371_v6, %v1339_v19  ;;  %v1402_v29 = vadd.f32 %v1384_v7, %v1340_v23 }
 0x1d6   : > { %v1463_v31 = vadd.f32 %v1433_v62, %v1401_v21 }
 0x1d8   : > { %v1399_v10 = vpop.f32.mrf.mxu2  ;;  %v1474_v36 = vmul.f32 %v1468_v25, %v1463_v31 }
 0x1db   : > { %v1373_v14 = vpop.f32.mrf.mxu0  ;;  %v1386_v15 = vpop.f32.mrf.mxu1 }
 0x1e3   : > { %v1446_v33 = vpop.f32.mrf.mxu0  ;;  %v1459_v34 = vpop.f32.mrf.mxu1 }
 0x1e4   : > { %v1464_v35 = vadd.f32 %v1446_v33, %v1402_v29  ;;  %v1465_v26 = vadd.f32 %v1459_v34, %v1403_v28 }
 0x1e6   : > { %v1475_v37 = vmul.f32 %v1469_v27, %v1464_v35  ;;  %v1476_v38 = vmul.f32 %v1470_v32, %v1465_v26 }
 0x1e8   : > { %v1477_v39 = vadd.f32 %v1475_v37, %v1474_v36  ;;  %v1479_v40 = vsel %vm1478_vm10, %v1476_v38, 0.0 }
 0x1ea   : > { %v1480_v41 = vadd.f32 %v1479_v40, %v1477_v39 }
 0x1eb   : > { %v1448_v42 = vpop.f32.mrf.mxu0  ;;  %v1461_v43 = vpop.f32.mrf.mxu1 }
 0x1ec   : > { %1481 = vadd.xlane.f32.xlu0 %v1480_v41 }
 0x1f8   : > { %v1517_v1 = vpop.permute.xlu2 %1516 }
 0x200   : > { %v1526_v11 = vpop.permute.xlu2 %1525 }
 0x25f   : > { %v1482_v17 = vpop.xlane.xlu0 %1481 }
 0x260   : > { %v1483_v47 = vmul.f32 0.00390625, %v1482_v17 }
 0x262   : > { %v1484_v48 = vsub.f32 %v1463_v31, %v1483_v47  ;;  %v1485_v49 = vsub.f32 %v1464_v35, %v1483_v47  ;;  %v1486_v50 = vsub.f32 %v1465_v26, %v1483_v47 }
 0x264   : > { %v1487_v51 = vmul.f32 %v1484_v48, %v1468_v25  ;;  %v1488_v53 = vmul.f32 %v1485_v49, %v1469_v27  ;;  %v1489_v52 = vmul.f32 %v1486_v50, %v1470_v32 }
 0x266   : > { %v1490_v54 = vmul.f32 %v1487_v51, %v1487_v51  ;;  %v1491_v55 = vmul.f32 %v1488_v53, %v1488_v53  ;;  %v1492_v56 = vmul.f32 %v1489_v52, %v1489_v52 }
 0x268   : > { %v1493_v57 = vadd.f32 %v1491_v55, %v1490_v54  ;;  %v1494_v58 = vsel %vm1478_vm10, %v1492_v56, 0.0 }
 0x26a   : > { %v1495_v59 = vadd.f32 %v1494_v58, %v1493_v57 }
 0x26c   : > { %1496 = vadd.xlane.f32.xlu1 %v1495_v59 }
 0x2df   : > { %v1497_v16 = vpop.xlane.xlu1 %1496 }
 0x2e0   : > { %v1498_v30 = vmul.f32 0.00390625, %v1497_v16 }
 0x2e2   : > { %v1499_v60 = vadd.f32 1e-05, %v1498_v30 }
 0x2e4   : > { %1694 = vrsqrt.f32 %v1499_v60  ;;  %vm1506_vm12 = vweird.f32 %v1499_v60 }
 0x2ea   : > { %v1695_v61 = vpop.eup %1694 }
 0x2eb   : > { %v1501_v62 = vmul.f32 %v1695_v61, %v1499_v60  ;;  %vm1507_vm11 = vweird.f32 %v1695_v61 }
 0x2ec   : > { %vm1508_vm13 = vmor %vm1506_vm12, %vm1507_vm11 }
 0x2ed   : > { %v1502_v63 = vmul.f32 %v1695_v61, %v1501_v62 }
 0x2ef   : > { %v1503_v0 = vmul.f32 0.5, %v1502_v63 }
 0x2f1   : > { %v1504_v2 = vsub.f32 1.5, %v1503_v0 }
 0x2f3   : > { %v1505_v3 = vmul.f32 %v1695_v61, %v1504_v2 }
 0x2f5   : > { %v1509_v4 = vsel %vm1508_vm13, %v1695_v61, %v1505_v3 }
 0x2f6   : > { %v1510_v5 = vmul.f32 %v1509_v4, %v1484_v48  ;;  %v1511_v6 = vmul.f32 %v1509_v4, %v1485_v49  ;;  %v1512_v7 = vmul.f32 %v1509_v4, %v1486_v50 }
 0x2f8   : > { %v1519_v8 = vmul.f32 %v1517_v1, %v1510_v5  ;;  %v1520_v9 = vmul.f32 %v1517_v1, %v1511_v6  ;;  %v1521_v10 = vmul.f32 %v1517_v1, %v1512_v7 }
 0x2fa   : > { %v1528_v12 = vadd.f32 %v1526_v11, %v1519_v8  ;;  %v1529_v13 = vadd.f32 %v1526_v11, %v1520_v9  ;;  %v1530_v14 = vadd.f32 %v1526_v11, %v1521_v10 }
 0x2fc   : > { %vm1531_vm14 = vcmp.ge.f32.partialorder %v1528_v12, 0.0  ;;  %vm1532_vm15 = vcmp.ge.f32.partialorder %v1529_v13, 0.0  ;;  %vm1533_vm0 = vcmp.ge.f32.partialorder %v1530_v14, 0.0  ;;  %v1534_v15 = vmul.f32 0.01, %v1528_v12 }
 0x2fd   : > { %v1535_v18 = vmul.f32 0.01, %v1529_v13  ;;  %v1536_v19 = vmul.f32 0.01, %v1530_v14 }
 0x2fe   : > { %v1537_v20 = vsel %vm1531_vm14, %v1528_v12, %v1534_v15 }
 0x2ff   : > { %v1538_v21 = vsel %vm1532_vm15, %v1529_v13, %v1535_v18  ;;  %v1539_v22 = vsel %vm1533_vm0, %v1530_v14, %v1536_v19  ;;  %1540 = vst [vmem:[%s298_s20] sm:$0xff] %v1537_v20 }
 0x300   : > { %1541 = vst [vmem:[%s298_s20 + $0x8] sm:$0xff] %v1538_v21 }
 0x301   : > { %1542 = vst.msk [vmem:[%s298_s20 + $0x10] sm:$0xff] %vm1478_vm10, %v1539_v22 }
 0x302 PF: > { %s17_s24 = sadd.s32 1, %s1702_s24  }
 0x303   : > { %p14_p4 = scmp.ge.s32.totalorder %s17_s24, 4  }
 0x305   :  { %16 = sbr.rel (!%p14_p4) target bundleno = 1 (0x1), region = 81 }

</bundles_post_ra>
